<compile_context>
chip_gen: v6e
topology: v6e:2x2x1
jax: 0.10.0
libtpu: 0.0.40
codegen_flags: <defaults>
</compile_context>

<pallas_src>
import functools

import jax
import jax.numpy as jnp
import numpy as np
from jax.experimental import pallas as pl
from jax.experimental.pallas import tpu as pltpu

NUM_KERNEL = 64
SIGMA = 0.2
BN_EPS = 1e-5
K_AUG = 8  # augmented contraction dim, padded to a sublane multiple


def _round_up(x, m):
    return (x + m - 1) // m * m


def _choose_tile(b, n):
    """Pick (tn, nt) so that padding waste is < 128 lanes and the grid has >=2 steps."""
    n128 = _round_up(n, 128)
    if n128 <= 1024:
        tn = n128                                   # one tile per batch, waste < 128
    else:
        tn, best_waste = None, None
        for cand in (1024, 512, 256):               # largest tile wins ties
            waste = _round_up(n, cand) - n128
            if best_waste is None or waste < best_waste:
                tn, best_waste = cand, waste
    nt = _round_up(n, tn) // tn
    if b * nt < 2 and n128 >= 256:
        # v7x has 2 TensorCores: make sure the (b, nt) grid has >= 2 steps.
        tn = _round_up(n128 // 2, 128)
        nt = _round_up(n, tn) // tn
    return tn, nt


# ---------------------------------------------------------------------------
# Pallas kernels
# ---------------------------------------------------------------------------
def fkc_kernel(x_ref, w_ref, fea_ref, stat_ref, *, tn, m, n_valid, use_bf16_exp):
    """Per (batch, N-tile) block: kernel-correlation feature + fused BN partials.

    x_ref   : (K_AUG, 4*tn)  augmented face points; point p lives in lanes [p*tn,(p+1)*tn)
    w_ref   : (4*m, K_AUG)   point-major augmented kernel points (row = l*m + k)
    fea_ref : (m, tn)        fea[k,i] = 1/16 * sum_{p,l} exp(-||x_ip - w_kl||^2/(2 s^2))
    stat_ref: (1, 2*m)       lane-dense per-channel [sum | sum of squares] over valid lanes
    """
    x = x_ref[...]                                                  # (K_AUG, 4*tn)
    acc = jnp.zeros((m, tn), jnp.float32)
    # Loop over the 4 kernel points: keeps dot -> exp -> slab-sum fused per
    # 64-row chunk (no (MK, 4*tn) intermediate materialized between stages).
    for l in range(4):
        w_l = w_ref[l * m:(l + 1) * m, :]                           # (m, K_AUG)
        # Augmented MXU matmul: output IS the exponent -(|x-w|^2)/(2 sigma^2).
        expo = jnp.dot(w_l, x, preferred_element_type=jnp.float32)  # (m, 4*tn)
        if use_bf16_exp:
            # v6e/v7x: EUP bf16 exp ~2x; NOT bit-accurate vs the f32 reference.
            e = jnp.exp(expo.astype(jnp.bfloat16)).astype(jnp.float32)
        else:
            e = jnp.exp(expo)
        # sum over the 4 face points: lane-slice adds at 128-multiple offsets
        acc = acc + (e[:, 0 * tn:1 * tn] + e[:, 1 * tn:2 * tn]
                     + e[:, 2 * tn:3 * tn] + e[:, 3 * tn:4 * tn])
    fea = acc * (1.0 / 16.0)
    fea_ref[...] = fea

    # fused BatchNorm partial statistics (mask padded lanes), lane-dense store
    ni = pl.program_id(1)
    lane = jax.lax.broadcasted_iota(jnp.int32, (1, tn), 1)
    valid = (ni * tn + lane) < n_valid                              # (1, tn)
    fea_m = jnp.where(valid, fea, 0.0)
    comb = jnp.concatenate([fea_m, fea_m * fea_m], axis=0)          # (2m, tn)
    stat_ref[...] = jnp.sum(comb.T, axis=0, keepdims=True)          # (1, 2m) = (1, 128)


def bn_relu_kernel(x_ref, mean_ref, rstd_ref, o_ref):
    """Elementwise (x - mean) * rstd then ReLU.  x/o: (M, TN); mean/rstd: (M, 1)."""
    o_ref[...] = jnp.maximum((x_ref[...] - mean_ref[...]) * rstd_ref[...], 0.0)


# ---------------------------------------------------------------------------
# Wrapper (XLA glue: gather, packing, parameter prep, tiny BN cross-tile reduce)
# ---------------------------------------------------------------------------
def face_kernel_correlation(normals, neighbor_index, weight_alpha, weight_beta,
                            sigma=SIGMA, use_bf16_exp=False):
    b, _, n = normals.shape
    m = weight_alpha.shape[1]
    mk = m * 4
    inv = -1.0 / (2.0 * sigma * sigma)

    tn, nt = _choose_tile(b, n)
    n_pad = nt * tn

    # --- gather face points (center + 3 neighbors); same semantics as torch.gather ---
    # TODO(synk): the data-dependent neighbor gather stays in XLA glue (not a
    # rectangular BlockSpec access pattern).
    idx_e = jnp.broadcast_to(neighbor_index[:, None, :, :], (b, 3, n, 3))
    src = jnp.broadcast_to(normals[:, :, :, None], (b, 3, n, 3))
    nbr = jnp.take_along_axis(src, idx_e, axis=2)                   # (b, 3, n, 3)
    face = jnp.concatenate([normals[:, :, :, None], nbr], axis=3)   # (b, 3, n, 4)
    face = face.astype(jnp.float32)

    # --- augment rows so the exponent is a single MXU matmul ---
    # rows: [x, y, z, 1, -|x|^2/(2 s^2), 0, 0, 0]
    xsq = jnp.sum(face * face, axis=1, keepdims=True) * inv         # (b, 1, n, 4)
    ones = jnp.ones((b, 1, n, 4), jnp.float32)
    zpad = jnp.zeros((b, K_AUG - 5, n, 4), jnp.float32)
    x_aug = jnp.concatenate([face, ones, xsq, zpad], axis=1)        # (b, K_AUG, n, 4)
    if n_pad != n:
        x_aug = jnp.pad(x_aug, ((0, 0), (0, 0), (0, n_pad - n), (0, 0)))
    # pack lanes as [tile | face-point | lane-within-tile]
    x_packed = x_aug.reshape(b, K_AUG, nt, tn, 4).transpose(0, 1, 2, 4, 3)
    x_packed = x_packed.reshape(b, K_AUG, nt * 4 * tn)

    # --- kernel points on the sphere, point-major rows, augmented cols ---
    # cols: [w/s^2, -|w|^2/(2 s^2), 1, 0, 0, 0]
    w3 = jnp.concatenate(
        [jnp.sin(weight_alpha) * jnp.cos(weight_beta),
         jnp.sin(weight_alpha) * jnp.sin(weight_beta),
         jnp.cos(weight_alpha)], axis=0)                            # (3, m, 4)
    w_pm = jnp.transpose(w3, (2, 1, 0)).reshape(mk, 3).astype(jnp.float32)  # row = l*m + k
    wsq = jnp.sum(w_pm * w_pm, axis=1, keepdims=True) * inv         # (mk, 1)
    w_aug = jnp.concatenate(
        [w_pm * (1.0 / (sigma * sigma)), wsq,
         jnp.ones((mk, 1), jnp.float32),
         jnp.zeros((mk, K_AUG - 5), jnp.float32)], axis=1)          # (mk, K_AUG)

    grid = (b, nt)
    cp_kwargs = dict(dimension_semantics=("parallel", "parallel"))
    if tn >= 1024:
        cp_kwargs["vmem_limit_bytes"] = 32 * 1024 * 1024
    cparams = pltpu.CompilerParams(**cp_kwargs)

    fea, stats = pl.pallas_call(
        functools.partial(fkc_kernel, tn=tn, m=m, n_valid=n,
                          use_bf16_exp=use_bf16_exp),
        out_shape=(jax.ShapeDtypeStruct((b, m, n_pad), jnp.float32),
                   jax.ShapeDtypeStruct((b, nt, 1, 2 * m), jnp.float32)),
        grid=grid,
        in_specs=[
            pl.BlockSpec((None, K_AUG, 4 * tn), lambda bi, ni: (bi, 0, ni)),
            pl.BlockSpec((mk, K_AUG), lambda bi, ni: (0, 0)),
        ],
        out_specs=(
            pl.BlockSpec((None, m, tn), lambda bi, ni: (bi, 0, ni)),
            pl.BlockSpec((None, None, 1, 2 * m), lambda bi, ni: (bi, ni, 0, 0)),
        ),
        compiler_params=cparams,
    )(x_packed, w_aug)

    # BatchNorm1d (training mode: batch statistics, gamma=1, beta=0)
    # TODO(synk): affine params / running-stats eval mode not implemented
    # (matches the PyTorch module at initialization in training mode).
    count = float(b * n)
    ch_sum = jnp.sum(stats[:, :, 0, :m], axis=(0, 1))               # (m,)
    ch_sumsq = jnp.sum(stats[:, :, 0, m:], axis=(0, 1))             # (m,)
    mean = ch_sum / count
    var = jnp.maximum(ch_sumsq / count - mean * mean, 0.0)          # biased, matches BN
    rstd = 1.0 / jnp.sqrt(var + BN_EPS)

    # bn + ReLU, writing the output directly at (b, m, n): the ragged last block
    # is handled by Pallas, so no extra HBM slice/copy pass is needed.
    out = pl.pallas_call(
        bn_relu_kernel,
        out_shape=jax.ShapeDtypeStruct((b, m, n), jnp.float32),
        grid=grid,
        in_specs=[
            pl.BlockSpec((None, m, tn), lambda bi, ni: (bi, 0, ni)),
            pl.BlockSpec((m, 1), lambda bi, ni: (0, 0)),
            pl.BlockSpec((m, 1), lambda bi, ni: (0, 0)),
        ],
        out_specs=pl.BlockSpec((None, m, tn), lambda bi, ni: (bi, 0, ni)),
        compiler_params=cparams,
    )(fea, mean.reshape(m, 1), rstd.reshape(m, 1))

    return out


# ---------------------------------------------------------------------------
# Pure-JAX reference (mirrors the PyTorch forward) for the correctness check
# ---------------------------------------------------------------------------
def reference(normals, neighbor_index, alpha, beta, sigma=SIGMA):
    b, _, n = normals.shape
    m = alpha.shape[1]
    idx_e = jnp.broadcast_to(neighbor_index[:, None, :, :], (b, 3, n, 3))
    src = jnp.broadcast_to(normals[:, :, :, None], (b, 3, n, 3))
    nbr = jnp.take_along_axis(src, idx_e, axis=2)                       # (b,3,n,3)
    center = jnp.broadcast_to(normals[:, :, None, :, None], (b, 3, m, n, 1))
    nbr = jnp.broadcast_to(nbr[:, :, None, :, :], (b, 3, m, n, 3))
    fea = jnp.concatenate([center, nbr], axis=4)[..., None]             # (b,3,m,n,4,1)
    w = jnp.concatenate(
        [jnp.sin(alpha) * jnp.cos(beta),
         jnp.sin(alpha) * jnp.sin(beta),
         jnp.cos(alpha)], axis=0)                                       # (3,m,4)
    w = w[None, :, :, None, None, :]                                    # (1,3,m,1,1,4)
    dist = jnp.sum((fea - w) ** 2, axis=1)                              # (b,m,n,4,4)
    fea = jnp.sum(jnp.sum(jnp.exp(dist / (-2.0 * sigma ** 2)), axis=4), axis=3) / 16.0
    mean = jnp.mean(fea, axis=(0, 2), keepdims=True)
    var = jnp.var(fea, axis=(0, 2), keepdims=True)
    return jnp.maximum((fea - mean) / jnp.sqrt(var + BN_EPS), 0.0)


if __name__ == "__main__":
    B, N, M = 2, 600, NUM_KERNEL   # N not a multiple of 128 -> exercises padding/masking

    key = jax.random.PRNGKey(0)
    k1, k2, k3, k4 = jax.random.split(key, 4)

    # module parameters (__init__ shapes: (1, num_kernel, 4))
    weight_alpha = jax.random.uniform(k1, (1, M, 4), jnp.float32) * np.pi
    weight_beta = jax.random.uniform(k2, (1, M, 4), jnp.float32) * 2.0 * np.pi

    # inputs: normals (B, 3, N) unit vectors, neighbor_index (B, N, 3) int32
    normals = jax.random.normal(k3, (B, 3, N), jnp.float32)
    normals = normals / jnp.linalg.norm(normals, axis=1, keepdims=True)
    neighbor_index = jax.random.randint(k4, (B, N, 3), 0, N, jnp.int32)

    out = jax.block_until_ready(
        face_kernel_correlation(normals, neighbor_index, weight_alpha, weight_beta))

    ref = jax.block_until_ready(
        reference(normals, neighbor_index, weight_alpha, weight_beta))
    np.testing.assert_allclose(np.asarray(out), np.asarray(ref), rtol=2e-4, atol=2e-4)

    print("KERNEL_OK")
</pallas_src>

<mosaic_0001>
module attributes {stable_mosaic.version = 11 : i64} {
  func.func @fkc_kernel(%arg0: i32, %arg1: i32, %arg2: memref<1x8x2560xf32, #tpu.memory_space<vmem>>, %arg3: memref<256x8xf32, #tpu.memory_space<vmem>>, %arg4: memref<1x64x640xf32, #tpu.memory_space<vmem>>, %arg5: memref<1x1x1x128xf32, #tpu.memory_space<vmem>>) attributes {dimension_semantics = [#tpu.dimension_semantics<parallel>, #tpu.dimension_semantics<parallel>], iteration_bounds = array<i64: 2, 1>, scalar_prefetch = 0 : i64, scratch_operands = 0 : i64, tpu.core_type = #tpu.core_type<tc>, window_params = [{transform_indices = @transform_0, window_bounds = array<i64: 1, 8, 2560>}, {pipeline_mode = #tpu.pipeline_mode<synchronous>, transform_indices = @transform_1, window_bounds = array<i64: 256, 8>}, {transform_indices = @transform_2, window_bounds = array<i64: 1, 64, 640>}, {transform_indices = @transform_3, window_bounds = array<i64: 1, 1, 1, 128>}]} {
    %c0 = arith.constant 0 : index
    %c0_0 = arith.constant 0 : index
    %c0_1 = arith.constant 0 : index
    %0 = vector.load %arg2[%c0, %c0_0, %c0_1] : memref<1x8x2560xf32, #tpu.memory_space<vmem>>, vector<1x8x2560xf32>
    %1 = vector.shape_cast %0 : vector<1x8x2560xf32> to vector<8x2560xf32>
    %cst = arith.constant 0.000000e+00 : f32
    %2 = vector.broadcast %cst : f32 to vector<64x640xf32>
    %c0_2 = arith.constant 0 : index
    %c0_3 = arith.constant 0 : index
    %3 = vector.load %arg3[%c0_2, %c0_3] : memref<256x8xf32, #tpu.memory_space<vmem>>, vector<64x8xf32>
    %cst_4 = arith.constant dense<0.000000e+00> : vector<64x2560xf32>
    %4 = tpu.matmul %3, %1, %cst_4 {dimension_numbers = #tpu.dot_dimension_numbers<[1], [0], [0], [1], [0, 0, 1, 1], [], []>} : vector<64x8xf32>, vector<8x2560xf32>, vector<64x2560xf32> -> vector<64x2560xf32>
    %5 = math.exp %4 : vector<64x2560xf32>
    %6 = vector.extract_strided_slice %5 {offsets = [0, 0], sizes = [64, 640], strides = [1, 1]} : vector<64x2560xf32> to vector<64x640xf32>
    %7 = vector.extract_strided_slice %5 {offsets = [0, 640], sizes = [64, 640], strides = [1, 1]} : vector<64x2560xf32> to vector<64x640xf32>
    %8 = arith.addf %6, %7 : vector<64x640xf32>
    %9 = vector.extract_strided_slice %5 {offsets = [0, 1280], sizes = [64, 640], strides = [1, 1]} : vector<64x2560xf32> to vector<64x640xf32>
    %10 = arith.addf %8, %9 : vector<64x640xf32>
    %11 = vector.extract_strided_slice %5 {offsets = [0, 1920], sizes = [64, 640], strides = [1, 1]} : vector<64x2560xf32> to vector<64x640xf32>
    %12 = arith.addf %10, %11 : vector<64x640xf32>
    %13 = arith.addf %2, %12 : vector<64x640xf32>
    %c64 = arith.constant 64 : index
    %c0_5 = arith.constant 0 : index
    %14 = vector.load %arg3[%c64, %c0_5] : memref<256x8xf32, #tpu.memory_space<vmem>>, vector<64x8xf32>
    %cst_6 = arith.constant dense<0.000000e+00> : vector<64x2560xf32>
    %15 = tpu.matmul %14, %1, %cst_6 {dimension_numbers = #tpu.dot_dimension_numbers<[1], [0], [0], [1], [0, 0, 1, 1], [], []>} : vector<64x8xf32>, vector<8x2560xf32>, vector<64x2560xf32> -> vector<64x2560xf32>
    %16 = math.exp %15 : vector<64x2560xf32>
    %17 = vector.extract_strided_slice %16 {offsets = [0, 0], sizes = [64, 640], strides = [1, 1]} : vector<64x2560xf32> to vector<64x640xf32>
    %18 = vector.extract_strided_slice %16 {offsets = [0, 640], sizes = [64, 640], strides = [1, 1]} : vector<64x2560xf32> to vector<64x640xf32>
    %19 = arith.addf %17, %18 : vector<64x640xf32>
    %20 = vector.extract_strided_slice %16 {offsets = [0, 1280], sizes = [64, 640], strides = [1, 1]} : vector<64x2560xf32> to vector<64x640xf32>
    %21 = arith.addf %19, %20 : vector<64x640xf32>
    %22 = vector.extract_strided_slice %16 {offsets = [0, 1920], sizes = [64, 640], strides = [1, 1]} : vector<64x2560xf32> to vector<64x640xf32>
    %23 = arith.addf %21, %22 : vector<64x640xf32>
    %24 = arith.addf %13, %23 : vector<64x640xf32>
    %c128 = arith.constant 128 : index
    %c0_7 = arith.constant 0 : index
    %25 = vector.load %arg3[%c128, %c0_7] : memref<256x8xf32, #tpu.memory_space<vmem>>, vector<64x8xf32>
    %cst_8 = arith.constant dense<0.000000e+00> : vector<64x2560xf32>
    %26 = tpu.matmul %25, %1, %cst_8 {dimension_numbers = #tpu.dot_dimension_numbers<[1], [0], [0], [1], [0, 0, 1, 1], [], []>} : vector<64x8xf32>, vector<8x2560xf32>, vector<64x2560xf32> -> vector<64x2560xf32>
    %27 = math.exp %26 : vector<64x2560xf32>
    %28 = vector.extract_strided_slice %27 {offsets = [0, 0], sizes = [64, 640], strides = [1, 1]} : vector<64x2560xf32> to vector<64x640xf32>
    %29 = vector.extract_strided_slice %27 {offsets = [0, 640], sizes = [64, 640], strides = [1, 1]} : vector<64x2560xf32> to vector<64x640xf32>
    %30 = arith.addf %28, %29 : vector<64x640xf32>
    %31 = vector.extract_strided_slice %27 {offsets = [0, 1280], sizes = [64, 640], strides = [1, 1]} : vector<64x2560xf32> to vector<64x640xf32>
    %32 = arith.addf %30, %31 : vector<64x640xf32>
    %33 = vector.extract_strided_slice %27 {offsets = [0, 1920], sizes = [64, 640], strides = [1, 1]} : vector<64x2560xf32> to vector<64x640xf32>
    %34 = arith.addf %32, %33 : vector<64x640xf32>
    %35 = arith.addf %24, %34 : vector<64x640xf32>
    %c192 = arith.constant 192 : index
    %c0_9 = arith.constant 0 : index
    %36 = vector.load %arg3[%c192, %c0_9] : memref<256x8xf32, #tpu.memory_space<vmem>>, vector<64x8xf32>
    %cst_10 = arith.constant dense<0.000000e+00> : vector<64x2560xf32>
    %37 = tpu.matmul %36, %1, %cst_10 {dimension_numbers = #tpu.dot_dimension_numbers<[1], [0], [0], [1], [0, 0, 1, 1], [], []>} : vector<64x8xf32>, vector<8x2560xf32>, vector<64x2560xf32> -> vector<64x2560xf32>
    %38 = math.exp %37 : vector<64x2560xf32>
    %39 = vector.extract_strided_slice %38 {offsets = [0, 0], sizes = [64, 640], strides = [1, 1]} : vector<64x2560xf32> to vector<64x640xf32>
    %40 = vector.extract_strided_slice %38 {offsets = [0, 640], sizes = [64, 640], strides = [1, 1]} : vector<64x2560xf32> to vector<64x640xf32>
    %41 = arith.addf %39, %40 : vector<64x640xf32>
    %42 = vector.extract_strided_slice %38 {offsets = [0, 1280], sizes = [64, 640], strides = [1, 1]} : vector<64x2560xf32> to vector<64x640xf32>
    %43 = arith.addf %41, %42 : vector<64x640xf32>
    %44 = vector.extract_strided_slice %38 {offsets = [0, 1920], sizes = [64, 640], strides = [1, 1]} : vector<64x2560xf32> to vector<64x640xf32>
    %45 = arith.addf %43, %44 : vector<64x640xf32>
    %46 = arith.addf %35, %45 : vector<64x640xf32>
    %cst_11 = arith.constant 6.250000e-02 : f32
    %47 = vector.broadcast %cst_11 : f32 to vector<64x640xf32>
    %48 = arith.mulf %46, %47 : vector<64x640xf32>
    %c0_12 = arith.constant 0 : index
    %c0_13 = arith.constant 0 : index
    %c0_14 = arith.constant 0 : index
    %49 = vector.load %arg4[%c0_12, %c0_13, %c0_14] : memref<1x64x640xf32, #tpu.memory_space<vmem>>, vector<1x64x640xf32>
    %50 = vector.shape_cast %49 : vector<1x64x640xf32> to vector<64x640xf32>
    %51 = vector.shape_cast %48 : vector<64x640xf32> to vector<1x64x640xf32>
    tpu.vector_store %arg4[%c0_12, %c0_13, %c0_14], %51 {strides = array<i32>} : memref<1x64x640xf32, #tpu.memory_space<vmem>>, vector<1x64x640xf32>,
    %52 = tpu.iota {dimensions = array<i32: 1>} : vector<1x640xi32>
    %c640_i32 = arith.constant 640 : i32
    %53 = arith.muli %arg1, %c640_i32 : i32
    %54 = vector.broadcast %53 : i32 to vector<1x640xi32>
    %55 = arith.addi %54, %52 : vector<1x640xi32>
    %c600_i32 = arith.constant 600 : i32
    %56 = vector.broadcast %c600_i32 : i32 to vector<1x640xi32>
    %57 = arith.cmpi slt, %55, %56 : vector<1x640xi32>
    %cst_15 = arith.constant 0.000000e+00 : f32
    %58 = vector.shape_cast %57 : vector<1x640xi1> to vector<1x640xi1>
    %59 = vector.broadcast %58 : vector<1x640xi1> to vector<64x640xi1>
    %60 = vector.broadcast %cst_15 : f32 to vector<64x640xf32>
    %61 = arith.select %59, %48, %60 : vector<64x640xi1>, vector<64x640xf32>
    %62 = arith.mulf %61, %61 : vector<64x640xf32>
    %63 = tpu.concatenate %61, %62 in 0 : vector<64x640xf32>, vector<64x640xf32> -> vector<128x640xf32>
    %64 = tpu.transpose %63, [1, 0] : vector<128x640xf32> -> vector<640x128xf32>
    %cst_16 = arith.constant dense<0.000000e+00> : vector<128xf32>
    %65 = vector.multi_reduction <add>, %64, %cst_16 [0] : vector<640x128xf32> to vector<128xf32>
    %66 = vector.shape_cast %65 : vector<128xf32> to vector<1x128xf32>
    %c0_17 = arith.constant 0 : index
    %c0_18 = arith.constant 0 : index
    %c0_19 = arith.constant 0 : index
    %c0_20 = arith.constant 0 : index
    %67 = vector.load %arg5[%c0_17, %c0_18, %c0_19, %c0_20] : memref<1x1x1x128xf32, #tpu.memory_space<vmem>>, vector<1x1x1x128xf32>
    %68 = vector.shape_cast %67 : vector<1x1x1x128xf32> to vector<1x128xf32>
    %69 = vector.shape_cast %66 : vector<1x128xf32> to vector<1x1x1x128xf32>
    tpu.vector_store %arg5[%c0_17, %c0_18, %c0_19, %c0_20], %69 {strides = array<i32>} : memref<1x1x1x128xf32, #tpu.memory_space<vmem>>, vector<1x1x1x128xf32>,
    return
  }
  func.func @transform_0(%arg0: i32, %arg1: i32) -> (i32, i32, i32) {
    %c0_i32 = arith.constant 0 : i32
    %c0_i32_0 = arith.constant 0 : i32
    return %arg0, %c0_i32, %arg1 : i32, i32, i32
  }
  func.func @transform_1(%arg0: i32, %arg1: i32) -> (i32, i32) {
    %c0_i32 = arith.constant 0 : i32
    %c0_i32_0 = arith.constant 0 : i32
    %c0_i32_1 = arith.constant 0 : i32
    return %c0_i32, %c0_i32_0 : i32, i32
  }
  func.func @transform_2(%arg0: i32, %arg1: i32) -> (i32, i32, i32) {
    %c0_i32 = arith.constant 0 : i32
    %c0_i32_0 = arith.constant 0 : i32
    return %arg0, %c0_i32, %arg1 : i32, i32, i32
  }
  func.func @transform_3(%arg0: i32, %arg1: i32) -> (i32, i32, i32, i32) {
    %c0_i32 = arith.constant 0 : i32
    %c0_i32_0 = arith.constant 0 : i32
    %c0_i32_1 = arith.constant 0 : i32
    return %arg0, %arg1, %c0_i32, %c0_i32_0 : i32, i32, i32, i32
  }
}

</mosaic_0001>

<bundles_post_ra>
// kernel: tpu_custom_call.1
= control target key start
LH: loop header
LB: loop body
LE: loop exit
PB: predicated region body
PF: predicated region fallthrough
CT: control target
= control target key end

     0   :  { %9 = vsyncpa [#allocation3], 0  ;;  %s12998_s0 = inlined_call_operand.hbm [shape: f32[2,8,2560], index: 0, kind: input, shape index: {}]   ;;  %s12999_s1 = inlined_call_operand.vmem [shape: f32[256,8], index: 1, kind: input, shape index: {}]   ;;  %s13000_s2 = inlined_call_operand.hbm [shape: f32[2,64,640], index: 2, kind: output, shape index: {0}]   ;;  %s13001_s3 = inlined_call_operand.hbm [shape: f32[2,1,1,128], index: 3, kind: output, shape index: {1}]  }
   0x1   :  { %11 = vsyncpa [#allocation3 + $0x1], 0 }
   0x2   :  { %12 = vsyncpa [#allocation4], 0 }
   0x3   :  { %14 = vsyncpa [#allocation4 + $0x1], 0 }
   0x4   :  { %15 = vsyncpa [#allocation7], 0 }
   0x5   :  { %17 = vsyncpa [#allocation7 + $0x1], 0  ;;  %s9307_s12 = smov 0   ;;  %s9309_s13 = smov 0  }
   0x6   :  { %s9311_s14 = smov 0   ;;  %s9313_s15 = smov 0  }
   0x7   :  { %s9315_s16 = smov 0   ;;  %s9317_s17 = smov 0  }
   0x8 LB: > { %s7392_s18 = sadd.s32 4294967295, %s9279_s17   ;;  %s7393_s19 = sadd.s32 4294967294, %s9279_s17   ;;  %s9279_s17 = sphi %s9317_s17, %s23_s17   ;;  %s9275_s16 = sphi %s9315_s16, %s13307_s16   ;;  %s9271_s15 = sphi %s9313_s15, %s13306_s15   ;;  %s9267_s14 = sphi %s9311_s14, %s13305_s14   ;;  %s9263_s13 = sphi %s9309_s13, %s13304_s13   ;;  %s9259_s12 = sphi %s9307_s12, %s13303_s12  }
   0x9   : > { %s35_s20 = sadd.s32 1, %s9275_s16  ;;  %s44_s21 = sadd.s32 1, %s9267_s14 }
   0xa   : > { %p37_p0 = scmp.ge.s32.totalorder %s35_s20, 2  ;;  %p51_p1 = scmp.ne.s32.totalorder %s9267_s14, %s9263_s13 }
   0xb   : > { %p52_p2 = scmp.eq.s32.totalorder %s9279_s17, 0  ;;  %p57_p3 = scmp.ne.s32.totalorder %s9263_s13, %s9259_s12 }
   0xc   : > { %s13309_s20 = smov (%p37_p0, %s35_s20), 0  ;;  %p58_p5 = scmp.eq.s32.totalorder %s7392_s18, 0 }
   0xd   : > { %p9348_p4 = por %p52_p2, %p51_p1  ;;  %s39_s23 = ssub.s32 %s9275_s16, %s13309_s20 }
   0xe   : > { %p104_p6 = scmp.eq.s32.totalorder %s7392_s18, 1  ;;  %p42_p7 = scmp.eq.s32.totalorder %s39_s23, 0 }
   0xf   : > { %p9354_p8 = por %p58_p5, %p57_p3  ;;  %p110_p10 = scmp.eq.s32.totalorder %s7393_s19, 1 }
  0x10   : > { %p9358_p9 = por %p104_p6, %p51_p1  ;;  %p7744_p13 = scmp.lt.s32.totalorder %s9279_s17, 2 }
  0x11   : > { %s9363_s26 = scalar_select %p42_p7, %s9267_s14, %s44_s21  }
  0x12   : > { %p9365_p11 = por %p110_p10, %p57_p3  ;;  %s161_s28 = sand.u32 1, %s9267_s14  }
  0x13   : > { %s7722_s29 = smul.u32 160, %s161_s28  ;;  %p9375_p0 = pnand %p7744_p13, %p9348_p4 }
  0x14   : > { %s13008_s27 = scalar_select %p9365_p11, 1, 0 }
  0x15   : > { %s7723_s30 = smul.u32 2560, %s9275_s16  ;;  %p7397_p1 = scmp.ge.s32.totalorder %s9279_s17, 1 }
  0x16   : > { %s165_s8 = scalar_lea.vmem [#allocation2], %s7722_s29  ;;  %s162_s10 = scalar_lea.sflag [#allocation3], %s161_s28 }
  0x17   : > { %s173_s7 = scalar_lea.hbm %s12998_s0, %s7723_s30  ;;  %s175_s9 = sshll.u32 %s165_s8, 4  ;;  %s176_s9 = int_to_ptr.vmem [resolvable:$true] %s175_s9 }
  0x18   : > { %p9143_p2 = pneg %p9375_p0  ;;  %s9154_s11 = scalar_lea.vmem %s176_s9, 2560 }
  0x19   : > { %p9155_p3 = scmp.ne.s32.totalorder %s176_s9, %s9154_s11  ;;  %s9281_s18 = smov [#allocation2]  }
  0x1a   : > { %s9159_s19 = sshll.u32 %s9281_s18, 4  ;;  %s9160_s19 = int_to_ptr.vmem [resolvable:$false] %s9159_s19 }
  0x1b   : > { %p9157_p5 = pnand %p9155_p3, %p9143_p2  ;;  %s9161_s21 = scalar_lea.vmem %s9160_s19, 5120 }
  0x1c   : > { %p9162_p4 = scmp.lt.s32.totalorder %s176_s9, %s9160_s19  ;;  %p9163_p7 = scmp.lt.s32.totalorder %s9161_s21, %s9154_s11 }
  0x1d   : > { %p9158_p6 = pneg %p9157_p5 }
  0x1e   : > { %p9164_p10 = por %p9163_p7, %p9162_p4 }
  0x20   : > { %p9165_p13 = pnand %p9164_p10, %p9158_p6 }
  0x22   : > { %9168 = shalt.err (!%p9165_p13)
}
  0x23   : > { %7736 = dma.hbm_to_vmem [thread:$0]  (!%p9375_p0), %s173_s7, 2560, %s176_s9, %s162_s10  }
  0x24   : > { %p180_p12 = scmp.lt.s32.totalorder %s9279_s17, 3 }
  0x26   : > { %p181_p11 = pnand %p7397_p1, %p180_p12 }
  0x28   : > { %184 = sbr.rel (%p181_p11) target bundleno = 1198 (0x4ae), region = 28 }
  0x2d   : > { %s9391_s22 = sand.u32 1, %s9263_s13  }
  0x2e   : > { %s7724_s23 = smul.u32 160, %s9391_s22  ;;  %s187_s28 = scalar_lea.sflag [#allocation3], %s9391_s22 }
  0x30   : > { %s9395_s29 = scalar_lea.vmem [#allocation2], %s7724_s23 }
  0x31   : > { %9246 = dma.done.wait (%p9354_p8), %s187_s28, 2560  }
  0x32   : > { %9248 = vsyncadd (%p9354_p8), %s187_s28, 4294964736  ;;  %v13002_v0 = vmov 0.0   ;;  %v9404_v1 = vld [vmem:[%s9395_s29 + $0x8] sm:$0xff]  ;;  %v9407_v2 = vld [vmem:[%s9395_s29 + $0x18] sm:$0xff]  ;;  %vm247_vm0 = vcmask 64512   ;;  %s7725_s8 = smul.u32 320, %s9391_s22 }
  0x33   : > { %336 = vmatprep.mubr.f32.mxu0 %v13002_v0  ;;  %449 = vmatprep.mubr.f32.mxu1 %v13002_v0  ;;  %v9410_v3 = vld [vmem:[%s9395_s29] sm:$0xff]  ;;  %v9415_v4 = vld [vmem:[%s9395_s29 + $0x10] sm:$0xff]  ;;  %v9423_v6 = vld [vmem:[%s9395_s29 + $0x38] sm:$0xff]  ;;  %s7726_s10 = smul.u32 5120, %s9271_s15  ;;  %s7243_s21 = scalar_lea.sflag [#allocation4], %s9391_s22 }
  0x34   : > { %302 = vmatprep.subr.mxu0 %v9404_v1  ;;  %415 = vmatprep.subr.mxu1 %v9407_v2  ;;  %v9420_v5 = vld [vmem:[%s12999_s1] sm:$0xff]  ;;  %v9428_v7 = vld [vmem:[%s9395_s29 + $0x30] sm:$0xff]  ;;  %v9431_v8 = vld [vmem:[%s9395_s29 + $0x28] sm:$0xff]  ;;  %s12405_s9 = scalar_lea.vmem [#allocation5], %s7725_s8  ;;  %s9283_s28 = smov [#allocation5]  }
  0x35   : > { %303 = vmatpush1.msra.mxu0 %v9410_v3  ;;  %416 = vmatpush1.msra.mxu1 %v9415_v4  ;;  %v9438_v9 = vld [vmem:[%s9395_s29 + $0x20] sm:$0xff]  ;;  %v9445_v10 = vld [vmem:[%s12999_s1 + $0x8] sm:$0xff]  ;;  %v9452_v11 = vld [vmem:[%s9395_s29 + $0x58] sm:$0xff]  ;;  %s7262_s11 = sshll.u32 %s12405_s9, 4  ;;  %s12930_s19 = scalar_lea.hbm %s13000_s2, %s7726_s10  ;;  %s12932_s11 = int_to_ptr.vmem [resolvable:$true] %s7262_s11 }
  0x36   : > { %7398 = vmatmul.mubr.msk.f32.vlgmr.msra.gmra.mxu0 %vm247_vm0, %v9420_v5  ;;  %7406 = vmatmul.mubr.msk.f32.vlgmr.msra.gmra.mxu1 %vm247_vm0, %v9420_v5  ;;  %v9455_v12 = vld [vmem:[%s9395_s29 + $0x48] sm:$0xff]  ;;  %v9466_v13 = vld [vmem:[%s12999_s1 + $0x10] sm:$0xff]  ;;  %v9479_v14 = vld [vmem:[%s12999_s1 + $0x18] sm:$0xff]  ;;  %s9169_s23 = scalar_lea.vmem %s12932_s11, 5120  ;;  %s9173_s24 = sshll.u32 %s9283_s28, 4  ;;  %s9174_s24 = int_to_ptr.vmem [resolvable:$false] %s9173_s24 }
  0x37   : > { %641 = vmatprep.subr.mxu1 %v9423_v6  ;;  %528 = vmatprep.subr.mxu0 %v9431_v8  ;;  %v9490_v15 = vld [vmem:[%s12999_s1 + $0x20] sm:$0xff]  ;;  %v9501_v16 = vld [vmem:[%s12999_s1 + $0x28] sm:$0xff]  ;;  %v9512_v17 = vld [vmem:[%s12999_s1 + $0x30] sm:$0xff]  ;;  %p9170_p8 = scmp.ne.s32.totalorder %s12932_s11, %s9169_s23  ;;  %s9175_s30 = scalar_lea.vmem %s9174_s24, 10240 }
  0x38   : > { %642 = vmatpush1.msra.mxu1 %v9428_v7  ;;  %342 = vmatprep.mubr.f32.mxu0 %v13002_v0  ;;  %v9523_v18 = vld [vmem:[%s12999_s1 + $0x38] sm:$0xff]  ;;  %v9532_v19 = vld [vmem:[%s9395_s29 + $0x50] sm:$0xff]  ;;  %v9535_v20 = vld [vmem:[%s9395_s29 + $0x40] sm:$0xff]  ;;  %p9176_p0 = scmp.lt.s32.totalorder %s12932_s11, %s9174_s24  ;;  %p9177_p1 = scmp.lt.s32.totalorder %s9175_s30, %s9169_s23 }
  0x39   : > { %455 = vmatprep.mubr.f32.mxu1 %v13002_v0  ;;  %529 = vmatpush1.msra.mxu0 %v9438_v9  ;;  %v9542_v21 = vld [vmem:[%s9395_s29 + $0x78] sm:$0xff]  ;;  %v9545_v22 = vld [vmem:[%s9395_s29 + $0x68] sm:$0xff]  ;;  %v9596_v23 = vld [vmem:[%s9395_s29 + $0x70] sm:$0xff]  ;;  %p9171_p11 = pnand %p9170_p8, %p9358_p9 }
  0x3a   : > { %7399 = vmatmul.mubr.msk.f32.gmra.mxu0 %vm247_vm0, %v9445_v10  ;;  %7407 = vmatmul.mubr.msk.f32.gmra.mxu1 %vm247_vm0, %v9445_v10  ;;  %v9599_v24 = vld [vmem:[%s9395_s29 + $0x60] sm:$0xff]  ;;  %v9606_v25 = vld [vmem:[%s9395_s29 + $0x98] sm:$0xff]  ;;  %v9609_v26 = vld [vmem:[%s9395_s29 + $0x88] sm:$0xff]  ;;  %p9178_p2 = por %p9177_p1, %p9176_p0 }
  0x3b   : > { %348 = vmatprep.mubr.f32.mxu0 %v13002_v0  ;;  %461 = vmatprep.mubr.f32.mxu1 %v13002_v0  ;;  %v9660_v27 = vld [vmem:[%s9395_s29 + $0x90] sm:$0xff]  ;;  %v9663_v28 = vld [vmem:[%s9395_s29 + $0x80] sm:$0xff]  ;;  %v9783_v30 = vld [vmem:[%s12999_s1 + $0x48] sm:$0xff]  ;;  %p9172_p12 = pneg %p9171_p11 }
  0x3c   : > { %867 = vmatprep.subr.mxu1 %v9452_v11  ;;  %754 = vmatprep.subr.mxu0 %v9455_v12  ;;  %v9772_v29 = vld [vmem:[%s12999_s1 + $0x40] sm:$0xff]  ;;  %v9798_v31 = vld [vmem:[%s12999_s1 + $0x50] sm:$0xff]  ;;  %v9809_v32 = vld [vmem:[%s12999_s1 + $0x58] sm:$0xff] }
  0x3d   : > { %v9820_v33 = vld [vmem:[%s12999_s1 + $0x60] sm:$0xff]  ;;  %v9831_v34 = vld [vmem:[%s12999_s1 + $0x68] sm:$0xff]  ;;  %v9842_v35 = vld [vmem:[%s12999_s1 + $0x70] sm:$0xff]  ;;  %p9179_p3 = pnand %p9178_p2, %p9172_p12 }
  0x3e   : > { %7400 = vmatmul.mubr.msk.f32.gmra.mxu0 %vm247_vm0, %v9466_v13  ;;  %7408 = vmatmul.mubr.msk.f32.gmra.mxu1 %vm247_vm0, %v9466_v13  ;;  %v9853_v36 = vld [vmem:[%s12999_s1 + $0x78] sm:$0xff] }
  0x3f   : > { %354 = vmatprep.mubr.f32.mxu0 %v13002_v0  ;;  %467 = vmatprep.mubr.f32.mxu1 %v13002_v0 }
  0x42   : > { %7401 = vmatmul.mubr.msk.f32.gmra.mxu0 %vm247_vm0, %v9479_v14  ;;  %7409 = vmatmul.mubr.msk.f32.gmra.mxu1 %vm247_vm0, %v9479_v14 }
  0x43   : > { %360 = vmatprep.mubr.f32.mxu0 %v13002_v0  ;;  %473 = vmatprep.mubr.f32.mxu1 %v13002_v0 }
  0x46   : > { %7402 = vmatmul.mubr.msk.f32.gmra.mxu0 %vm247_vm0, %v9490_v15  ;;  %7410 = vmatmul.mubr.msk.f32.gmra.mxu1 %vm247_vm0, %v9490_v15 }
  0x47   : > { %366 = vmatprep.mubr.f32.mxu0 %v13002_v0  ;;  %479 = vmatprep.mubr.f32.mxu1 %v13002_v0 }
  0x4a   : > { %7403 = vmatmul.mubr.msk.f32.gmra.mxu0 %vm247_vm0, %v9501_v16  ;;  %7411 = vmatmul.mubr.msk.f32.gmra.mxu1 %vm247_vm0, %v9501_v16 }
  0x4b   : > { %372 = vmatprep.mubr.f32.mxu0 %v13002_v0  ;;  %485 = vmatprep.mubr.f32.mxu1 %v13002_v0 }
  0x4e   : > { %7404 = vmatmul.mubr.msk.f32.gmra.mxu0 %vm247_vm0, %v9512_v17  ;;  %7412 = vmatmul.mubr.msk.f32.gmra.mxu1 %vm247_vm0, %v9512_v17 }
  0x4f   : > { %378 = vmatprep.mubr.f32.mxu0 %v13002_v0  ;;  %491 = vmatprep.mubr.f32.mxu1 %v13002_v0 }
  0x52   : > { %7405 = vmatmul.mubr.msk.f32.gmra.mxu0 %vm247_vm0, %v9523_v18  ;;  %7413 = vmatmul.mubr.msk.f32.gmra.mxu1 %vm247_vm0, %v9523_v18 }
  0x53   : > { %562 = vmatprep.mubr.f32.mxu0 %v13002_v0  ;;  %675 = vmatprep.mubr.f32.mxu1 %v13002_v0 }
  0x56   : > { %7414 = vmatmul.mubr.msk.f32.vlgmr.msra.gmra.mxu0 %vm247_vm0, %v9420_v5  ;;  %7422 = vmatmul.mubr.msk.f32.vlgmr.msra.gmra.mxu1 %vm247_vm0, %v9420_v5 }
  0x57   : > { %868 = vmatpush1.msra.mxu1 %v9532_v19  ;;  %568 = vmatprep.mubr.f32.mxu0 %v13002_v0 }
  0x58   : > { %681 = vmatprep.mubr.f32.mxu1 %v13002_v0  ;;  %755 = vmatpush1.msra.mxu0 %v9535_v20 }
  0x59   : > { %1093 = vmatprep.subr.mxu1 %v9542_v21  ;;  %980 = vmatprep.subr.mxu0 %v9545_v22 }
  0x5a   : > { %7415 = vmatmul.mubr.msk.f32.gmra.mxu0 %vm247_vm0, %v9445_v10  ;;  %7423 = vmatmul.mubr.msk.f32.gmra.mxu1 %vm247_vm0, %v9445_v10 }
  0x5b   : > { %574 = vmatprep.mubr.f32.mxu0 %v13002_v0  ;;  %687 = vmatprep.mubr.f32.mxu1 %v13002_v0 }
  0x5e   : > { %7416 = vmatmul.mubr.msk.f32.gmra.mxu0 %vm247_vm0, %v9466_v13  ;;  %7424 = vmatmul.mubr.msk.f32.gmra.mxu1 %vm247_vm0, %v9466_v13 }
  0x5f   : > { %580 = vmatprep.mubr.f32.mxu0 %v13002_v0  ;;  %693 = vmatprep.mubr.f32.mxu1 %v13002_v0 }
  0x62   : > { %7417 = vmatmul.mubr.msk.f32.gmra.mxu0 %vm247_vm0, %v9479_v14  ;;  %7425 = vmatmul.mubr.msk.f32.gmra.mxu1 %vm247_vm0, %v9479_v14 }
  0x63   : > { %586 = vmatprep.mubr.f32.mxu0 %v13002_v0  ;;  %699 = vmatprep.mubr.f32.mxu1 %v13002_v0 }
  0x66   : > { %7418 = vmatmul.mubr.msk.f32.gmra.mxu0 %vm247_vm0, %v9490_v15  ;;  %7426 = vmatmul.mubr.msk.f32.gmra.mxu1 %vm247_vm0, %v9490_v15 }
  0x67   : > { %592 = vmatprep.mubr.f32.mxu0 %v13002_v0  ;;  %705 = vmatprep.mubr.f32.mxu1 %v13002_v0 }
  0x6a   : > { %7419 = vmatmul.mubr.msk.f32.gmra.mxu0 %vm247_vm0, %v9501_v16  ;;  %7427 = vmatmul.mubr.msk.f32.gmra.mxu1 %vm247_vm0, %v9501_v16 }
  0x6b   : > { %598 = vmatprep.mubr.f32.mxu0 %v13002_v0  ;;  %711 = vmatprep.mubr.f32.mxu1 %v13002_v0 }
  0x6e   : > { %7420 = vmatmul.mubr.msk.f32.gmra.mxu0 %vm247_vm0, %v9512_v17  ;;  %7428 = vmatmul.mubr.msk.f32.gmra.mxu1 %vm247_vm0, %v9512_v17 }
  0x6f   : > { %604 = vmatprep.mubr.f32.mxu0 %v13002_v0  ;;  %717 = vmatprep.mubr.f32.mxu1 %v13002_v0 }
  0x72   : > { %7421 = vmatmul.mubr.msk.f32.gmra.mxu0 %vm247_vm0, %v9523_v18  ;;  %7429 = vmatmul.mubr.msk.f32.gmra.mxu1 %vm247_vm0, %v9523_v18 }
  0x73   : > { %788 = vmatprep.mubr.f32.mxu0 %v13002_v0  ;;  %901 = vmatprep.mubr.f32.mxu1 %v13002_v0 }
  0x76   : > { %7430 = vmatmul.mubr.msk.f32.vlgmr.msra.gmra.mxu0 %vm247_vm0, %v9420_v5  ;;  %7438 = vmatmul.mubr.msk.f32.vlgmr.msra.gmra.mxu1 %vm247_vm0, %v9420_v5 }
  0x77   : > { %1094 = vmatpush1.msra.mxu1 %v9596_v23  ;;  %794 = vmatprep.mubr.f32.mxu0 %v13002_v0 }
  0x78   : > { %907 = vmatprep.mubr.f32.mxu1 %v13002_v0  ;;  %981 = vmatpush1.msra.mxu0 %v9599_v24 }
  0x79   : > { %1319 = vmatprep.subr.mxu1 %v9606_v25  ;;  %1206 = vmatprep.subr.mxu0 %v9609_v26 }
  0x7a   : > { %7431 = vmatmul.mubr.msk.f32.gmra.mxu0 %vm247_vm0, %v9445_v10  ;;  %7439 = vmatmul.mubr.msk.f32.gmra.mxu1 %vm247_vm0, %v9445_v10 }
  0x7b   : > { %800 = vmatprep.mubr.f32.mxu0 %v13002_v0  ;;  %913 = vmatprep.mubr.f32.mxu1 %v13002_v0 }
  0x7e   : > { %7432 = vmatmul.mubr.msk.f32.gmra.mxu0 %vm247_vm0, %v9466_v13  ;;  %7440 = vmatmul.mubr.msk.f32.gmra.mxu1 %vm247_vm0, %v9466_v13 }
  0x7f   : > { %806 = vmatprep.mubr.f32.mxu0 %v13002_v0  ;;  %919 = vmatprep.mubr.f32.mxu1 %v13002_v0 }
  0x82   : > { %7433 = vmatmul.mubr.msk.f32.gmra.mxu0 %vm247_vm0, %v9479_v14  ;;  %7441 = vmatmul.mubr.msk.f32.gmra.mxu1 %vm247_vm0, %v9479_v14 }
  0x83   : > { %812 = vmatprep.mubr.f32.mxu0 %v13002_v0  ;;  %925 = vmatprep.mubr.f32.mxu1 %v13002_v0 }
  0x86   : > { %7434 = vmatmul.mubr.msk.f32.gmra.mxu0 %vm247_vm0, %v9490_v15  ;;  %7442 = vmatmul.mubr.msk.f32.gmra.mxu1 %vm247_vm0, %v9490_v15 }
  0x87   : > { %818 = vmatprep.mubr.f32.mxu0 %v13002_v0  ;;  %931 = vmatprep.mubr.f32.mxu1 %v13002_v0 }
  0x8a   : > { %7435 = vmatmul.mubr.msk.f32.gmra.mxu0 %vm247_vm0, %v9501_v16  ;;  %7443 = vmatmul.mubr.msk.f32.gmra.mxu1 %vm247_vm0, %v9501_v16 }
  0x8b   : > { %824 = vmatprep.mubr.f32.mxu0 %v13002_v0  ;;  %937 = vmatprep.mubr.f32.mxu1 %v13002_v0 }
  0x8e   : > { %7436 = vmatmul.mubr.msk.f32.gmra.mxu0 %vm247_vm0, %v9512_v17  ;;  %7444 = vmatmul.mubr.msk.f32.gmra.mxu1 %vm247_vm0, %v9512_v17 }
  0x8f   : > { %830 = vmatprep.mubr.f32.mxu0 %v13002_v0  ;;  %943 = vmatprep.mubr.f32.mxu1 %v13002_v0 }
  0x92   : > { %7437 = vmatmul.mubr.msk.f32.gmra.mxu0 %vm247_vm0, %v9523_v18  ;;  %7445 = vmatmul.mubr.msk.f32.gmra.mxu1 %vm247_vm0, %v9523_v18 }
  0x93   : > { %1014 = vmatprep.mubr.f32.mxu0 %v13002_v0  ;;  %1127 = vmatprep.mubr.f32.mxu1 %v13002_v0 }
  0x96   : > { %7446 = vmatmul.mubr.msk.f32.vlgmr.msra.gmra.mxu0 %vm247_vm0, %v9420_v5  ;;  %7454 = vmatmul.mubr.msk.f32.vlgmr.msra.gmra.mxu1 %vm247_vm0, %v9420_v5 }
  0x97   : > { %1320 = vmatpush1.msra.mxu1 %v9660_v27  ;;  %1020 = vmatprep.mubr.f32.mxu0 %v13002_v0 }
  0x98   : > { %1133 = vmatprep.mubr.f32.mxu1 %v13002_v0  ;;  %1207 = vmatpush1.msra.mxu0 %v9663_v28 }
  0x99   : > { %2057 = vmatprep.subr.mxu1 %v9407_v2  ;;  %1944 = vmatprep.subr.mxu0 %v9404_v1 }
  0x9a   : > { %7447 = vmatmul.mubr.msk.f32.gmra.mxu0 %vm247_vm0, %v9445_v10  ;;  %7455 = vmatmul.mubr.msk.f32.gmra.mxu1 %vm247_vm0, %v9445_v10 }
  0x9b   : > { %1026 = vmatprep.mubr.f32.mxu0 %v13002_v0  ;;  %1139 = vmatprep.mubr.f32.mxu1 %v13002_v0 }
  0x9e   : > { %7448 = vmatmul.mubr.msk.f32.gmra.mxu0 %vm247_vm0, %v9466_v13  ;;  %7456 = vmatmul.mubr.msk.f32.gmra.mxu1 %vm247_vm0, %v9466_v13 }
  0x9f   : > { %1032 = vmatprep.mubr.f32.mxu0 %v13002_v0  ;;  %1145 = vmatprep.mubr.f32.mxu1 %v13002_v0 }
  0xa2   : > { %7449 = vmatmul.mubr.msk.f32.gmra.mxu0 %vm247_vm0, %v9479_v14  ;;  %7457 = vmatmul.mubr.msk.f32.gmra.mxu1 %vm247_vm0, %v9479_v14 }
  0xa3   : > { %1038 = vmatprep.mubr.f32.mxu0 %v13002_v0  ;;  %1151 = vmatprep.mubr.f32.mxu1 %v13002_v0 }
  0xa6   : > { %7450 = vmatmul.mubr.msk.f32.gmra.mxu0 %vm247_vm0, %v9490_v15  ;;  %7458 = vmatmul.mubr.msk.f32.gmra.mxu1 %vm247_vm0, %v9490_v15 }
  0xa7   : > { %1044 = vmatprep.mubr.f32.mxu0 %v13002_v0  ;;  %1157 = vmatprep.mubr.f32.mxu1 %v13002_v0 }
  0xaa   : > { %7451 = vmatmul.mubr.msk.f32.gmra.mxu0 %vm247_vm0, %v9501_v16  ;;  %7459 = vmatmul.mubr.msk.f32.gmra.mxu1 %vm247_vm0, %v9501_v16 }
  0xab   : > { %1050 = vmatprep.mubr.f32.mxu0 %v13002_v0  ;;  %1163 = vmatprep.mubr.f32.mxu1 %v13002_v0 }
  0xae   : > { %7452 = vmatmul.mubr.msk.f32.gmra.mxu0 %vm247_vm0, %v9512_v17  ;;  %7460 = vmatmul.mubr.msk.f32.gmra.mxu1 %vm247_vm0, %v9512_v17 }
  0xaf   : > { %1056 = vmatprep.mubr.f32.mxu0 %v13002_v0  ;;  %1169 = vmatprep.mubr.f32.mxu1 %v13002_v0 }
  0xb2   : > { %7453 = vmatmul.mubr.msk.f32.gmra.mxu0 %vm247_vm0, %v9523_v18  ;;  %7461 = vmatmul.mubr.msk.f32.gmra.mxu1 %vm247_vm0, %v9523_v18 }
  0xb3   : > { %1240 = vmatprep.mubr.f32.mxu0 %v13002_v0  ;;  %1353 = vmatprep.mubr.f32.mxu1 %v13002_v0 }
  0xb6   : > { %7462 = vmatmul.mubr.msk.f32.vlgmr.msra.gmra.mxu0 %vm247_vm0, %v9420_v5  ;;  %7470 = vmatmul.mubr.msk.f32.vlgmr.msra.gmra.mxu1 %vm247_vm0, %v9420_v5 }
  0xb7   : > { %2058 = vmatpush1.msra.mxu1 %v9415_v4  ;;  %1246 = vmatprep.mubr.f32.mxu0 %v13002_v0 }
  0xb8   : > { %1359 = vmatprep.mubr.f32.mxu1 %v13002_v0  ;;  %1945 = vmatpush1.msra.mxu0 %v9410_v3 }
  0xb9   : > { %2283 = vmatprep.subr.mxu1 %v9423_v6  ;;  %2170 = vmatprep.subr.mxu0 %v9431_v8 }
  0xba   : > { %7463 = vmatmul.mubr.msk.f32.gmra.mxu0 %vm247_vm0, %v9445_v10  ;;  %7471 = vmatmul.mubr.msk.f32.gmra.mxu1 %vm247_vm0, %v9445_v10 }
  0xbb   : > { %1252 = vmatprep.mubr.f32.mxu0 %v13002_v0  ;;  %1365 = vmatprep.mubr.f32.mxu1 %v13002_v0 }
  0xbe   : > { %7464 = vmatmul.mubr.msk.f32.gmra.mxu0 %vm247_vm0, %v9466_v13  ;;  %7472 = vmatmul.mubr.msk.f32.gmra.mxu1 %vm247_vm0, %v9466_v13 }
  0xbf   : > { %1258 = vmatprep.mubr.f32.mxu0 %v13002_v0  ;;  %1371 = vmatprep.mubr.f32.mxu1 %v13002_v0 }
  0xc2   : > { %7465 = vmatmul.mubr.msk.f32.gmra.mxu0 %vm247_vm0, %v9479_v14  ;;  %7473 = vmatmul.mubr.msk.f32.gmra.mxu1 %vm247_vm0, %v9479_v14 }
  0xc3   : > { %1264 = vmatprep.mubr.f32.mxu0 %v13002_v0  ;;  %1377 = vmatprep.mubr.f32.mxu1 %v13002_v0 }
  0xc6   : > { %7466 = vmatmul.mubr.msk.f32.gmra.mxu0 %vm247_vm0, %v9490_v15  ;;  %7474 = vmatmul.mubr.msk.f32.gmra.mxu1 %vm247_vm0, %v9490_v15 }
  0xc7   : > { %1270 = vmatprep.mubr.f32.mxu0 %v13002_v0  ;;  %1383 = vmatprep.mubr.f32.mxu1 %v13002_v0 }
  0xca   : > { %7467 = vmatmul.mubr.msk.f32.gmra.mxu0 %vm247_vm0, %v9501_v16  ;;  %7475 = vmatmul.mubr.msk.f32.gmra.mxu1 %vm247_vm0, %v9501_v16 }
  0xcb   : > { %1276 = vmatprep.mubr.f32.mxu0 %v13002_v0  ;;  %1389 = vmatprep.mubr.f32.mxu1 %v13002_v0 }
  0xce   : > { %7468 = vmatmul.mubr.msk.f32.gmra.mxu0 %vm247_vm0, %v9512_v17  ;;  %7476 = vmatmul.mubr.msk.f32.gmra.mxu1 %vm247_vm0, %v9512_v17 }
  0xcf   : > { %1282 = vmatprep.mubr.f32.mxu0 %v13002_v0  ;;  %1395 = vmatprep.mubr.f32.mxu1 %v13002_v0 }
  0xd2   : > { %7469 = vmatmul.mubr.msk.f32.gmra.mxu0 %vm247_vm0, %v9523_v18  ;;  %7477 = vmatmul.mubr.msk.f32.gmra.mxu1 %vm247_vm0, %v9523_v18 }
  0xd3   : > { %1978 = vmatprep.mubr.f32.mxu0 %v13002_v0  ;;  %2091 = vmatprep.mubr.f32.mxu1 %v13002_v0 }
  0xd6   : > { %7478 = vmatmul.mubr.msk.f32.vlgmr.msra.gmra.mxu0 %vm247_vm0, %v9772_v29  ;;  %7486 = vmatmul.mubr.msk.f32.vlgmr.msra.gmra.mxu1 %vm247_vm0, %v9772_v29 }
  0xd7   : > { %2284 = vmatpush1.msra.mxu1 %v9428_v7  ;;  %1984 = vmatprep.mubr.f32.mxu0 %v13002_v0 }
  0xd8   : > { %2097 = vmatprep.mubr.f32.mxu1 %v13002_v0  ;;  %2171 = vmatpush1.msra.mxu0 %v9438_v9 }
  0xd9   : > { %2509 = vmatprep.subr.mxu1 %v9452_v11  ;;  %2396 = vmatprep.subr.mxu0 %v9455_v12 }
  0xda   : > { %7479 = vmatmul.mubr.msk.f32.gmra.mxu0 %vm247_vm0, %v9783_v30  ;;  %7487 = vmatmul.mubr.msk.f32.gmra.mxu1 %vm247_vm0, %v9783_v30 }
  0xdb   : > { %1990 = vmatprep.mubr.f32.mxu0 %v13002_v0  ;;  %2103 = vmatprep.mubr.f32.mxu1 %v13002_v0 }
  0xde   : > { %7480 = vmatmul.mubr.msk.f32.gmra.mxu0 %vm247_vm0, %v9798_v31  ;;  %7488 = vmatmul.mubr.msk.f32.gmra.mxu1 %vm247_vm0, %v9798_v31 }
  0xdf   : > { %1996 = vmatprep.mubr.f32.mxu0 %v13002_v0  ;;  %2109 = vmatprep.mubr.f32.mxu1 %v13002_v0 }
  0xe2   : > { %7481 = vmatmul.mubr.msk.f32.gmra.mxu0 %vm247_vm0, %v9809_v32  ;;  %7489 = vmatmul.mubr.msk.f32.gmra.mxu1 %vm247_vm0, %v9809_v32 }
  0xe3   : > { %2002 = vmatprep.mubr.f32.mxu0 %v13002_v0  ;;  %2115 = vmatprep.mubr.f32.mxu1 %v13002_v0 }
  0xe6   : > { %7482 = vmatmul.mubr.msk.f32.gmra.mxu0 %vm247_vm0, %v9820_v33  ;;  %7490 = vmatmul.mubr.msk.f32.gmra.mxu1 %vm247_vm0, %v9820_v33 }
  0xe7   : > { %2008 = vmatprep.mubr.f32.mxu0 %v13002_v0  ;;  %2121 = vmatprep.mubr.f32.mxu1 %v13002_v0 }
  0xea   : > { %7483 = vmatmul.mubr.msk.f32.gmra.mxu0 %vm247_vm0, %v9831_v34  ;;  %7491 = vmatmul.mubr.msk.f32.gmra.mxu1 %vm247_vm0, %v9831_v34 }
  0xeb   : > { %2014 = vmatprep.mubr.f32.mxu0 %v13002_v0  ;;  %2127 = vmatprep.mubr.f32.mxu1 %v13002_v0 }
  0xee   : > { %7484 = vmatmul.mubr.msk.f32.gmra.mxu0 %vm247_vm0, %v9842_v35  ;;  %7492 = vmatmul.mubr.msk.f32.gmra.mxu1 %vm247_vm0, %v9842_v35 }
  0xef   : > { %2020 = vmatprep.mubr.f32.mxu0 %v13002_v0  ;;  %2133 = vmatprep.mubr.f32.mxu1 %v13002_v0 }
  0xf2   : > { %7485 = vmatmul.mubr.msk.f32.gmra.mxu0 %vm247_vm0, %v9853_v36  ;;  %7493 = vmatmul.mubr.msk.f32.gmra.mxu1 %vm247_vm0, %v9853_v36 }
  0xf3   : > { %2204 = vmatprep.mubr.f32.mxu0 %v13002_v0  ;;  %2317 = vmatprep.mubr.f32.mxu1 %v13002_v0 }
  0xf6   : > { %v338_v37 = vpop.f32.mrf.mxu0  ;;  %v451_v38 = vpop.f32.mrf.mxu1  ;;  %7494 = vmatmul.mubr.msk.f32.vlgmr.msra.gmra.mxu0 %vm247_vm0, %v9772_v29  ;;  %7502 = vmatmul.mubr.msk.f32.vlgmr.msra.gmra.mxu1 %vm247_vm0, %v9772_v29 }
  0xf7   : > { %v1402_v39 = vmul.f32 1.442695, %v338_v37  ;;  %v1406_v40 = vmul.f32 1.442695, %v451_v38  ;;  %2510 = vmatpush1.msra.mxu1 %v9532_v19  ;;  %2210 = vmatprep.mubr.f32.mxu0 %v13002_v0 }
  0xf8   : > { %v340_v41 = vpop.f32.mrf.mxu0  ;;  %v453_v42 = vpop.f32.mrf.mxu1  ;;  %2323 = vmatprep.mubr.f32.mxu1 %v13002_v0  ;;  %2397 = vmatpush1.msra.mxu0 %v9535_v20 }
  0xf9   : > { %7797 = vpow2.f32 %v1402_v39  ;;  %v1404_v43 = vmul.f32 1.442695, %v340_v41  ;;  %v1408_v44 = vmul.f32 1.442695, %v453_v42  ;;  %2735 = vmatprep.subr.mxu1 %v9542_v21  ;;  %2622 = vmatprep.subr.mxu0 %v9545_v22 }
  0xfa   : > { %7799 = vpow2.f32 %v1406_v40  ;;  %v344_v45 = vpop.f32.mrf.mxu0  ;;  %v457_v46 = vpop.f32.mrf.mxu1  ;;  %7495 = vmatmul.mubr.msk.f32.gmra.mxu0 %vm247_vm0, %v9783_v30  ;;  %7503 = vmatmul.mubr.msk.f32.gmra.mxu1 %vm247_vm0, %v9783_v30 }
  0xfb   : > { %7801 = vpow2.f32 %v1404_v43  ;;  %v1442_v47 = vmul.f32 1.442695, %v344_v45  ;;  %v1446_v48 = vmul.f32 1.442695, %v457_v46  ;;  %2216 = vmatprep.mubr.f32.mxu0 %v13002_v0  ;;  %2329 = vmatprep.mubr.f32.mxu1 %v13002_v0 }
  0xfc   : > { %7803 = vpow2.f32 %v1408_v44  ;;  %v346_v49 = vpop.f32.mrf.mxu0  ;;  %v459_v50 = vpop.f32.mrf.mxu1 }
  0xfd   : > { %7805 = vpow2.f32 %v1442_v47  ;;  %v1444_v51 = vmul.f32 1.442695, %v346_v49  ;;  %v1448_v52 = vmul.f32 1.442695, %v459_v50 }
  0xfe   : > { %7807 = vpow2.f32 %v1446_v48  ;;  %v350_v53 = vpop.f32.mrf.mxu0  ;;  %v463_v54 = vpop.f32.mrf.mxu1  ;;  %7496 = vmatmul.mubr.msk.f32.gmra.mxu0 %vm247_vm0, %v9798_v31  ;;  %7504 = vmatmul.mubr.msk.f32.gmra.mxu1 %vm247_vm0, %v9798_v31 }
  0xff   : > { %7809 = vpow2.f32 %v1444_v51  ;;  %v1482_v55 = vmul.f32 1.442695, %v350_v53  ;;  %v1486_v56 = vmul.f32 1.442695, %v463_v54  ;;  %2222 = vmatprep.mubr.f32.mxu0 %v13002_v0  ;;  %2335 = vmatprep.mubr.f32.mxu1 %v13002_v0 }
 0x100   : > { %7811 = vpow2.f32 %v1448_v52  ;;  %v352_v57 = vpop.f32.mrf.mxu0  ;;  %v465_v58 = vpop.f32.mrf.mxu1 }
 0x101   : > { %7813 = vpow2.f32 %v1482_v55  ;;  %v1484_v59 = vmul.f32 1.442695, %v352_v57  ;;  %v1488_v60 = vmul.f32 1.442695, %v465_v58 }
 0x102   : > { %7815 = vpow2.f32 %v1486_v56  ;;  %v356_v61 = vpop.f32.mrf.mxu0  ;;  %v469_v62 = vpop.f32.mrf.mxu1  ;;  %7497 = vmatmul.mubr.msk.f32.gmra.mxu0 %vm247_vm0, %v9809_v32  ;;  %7505 = vmatmul.mubr.msk.f32.gmra.mxu1 %vm247_vm0, %v9809_v32 }
 0x103   : > { %7817 = vpow2.f32 %v1484_v59  ;;  %v1522_v63 = vmul.f32 1.442695, %v356_v61  ;;  %v1526_v1 = vmul.f32 1.442695, %v469_v62  ;;  %2228 = vmatprep.mubr.f32.mxu0 %v13002_v0  ;;  %2341 = vmatprep.mubr.f32.mxu1 %v13002_v0 }
 0x104   : > { %7819 = vpow2.f32 %v1488_v60  ;;  %v358_v2 = vpop.f32.mrf.mxu0  ;;  %v471_v3 = vpop.f32.mrf.mxu1 }
 0x105   : > { %7821 = vpow2.f32 %v1522_v63  ;;  %v1524_v4 = vmul.f32 1.442695, %v358_v2  ;;  %v1528_v5 = vmul.f32 1.442695, %v471_v3 }
 0x106   : > { %v9889_v6 = vpop.eup %7797  ;;  %7823 = vpow2.f32 %v1526_v1  ;;  %v362_v7 = vpop.f32.mrf.mxu0  ;;  %7498 = vmatmul.mubr.msk.f32.gmra.mxu0 %vm247_vm0, %v9820_v33  ;;  %7506 = vmatmul.mubr.msk.f32.gmra.mxu1 %vm247_vm0, %v9820_v33 }
 0x107   : > { %v475_v8 = vpop.f32.mrf.mxu1  ;;  %v9895_v9 = vpop.eup %7799  ;;  %7825 = vpow2.f32 %v1524_v4  ;;  %v1562_v10 = vmul.f32 1.442695, %v362_v7  ;;  %2234 = vmatprep.mubr.f32.mxu0 %v13002_v0  ;;  %2347 = vmatprep.mubr.f32.mxu1 %v13002_v0 }
 0x108   : > { %v1566_v11 = vmul.f32 1.442695, %v475_v8  ;;  %v9899_v12 = vpop.eup %7801  ;;  %7827 = vpow2.f32 %v1528_v5  ;;  %v364_v13 = vpop.f32.mrf.mxu0 }
 0x109   : > { %v477_v14 = vpop.f32.mrf.mxu1  ;;  %v9901_v15 = vpop.eup %7803  ;;  %7829 = vpow2.f32 %v1562_v10  ;;  %v1564_v16 = vmul.f32 1.442695, %v364_v13 }
 0x10a   : > { %v1568_v17 = vmul.f32 1.442695, %v477_v14  ;;  %v9903_v18 = vpop.eup %7805  ;;  %7831 = vpow2.f32 %v1566_v11  ;;  %v368_v19 = vpop.f32.mrf.mxu0  ;;  %7499 = vmatmul.mubr.msk.f32.gmra.mxu0 %vm247_vm0, %v9831_v34  ;;  %7507 = vmatmul.mubr.msk.f32.gmra.mxu1 %vm247_vm0, %v9831_v34 }
 0x10b   : > { %v481_v20 = vpop.f32.mrf.mxu1  ;;  %v9909_v21 = vpop.eup %7807  ;;  %7833 = vpow2.f32 %v1564_v16  ;;  %v1602_v22 = vmul.f32 1.442695, %v368_v19  ;;  %2240 = vmatprep.mubr.f32.mxu0 %v13002_v0  ;;  %2353 = vmatprep.mubr.f32.mxu1 %v13002_v0 }
 0x10c   : > { %v1606_v37 = vmul.f32 1.442695, %v481_v20  ;;  %v9913_v38 = vpop.eup %7809  ;;  %7835 = vpow2.f32 %v1568_v17  ;;  %v370_v39 = vpop.f32.mrf.mxu0 }
 0x10d   : > { %v483_v40 = vpop.f32.mrf.mxu1  ;;  %v9915_v41 = vpop.eup %7811  ;;  %7837 = vpow2.f32 %v1602_v22  ;;  %v1604_v42 = vmul.f32 1.442695, %v370_v39 }
 0x10e   : > { %v1608_v43 = vmul.f32 1.442695, %v483_v40  ;;  %v9917_v44 = vpop.eup %7813  ;;  %7839 = vpow2.f32 %v1606_v37  ;;  %v374_v45 = vpop.f32.mrf.mxu0  ;;  %7500 = vmatmul.mubr.msk.f32.gmra.mxu0 %vm247_vm0, %v9842_v35  ;;  %7508 = vmatmul.mubr.msk.f32.gmra.mxu1 %vm247_vm0, %v9842_v35 }
 0x10f   : > { %v487_v46 = vpop.f32.mrf.mxu1  ;;  %v9923_v47 = vpop.eup %7815  ;;  %7841 = vpow2.f32 %v1604_v42  ;;  %v1642_v48 = vmul.f32 1.442695, %v374_v45  ;;  %2246 = vmatprep.mubr.f32.mxu0 %v13002_v0  ;;  %2359 = vmatprep.mubr.f32.mxu1 %v13002_v0 }
 0x110   : > { %v1646_v49 = vmul.f32 1.442695, %v487_v46  ;;  %v9927_v50 = vpop.eup %7817  ;;  %7843 = vpow2.f32 %v1608_v43  ;;  %v376_v51 = vpop.f32.mrf.mxu0 }
 0x111   : > { %v489_v52 = vpop.f32.mrf.mxu1  ;;  %v9929_v53 = vpop.eup %7819  ;;  %7845 = vpow2.f32 %v1642_v48  ;;  %v1644_v54 = vmul.f32 1.442695, %v376_v51 }
 0x112   : > { %v1648_v55 = vmul.f32 1.442695, %v489_v52  ;;  %v9931_v56 = vpop.eup %7821  ;;  %7847 = vpow2.f32 %v1646_v49  ;;  %v380_v57 = vpop.f32.mrf.mxu0  ;;  %7501 = vmatmul.mubr.msk.f32.gmra.mxu0 %vm247_vm0, %v9853_v36  ;;  %7509 = vmatmul.mubr.msk.f32.gmra.mxu1 %vm247_vm0, %v9853_v36 }
 0x113   : > { %v493_v58 = vpop.f32.mrf.mxu1  ;;  %v9937_v59 = vpop.eup %7823  ;;  %7849 = vpow2.f32 %v1644_v54  ;;  %v1682_v60 = vmul.f32 1.442695, %v380_v57  ;;  %2430 = vmatprep.mubr.f32.mxu0 %v13002_v0  ;;  %2543 = vmatprep.mubr.f32.mxu1 %v13002_v0 }
 0x114   : > { %v1686_v61 = vmul.f32 1.442695, %v493_v58  ;;  %v9941_v62 = vpop.eup %7825  ;;  %7851 = vpow2.f32 %v1648_v55  ;;  %v382_v63 = vpop.f32.mrf.mxu0 }
 0x115   : > { %v495_v1 = vpop.f32.mrf.mxu1  ;;  %v9943_v2 = vpop.eup %7827  ;;  %7853 = vpow2.f32 %v1682_v60  ;;  %v1684_v3 = vmul.f32 1.442695, %v382_v63 }
 0x116   : > { %v1688_v4 = vmul.f32 1.442695, %v495_v1  ;;  %v9945_v5 = vpop.eup %7829  ;;  %7855 = vpow2.f32 %v1686_v61  ;;  %v564_v7 = vpop.f32.mrf.mxu0  ;;  %7510 = vmatmul.mubr.msk.f32.vlgmr.msra.gmra.mxu0 %vm247_vm0, %v9772_v29  ;;  %7518 = vmatmul.mubr.msk.f32.vlgmr.msra.gmra.mxu1 %vm247_vm0, %v9772_v29 }
 0x117   : > { %v677_v8 = vpop.f32.mrf.mxu1  ;;  %v9951_v10 = vpop.eup %7831  ;;  %7857 = vpow2.f32 %v1684_v3  ;;  %v1410_v11 = vmul.f32 1.442695, %v564_v7  ;;  %2736 = vmatpush1.msra.mxu1 %v9596_v23  ;;  %2436 = vmatprep.mubr.f32.mxu0 %v13002_v0 }
 0x118   : > { %v1414_v13 = vmul.f32 1.442695, %v677_v8  ;;  %v9955_v14 = vpop.eup %7833  ;;  %7859 = vpow2.f32 %v1688_v4  ;;  %v566_v16 = vpop.f32.mrf.mxu0  ;;  %2549 = vmatprep.mubr.f32.mxu1 %v13002_v0  ;;  %2623 = vmatpush1.msra.mxu0 %v9599_v24 }
 0x119   : > { %v679_v17 = vpop.f32.mrf.mxu1  ;;  %v9959_v19 = vpop.eup %7835  ;;  %7861 = vpow2.f32 %v1410_v11  ;;  %v1412_v20 = vmul.f32 1.442695, %v566_v16  ;;  %2961 = vmatprep.subr.mxu1 %v9606_v25  ;;  %2848 = vmatprep.subr.mxu0 %v9609_v26 }
 0x11a   : > { %v1416_v22 = vmul.f32 1.442695, %v679_v17  ;;  %v9963_v23 = vpop.eup %7837  ;;  %7863 = vpow2.f32 %v1414_v13  ;;  %v570_v37 = vpop.f32.mrf.mxu0  ;;  %7511 = vmatmul.mubr.msk.f32.gmra.mxu0 %vm247_vm0, %v9783_v30  ;;  %7519 = vmatmul.mubr.msk.f32.gmra.mxu1 %vm247_vm0, %v9783_v30 }
 0x11b   : > { %v683_v39 = vpop.f32.mrf.mxu1  ;;  %v9969_v24 = vpop.eup %7839  ;;  %7865 = vpow2.f32 %v1412_v20  ;;  %v1450_v40 = vmul.f32 1.442695, %v570_v37  ;;  %2442 = vmatprep.mubr.f32.mxu0 %v13002_v0  ;;  %2555 = vmatprep.mubr.f32.mxu1 %v13002_v0 }
 0x11c   : > { %v1454_v42 = vmul.f32 1.442695, %v683_v39  ;;  %v9973_v25 = vpop.eup %7841  ;;  %7867 = vpow2.f32 %v1416_v22  ;;  %v572_v26 = vpop.f32.mrf.mxu0 }
 0x11d   : > { %v685_v43 = vpop.f32.mrf.mxu1  ;;  %v9975_v45 = vpop.eup %7843  ;;  %7869 = vpow2.f32 %v1450_v40  ;;  %v1452_v46 = vmul.f32 1.442695, %v572_v26 }
 0x11e   : > { %v1456_v48 = vmul.f32 1.442695, %v685_v43  ;;  %v9977_v49 = vpop.eup %7845  ;;  %7871 = vpow2.f32 %v1454_v42  ;;  %v576_v51 = vpop.f32.mrf.mxu0  ;;  %7512 = vmatmul.mubr.msk.f32.gmra.mxu0 %vm247_vm0, %v9798_v31  ;;  %7520 = vmatmul.mubr.msk.f32.gmra.mxu1 %vm247_vm0, %v9798_v31 }
 0x11f   : > { %v689_v52 = vpop.f32.mrf.mxu1  ;;  %v9983_v54 = vpop.eup %7847  ;;  %7873 = vpow2.f32 %v1452_v46  ;;  %v1490_v55 = vmul.f32 1.442695, %v576_v51  ;;  %2448 = vmatprep.mubr.f32.mxu0 %v13002_v0  ;;  %2561 = vmatprep.mubr.f32.mxu1 %v13002_v0 }
 0x120   : > { %v1494_v57 = vmul.f32 1.442695, %v689_v52  ;;  %v9987_v58 = vpop.eup %7849  ;;  %7875 = vpow2.f32 %v1456_v48  ;;  %v578_v60 = vpop.f32.mrf.mxu0 }
 0x121   : > { %v691_v61 = vpop.f32.mrf.mxu1  ;;  %v9989_v63 = vpop.eup %7851  ;;  %7877 = vpow2.f32 %v1490_v55  ;;  %v1492_v1 = vmul.f32 1.442695, %v578_v60 }
 0x122   : > { %v1496_v3 = vmul.f32 1.442695, %v691_v61  ;;  %v9991_v4 = vpop.eup %7853  ;;  %7879 = vpow2.f32 %v1494_v57  ;;  %v582_v7 = vpop.f32.mrf.mxu0  ;;  %7513 = vmatmul.mubr.msk.f32.gmra.mxu0 %vm247_vm0, %v9809_v32  ;;  %7521 = vmatmul.mubr.msk.f32.gmra.mxu1 %vm247_vm0, %v9809_v32 }
 0x123   : > { %v695_v8 = vpop.f32.mrf.mxu1  ;;  %v9997_v11 = vpop.eup %7855  ;;  %7881 = vpow2.f32 %v1492_v1  ;;  %v1530_v13 = vmul.f32 1.442695, %v582_v7  ;;  %2454 = vmatprep.mubr.f32.mxu0 %v13002_v0  ;;  %2567 = vmatprep.mubr.f32.mxu1 %v13002_v0 }
 0x124   : > { %v1534_v16 = vmul.f32 1.442695, %v695_v8  ;;  %v10001_v17 = vpop.eup %7857  ;;  %7883 = vpow2.f32 %v1496_v3  ;;  %v584_v20 = vpop.f32.mrf.mxu0 }
 0x125   : > { %v697_v22 = vpop.f32.mrf.mxu1  ;;  %v10003_v37 = vpop.eup %7859  ;;  %7885 = vpow2.f32 %v1530_v13  ;;  %v1532_v39 = vmul.f32 1.442695, %v584_v20 }
 0x126   : > { %v1536_v40 = vmul.f32 1.442695, %v697_v22  ;;  %v10005_v42 = vpop.eup %7861  ;;  %7887 = vpow2.f32 %v1534_v16  ;;  %v588_v26 = vpop.f32.mrf.mxu0  ;;  %7514 = vmatmul.mubr.msk.f32.gmra.mxu0 %vm247_vm0, %v9820_v33  ;;  %7522 = vmatmul.mubr.msk.f32.gmra.mxu1 %vm247_vm0, %v9820_v33 }
 0x127   : > { %v701_v43 = vpop.f32.mrf.mxu1  ;;  %v7864_v46 = vpop.eup %7863  ;;  %7889 = vpow2.f32 %v1532_v39  ;;  %v1570_v48 = vmul.f32 1.442695, %v588_v26  ;;  %2460 = vmatprep.mubr.f32.mxu0 %v13002_v0  ;;  %2573 = vmatprep.mubr.f32.mxu1 %v13002_v0 }
 0x128   : > { %v1574_v51 = vmul.f32 1.442695, %v701_v43  ;;  %v7866_v52 = vpop.eup %7865  ;;  %7891 = vpow2.f32 %v1536_v40  ;;  %v590_v55 = vpop.f32.mrf.mxu0  ;;  %v10014_v60 = vadd.f32 %v7864_v46, %v9899_v12 }
 0x129   : > { %v703_v57 = vpop.f32.mrf.mxu1  ;;  %v7868_v61 = vpop.eup %7867  ;;  %7893 = vpow2.f32 %v1570_v48  ;;  %v1572_v1 = vmul.f32 1.442695, %v590_v55  ;;  %v10017_v7 = vadd.f32 %v7866_v52, %v9889_v6 }
 0x12a   : > { %v1576_v3 = vmul.f32 1.442695, %v703_v57  ;;  %v10019_v8 = vpop.eup %7869  ;;  %7895 = vpow2.f32 %v1574_v51  ;;  %v594_v13 = vpop.f32.mrf.mxu0  ;;  %7515 = vmatmul.mubr.msk.f32.gmra.mxu0 %vm247_vm0, %v9831_v34  ;;  %7523 = vmatmul.mubr.msk.f32.gmra.mxu1 %vm247_vm0, %v9831_v34  ;;  %v10026_v12 = vadd.f32 %v7868_v61, %v9895_v9 }
 0x12b   : > { %v707_v16 = vpop.f32.mrf.mxu1  ;;  %v7872_v20 = vpop.eup %7871  ;;  %7897 = vpow2.f32 %v1572_v1  ;;  %v1610_v22 = vmul.f32 1.442695, %v594_v13  ;;  %2466 = vmatprep.mubr.f32.mxu0 %v13002_v0  ;;  %2579 = vmatprep.mubr.f32.mxu1 %v13002_v0 }
 0x12c   : > { %v1614_v39 = vmul.f32 1.442695, %v707_v16  ;;  %v7874_v6 = vpop.eup %7873  ;;  %7899 = vpow2.f32 %v1576_v3  ;;  %v596_v40 = vpop.f32.mrf.mxu0  ;;  %v10031_v43 = vadd.f32 %v7872_v20, %v9913_v38 }
 0x12d   : > { %v709_v26 = vpop.f32.mrf.mxu1  ;;  %v7876_v46 = vpop.eup %7875  ;;  %7901 = vpow2.f32 %v1610_v22  ;;  %v1612_v48 = vmul.f32 1.442695, %v596_v40  ;;  %v10034_v51 = vadd.f32 %v7874_v6, %v9903_v18 }
 0x12e   : > { %v1616_v9 = vmul.f32 1.442695, %v709_v26  ;;  %v10036_v52 = vpop.eup %7877  ;;  %7903 = vpow2.f32 %v1614_v39  ;;  %v600_v55 = vpop.f32.mrf.mxu0  ;;  %7516 = vmatmul.mubr.msk.f32.gmra.mxu0 %vm247_vm0, %v9842_v35  ;;  %7524 = vmatmul.mubr.msk.f32.gmra.mxu1 %vm247_vm0, %v9842_v35  ;;  %v10043_v38 = vadd.f32 %v7876_v46, %v9909_v21 }
 0x12f   : > { %v713_v57 = vpop.f32.mrf.mxu1  ;;  %v7880_v61 = vpop.eup %7879  ;;  %7905 = vpow2.f32 %v1612_v48  ;;  %v1650_v1 = vmul.f32 1.442695, %v600_v55  ;;  %2472 = vmatprep.mubr.f32.mxu0 %v13002_v0  ;;  %2585 = vmatprep.mubr.f32.mxu1 %v13002_v0 }
 0x130   : > { %v1654_v3 = vmul.f32 1.442695, %v713_v57  ;;  %v7882_v18 = vpop.eup %7881  ;;  %7907 = vpow2.f32 %v1616_v9  ;;  %v602_v13 = vpop.f32.mrf.mxu0  ;;  %v10048_v20 = vadd.f32 %v7880_v61, %v9927_v50 }
 0x131   : > { %v715_v16 = vpop.f32.mrf.mxu1  ;;  %v7884_v22 = vpop.eup %7883  ;;  %7909 = vpow2.f32 %v1650_v1  ;;  %v1652_v39 = vmul.f32 1.442695, %v602_v13  ;;  %v10051_v6 = vadd.f32 %v7882_v18, %v9917_v44 }
 0x132   : > { %v1656_v21 = vmul.f32 1.442695, %v715_v16  ;;  %v10053_v40 = vpop.eup %7885  ;;  %7911 = vpow2.f32 %v1654_v3  ;;  %v606_v26 = vpop.f32.mrf.mxu0  ;;  %7517 = vmatmul.mubr.msk.f32.gmra.mxu0 %vm247_vm0, %v9853_v36  ;;  %7525 = vmatmul.mubr.msk.f32.gmra.mxu1 %vm247_vm0, %v9853_v36  ;;  %v10060_v50 = vadd.f32 %v7884_v22, %v9923_v47 }
 0x133   : > { %v719_v46 = vpop.f32.mrf.mxu1  ;;  %v7888_v48 = vpop.eup %7887  ;;  %7913 = vpow2.f32 %v1652_v39  ;;  %v1690_v9 = vmul.f32 1.442695, %v606_v26  ;;  %2656 = vmatprep.mubr.f32.mxu0 %v13002_v0  ;;  %2769 = vmatprep.mubr.f32.mxu1 %v13002_v0 }
 0x134   : > { %v1694_v55 = vmul.f32 1.442695, %v719_v46  ;;  %v7890_v44 = vpop.eup %7889  ;;  %7915 = vpow2.f32 %v1656_v21  ;;  %v608_v57 = vpop.f32.mrf.mxu0  ;;  %v10065_v1 = vadd.f32 %v7888_v48, %v9941_v62 }
 0x135   : > { %v721_v61 = vpop.f32.mrf.mxu1  ;;  %v7892_v3 = vpop.eup %7891  ;;  %7917 = vpow2.f32 %v1690_v9  ;;  %v1692_v18 = vmul.f32 1.442695, %v608_v57  ;;  %v10068_v13 = vadd.f32 %v7890_v44, %v9931_v56  ;;  %v9077_v57 = vld [vmem:[%s9395_s29 + $0x18] sm:$0xff] }
 0x136   : > { %v1696_v47 = vmul.f32 1.442695, %v721_v61  ;;  %v10070_v16 = vpop.eup %7893  ;;  %7919 = vpow2.f32 %v1694_v55  ;;  %v790_v22 = vpop.f32.mrf.mxu0  ;;  %7526 = vmatmul.mubr.msk.f32.vlgmr.msra.gmra.mxu0 %vm247_vm0, %v9772_v29  ;;  %7534 = vmatmul.mubr.msk.f32.vlgmr.msra.gmra.mxu1 %vm247_vm0, %v9772_v29  ;;  %v10077_v62 = vadd.f32 %v7892_v3, %v9937_v59 }
 0x137   : > { %v903_v39 = vpop.f32.mrf.mxu1  ;;  %v7896_v21 = vpop.eup %7895  ;;  %7921 = vpow2.f32 %v1692_v18  ;;  %v1418_v26 = vmul.f32 1.442695, %v790_v22  ;;  %2962 = vmatpush1.msra.mxu1 %v9660_v27  ;;  %2662 = vmatprep.mubr.f32.mxu0 %v13002_v0  ;;  %v9078_v27 = vld [vmem:[%s9395_s29 + $0x8] sm:$0xff] }
 0x138   : > { %v1422_v56 = vmul.f32 1.442695, %v903_v39  ;;  %v7898_v46 = vpop.eup %7897  ;;  %7923 = vpow2.f32 %v1696_v47  ;;  %v792_v48 = vpop.f32.mrf.mxu0  ;;  %2775 = vmatprep.mubr.f32.mxu1 %v13002_v0  ;;  %2849 = vmatpush1.msra.mxu0 %v9663_v28  ;;  %v10084_v29 = vadd.f32 %v7896_v21, %v9955_v14 }
 0x139   : > { %v905_v9 = vpop.f32.mrf.mxu1  ;;  %v7900_v59 = vpop.eup %7899  ;;  %7925 = vpow2.f32 %v1418_v26  ;;  %v1420_v55 = vmul.f32 1.442695, %v792_v48  ;;  %3699 = vmatprep.subr.mxu1 %v9077_v57  ;;  %3586 = vmatprep.subr.mxu0 %v9078_v27  ;;  %v10089_v61 = vadd.f32 %v7898_v46, %v9945_v5 }
 0x13a   : > { %v1424_v44 = vmul.f32 1.442695, %v905_v9  ;;  %v10091_v3 = vpop.eup %7901  ;;  %7927 = vpow2.f32 %v1422_v56  ;;  %v796_v18 = vpop.f32.mrf.mxu0  ;;  %7527 = vmatmul.mubr.msk.f32.gmra.mxu0 %vm247_vm0, %v9783_v30  ;;  %7535 = vmatmul.mubr.msk.f32.gmra.mxu1 %vm247_vm0, %v9783_v30  ;;  %v10098_v28 = vadd.f32 %v7900_v59, %v9951_v10 }
 0x13b   : > { %v909_v47 = vpop.f32.mrf.mxu1  ;;  %v7904_v14 = vpop.eup %7903  ;;  %7929 = vpow2.f32 %v1420_v55  ;;  %v1458_v22 = vmul.f32 1.442695, %v796_v18  ;;  %2668 = vmatprep.mubr.f32.mxu0 %v13002_v0  ;;  %2781 = vmatprep.mubr.f32.mxu1 %v13002_v0 }
 0x13c   : > { %v1462_v39 = vmul.f32 1.442695, %v909_v47  ;;  %v7906_v5 = vpop.eup %7905  ;;  %7931 = vpow2.f32 %v1424_v44  ;;  %v798_v21 = vpop.f32.mrf.mxu0  ;;  %v10103_v56 = vadd.f32 %v7904_v14, %v9973_v25 }
 0x13d   : > { %v911_v26 = vpop.f32.mrf.mxu1  ;;  %v7908_v46 = vpop.eup %7907  ;;  %7933 = vpow2.f32 %v1458_v22  ;;  %v1460_v30 = vmul.f32 1.442695, %v798_v21  ;;  %v10106_v48 = vadd.f32 %v7906_v5, %v9963_v23 }
 0x13e   : > { %v1464_v10 = vmul.f32 1.442695, %v911_v26  ;;  %v10108_v9 = vpop.eup %7909  ;;  %7935 = vpow2.f32 %v1462_v39  ;;  %v802_v59 = vpop.f32.mrf.mxu0  ;;  %7528 = vmatmul.mubr.msk.f32.gmra.mxu0 %vm247_vm0, %v9798_v31  ;;  %7536 = vmatmul.mubr.msk.f32.gmra.mxu1 %vm247_vm0, %v9798_v31  ;;  %v10115_v25 = vadd.f32 %v7908_v46, %v9969_v24 }
 0x13f   : > { %v915_v55 = vpop.f32.mrf.mxu1  ;;  %v7912_v44 = vpop.eup %7911  ;;  %7937 = vpow2.f32 %v1460_v30  ;;  %v1498_v57 = vmul.f32 1.442695, %v802_v59  ;;  %2674 = vmatprep.mubr.f32.mxu0 %v13002_v0  ;;  %2787 = vmatprep.mubr.f32.mxu1 %v13002_v0 }
 0x140   : > { %v1502_v27 = vmul.f32 1.442695, %v915_v55  ;;  %v7914_v23 = vpop.eup %7913  ;;  %7939 = vpow2.f32 %v1464_v10  ;;  %v804_v18 = vpop.f32.mrf.mxu0  ;;  %v10120_v14 = vadd.f32 %v7912_v44, %v9987_v58 }
 0x141   : > { %v917_v47 = vpop.f32.mrf.mxu1  ;;  %v7916_v22 = vpop.eup %7915  ;;  %7941 = vpow2.f32 %v1498_v57  ;;  %v1500_v31 = vmul.f32 1.442695, %v804_v18  ;;  %v10123_v39 = vadd.f32 %v7914_v23, %v9977_v49 }
 0x142   : > { %v1504_v24 = vmul.f32 1.442695, %v917_v47  ;;  %v10125_v5 = vpop.eup %7917  ;;  %7943 = vpow2.f32 %v1502_v27  ;;  %v808_v21 = vpop.f32.mrf.mxu0  ;;  %7529 = vmatmul.mubr.msk.f32.gmra.mxu0 %vm247_vm0, %v9809_v32  ;;  %7537 = vmatmul.mubr.msk.f32.gmra.mxu1 %vm247_vm0, %v9809_v32  ;;  %v10132_v58 = vadd.f32 %v7916_v22, %v9983_v54 }
 0x143   : > { %v921_v26 = vpop.f32.mrf.mxu1  ;;  %v7920_v46 = vpop.eup %7919  ;;  %7945 = vpow2.f32 %v1500_v31  ;;  %v1538_v30 = vmul.f32 1.442695, %v808_v21  ;;  %2680 = vmatprep.mubr.f32.mxu0 %v13002_v0  ;;  %2793 = vmatprep.mubr.f32.mxu1 %v13002_v0 }
 0x144   : > { %v1542_v10 = vmul.f32 1.442695, %v921_v26  ;;  %v7922_v49 = vpop.eup %7921  ;;  %7947 = vpow2.f32 %v1504_v24  ;;  %v810_v59 = vpop.f32.mrf.mxu0  ;;  %v10137_v44 = vadd.f32 %v7920_v46, %v10001_v17 }
 0x145   : > { %v923_v55 = vpop.f32.mrf.mxu1  ;;  %v7924_v57 = vpop.eup %7923  ;;  %7949 = vpow2.f32 %v1538_v30  ;;  %v1540_v32 = vmul.f32 1.442695, %v810_v59  ;;  %v10140_v27 = vadd.f32 %v7922_v49, %v9991_v4 }
 0x146   : > { %v1544_v54 = vmul.f32 1.442695, %v923_v55  ;;  %v7926_v23 = vpop.eup %7925  ;;  %7951 = vpow2.f32 %v1542_v10  ;;  %v814_v18 = vpop.f32.mrf.mxu0  ;;  %7530 = vmatmul.mubr.msk.f32.gmra.mxu0 %vm247_vm0, %v9820_v33  ;;  %7538 = vmatmul.mubr.msk.f32.gmra.mxu1 %vm247_vm0, %v9820_v33  ;;  %v10147_v17 = vadd.f32 %v7924_v57, %v9997_v11 }
 0x147   : > { %v927_v47 = vpop.f32.mrf.mxu1  ;;  %v7928_v22 = vpop.eup %7927  ;;  %7953 = vpow2.f32 %v1540_v32  ;;  %v1578_v31 = vmul.f32 1.442695, %v814_v18  ;;  %2686 = vmatprep.mubr.f32.mxu0 %v13002_v0  ;;  %2799 = vmatprep.mubr.f32.mxu1 %v13002_v0  ;;  %v10152_v4 = vadd.f32 %v7926_v23, %v9901_v15 }
 0x148   : > { %v1582_v24 = vmul.f32 1.442695, %v927_v47  ;;  %v7930_v21 = vpop.eup %7929  ;;  %7955 = vpow2.f32 %v1544_v54  ;;  %v816_v26 = vpop.f32.mrf.mxu0  ;;  %v10155_v33 = vadd.f32 %v7928_v22, %v10017_v7 }
 0x149   : > { %v929_v46 = vpop.f32.mrf.mxu1  ;;  %v7932_v11 = vpop.eup %7931  ;;  %7957 = vpow2.f32 %v1578_v31  ;;  %v1580_v30 = vmul.f32 1.442695, %v816_v26  ;;  %v10158_v49 = vadd.f32 %v7930_v21, %v10005_v42 }
 0x14a   : > { %v1584_v10 = vmul.f32 1.442695, %v929_v46  ;;  %v7934_v59 = vpop.eup %7933  ;;  %7959 = vpow2.f32 %v1582_v24  ;;  %v820_v55 = vpop.f32.mrf.mxu0  ;;  %7531 = vmatmul.mubr.msk.f32.gmra.mxu0 %vm247_vm0, %v9831_v34  ;;  %7539 = vmatmul.mubr.msk.f32.gmra.mxu1 %vm247_vm0, %v9831_v34  ;;  %v10165_v15 = vadd.f32 %v7932_v11, %v10014_v60 }
 0x14b   : > { %v933_v57 = vpop.f32.mrf.mxu1  ;;  %v7936_v7 = vpop.eup %7935  ;;  %7961 = vpow2.f32 %v1580_v30  ;;  %v1618_v32 = vmul.f32 1.442695, %v820_v55  ;;  %2692 = vmatprep.mubr.f32.mxu0 %v13002_v0  ;;  %2805 = vmatprep.mubr.f32.mxu1 %v13002_v0  ;;  %v10170_v42 = vadd.f32 %v7934_v59, %v9915_v41 }
 0x14c   : > { %v1622_v54 = vmul.f32 1.442695, %v933_v57  ;;  %v7938_v23 = vpop.eup %7937  ;;  %7963 = vpow2.f32 %v1584_v10  ;;  %v822_v18 = vpop.f32.mrf.mxu0  ;;  %v10173_v34 = vadd.f32 %v7936_v7, %v10034_v51 }
 0x14d   : > { %v935_v47 = vpop.f32.mrf.mxu1  ;;  %v7940_v60 = vpop.eup %7939  ;;  %7965 = vpow2.f32 %v1618_v32  ;;  %v1620_v22 = vmul.f32 1.442695, %v822_v18  ;;  %v10176_v24 = vadd.f32 %v7938_v23, %v10019_v8 }
 0x14e   : > { %v1624_v31 = vmul.f32 1.442695, %v935_v47  ;;  %v7942_v21 = vpop.eup %7941  ;;  %7967 = vpow2.f32 %v1622_v54  ;;  %v826_v26 = vpop.f32.mrf.mxu0  ;;  %7532 = vmatmul.mubr.msk.f32.gmra.mxu0 %vm247_vm0, %v9842_v35  ;;  %7540 = vmatmul.mubr.msk.f32.gmra.mxu1 %vm247_vm0, %v9842_v35  ;;  %v10183_v41 = vadd.f32 %v7940_v60, %v10031_v43 }
 0x14f   : > { %v939_v46 = vpop.f32.mrf.mxu1  ;;  %v7944_v51 = vpop.eup %7943  ;;  %7969 = vpow2.f32 %v1620_v22  ;;  %v1658_v11 = vmul.f32 1.442695, %v826_v26  ;;  %2698 = vmatprep.mubr.f32.mxu0 %v13002_v0  ;;  %2811 = vmatprep.mubr.f32.mxu1 %v13002_v0  ;;  %v10188_v8 = vadd.f32 %v7942_v21, %v9929_v53 }
 0x150   : > { %v1662_v30 = vmul.f32 1.442695, %v939_v46  ;;  %v7946_v10 = vpop.eup %7945  ;;  %7971 = vpow2.f32 %v1624_v31  ;;  %v828_v59 = vpop.f32.mrf.mxu0  ;;  %v10191_v35 = vadd.f32 %v7944_v51, %v10051_v6 }
 0x151   : > { %v941_v55 = vpop.f32.mrf.mxu1  ;;  %v7948_v43 = vpop.eup %7947  ;;  %7973 = vpow2.f32 %v1658_v11  ;;  %v1660_v57 = vmul.f32 1.442695, %v828_v59  ;;  %v10194_v32 = vadd.f32 %v7946_v10, %v10036_v52  ;;  %v9079_v10 = vld [vmem:[%s12999_s1 + $0x40] sm:$0xff] }
 0x152   : > { %v1664_v7 = vmul.f32 1.442695, %v941_v55  ;;  %v7950_v54 = vpop.eup %7949  ;;  %7975 = vpow2.f32 %v1662_v30  ;;  %v832_v23 = vpop.f32.mrf.mxu0  ;;  %7533 = vmatmul.mubr.msk.f32.gmra.mxu0 %vm247_vm0, %v9853_v36  ;;  %7541 = vmatmul.mubr.msk.f32.gmra.mxu1 %vm247_vm0, %v9853_v36  ;;  %v10201_v53 = vadd.f32 %v7948_v43, %v10048_v20  ;;  %v9080_v43 = vld [vmem:[%s9395_s29 + $0x10] sm:$0xff] }
 0x153   : > { %v945_v18 = vpop.f32.mrf.mxu1  ;;  %v7952_v6 = vpop.eup %7951  ;;  %7977 = vpow2.f32 %v1660_v57  ;;  %v1698_v47 = vmul.f32 1.442695, %v832_v23  ;;  %2882 = vmatprep.mubr.f32.mxu0 %v13002_v0  ;;  %2995 = vmatprep.mubr.f32.mxu1 %v13002_v0  ;;  %v10206_v52 = vadd.f32 %v7950_v54, %v9943_v2 }
 0x154   : > { %v1702_v60 = vmul.f32 1.442695, %v945_v18  ;;  %v7954_v22 = vpop.eup %7953  ;;  %7979 = vpow2.f32 %v1664_v7  ;;  %v834_v31 = vpop.f32.mrf.mxu0  ;;  %v10209_v36 = vadd.f32 %v7952_v6, %v10068_v13 }
 0x155   : > { %v947_v21 = vpop.f32.mrf.mxu1  ;;  %v7956_v20 = vpop.eup %7955  ;;  %7981 = vpow2.f32 %v1698_v47  ;;  %v1700_v26 = vmul.f32 1.442695, %v834_v31  ;;  %v10212_v51 = vadd.f32 %v7954_v22, %v10053_v40  ;;  %v9082_v22 = vld [vmem:[%s9395_s29 + $0x38] sm:$0xff]  ;;  %v9083_v31 = vld [vmem:[%s9395_s29 + $0x28] sm:$0xff] }
 0x156   : > { %v1704_v46 = vmul.f32 1.442695, %v947_v21  ;;  %v7958_v11 = vpop.eup %7957  ;;  %7983 = vpow2.f32 %v1702_v60  ;;  %v1016_v30 = vpop.f32.mrf.mxu0  ;;  %7542 = vmatmul.mubr.msk.f32.vlgmr.msra.gmra.mxu0 %vm247_vm0, %v9079_v10  ;;  %7550 = vmatmul.mubr.msk.f32.vlgmr.msra.gmra.mxu1 %vm247_vm0, %v9079_v10  ;;  %v10220_v13 = vadd.f32 %v7956_v20, %v10065_v1  ;;  %v9081_v1 = vld [vmem:[%s9395_s29] sm:$0xff] }
 0x157   : > { %v1129_v2 = vpop.f32.mrf.mxu1  ;;  %v7960_v59 = vpop.eup %7959  ;;  %7985 = vpow2.f32 %v1700_v26  ;;  %v1426_v40 = vmul.f32 1.442695, %v1016_v30  ;;  %3700 = vmatpush1.msra.mxu1 %v9080_v43  ;;  %2888 = vmatprep.mubr.f32.mxu0 %v13002_v0  ;;  %v10225_v57 = vadd.f32 %v7958_v11, %v9959_v19 }
 0x158   : > { %v1430_v55 = vmul.f32 1.442695, %v1129_v2  ;;  %v7962_v7 = vpop.eup %7961  ;;  %7987 = vpow2.f32 %v1704_v46  ;;  %v1018_v54 = vpop.f32.mrf.mxu0  ;;  %3001 = vmatprep.mubr.f32.mxu1 %v13002_v0  ;;  %3587 = vmatpush1.msra.mxu0 %v9081_v1  ;;  %v10230_v18 = vadd.f32 %v7960_v59, %v10089_v61  ;;  %v9084_v61 = vld [vmem:[%s12999_s1 + $0x48] sm:$0xff] }
 0x159   : > { %v1131_v23 = vpop.f32.mrf.mxu1  ;;  %v7964_v6 = vpop.eup %7963  ;;  %7989 = vpow2.f32 %v1426_v40  ;;  %v1428_v47 = vmul.f32 1.442695, %v1018_v54  ;;  %3925 = vmatprep.subr.mxu1 %v9082_v22  ;;  %3812 = vmatprep.subr.mxu0 %v9083_v31  ;;  %v10235_v19 = vadd.f32 %v7962_v7, %v10070_v16 }
 0x15a   : > { %v1432_v60 = vmul.f32 1.442695, %v1131_v23  ;;  %v7966_v21 = vpop.eup %7965  ;;  %7991 = vpow2.f32 %v1430_v55  ;;  %v1022_v20 = vpop.f32.mrf.mxu0  ;;  %7543 = vmatmul.mubr.msk.f32.gmra.mxu0 %vm247_vm0, %v9084_v61  ;;  %7551 = vmatmul.mubr.msk.f32.gmra.mxu1 %vm247_vm0, %v9084_v61  ;;  %v10243_v46 = vadd.f32 %v7964_v6, %v10084_v29 }
 0x15b   : > { %v1135_v26 = vpop.f32.mrf.mxu1  ;;  %v7968_v11 = vpop.eup %7967  ;;  %7993 = vpow2.f32 %v1428_v47  ;;  %v1466_v30 = vmul.f32 1.442695, %v1022_v20  ;;  %2894 = vmatprep.mubr.f32.mxu0 %v13002_v0  ;;  %3007 = vmatprep.mubr.f32.mxu1 %v13002_v0  ;;  %v10248_v2 = vadd.f32 %v7966_v21, %v9975_v45  ;;  %v9085_v45 = vld [vmem:[%s12999_s1 + $0x50] sm:$0xff] }
 0x15c   : > { %v1470_v16 = vmul.f32 1.442695, %v1135_v26  ;;  %v7970_v10 = vpop.eup %7969  ;;  %7995 = vpow2.f32 %v1432_v60  ;;  %v1024_v59 = vpop.f32.mrf.mxu0  ;;  %v10251_v55 = vadd.f32 %v7968_v11, %v10106_v48 }
 0x15d   : > { %v1137_v40 = vpop.f32.mrf.mxu1  ;;  %v7972_v29 = vpop.eup %7971  ;;  %7997 = vpow2.f32 %v1466_v30  ;;  %v1468_v43 = vmul.f32 1.442695, %v1024_v59  ;;  %v10254_v54 = vadd.f32 %v7970_v10, %v10091_v3 }
 0x15e   : > { %v1472_v7 = vmul.f32 1.442695, %v1137_v40  ;;  %v7974_v23 = vpop.eup %7973  ;;  %7999 = vpow2.f32 %v1470_v16  ;;  %v1028_v1 = vpop.f32.mrf.mxu0  ;;  %7544 = vmatmul.mubr.msk.f32.gmra.mxu0 %vm247_vm0, %v9085_v45  ;;  %7552 = vmatmul.mubr.msk.f32.gmra.mxu1 %vm247_vm0, %v9085_v45  ;;  %v10262_v48 = vadd.f32 %v7972_v29, %v10103_v56 }
 0x15f   : > { %v1141_v6 = vpop.f32.mrf.mxu1  ;;  %v7976_v47 = vpop.eup %7975  ;;  %8001 = vpow2.f32 %v1468_v43  ;;  %v1506_v60 = vmul.f32 1.442695, %v1028_v1  ;;  %2900 = vmatprep.mubr.f32.mxu0 %v13002_v0  ;;  %3013 = vmatprep.mubr.f32.mxu1 %v13002_v0  ;;  %v10267_v22 = vadd.f32 %v7974_v23, %v9989_v63  ;;  %v9086_v63 = vld [vmem:[%s12999_s1 + $0x58] sm:$0xff] }
 0x160   : > { %v1510_v3 = vmul.f32 1.442695, %v1141_v6  ;;  %v7978_v31 = vpop.eup %7977  ;;  %8003 = vpow2.f32 %v1472_v7  ;;  %v1030_v21 = vpop.f32.mrf.mxu0  ;;  %v10270_v26 = vadd.f32 %v7976_v47, %v10123_v39 }
 0x161   : > { %v1143_v20 = vpop.f32.mrf.mxu1  ;;  %v7980_v56 = vpop.eup %7979  ;;  %8005 = vpow2.f32 %v1506_v60  ;;  %v1508_v61 = vmul.f32 1.442695, %v1030_v21  ;;  %v10273_v30 = vadd.f32 %v7978_v31, %v10108_v9 }
 0x162   : > { %v1512_v11 = vmul.f32 1.442695, %v1143_v20  ;;  %v7982_v16 = vpop.eup %7981  ;;  %8007 = vpow2.f32 %v1510_v3  ;;  %v1034_v10 = vpop.f32.mrf.mxu0  ;;  %7545 = vmatmul.mubr.msk.f32.gmra.mxu0 %vm247_vm0, %v9086_v63  ;;  %7553 = vmatmul.mubr.msk.f32.gmra.mxu1 %vm247_vm0, %v9086_v63  ;;  %v10281_v39 = vadd.f32 %v7980_v56, %v10120_v14 }
 0x163   : > { %v1147_v59 = vpop.f32.mrf.mxu1  ;;  %v7984_v40 = vpop.eup %7983  ;;  %8009 = vpow2.f32 %v1508_v61  ;;  %v1546_v29 = vmul.f32 1.442695, %v1034_v10  ;;  %2906 = vmatprep.mubr.f32.mxu0 %v13002_v0  ;;  %3019 = vmatprep.mubr.f32.mxu1 %v13002_v0  ;;  %v10286_v43 = vadd.f32 %v7982_v16, %v10003_v37  ;;  %v9087_v37 = vld [vmem:[%s12999_s1 + $0x60] sm:$0xff] }
 0x164   : > { %v1550_v9 = vmul.f32 1.442695, %v1147_v59  ;;  %v7986_v7 = vpop.eup %7985  ;;  %8011 = vpow2.f32 %v1512_v11  ;;  %v1036_v23 = vpop.f32.mrf.mxu0  ;;  %v10289_v6 = vadd.f32 %v7984_v40, %v10140_v27 }
 0x165   : > { %v1149_v1 = vpop.f32.mrf.mxu1  ;;  %v7988_v14 = vpop.eup %7987  ;;  %8013 = vpow2.f32 %v1546_v29  ;;  %v1548_v45 = vmul.f32 1.442695, %v1036_v23  ;;  %v10292_v60 = vadd.f32 %v7986_v7, %v10125_v5 }
 0x166   : > { %v1552_v47 = vmul.f32 1.442695, %v1149_v1  ;;  %v7990_v3 = vpop.eup %7989  ;;  %8015 = vpow2.f32 %v1550_v9  ;;  %v1040_v31 = vpop.f32.mrf.mxu0  ;;  %7546 = vmatmul.mubr.msk.f32.gmra.mxu0 %vm247_vm0, %v9087_v37  ;;  %7554 = vmatmul.mubr.msk.f32.gmra.mxu1 %vm247_vm0, %v9087_v37  ;;  %v10300_v27 = vadd.f32 %v7988_v14, %v10137_v44 }
 0x167   : > { %v1153_v21 = vpop.f32.mrf.mxu1  ;;  %v7992_v20 = vpop.eup %7991  ;;  %8017 = vpow2.f32 %v1548_v45  ;;  %v1586_v56 = vmul.f32 1.442695, %v1040_v31  ;;  %2912 = vmatprep.mubr.f32.mxu0 %v13002_v0  ;;  %3025 = vmatprep.mubr.f32.mxu1 %v13002_v0  ;;  %v10305_v61 = vadd.f32 %v7990_v3, %v10026_v12  ;;  %v9088_v12 = vld [vmem:[%s12999_s1 + $0x68] sm:$0xff] }
 0x168   : > { %v1590_v5 = vmul.f32 1.442695, %v1153_v21  ;;  %v7994_v11 = vpop.eup %7993  ;;  %8019 = vpow2.f32 %v1552_v47  ;;  %v1042_v16 = vpop.f32.mrf.mxu0  ;;  %v10308_v59 = vadd.f32 %v7992_v20, %v10158_v49 }
 0x169   : > { %v1155_v10 = vpop.f32.mrf.mxu1  ;;  %v7996_v44 = vpop.eup %7995  ;;  %8021 = vpow2.f32 %v1586_v56  ;;  %v1588_v63 = vmul.f32 1.442695, %v1042_v16  ;;  %v10311_v29 = vadd.f32 %v7994_v11, %v10152_v4 }
 0x16a   : > { %v1592_v40 = vmul.f32 1.442695, %v1155_v10  ;;  %v7998_v9 = vpop.eup %7997  ;;  %8023 = vpow2.f32 %v1590_v5  ;;  %v1046_v7 = vpop.f32.mrf.mxu0  ;;  %7547 = vmatmul.mubr.msk.f32.gmra.mxu0 %vm247_vm0, %v9088_v12  ;;  %7555 = vmatmul.mubr.msk.f32.gmra.mxu1 %vm247_vm0, %v9088_v12  ;;  %v10319_v49 = vadd.f32 %v7996_v44, %v10155_v33 }
 0x16b   : > { %v1159_v23 = vpop.f32.mrf.mxu1  ;;  %v8000_v1 = vpop.eup %7999  ;;  %8025 = vpow2.f32 %v1588_v63  ;;  %v1626_v14 = vmul.f32 1.442695, %v1046_v7  ;;  %2918 = vmatprep.mubr.f32.mxu0 %v13002_v0  ;;  %3031 = vmatprep.mubr.f32.mxu1 %v13002_v0  ;;  %v10324_v45 = vadd.f32 %v7998_v9, %v10043_v38  ;;  %v9089_v38 = vld [vmem:[%s12999_s1 + $0x70] sm:$0xff] }
 0x16c   : > { %v1630_v4 = vmul.f32 1.442695, %v1159_v23  ;;  %v8002_v47 = vpop.eup %8001  ;;  %8027 = vpow2.f32 %v1592_v40  ;;  %v1048_v3 = vpop.f32.mrf.mxu0  ;;  %v10327_v21 = vadd.f32 %v8000_v1, %v10176_v24 }
 0x16d   : > { %v1161_v31 = vpop.f32.mrf.mxu1  ;;  %v8004_v33 = vpop.eup %8003  ;;  %8029 = vpow2.f32 %v1626_v14  ;;  %v1628_v37 = vmul.f32 1.442695, %v1048_v3  ;;  %v10330_v56 = vadd.f32 %v8002_v47, %v10170_v42 }
 0x16e   : > { %v1632_v20 = vmul.f32 1.442695, %v1161_v31  ;;  %v8006_v5 = vpop.eup %8005  ;;  %8031 = vpow2.f32 %v1630_v4  ;;  %v1052_v11 = vpop.f32.mrf.mxu0  ;;  %7548 = vmatmul.mubr.msk.f32.gmra.mxu0 %vm247_vm0, %v9089_v38  ;;  %7556 = vmatmul.mubr.msk.f32.gmra.mxu1 %vm247_vm0, %v9089_v38  ;;  %v10338_v24 = vadd.f32 %v8004_v33, %v10173_v34 }
 0x16f   : > { %v1165_v16 = vpop.f32.mrf.mxu1  ;;  %v8008_v10 = vpop.eup %8007  ;;  %8033 = vpow2.f32 %v1628_v37  ;;  %v1666_v44 = vmul.f32 1.442695, %v1052_v11  ;;  %2924 = vmatprep.mubr.f32.mxu0 %v13002_v0  ;;  %3037 = vmatprep.mubr.f32.mxu1 %v13002_v0  ;;  %v10343_v63 = vadd.f32 %v8006_v5, %v10060_v50  ;;  %v9090_v50 = vld [vmem:[%s12999_s1 + $0x78] sm:$0xff]  ;;  %v10364_v37 = vld [vmem:[%s12999_s1 + $0x80] sm:$0xff] }
 0x170   : > { %v1670_v42 = vmul.f32 1.442695, %v1165_v16  ;;  %v8010_v40 = vpop.eup %8009  ;;  %8035 = vpow2.f32 %v1632_v20  ;;  %v1054_v9 = vpop.f32.mrf.mxu0  ;;  %v10346_v23 = vadd.f32 %v8008_v10, %v10194_v32 }
 0x171   : > { %v1167_v7 = vpop.f32.mrf.mxu1  ;;  %v8012_v34 = vpop.eup %8011  ;;  %8037 = vpow2.f32 %v1666_v44  ;;  %v1668_v12 = vmul.f32 1.442695, %v1054_v9  ;;  %v10349_v14 = vadd.f32 %v8010_v40, %v10188_v8 }
 0x172   : > { %v1672_v1 = vmul.f32 1.442695, %v1167_v7  ;;  %v8014_v4 = vpop.eup %8013  ;;  %8039 = vpow2.f32 %v1670_v42  ;;  %v1058_v47 = vpop.f32.mrf.mxu0  ;;  %7549 = vmatmul.mubr.msk.f32.gmra.mxu0 %vm247_vm0, %v9090_v50  ;;  %7557 = vmatmul.mubr.msk.f32.gmra.mxu1 %vm247_vm0, %v9090_v50  ;;  %v10357_v32 = vadd.f32 %v8012_v34, %v10191_v35  ;;  %v9092_v50 = vld [vmem:[%s9395_s29 + $0x20] sm:$0xff] }
 0x173   : > { %v1171_v3 = vpop.f32.mrf.mxu1  ;;  %v8016_v31 = vpop.eup %8015  ;;  %8041 = vpow2.f32 %v1668_v12  ;;  %v1706_v33 = vmul.f32 1.442695, %v1058_v47  ;;  %3620 = vmatprep.mubr.f32.mxu0 %v13002_v0  ;;  %3733 = vmatprep.mubr.f32.mxu1 %v13002_v0  ;;  %v10367_v20 = vadd.f32 %v8014_v4, %v10077_v62 }
 0x174   : > { %v1710_v8 = vmul.f32 1.442695, %v1171_v3  ;;  %v8018_v5 = vpop.eup %8017  ;;  %8043 = vpow2.f32 %v1672_v1  ;;  %v1060_v35 = vpop.f32.mrf.mxu0  ;;  %v10370_v16 = vadd.f32 %v8016_v31, %v10212_v51  ;;  %v10387_v1 = vld [vmem:[%s12999_s1 + $0x88] sm:$0xff] }
 0x175   : > { %v1173_v11 = vpop.f32.mrf.mxu1  ;;  %v8020_v38 = vpop.eup %8019  ;;  %8045 = vpow2.f32 %v1706_v33  ;;  %v1708_v10 = vmul.f32 1.442695, %v1060_v35  ;;  %v10373_v42 = vadd.f32 %v8018_v5, %v10206_v52  ;;  %v9091_v52 = vld [vmem:[%s9395_s29 + $0x30] sm:$0xff]  ;;  %v9093_v35 = vld [vmem:[%s9395_s29 + $0x58] sm:$0xff] }
 0x176   : > { %v1712_v44 = vmul.f32 1.442695, %v1173_v11  ;;  %v8022_v40 = vpop.eup %8021  ;;  %8047 = vpow2.f32 %v1710_v8  ;;  %v1242_v9 = vpop.f32.mrf.mxu0  ;;  %7558 = vmatmul.mubr.msk.f32.vlgmr.msra.gmra.mxu0 %vm247_vm0, %v10364_v37  ;;  %7566 = vmatmul.mubr.msk.f32.vlgmr.msra.gmra.mxu1 %vm247_vm0, %v10364_v37  ;;  %v10380_v51 = vadd.f32 %v8020_v38, %v10209_v36  ;;  %v9094_v11 = vld [vmem:[%s9395_s29 + $0x48] sm:$0xff] }
 0x177   : > { %v1355_v62 = vpop.f32.mrf.mxu1  ;;  %v8024_v7 = vpop.eup %8023  ;;  %8049 = vpow2.f32 %v1708_v10  ;;  %v1434_v34 = vmul.f32 1.442695, %v1242_v9  ;;  %3926 = vmatpush1.msra.mxu1 %v9091_v52  ;;  %3626 = vmatprep.mubr.f32.mxu0 %v13002_v0  ;;  %v10390_v4 = vadd.f32 %v8022_v40, %v10098_v28 }
 0x178   : > { %v1438_v12 = vmul.f32 1.442695, %v1355_v62  ;;  %v8026_v36 = vpop.eup %8025  ;;  %8051 = vpow2.f32 %v1712_v44  ;;  %v1244_v47 = vpop.f32.mrf.mxu0  ;;  %3739 = vmatprep.mubr.f32.mxu1 %v13002_v0  ;;  %3813 = vmatpush1.msra.mxu0 %v9092_v50  ;;  %v10395_v31 = vadd.f32 %v8024_v7, %v10235_v19 }
 0x179   : > { %v1357_v3 = vpop.f32.mrf.mxu1  ;;  %v8028_v33 = vpop.eup %8027  ;;  %8053 = vpow2.f32 %v1434_v34  ;;  %v1436_v8 = vmul.f32 1.442695, %v1244_v47  ;;  %4151 = vmatprep.subr.mxu1 %v9093_v35  ;;  %4038 = vmatprep.subr.mxu0 %v9094_v11  ;;  %v10400_v28 = vadd.f32 %v8026_v36, %v10225_v57  ;;  %v10414_v57 = vld [vmem:[%s12999_s1 + $0x90] sm:$0xff] }
 0x17a   : > { %v1440_v5 = vmul.f32 1.442695, %v1357_v3  ;;  %v8030_v38 = vpop.eup %8029  ;;  %8055 = vpow2.f32 %v1438_v12  ;;  %v1248_v10 = vpop.f32.mrf.mxu0  ;;  %7559 = vmatmul.mubr.msk.f32.gmra.mxu0 %vm247_vm0, %v10387_v1  ;;  %7567 = vmatmul.mubr.msk.f32.gmra.mxu1 %vm247_vm0, %v10387_v1  ;;  %v10407_v19 = vadd.f32 %v8028_v33, %v10230_v18 }
 0x17b   : > { %v1361_v44 = vpop.f32.mrf.mxu1  ;;  %v8032_v40 = vpop.eup %8031  ;;  %8057 = vpow2.f32 %v1436_v8  ;;  %v1474_v9 = vmul.f32 1.442695, %v1248_v10  ;;  %3632 = vmatprep.mubr.f32.mxu0 %v13002_v0  ;;  %3745 = vmatprep.mubr.f32.mxu1 %v13002_v0  ;;  %v10417_v7 = vadd.f32 %v8030_v38, %v10115_v25 }
 0x17c   : > { %13010 = vst [vmem:[#allocation11_spill] sm:$0xff] %v10407_v19  ;;  %v1478_v62 = vmul.f32 1.442695, %v1361_v44  ;;  %v8034_v34 = vpop.eup %8033  ;;  %8059 = vpow2.f32 %v1440_v5  ;;  %v1250_v18 = vpop.f32.mrf.mxu0  ;;  %v10420_v52 = vadd.f32 %v8032_v40, %v10254_v54 }
 0x17d   : > { %v1363_v12 = vpop.f32.mrf.mxu1  ;;  %v8036_v36 = vpop.eup %8035  ;;  %8061 = vpow2.f32 %v1474_v9  ;;  %v1476_v47 = vmul.f32 1.442695, %v1250_v18  ;;  %v10423_v50 = vadd.f32 %v8034_v34, %v10248_v2  ;;  %v10437_v2 = vld [vmem:[%s12999_s1 + $0x98] sm:$0xff] }
 0x17e   : > { %v1480_v3 = vmul.f32 1.442695, %v1363_v12  ;;  %v8038_v33 = vpop.eup %8037  ;;  %8063 = vpow2.f32 %v1478_v62  ;;  %v1254_v8 = vpop.f32.mrf.mxu0  ;;  %7560 = vmatmul.mubr.msk.f32.gmra.mxu0 %vm247_vm0, %v10414_v57  ;;  %7568 = vmatmul.mubr.msk.f32.gmra.mxu1 %vm247_vm0, %v10414_v57  ;;  %v10430_v25 = vadd.f32 %v8036_v36, %v10251_v55 }
 0x17f   : > { %v1367_v35 = vpop.f32.mrf.mxu1  ;;  %v8040_v54 = vpop.eup %8039  ;;  %8065 = vpow2.f32 %v1476_v47  ;;  %v1514_v5 = vmul.f32 1.442695, %v1254_v8  ;;  %3638 = vmatprep.mubr.f32.mxu0 %v13002_v0  ;;  %3751 = vmatprep.mubr.f32.mxu1 %v13002_v0  ;;  %v10440_v38 = vadd.f32 %v8038_v33, %v10132_v58 }
 0x180   : > { %13011 = vst [vmem:[#allocation12_spill] sm:$0xff] %v10430_v25  ;;  %v1518_v11 = vmul.f32 1.442695, %v1367_v35  ;;  %v8042_v10 = vpop.eup %8041  ;;  %8067 = vpow2.f32 %v1480_v3  ;;  %v1256_v55 = vpop.f32.mrf.mxu0  ;;  %v10443_v40 = vadd.f32 %v8040_v54, %v10273_v30 }
 0x181   : > { %v1369_v44 = vpop.f32.mrf.mxu1  ;;  %v8044_v9 = vpop.eup %8043  ;;  %8069 = vpow2.f32 %v1514_v5  ;;  %v1516_v62 = vmul.f32 1.442695, %v1256_v55  ;;  %v10446_v18 = vadd.f32 %v8042_v10, %v10267_v22  ;;  %v10460_v22 = vld [vmem:[%s12999_s1 + $0xa0] sm:$0xff] }
 0x182   : > { %v1520_v34 = vmul.f32 1.442695, %v1369_v44  ;;  %v8046_v12 = vpop.eup %8045  ;;  %8071 = vpow2.f32 %v1518_v11  ;;  %v1260_v36 = vpop.f32.mrf.mxu0  ;;  %7561 = vmatmul.mubr.msk.f32.gmra.mxu0 %vm247_vm0, %v10437_v2  ;;  %7569 = vmatmul.mubr.msk.f32.gmra.mxu1 %vm247_vm0, %v10437_v2  ;;  %v10453_v58 = vadd.f32 %v8044_v9, %v10270_v26 }
 0x183   : > { %v1373_v47 = vpop.f32.mrf.mxu1  ;;  %v8048_v30 = vpop.eup %8047  ;;  %8073 = vpow2.f32 %v1516_v62  ;;  %v1554_v3 = vmul.f32 1.442695, %v1260_v36  ;;  %3644 = vmatprep.mubr.f32.mxu0 %v13002_v0  ;;  %3757 = vmatprep.mubr.f32.mxu1 %v13002_v0  ;;  %v10463_v8 = vadd.f32 %v8046_v12, %v10147_v17 }
 0x184   : > { %13012 = vst [vmem:[#allocation13_spill] sm:$0xff] %v10453_v58  ;;  %v1558_v33 = vmul.f32 1.442695, %v1373_v47  ;;  %v8050_v35 = vpop.eup %8049  ;;  %8075 = vpow2.f32 %v1520_v34  ;;  %v1262_v26 = vpop.f32.mrf.mxu0  ;;  %v10466_v5 = vadd.f32 %v8048_v30, %v10292_v60 }
 0x185   : > { %v1375_v54 = vpop.f32.mrf.mxu1  ;;  %v8052_v11 = vpop.eup %8051  ;;  %8077 = vpow2.f32 %v1554_v3  ;;  %v1556_v10 = vmul.f32 1.442695, %v1262_v26  ;;  %v10469_v44 = vadd.f32 %v8050_v35, %v10286_v43  ;;  %v10483_v43 = vld [vmem:[%s12999_s1 + $0xa8] sm:$0xff] }
 0x186   : > { %v1560_v55 = vmul.f32 1.442695, %v1375_v54  ;;  %v8054_v9 = vpop.eup %8053  ;;  %8079 = vpow2.f32 %v1558_v33  ;;  %v1266_v62 = vpop.f32.mrf.mxu0  ;;  %7562 = vmatmul.mubr.msk.f32.gmra.mxu0 %vm247_vm0, %v10460_v22  ;;  %7570 = vmatmul.mubr.msk.f32.gmra.mxu1 %vm247_vm0, %v10460_v22  ;;  %v10476_v17 = vadd.f32 %v8052_v11, %v10289_v6 }
 0x187   : > { %v1379_v36 = vpop.f32.mrf.mxu1  ;;  %v8056_v60 = vpop.eup %8055  ;;  %8081 = vpow2.f32 %v1556_v10  ;;  %v1594_v34 = vmul.f32 1.442695, %v1266_v62  ;;  %3650 = vmatprep.mubr.f32.mxu0 %v13002_v0  ;;  %3763 = vmatprep.mubr.f32.mxu1 %v13002_v0  ;;  %v10486_v47 = vadd.f32 %v8054_v9, %v10165_v15 }
 0x188   : > { %13013 = vst [vmem:[#allocation14_spill] sm:$0xff] %v10476_v17  ;;  %v1598_v12 = vmul.f32 1.442695, %v1379_v36  ;;  %v8058_v30 = vpop.eup %8057  ;;  %8083 = vpow2.f32 %v1560_v55  ;;  %v1268_v6 = vpop.f32.mrf.mxu0  ;;  %v10489_v33 = vadd.f32 %v8056_v60, %v10311_v29 }
 0x189   : > { %13014 = vst [vmem:[#allocation15_spill] sm:$0xff] %v10486_v47  ;;  %v1381_v3 = vpop.f32.mrf.mxu1  ;;  %v8060_v35 = vpop.eup %8059  ;;  %8085 = vpow2.f32 %v1594_v34  ;;  %v1596_v26 = vmul.f32 1.442695, %v1268_v6  ;;  %v10492_v11 = vadd.f32 %v8058_v30, %v10305_v61  ;;  %v10506_v61 = vld [vmem:[%s12999_s1 + $0xb0] sm:$0xff] }
 0x18a   : > { %13015 = vst [vmem:[#allocation16_spill] sm:$0xff] %v10489_v33  ;;  %v1600_v54 = vmul.f32 1.442695, %v1381_v3  ;;  %v8062_v10 = vpop.eup %8061  ;;  %8087 = vpow2.f32 %v1598_v12  ;;  %v1272_v62 = vpop.f32.mrf.mxu0  ;;  %7563 = vmatmul.mubr.msk.f32.gmra.mxu0 %vm247_vm0, %v10483_v43  ;;  %7571 = vmatmul.mubr.msk.f32.gmra.mxu1 %vm247_vm0, %v10483_v43  ;;  %v10499_v15 = vadd.f32 %v8060_v35, %v10308_v59 }
 0x18b   : > { %13016 = vst [vmem:[#allocation17_spill] sm:$0xff] %v10492_v11  ;;  %v1385_v36 = vpop.f32.mrf.mxu1  ;;  %v8064_v29 = vpop.eup %8063  ;;  %8089 = vpow2.f32 %v1596_v26  ;;  %v1634_v55 = vmul.f32 1.442695, %v1272_v62  ;;  %3656 = vmatprep.mubr.f32.mxu0 %v13002_v0  ;;  %3769 = vmatprep.mubr.f32.mxu1 %v13002_v0  ;;  %v10509_v60 = vadd.f32 %v8062_v10, %v10183_v41 }
 0x18c   : > { %13017 = vst [vmem:[#allocation18_spill] sm:$0xff] %v10499_v15  ;;  %v1638_v9 = vmul.f32 1.442695, %v1385_v36  ;;  %v8066_v34 = vpop.eup %8065  ;;  %8091 = vpow2.f32 %v1600_v54  ;;  %v1274_v59 = vpop.f32.mrf.mxu0  ;;  %v10512_v30 = vadd.f32 %v8064_v29, %v10330_v56  ;;  %v13022_v29 = vmov 0.0   ;;  %v9105_v15 = vld [vmem:[%s9395_s29 + $0x80] sm:$0xff] }
 0x18d   : > { %13018 = vst [vmem:[#allocation19_spill] sm:$0xff] %v10509_v60  ;;  %v1387_v12 = vpop.f32.mrf.mxu1  ;;  %v8068_v6 = vpop.eup %8067  ;;  %8093 = vpow2.f32 %v1634_v55  ;;  %v1636_v3 = vmul.f32 1.442695, %v1274_v59  ;;  %v10515_v26 = vadd.f32 %v8066_v34, %v10324_v45  ;;  %v10529_v45 = vld [vmem:[%s12999_s1 + $0xb8] sm:$0xff] }
 0x18e   : > { %13019 = vst [vmem:[#allocation20_spill] sm:$0xff] %v10512_v30  ;;  %v1640_v35 = vmul.f32 1.442695, %v1387_v12  ;;  %v8070_v62 = vpop.eup %8069  ;;  %8095 = vpow2.f32 %v1638_v9  ;;  %v1278_v36 = vpop.f32.mrf.mxu0  ;;  %7564 = vmatmul.mubr.msk.f32.gmra.mxu0 %vm247_vm0, %v10506_v61  ;;  %7572 = vmatmul.mubr.msk.f32.gmra.mxu1 %vm247_vm0, %v10506_v61  ;;  %v10522_v41 = vadd.f32 %v8068_v6, %v10327_v21 }
 0x18f   : > { %13020 = vst [vmem:[#allocation21_spill] sm:$0xff] %v10515_v26  ;;  %v1391_v0 = vpop.f32.mrf.mxu1  ;;  %v8072_v56 = vpop.eup %8071  ;;  %8097 = vpow2.f32 %v1636_v3  ;;  %v1674_v54 = vmul.f32 1.442695, %v1278_v36  ;;  %3662 = vmatprep.mubr.f32.mxu0 %v13022_v29  ;;  %3775 = vmatprep.mubr.f32.mxu1 %v13022_v29  ;;  %v10532_v55 = vadd.f32 %v8070_v62, %v10201_v53 }
 0x190   : > { %13021 = vst [vmem:[#allocation22_spill] sm:$0xff] %v10522_v41  ;;  %v1678_v10 = vmul.f32 1.442695, %v1391_v0  ;;  %v8074_v9 = vpop.eup %8073  ;;  %8099 = vpow2.f32 %v1640_v35  ;;  %v1280_v21 = vpop.f32.mrf.mxu0  ;;  %v10535_v59 = vadd.f32 %v8072_v56, %v10349_v14 }
 0x191   : > { %13023 = vst [vmem:[#allocation23_spill] sm:$0xff] %v10532_v55  ;;  %v1393_v34 = vpop.f32.mrf.mxu1  ;;  %v8076_v0 = vpop.eup %8075  ;;  %8101 = vpow2.f32 %v1674_v54  ;;  %v1676_v12 = vmul.f32 1.442695, %v1280_v21  ;;  %v10538_v3 = vadd.f32 %v8074_v9, %v10343_v63 }
 0x192   : > { %13024 = vst [vmem:[#allocation24_spill] sm:$0xff] %v10535_v59  ;;  %v1680_v6 = vmul.f32 1.442695, %v1393_v34  ;;  %v8078_v36 = vpop.eup %8077  ;;  %8103 = vpow2.f32 %v1678_v10  ;;  %v1284_v41 = vpop.f32.mrf.mxu0  ;;  %7565 = vmatmul.mubr.msk.f32.gmra.mxu0 %vm247_vm0, %v10529_v45  ;;  %7573 = vmatmul.mubr.msk.f32.gmra.mxu1 %vm247_vm0, %v10529_v45  ;;  %v10545_v53 = vadd.f32 %v8076_v0, %v10346_v23 }
 0x193   : > { %13025 = vst [vmem:[#allocation25_spill] sm:$0xff] %v10538_v3  ;;  %v1397_v26 = vpop.f32.mrf.mxu1  ;;  %v8080_v14 = vpop.eup %8079  ;;  %8105 = vpow2.f32 %v1676_v12  ;;  %v1714_v35 = vmul.f32 1.442695, %v1284_v41  ;;  %3846 = vmatprep.mubr.f32.mxu0 %v13022_v29  ;;  %3959 = vmatprep.mubr.f32.mxu1 %v13022_v29  ;;  %v10550_v63 = vadd.f32 %v8078_v36, %v10220_v13 }
 0x194   : > { %13026 = vst [vmem:[#allocation26_spill] sm:$0xff] %v10545_v53  ;;  %v1718_v62 = vmul.f32 1.442695, %v1397_v26  ;;  %v8082_v56 = vpop.eup %8081  ;;  %8107 = vpow2.f32 %v1680_v6  ;;  %v1286_v54 = vpop.f32.mrf.mxu0  ;;  %v10553_v9 = vadd.f32 %v8080_v14, %v10373_v42 }
 0x195   : > { %13027 = vst [vmem:[#allocation27_spill] sm:$0xff] %v10550_v63  ;;  %v1399_v10 = vpop.f32.mrf.mxu1  ;;  %v8084_v23 = vpop.eup %8083  ;;  %8109 = vpow2.f32 %v1714_v35  ;;  %v1716_v21 = vmul.f32 1.442695, %v1286_v54  ;;  %v10556_v26 = vadd.f32 %v8082_v56, %v10367_v20  ;;  %v9095_v20 = vld [vmem:[%s9395_s29 + $0x50] sm:$0xff] }
 0x196   : > { %13028 = vst [vmem:[#allocation28_spill] sm:$0xff] %v10553_v9  ;;  %v1720_v41 = vmul.f32 1.442695, %v1399_v10  ;;  %v8086_v34 = vpop.eup %8085  ;;  %8111 = vpow2.f32 %v1718_v62  ;;  %v1980_v0 = vpop.f32.mrf.mxu0  ;;  %7574 = vmatmul.mubr.msk.f32.vlgmr.msra.gmra.mxu0 %vm247_vm0, %v10364_v37  ;;  %7582 = vmatmul.mubr.msk.f32.vlgmr.msra.gmra.mxu1 %vm247_vm0, %v10364_v37  ;;  %v10563_v42 = vadd.f32 %v8084_v23, %v10370_v16  ;;  %v9096_v16 = vld [vmem:[%s9395_s29 + $0x40] sm:$0xff] }
 0x197   : > { %13029 = vst [vmem:[#allocation29_spill] sm:$0xff] %v10556_v26  ;;  %v2093_v13 = vpop.f32.mrf.mxu1  ;;  %v8088_v12 = vpop.eup %8087  ;;  %8113 = vpow2.f32 %v1716_v21  ;;  %v3044_v6 = vmul.f32 1.442695, %v1980_v0  ;;  %4152 = vmatpush1.msra.mxu1 %v9095_v20  ;;  %3852 = vmatprep.mubr.f32.mxu0 %v13022_v29  ;;  %v10568_v14 = vadd.f32 %v8086_v34, %v10243_v46  ;;  %v9097_v0 = vld [vmem:[%s9395_s29 + $0x78] sm:$0xff] }
 0x198   : > { %13030 = vst [vmem:[#allocation30_spill] sm:$0xff] %v10563_v42  ;;  %v3048_v36 = vmul.f32 1.442695, %v2093_v13  ;;  %v8090_v35 = vpop.eup %8089  ;;  %8115 = vpow2.f32 %v1720_v41  ;;  %v1982_v62 = vpop.f32.mrf.mxu0  ;;  %3965 = vmatprep.mubr.f32.mxu1 %v13022_v29  ;;  %4039 = vmatpush1.msra.mxu0 %v9096_v16  ;;  %v10573_v54 = vadd.f32 %v8088_v12, %v10400_v28  ;;  %v9098_v13 = vld [vmem:[%s9395_s29 + $0x68] sm:$0xff] }
 0x199   : > { %13031 = vst [vmem:[#allocation31_spill] sm:$0xff] %v10568_v14  ;;  %v2095_v56 = vpop.f32.mrf.mxu1  ;;  %v8092_v10 = vpop.eup %8091  ;;  %8117 = vpow2.f32 %v3044_v6  ;;  %v3046_v23 = vmul.f32 1.442695, %v1982_v62  ;;  %4377 = vmatprep.subr.mxu1 %v9097_v0  ;;  %4264 = vmatprep.subr.mxu0 %v9098_v13  ;;  %v10578_v46 = vadd.f32 %v8090_v35, %v10390_v4 }
 0x19a   : > { %13032 = vst [vmem:[#allocation32_spill] sm:$0xff] %v10573_v54  ;;  %v3050_v21 = vmul.f32 1.442695, %v2095_v56  ;;  %v8094_v41 = vpop.eup %8093  ;;  %8119 = vpow2.f32 %v3048_v36  ;;  %v1986_v34 = vpop.f32.mrf.mxu0  ;;  %7575 = vmatmul.mubr.msk.f32.gmra.mxu0 %vm247_vm0, %v10387_v1  ;;  %7583 = vmatmul.mubr.msk.f32.gmra.mxu1 %vm247_vm0, %v10387_v1  ;;  %v10585_v28 = vadd.f32 %v8092_v10, %v10395_v31 }
 0x19b   : > { %13033 = vst [vmem:[#allocation33_spill] sm:$0xff] %v10578_v46  ;;  %v2099_v20 = vpop.f32.mrf.mxu1  ;;  %v8096_v12 = vpop.eup %8095  ;;  %8121 = vpow2.f32 %v3046_v23  ;;  %v3084_v6 = vmul.f32 1.442695, %v1986_v34  ;;  %3858 = vmatprep.mubr.f32.mxu0 %v13022_v29  ;;  %3971 = vmatprep.mubr.f32.mxu1 %v13022_v29  ;;  %v10590_v4 = vadd.f32 %v8094_v41, %v10262_v48 }
 0x19c   : > { %13034 = vst [vmem:[#allocation34_spill] sm:$0xff] %v10585_v28  ;;  %v3088_v62 = vmul.f32 1.442695, %v2099_v20  ;;  %v8098_v36 = vpop.eup %8097  ;;  %8123 = vpow2.f32 %v3050_v21  ;;  %v1988_v35 = vpop.f32.mrf.mxu0  ;;  %v10593_v16 = vadd.f32 %v8096_v12, %v10423_v50  ;;  %v9102_v28 = vld [vmem:[%s9395_s29 + $0x88] sm:$0xff] }
 0x19d   : > { %13035 = vst [vmem:[#allocation35_spill] sm:$0xff] %v10590_v4  ;;  %v2101_v56 = vpop.f32.mrf.mxu1  ;;  %v8100_v31 = vpop.eup %8099  ;;  %8125 = vpow2.f32 %v3084_v6  ;;  %v3086_v10 = vmul.f32 1.442695, %v1988_v35  ;;  %v10596_v0 = vadd.f32 %v8098_v36, %v10417_v7  ;;  %v9100_v4 = vld [vmem:[%s9395_s29 + $0x60] sm:$0xff] }
 0x19e   : > { %13036 = vst [vmem:[#allocation36_spill] sm:$0xff] %v10593_v16  ;;  %v3090_v23 = vmul.f32 1.442695, %v2101_v56  ;;  %v8102_v13 = vpop.eup %8101  ;;  %8127 = vpow2.f32 %v3088_v62  ;;  %v1992_v34 = vpop.f32.mrf.mxu0  ;;  %7576 = vmatmul.mubr.msk.f32.gmra.mxu0 %vm247_vm0, %v10414_v57  ;;  %7584 = vmatmul.mubr.msk.f32.gmra.mxu1 %vm247_vm0, %v10414_v57  ;;  %v10603_v48 = vadd.f32 %v8100_v31, %v10420_v52 }
 0x19f   : > { %13037 = vst [vmem:[#allocation37_spill] sm:$0xff] %v10596_v0  ;;  %v2105_v20 = vpop.f32.mrf.mxu1  ;;  %v8104_v50 = vpop.eup %8103  ;;  %8129 = vpow2.f32 %v3086_v10  ;;  %v3124_v21 = vmul.f32 1.442695, %v1992_v34  ;;  %3864 = vmatprep.mubr.f32.mxu0 %v13022_v29  ;;  %3977 = vmatprep.mubr.f32.mxu1 %v13022_v29  ;;  %v10608_v7 = vadd.f32 %v8102_v13, %v10281_v39 }
 0x1a0   : > { %13038 = vst [vmem:[#allocation38_spill] sm:$0xff] %v10603_v48  ;;  %v3128_v41 = vmul.f32 1.442695, %v2105_v20  ;;  %v8106_v12 = vpop.eup %8105  ;;  %8131 = vpow2.f32 %v3090_v23  ;;  %v1994_v6 = vpop.f32.mrf.mxu0  ;;  %v10611_v36 = vadd.f32 %v8104_v50, %v10446_v18 }
 0x1a1   : > { %13039 = vst [vmem:[#allocation39_spill] sm:$0xff] %v10608_v7  ;;  %v2107_v62 = vpop.f32.mrf.mxu1  ;;  %v8108_v52 = vpop.eup %8107  ;;  %8133 = vpow2.f32 %v3124_v21  ;;  %v3126_v35 = vmul.f32 1.442695, %v1994_v6  ;;  %v10614_v31 = vadd.f32 %v8106_v12, %v10440_v38 }
 0x1a2   : > { %13040 = vst [vmem:[#allocation40_spill] sm:$0xff] %v10611_v36  ;;  %v3130_v56 = vmul.f32 1.442695, %v2107_v62  ;;  %v8110_v10 = vpop.eup %8109  ;;  %8135 = vpow2.f32 %v3128_v41  ;;  %v1998_v34 = vpop.f32.mrf.mxu0  ;;  %7577 = vmatmul.mubr.msk.f32.gmra.mxu0 %vm247_vm0, %v10437_v2  ;;  %7585 = vmatmul.mubr.msk.f32.gmra.mxu1 %vm247_vm0, %v10437_v2  ;;  %v10621_v39 = vadd.f32 %v8108_v52, %v10443_v40 }
 0x1a3   : > { %13041 = vst [vmem:[#allocation41_spill] sm:$0xff] %v10614_v31  ;;  %v2111_v20 = vpop.f32.mrf.mxu1  ;;  %v8112_v18 = vpop.eup %8111  ;;  %8137 = vpow2.f32 %v3126_v35  ;;  %v3164_v23 = vmul.f32 1.442695, %v1998_v34  ;;  %3870 = vmatprep.mubr.f32.mxu0 %v13022_v29  ;;  %3983 = vmatprep.mubr.f32.mxu1 %v13022_v29  ;;  %v10626_v38 = vadd.f32 %v8110_v10, %v10300_v27 }
 0x1a4   : > { %13042 = vst [vmem:[#allocation42_spill] sm:$0xff] %v10621_v39  ;;  %v3168_v13 = vmul.f32 1.442695, %v2111_v20  ;;  %v8114_v50 = vpop.eup %8113  ;;  %8139 = vpow2.f32 %v3130_v56  ;;  %v2000_v21 = vpop.f32.mrf.mxu0  ;;  %v10629_v12 = vadd.f32 %v8112_v18, %v10469_v44 }
 0x1a5   : > { %13043 = vst [vmem:[#allocation43_spill] sm:$0xff] %v10626_v38  ;;  %v2113_v41 = vpop.f32.mrf.mxu1  ;;  %v8116_v40 = vpop.eup %8115  ;;  %8141 = vpow2.f32 %v3164_v23  ;;  %v3166_v6 = vmul.f32 1.442695, %v2000_v21  ;;  %v10632_v52 = vadd.f32 %v8114_v50, %v10463_v8 }
 0x1a6   : > { %13044 = vst [vmem:[#allocation44_spill] sm:$0xff] %v10629_v12  ;;  %v3170_v62 = vmul.f32 1.442695, %v2113_v41  ;;  %v10634_v35 = vpop.eup %8117  ;;  %8143 = vpow2.f32 %v3168_v13  ;;  %v2004_v34 = vpop.f32.mrf.mxu0  ;;  %7578 = vmatmul.mubr.msk.f32.gmra.mxu0 %vm247_vm0, %v10460_v22  ;;  %7586 = vmatmul.mubr.msk.f32.gmra.mxu1 %vm247_vm0, %v10460_v22  ;;  %v10641_v44 = vadd.f32 %v8116_v40, %v10466_v5 }
 0x1a7   : > { %13045 = vst [vmem:[#allocation45_spill] sm:$0xff] %v10632_v52  ;;  %v2117_v27 = vpop.f32.mrf.mxu1  ;;  %v10643_v56 = vpop.eup %8119  ;;  %8145 = vpow2.f32 %v3166_v6  ;;  %v3204_v10 = vmul.f32 1.442695, %v2004_v34  ;;  %3876 = vmatprep.mubr.f32.mxu0 %v13022_v29  ;;  %3989 = vmatprep.mubr.f32.mxu1 %v13022_v29 }
 0x1a8   : > { %13046 = vst [vmem:[#allocation46_spill] sm:$0xff] %v10641_v44  ;;  %v3208_v8 = vmul.f32 1.442695, %v2117_v27  ;;  %v10647_v20 = vpop.eup %8121  ;;  %8147 = vpow2.f32 %v3170_v62  ;;  %v2006_v18 = vpop.f32.mrf.mxu0 }
 0x1a9   : > { %v2119_v23 = vpop.f32.mrf.mxu1  ;;  %v10649_v13 = vpop.eup %8123  ;;  %8149 = vpow2.f32 %v3204_v10  ;;  %v3206_v50 = vmul.f32 1.442695, %v2006_v18 }
 0x1aa   : > { %v3210_v5 = vmul.f32 1.442695, %v2119_v23  ;;  %v10651_v21 = vpop.eup %8125  ;;  %8151 = vpow2.f32 %v3208_v8  ;;  %v2010_v41 = vpop.f32.mrf.mxu0  ;;  %7579 = vmatmul.mubr.msk.f32.gmra.mxu0 %vm247_vm0, %v10483_v43  ;;  %7587 = vmatmul.mubr.msk.f32.gmra.mxu1 %vm247_vm0, %v10483_v43 }
 0x1ab   : > { %v2123_v40 = vpop.f32.mrf.mxu1  ;;  %v10657_v6 = vpop.eup %8127  ;;  %8153 = vpow2.f32 %v3206_v50  ;;  %v3244_v62 = vmul.f32 1.442695, %v2010_v41  ;;  %3882 = vmatprep.mubr.f32.mxu0 %v13022_v29  ;;  %3995 = vmatprep.mubr.f32.mxu1 %v13022_v29 }
 0x1ac   : > { %v3248_v34 = vmul.f32 1.442695, %v2123_v40  ;;  %v10661_v27 = vpop.eup %8129  ;;  %8155 = vpow2.f32 %v3210_v5  ;;  %v2012_v10 = vpop.f32.mrf.mxu0 }
 0x1ad   : > { %v2125_v8 = vpop.f32.mrf.mxu1  ;;  %v10663_v18 = vpop.eup %8131  ;;  %8157 = vpow2.f32 %v3244_v62  ;;  %v3246_v23 = vmul.f32 1.442695, %v2012_v10 }
 0x1ae   : > { %v3250_v44 = vmul.f32 1.442695, %v2125_v8  ;;  %v10665_v52 = vpop.eup %8133  ;;  %8159 = vpow2.f32 %v3248_v34  ;;  %v2016_v50 = vpop.f32.mrf.mxu0  ;;  %7580 = vmatmul.mubr.msk.f32.gmra.mxu0 %vm247_vm0, %v10506_v61  ;;  %7588 = vmatmul.mubr.msk.f32.gmra.mxu1 %vm247_vm0, %v10506_v61 }
 0x1af   : > { %v2129_v41 = vpop.f32.mrf.mxu1  ;;  %v10671_v40 = vpop.eup %8135  ;;  %8161 = vpow2.f32 %v3246_v23  ;;  %v3284_v5 = vmul.f32 1.442695, %v2016_v50  ;;  %3888 = vmatprep.mubr.f32.mxu0 %v13022_v29  ;;  %4001 = vmatprep.mubr.f32.mxu1 %v13022_v29 }
 0x1b0   : > { %v3288_v12 = vmul.f32 1.442695, %v2129_v41  ;;  %v10675_v62 = vpop.eup %8137  ;;  %8163 = vpow2.f32 %v3250_v44  ;;  %v2018_v34 = vpop.f32.mrf.mxu0 }
 0x1b1   : > { %v2131_v10 = vpop.f32.mrf.mxu1  ;;  %v10677_v8 = vpop.eup %8139  ;;  %8165 = vpow2.f32 %v3284_v5  ;;  %v3286_v38 = vmul.f32 1.442695, %v2018_v34 }
 0x1b2   : > { %v3290_v39 = vmul.f32 1.442695, %v2131_v10  ;;  %v10679_v31 = vpop.eup %8141  ;;  %8167 = vpow2.f32 %v3288_v12  ;;  %v2022_v23 = vpop.f32.mrf.mxu0  ;;  %7581 = vmatmul.mubr.msk.f32.gmra.mxu0 %vm247_vm0, %v10529_v45  ;;  %7589 = vmatmul.mubr.msk.f32.gmra.mxu1 %vm247_vm0, %v10529_v45 }
 0x1b3   : > { %v2135_v50 = vpop.f32.mrf.mxu1  ;;  %v10685_v41 = vpop.eup %8143  ;;  %8169 = vpow2.f32 %v3286_v38  ;;  %v3324_v44 = vmul.f32 1.442695, %v2022_v23  ;;  %4072 = vmatprep.mubr.f32.mxu0 %v13022_v29  ;;  %4185 = vmatprep.mubr.f32.mxu1 %v13022_v29 }
 0x1b4   : > { %v3328_v36 = vmul.f32 1.442695, %v2135_v50  ;;  %v10689_v5 = vpop.eup %8145  ;;  %8171 = vpow2.f32 %v3290_v39  ;;  %v2024_v12 = vpop.f32.mrf.mxu0 }
 0x1b5   : > { %v2137_v34 = vpop.f32.mrf.mxu1  ;;  %v10691_v10 = vpop.eup %8147  ;;  %8173 = vpow2.f32 %v3324_v44  ;;  %v3326_v7 = vmul.f32 1.442695, %v2024_v12  ;;  %v9099_v12 = vld [vmem:[%s9395_s29 + $0x70] sm:$0xff] }
 0x1b6   : > { %v3330_v48 = vmul.f32 1.442695, %v2137_v34  ;;  %v10693_v0 = vpop.eup %8149  ;;  %8175 = vpow2.f32 %v3328_v36  ;;  %v2206_v38 = vpop.f32.mrf.mxu0  ;;  %7590 = vmatmul.mubr.msk.f32.vlgmr.msra.gmra.mxu0 %vm247_vm0, %v10364_v37  ;;  %7598 = vmatmul.mubr.msk.f32.vlgmr.msra.gmra.mxu1 %vm247_vm0, %v10364_v37 }
 0x1b7   : > { %v2319_v23 = vpop.f32.mrf.mxu1  ;;  %v10699_v39 = vpop.eup %8151  ;;  %8177 = vpow2.f32 %v3326_v7  ;;  %v3052_v50 = vmul.f32 1.442695, %v2206_v38  ;;  %4378 = vmatpush1.msra.mxu1 %v9099_v12  ;;  %4078 = vmatprep.mubr.f32.mxu0 %v13022_v29 }
 0x1b8   : > { %v3056_v44 = vmul.f32 1.442695, %v2319_v23  ;;  %v10703_v36 = vpop.eup %8153  ;;  %8179 = vpow2.f32 %v3330_v48  ;;  %v2208_v34 = vpop.f32.mrf.mxu0  ;;  %4191 = vmatprep.mubr.f32.mxu1 %v13022_v29  ;;  %4265 = vmatpush1.msra.mxu0 %v9100_v4  ;;  %v9101_v23 = vld [vmem:[%s9395_s29 + $0x98] sm:$0xff] }
 0x1b9   : > { %v2321_v16 = vpop.f32.mrf.mxu1  ;;  %v10707_v37 = vpop.eup %8155  ;;  %8181 = vpow2.f32 %v3052_v50  ;;  %v3054_v7 = vmul.f32 1.442695, %v2208_v34  ;;  %4603 = vmatprep.subr.mxu1 %v9101_v23  ;;  %4490 = vmatprep.subr.mxu0 %v9102_v28 }
 0x1ba   : > { %v3058_v38 = vmul.f32 1.442695, %v2321_v16  ;;  %v10711_v12 = vpop.eup %8157  ;;  %8183 = vpow2.f32 %v3056_v44  ;;  %v2212_v46 = vpop.f32.mrf.mxu0  ;;  %7591 = vmatmul.mubr.msk.f32.gmra.mxu0 %vm247_vm0, %v10387_v1  ;;  %7599 = vmatmul.mubr.msk.f32.gmra.mxu1 %vm247_vm0, %v10387_v1 }
 0x1bb   : > { %v2325_v48 = vpop.f32.mrf.mxu1  ;;  %v10717_v4 = vpop.eup %8159  ;;  %8185 = vpow2.f32 %v3054_v7  ;;  %v3092_v50 = vmul.f32 1.442695, %v2212_v46  ;;  %4084 = vmatprep.mubr.f32.mxu0 %v13022_v29  ;;  %4197 = vmatprep.mubr.f32.mxu1 %v13022_v29 }
 0x1bc   : > { %v3096_v16 = vmul.f32 1.442695, %v2325_v48  ;;  %v10721_v28 = vpop.eup %8161  ;;  %8187 = vpow2.f32 %v3058_v38  ;;  %v2214_v44 = vpop.f32.mrf.mxu0 }
 0x1bd   : > { %v2327_v34 = vpop.f32.mrf.mxu1  ;;  %v10723_v23 = vpop.eup %8163  ;;  %8189 = vpow2.f32 %v3092_v50  ;;  %v3094_v54 = vmul.f32 1.442695, %v2214_v44 }
 0x1be   : > { %v3098_v14 = vmul.f32 1.442695, %v2327_v34  ;;  %v10725_v1 = vpop.eup %8165  ;;  %8191 = vpow2.f32 %v3096_v16  ;;  %v2218_v7 = vpop.f32.mrf.mxu0  ;;  %7592 = vmatmul.mubr.msk.f32.gmra.mxu0 %vm247_vm0, %v10414_v57  ;;  %7600 = vmatmul.mubr.msk.f32.gmra.mxu1 %vm247_vm0, %v10414_v57 }
 0x1bf   : > { %v2331_v46 = vpop.f32.mrf.mxu1  ;;  %v10731_v48 = vpop.eup %8167  ;;  %8193 = vpow2.f32 %v3094_v54  ;;  %v3132_v38 = vmul.f32 1.442695, %v2218_v7  ;;  %4090 = vmatprep.mubr.f32.mxu0 %v13022_v29  ;;  %4203 = vmatprep.mubr.f32.mxu1 %v13022_v29 }
 0x1c0   : > { %v3136_v42 = vmul.f32 1.442695, %v2331_v46  ;;  %v10735_v50 = vpop.eup %8169  ;;  %8195 = vpow2.f32 %v3098_v14  ;;  %v2220_v16 = vpop.f32.mrf.mxu0 }
 0x1c1   : > { %v2333_v44 = vpop.f32.mrf.mxu1  ;;  %v10737_v34 = vpop.eup %8171  ;;  %8197 = vpow2.f32 %v3132_v38  ;;  %v3134_v26 = vmul.f32 1.442695, %v2220_v16 }
 0x1c2   : > { %v3138_v9 = vmul.f32 1.442695, %v2333_v44  ;;  %v10739_v57 = vpop.eup %8173  ;;  %8199 = vpow2.f32 %v3136_v42  ;;  %v2224_v54 = vpop.f32.mrf.mxu0  ;;  %7593 = vmatmul.mubr.msk.f32.gmra.mxu0 %vm247_vm0, %v10437_v2  ;;  %7601 = vmatmul.mubr.msk.f32.gmra.mxu1 %vm247_vm0, %v10437_v2 }
 0x1c3   : > { %v2337_v7 = vpop.f32.mrf.mxu1  ;;  %v10745_v46 = vpop.eup %8175  ;;  %8201 = vpow2.f32 %v3134_v26  ;;  %v3172_v14 = vmul.f32 1.442695, %v2224_v54  ;;  %4096 = vmatprep.mubr.f32.mxu0 %v13022_v29  ;;  %4209 = vmatprep.mubr.f32.mxu1 %v13022_v29 }
 0x1c4   : > { %v3176_v63 = vmul.f32 1.442695, %v2337_v7  ;;  %v10749_v38 = vpop.eup %8177  ;;  %8203 = vpow2.f32 %v3138_v9  ;;  %v2226_v42 = vpop.f32.mrf.mxu0 }
 0x1c5   : > { %v2339_v16 = vpop.f32.mrf.mxu1  ;;  %v10751_v44 = vpop.eup %8179  ;;  %8205 = vpow2.f32 %v3172_v14  ;;  %v3174_v53 = vmul.f32 1.442695, %v2226_v42 }
 0x1c6   : > { %v3178_v3 = vmul.f32 1.442695, %v2339_v16  ;;  %v10753_v2 = vpop.eup %8181  ;;  %8207 = vpow2.f32 %v3176_v63  ;;  %v2230_v26 = vpop.f32.mrf.mxu0  ;;  %7594 = vmatmul.mubr.msk.f32.gmra.mxu0 %vm247_vm0, %v10460_v22  ;;  %7602 = vmatmul.mubr.msk.f32.gmra.mxu1 %vm247_vm0, %v10460_v22 }
 0x1c7   : > { %v2343_v54 = vpop.f32.mrf.mxu1  ;;  %v8184_v7 = vpop.eup %8183  ;;  %8209 = vpow2.f32 %v3174_v53  ;;  %v3212_v9 = vmul.f32 1.442695, %v2230_v26  ;;  %4102 = vmatprep.mubr.f32.mxu0 %v13022_v29  ;;  %4215 = vmatprep.mubr.f32.mxu1 %v13022_v29 }
 0x1c8   : > { %v3216_v59 = vmul.f32 1.442695, %v2343_v54  ;;  %v8186_v14 = vpop.eup %8185  ;;  %8211 = vpow2.f32 %v3178_v3  ;;  %v2232_v42 = vpop.f32.mrf.mxu0  ;;  %v10762_v16 = vadd.f32 %v8184_v7, %v10647_v20 }
 0x1c9   : > { %v2345_v63 = vpop.f32.mrf.mxu1  ;;  %v8188_v55 = vpop.eup %8187  ;;  %8213 = vpow2.f32 %v3212_v9  ;;  %v3214_v30 = vmul.f32 1.442695, %v2232_v42  ;;  %v10765_v22 = vadd.f32 %v8186_v14, %v10634_v35 }
 0x1ca   : > { %v3218_v60 = vmul.f32 1.442695, %v2345_v63  ;;  %v10767_v53 = vpop.eup %8189  ;;  %8215 = vpow2.f32 %v3216_v59  ;;  %v2236_v26 = vpop.f32.mrf.mxu0  ;;  %7595 = vmatmul.mubr.msk.f32.gmra.mxu0 %vm247_vm0, %v10483_v43  ;;  %7603 = vmatmul.mubr.msk.f32.gmra.mxu1 %vm247_vm0, %v10483_v43  ;;  %v10774_v3 = vadd.f32 %v8188_v55, %v10643_v56 }
 0x1cb   : > { %v2349_v54 = vpop.f32.mrf.mxu1  ;;  %v8192_v20 = vpop.eup %8191  ;;  %8217 = vpow2.f32 %v3214_v30  ;;  %v3252_v7 = vmul.f32 1.442695, %v2236_v26  ;;  %4108 = vmatprep.mubr.f32.mxu0 %v13022_v29  ;;  %4221 = vmatprep.mubr.f32.mxu1 %v13022_v29 }
 0x1cc   : > { %v3256_v9 = vmul.f32 1.442695, %v2349_v54  ;;  %v8194_v59 = vpop.eup %8193  ;;  %8219 = vpow2.f32 %v3218_v60  ;;  %v2238_v35 = vpop.f32.mrf.mxu0  ;;  %v10779_v42 = vadd.f32 %v8192_v20, %v10661_v27 }
 0x1cd   : > { %v2351_v14 = vpop.f32.mrf.mxu1  ;;  %v8196_v63 = vpop.eup %8195  ;;  %8221 = vpow2.f32 %v3252_v7  ;;  %v3254_v43 = vmul.f32 1.442695, %v2238_v35  ;;  %v10782_v56 = vadd.f32 %v8194_v59, %v10651_v21 }
 0x1ce   : > { %v3258_v55 = vmul.f32 1.442695, %v2351_v14  ;;  %v10784_v30 = vpop.eup %8197  ;;  %8223 = vpow2.f32 %v3256_v9  ;;  %v2242_v26 = vpop.f32.mrf.mxu0  ;;  %7596 = vmatmul.mubr.msk.f32.gmra.mxu0 %vm247_vm0, %v10506_v61  ;;  %7604 = vmatmul.mubr.msk.f32.gmra.mxu1 %vm247_vm0, %v10506_v61  ;;  %v10791_v60 = vadd.f32 %v8196_v63, %v10657_v6 }
 0x1cf   : > { %v2355_v54 = vpop.f32.mrf.mxu1  ;;  %v8200_v27 = vpop.eup %8199  ;;  %8225 = vpow2.f32 %v3254_v43  ;;  %v3292_v20 = vmul.f32 1.442695, %v2242_v26  ;;  %4114 = vmatprep.mubr.f32.mxu0 %v13022_v29  ;;  %4227 = vmatprep.mubr.f32.mxu1 %v13022_v29 }
 0x1d0   : > { %v3296_v7 = vmul.f32 1.442695, %v2355_v54  ;;  %v8202_v21 = vpop.eup %8201  ;;  %8227 = vpow2.f32 %v3258_v55  ;;  %v2244_v9 = vpop.f32.mrf.mxu0  ;;  %v10796_v35 = vadd.f32 %v8200_v27, %v10675_v62 }
 0x1d1   : > { %v2357_v59 = vpop.f32.mrf.mxu1  ;;  %v8204_v14 = vpop.eup %8203  ;;  %8229 = vpow2.f32 %v3292_v20  ;;  %v3294_v61 = vmul.f32 1.442695, %v2244_v9  ;;  %v10799_v63 = vadd.f32 %v8202_v21, %v10665_v52 }
 0x1d2   : > { %v3298_v6 = vmul.f32 1.442695, %v2357_v59  ;;  %v10801_v43 = vpop.eup %8205  ;;  %8231 = vpow2.f32 %v3296_v7  ;;  %v2248_v26 = vpop.f32.mrf.mxu0  ;;  %7597 = vmatmul.mubr.msk.f32.gmra.mxu0 %vm247_vm0, %v10529_v45  ;;  %7605 = vmatmul.mubr.msk.f32.gmra.mxu1 %vm247_vm0, %v10529_v45  ;;  %v10808_v62 = vadd.f32 %v8204_v14, %v10671_v40 }
 0x1d3   : > { %v2361_v54 = vpop.f32.mrf.mxu1  ;;  %v8208_v55 = vpop.eup %8207  ;;  %8233 = vpow2.f32 %v3294_v61  ;;  %v3332_v27 = vmul.f32 1.442695, %v2248_v26  ;;  %4298 = vmatprep.mubr.f32.mxu0 %v13022_v29  ;;  %4411 = vmatprep.mubr.f32.mxu1 %v13022_v29 }
 0x1d4   : > { %v3336_v20 = vmul.f32 1.442695, %v2361_v54  ;;  %v8210_v52 = vpop.eup %8209  ;;  %8235 = vpow2.f32 %v3298_v6  ;;  %v2250_v7 = vpop.f32.mrf.mxu0  ;;  %v10813_v9 = vadd.f32 %v8208_v55, %v10689_v5  ;;  %v10823_v6 = vld [vmem:[%s12999_s1 + $0x80] sm:$0xff] }
 0x1d5   : > { %v2363_v21 = vpop.f32.mrf.mxu1  ;;  %v8212_v59 = vpop.eup %8211  ;;  %8237 = vpow2.f32 %v3332_v27  ;;  %v3334_v45 = vmul.f32 1.442695, %v2250_v7  ;;  %v10816_v14 = vadd.f32 %v8210_v52, %v10679_v31 }
 0x1d6   : > { %v3338_v40 = vmul.f32 1.442695, %v2363_v21  ;;  %v10818_v61 = vpop.eup %8213  ;;  %8239 = vpow2.f32 %v3336_v20  ;;  %v2432_v26 = vpop.f32.mrf.mxu0  ;;  %7606 = vmatmul.mubr.msk.f32.vlgmr.msra.gmra.mxu0 %vm247_vm0, %v10823_v6  ;;  %7614 = vmatmul.mubr.msk.f32.vlgmr.msra.gmra.mxu1 %vm247_vm0, %v10823_v6  ;;  %v10830_v31 = vadd.f32 %v8212_v59, %v10685_v41  ;;  %v9104_v20 = vld [vmem:[%s9395_s29 + $0x90] sm:$0xff] }
 0x1d7   : > { %v2545_v54 = vpop.f32.mrf.mxu1  ;;  %v8216_v5 = vpop.eup %8215  ;;  %8241 = vpow2.f32 %v3334_v45  ;;  %v3060_v55 = vmul.f32 1.442695, %v2432_v26  ;;  %4604 = vmatpush1.msra.mxu1 %v9104_v20  ;;  %4304 = vmatprep.mubr.f32.mxu0 %v13022_v29  ;;  %v9107_v20 = vld [vmem:[%s9395_s29 + $0x8] sm:$0xff] }
 0x1d8   : > { %v3064_v27 = vmul.f32 1.442695, %v2545_v54  ;;  %v8218_v52 = vpop.eup %8217  ;;  %8243 = vpow2.f32 %v3338_v40  ;;  %v2434_v7 = vpop.f32.mrf.mxu0  ;;  %4417 = vmatprep.mubr.f32.mxu1 %v13022_v29  ;;  %4491 = vmatpush1.msra.mxu0 %v9105_v15  ;;  %v10837_v41 = vadd.f32 %v8216_v5, %v10703_v36  ;;  %v9106_v54 = vld [vmem:[%s9395_s29 + $0x18] sm:$0xff]  ;;  %v10849_v15 = vld [vmem:[%s12999_s1 + $0x88] sm:$0xff] }
 0x1d9   : > { %v2547_v21 = vpop.f32.mrf.mxu1  ;;  %v8220_v59 = vpop.eup %8219  ;;  %8245 = vpow2.f32 %v3060_v55  ;;  %v3062_v45 = vmul.f32 1.442695, %v2434_v7  ;;  %5341 = vmatprep.subr.mxu1 %v9106_v54  ;;  %5228 = vmatprep.subr.mxu0 %v9107_v20  ;;  %v10842_v11 = vadd.f32 %v8218_v52, %v10693_v0 }
 0x1da   : > { %v3066_v26 = vmul.f32 1.442695, %v2547_v21  ;;  %v10844_v40 = vpop.eup %8221  ;;  %8247 = vpow2.f32 %v3064_v27  ;;  %v2438_v33 = vpop.f32.mrf.mxu0  ;;  %7607 = vmatmul.mubr.msk.f32.gmra.mxu0 %vm247_vm0, %v10849_v15  ;;  %7615 = vmatmul.mubr.msk.f32.gmra.mxu1 %vm247_vm0, %v10849_v15  ;;  %v10856_v36 = vadd.f32 %v8220_v59, %v10699_v39 }
 0x1db   : > { %v2551_v47 = vpop.f32.mrf.mxu1  ;;  %v8224_v0 = vpop.eup %8223  ;;  %8249 = vpow2.f32 %v3062_v45  ;;  %v3100_v5 = vmul.f32 1.442695, %v2438_v33  ;;  %4310 = vmatprep.mubr.f32.mxu0 %v13022_v29  ;;  %4423 = vmatprep.mubr.f32.mxu1 %v13022_v29 }
 0x1dc   : > { %v3104_v55 = vmul.f32 1.442695, %v2551_v47  ;;  %v8226_v27 = vpop.eup %8225  ;;  %8251 = vpow2.f32 %v3066_v26  ;;  %v2440_v52 = vpop.f32.mrf.mxu0  ;;  %v10861_v21 = vadd.f32 %v8224_v0, %v10721_v28  ;;  %v10871_v26 = vld [vmem:[%s12999_s1 + $0x90] sm:$0xff] }
 0x1dd   : > { %v2553_v7 = vpop.f32.mrf.mxu1  ;;  %v8228_v54 = vpop.eup %8227  ;;  %8253 = vpow2.f32 %v3100_v5  ;;  %v3102_v20 = vmul.f32 1.442695, %v2440_v52  ;;  %v10864_v59 = vadd.f32 %v8226_v27, %v10711_v12 }
 0x1de   : > { %v3106_v39 = vmul.f32 1.442695, %v2553_v7  ;;  %v10866_v33 = vpop.eup %8229  ;;  %8255 = vpow2.f32 %v3104_v55  ;;  %v2444_v47 = vpop.f32.mrf.mxu0  ;;  %7608 = vmatmul.mubr.msk.f32.gmra.mxu0 %vm247_vm0, %v10871_v26  ;;  %7616 = vmatmul.mubr.msk.f32.gmra.mxu1 %vm247_vm0, %v10871_v26  ;;  %v10878_v28 = vadd.f32 %v8228_v54, %v10717_v4 }
 0x1df   : > { %v2557_v45 = vpop.f32.mrf.mxu1  ;;  %v8232_v12 = vpop.eup %8231  ;;  %8257 = vpow2.f32 %v3102_v20  ;;  %v3140_v0 = vmul.f32 1.442695, %v2444_v47  ;;  %4316 = vmatprep.mubr.f32.mxu0 %v13022_v29  ;;  %4429 = vmatprep.mubr.f32.mxu1 %v13022_v29 }
 0x1e0   : > { %13047 = vst [vmem:[#allocation47_spill] sm:$0xff] %v10878_v28  ;;  %v3144_v5 = vmul.f32 1.442695, %v2557_v45  ;;  %v8234_v55 = vpop.eup %8233  ;;  %8259 = vpow2.f32 %v3106_v39  ;;  %v2446_v27 = vpop.f32.mrf.mxu0  ;;  %v10883_v7 = vadd.f32 %v8232_v12, %v10735_v50  ;;  %v10893_v39 = vld [vmem:[%s12999_s1 + $0x98] sm:$0xff] }
 0x1e1   : > { %v2559_v52 = vpop.f32.mrf.mxu1  ;;  %v8236_v17 = vpop.eup %8235  ;;  %8261 = vpow2.f32 %v3140_v0  ;;  %v3142_v58 = vmul.f32 1.442695, %v2446_v27  ;;  %v10886_v54 = vadd.f32 %v8234_v55, %v10725_v1 }
 0x1e2   : > { %v3146_v4 = vmul.f32 1.442695, %v2559_v52  ;;  %v10888_v20 = vpop.eup %8237  ;;  %8263 = vpow2.f32 %v3144_v5  ;;  %v2450_v47 = vpop.f32.mrf.mxu0  ;;  %7609 = vmatmul.mubr.msk.f32.gmra.mxu0 %vm247_vm0, %v10893_v39  ;;  %7617 = vmatmul.mubr.msk.f32.gmra.mxu1 %vm247_vm0, %v10893_v39  ;;  %v10900_v50 = vadd.f32 %v8236_v17, %v10731_v48 }
 0x1e3   : > { %v2563_v45 = vpop.f32.mrf.mxu1  ;;  %v8240_v1 = vpop.eup %8239  ;;  %8265 = vpow2.f32 %v3142_v58  ;;  %v3180_v12 = vmul.f32 1.442695, %v2450_v47  ;;  %4322 = vmatprep.mubr.f32.mxu0 %v13022_v29  ;;  %4435 = vmatprep.mubr.f32.mxu1 %v13022_v29 }
 0x1e4   : > { %13048 = vst [vmem:[#allocation48_spill] sm:$0xff] %v10900_v50  ;;  %v3184_v0 = vmul.f32 1.442695, %v2563_v45  ;;  %v8242_v5 = vpop.eup %8241  ;;  %8267 = vpow2.f32 %v3146_v4  ;;  %v2452_v55 = vpop.f32.mrf.mxu0  ;;  %v10905_v52 = vadd.f32 %v8240_v1, %v10749_v38  ;;  %v10913_v4 = vld [vmem:[%s12999_s1 + $0xa0] sm:$0xff] }
 0x1e5   : > { %v2565_v27 = vpop.f32.mrf.mxu1  ;;  %v8244_v25 = vpop.eup %8243  ;;  %8269 = vpow2.f32 %v3180_v12  ;;  %v3182_v19 = vmul.f32 1.442695, %v2452_v55  ;;  %v10908_v48 = vadd.f32 %v8242_v5, %v10739_v57 }
 0x1e6   : > { %v3186_v17 = vmul.f32 1.442695, %v2565_v27  ;;  %v8246_v58 = vpop.eup %8245  ;;  %8271 = vpow2.f32 %v3184_v0  ;;  %v2456_v47 = vpop.f32.mrf.mxu0  ;;  %7610 = vmatmul.mubr.msk.f32.gmra.mxu0 %vm247_vm0, %v10913_v4  ;;  %7618 = vmatmul.mubr.msk.f32.gmra.mxu1 %vm247_vm0, %v10913_v4  ;;  %v10920_v38 = vadd.f32 %v8244_v25, %v10745_v46 }
 0x1e7   : > { %v2569_v45 = vpop.f32.mrf.mxu1  ;;  %v8248_v57 = vpop.eup %8247  ;;  %8273 = vpow2.f32 %v3182_v19  ;;  %v3220_v1 = vmul.f32 1.442695, %v2456_v47  ;;  %4328 = vmatprep.mubr.f32.mxu0 %v13022_v29  ;;  %4441 = vmatprep.mubr.f32.mxu1 %v13022_v29  ;;  %v10925_v0 = vadd.f32 %v8246_v58, %v10649_v13  ;;  %v10936_v13 = vld [vmem:[%s12999_s1 + $0xa8] sm:$0xff] }
 0x1e8   : > { %13049 = vst [vmem:[#allocation49_spill] sm:$0xff] %v10920_v38  ;;  %v3224_v12 = vmul.f32 1.442695, %v2569_v45  ;;  %v8250_v5 = vpop.eup %8249  ;;  %8275 = vpow2.f32 %v3186_v17  ;;  %v2458_v55 = vpop.f32.mrf.mxu0  ;;  %v10928_v50 = vadd.f32 %v8248_v57, %v10765_v22 }
 0x1e9   : > { %v2571_v27 = vpop.f32.mrf.mxu1  ;;  %v8252_v25 = vpop.eup %8251  ;;  %8277 = vpow2.f32 %v3220_v1  ;;  %v3222_v46 = vmul.f32 1.442695, %v2458_v55  ;;  %v10931_v47 = vadd.f32 %v8250_v5, %v10753_v2 }
 0x1ea   : > { %v3226_v19 = vmul.f32 1.442695, %v2571_v27  ;;  %v8254_v45 = vpop.eup %8253  ;;  %8279 = vpow2.f32 %v3224_v12  ;;  %v2462_v38 = vpop.f32.mrf.mxu0  ;;  %7611 = vmatmul.mubr.msk.f32.gmra.mxu0 %vm247_vm0, %v10936_v13  ;;  %7619 = vmatmul.mubr.msk.f32.gmra.mxu1 %vm247_vm0, %v10936_v13  ;;  %v10943_v22 = vadd.f32 %v8252_v25, %v10762_v16 }
 0x1eb   : > { %v2575_v28 = vpop.f32.mrf.mxu1  ;;  %v8256_v2 = vpop.eup %8255  ;;  %8281 = vpow2.f32 %v3222_v46  ;;  %v3260_v17 = vmul.f32 1.442695, %v2462_v38  ;;  %4334 = vmatprep.mubr.f32.mxu0 %v13022_v29  ;;  %4447 = vmatprep.mubr.f32.mxu1 %v13022_v29  ;;  %v10948_v57 = vadd.f32 %v8254_v45, %v10663_v18  ;;  %v10959_v18 = vld [vmem:[%s12999_s1 + $0xb0] sm:$0xff] }
 0x1ec   : > { %13050 = vst [vmem:[#allocation50_spill] sm:$0xff] %v10943_v22  ;;  %v3264_v58 = vmul.f32 1.442695, %v2575_v28  ;;  %v8258_v1 = vpop.eup %8257  ;;  %8283 = vpow2.f32 %v3226_v19  ;;  %v2464_v12 = vpop.f32.mrf.mxu0  ;;  %v10951_v55 = vadd.f32 %v8256_v2, %v10782_v56 }
 0x1ed   : > { %v2577_v5 = vpop.f32.mrf.mxu1  ;;  %v8260_v16 = vpop.eup %8259  ;;  %8285 = vpow2.f32 %v3260_v17  ;;  %v3262_v27 = vmul.f32 1.442695, %v2464_v12  ;;  %v10954_v28 = vadd.f32 %v8258_v1, %v10767_v53 }
 0x1ee   : > { %v3266_v25 = vmul.f32 1.442695, %v2577_v5  ;;  %v8262_v38 = vpop.eup %8261  ;;  %8287 = vpow2.f32 %v3264_v58  ;;  %v2468_v46 = vpop.f32.mrf.mxu0  ;;  %7612 = vmatmul.mubr.msk.f32.gmra.mxu0 %vm247_vm0, %v10959_v18  ;;  %7620 = vmatmul.mubr.msk.f32.gmra.mxu1 %vm247_vm0, %v10959_v18  ;;  %v10966_v56 = vadd.f32 %v8260_v16, %v10779_v42 }
 0x1ef   : > { %v2581_v22 = vpop.f32.mrf.mxu1  ;;  %v8264_v53 = vpop.eup %8263  ;;  %8289 = vpow2.f32 %v3262_v27  ;;  %v3300_v19 = vmul.f32 1.442695, %v2468_v46  ;;  %4340 = vmatprep.mubr.f32.mxu0 %v13022_v29  ;;  %4453 = vmatprep.mubr.f32.mxu1 %v13022_v29  ;;  %v10971_v2 = vadd.f32 %v8262_v38, %v10677_v8  ;;  %v10982_v8 = vld [vmem:[%s12999_s1 + $0xb8] sm:$0xff] }
 0x1f0   : > { %13051 = vst [vmem:[#allocation51_spill] sm:$0xff] %v10966_v56  ;;  %v3304_v45 = vmul.f32 1.442695, %v2581_v22  ;;  %v8266_v17 = vpop.eup %8265  ;;  %8291 = vpow2.f32 %v3266_v25  ;;  %v2470_v58 = vpop.f32.mrf.mxu0  ;;  %v10974_v12 = vadd.f32 %v8264_v53, %v10799_v63 }
 0x1f1   : > { %v2583_v1 = vpop.f32.mrf.mxu1  ;;  %v8268_v42 = vpop.eup %8267  ;;  %8293 = vpow2.f32 %v3300_v19  ;;  %v3302_v5 = vmul.f32 1.442695, %v2470_v58  ;;  %v10977_v22 = vadd.f32 %v8266_v17, %v10784_v30 }
 0x1f2   : > { %v3306_v16 = vmul.f32 1.442695, %v2583_v1  ;;  %v8270_v27 = vpop.eup %8269  ;;  %8295 = vpow2.f32 %v3304_v45  ;;  %v2474_v46 = vpop.f32.mrf.mxu0  ;;  %7613 = vmatmul.mubr.msk.f32.gmra.mxu0 %vm247_vm0, %v10982_v8  ;;  %7621 = vmatmul.mubr.msk.f32.gmra.mxu1 %vm247_vm0, %v10982_v8  ;;  %v10989_v63 = vadd.f32 %v8268_v42, %v10796_v35 }
 0x1f3   : > { %v2587_v56 = vpop.f32.mrf.mxu1  ;;  %v8272_v30 = vpop.eup %8271  ;;  %8297 = vpow2.f32 %v3302_v5  ;;  %v3340_v25 = vmul.f32 1.442695, %v2474_v46  ;;  %4524 = vmatprep.mubr.f32.mxu0 %v13022_v29  ;;  %4637 = vmatprep.mubr.f32.mxu1 %v13022_v29  ;;  %v10994_v53 = vadd.f32 %v8270_v27, %v10691_v10 }
 0x1f4   : > { %v3344_v38 = vmul.f32 1.442695, %v2587_v56  ;;  %v8274_v19 = vpop.eup %8273  ;;  %8299 = vpow2.f32 %v3306_v16  ;;  %v2476_v45 = vpop.f32.mrf.mxu0  ;;  %v10997_v58 = vadd.f32 %v8272_v30, %v10816_v14 }
 0x1f5   : > { %v2589_v17 = vpop.f32.mrf.mxu1  ;;  %v8276_v35 = vpop.eup %8275  ;;  %8301 = vpow2.f32 %v3340_v25  ;;  %v3342_v1 = vmul.f32 1.442695, %v2476_v45  ;;  %v11000_v56 = vadd.f32 %v8274_v19, %v10801_v43  ;;  %v9115_v43 = vld [vmem:[%s9395_s29 + $0x10] sm:$0xff] }
 0x1f6   : > { %v3346_v42 = vmul.f32 1.442695, %v2589_v17  ;;  %v8278_v5 = vpop.eup %8277  ;;  %8303 = vpow2.f32 %v3344_v38  ;;  %v2658_v46 = vpop.f32.mrf.mxu0  ;;  %7622 = vmatmul.mubr.msk.f32.vlgmr.msra.gmra.mxu0 %vm247_vm0, %v10823_v6  ;;  %7630 = vmatmul.mubr.msk.f32.vlgmr.msra.gmra.mxu1 %vm247_vm0, %v10823_v6  ;;  %v11007_v14 = vadd.f32 %v8276_v35, %v10813_v9  ;;  %v9116_v9 = vld [vmem:[%s9395_s29] sm:$0xff] }
 0x1f7   : > { %v2771_v10 = vpop.f32.mrf.mxu1  ;;  %v8280_v16 = vpop.eup %8279  ;;  %8305 = vpow2.f32 %v3342_v1  ;;  %v3068_v27 = vmul.f32 1.442695, %v2658_v46  ;;  %5342 = vmatpush1.msra.mxu1 %v9115_v43  ;;  %4530 = vmatprep.mubr.f32.mxu0 %v13022_v29  ;;  %v11012_v25 = vadd.f32 %v8278_v5, %v10707_v37  ;;  %v9117_v46 = vld [vmem:[%s9395_s29 + $0x38] sm:$0xff] }
 0x1f8   : > { %v3072_v30 = vmul.f32 1.442695, %v2771_v10  ;;  %v8282_v38 = vpop.eup %8281  ;;  %8307 = vpow2.f32 %v3346_v42  ;;  %v2660_v19 = vpop.f32.mrf.mxu0  ;;  %4643 = vmatprep.mubr.f32.mxu1 %v13022_v29  ;;  %5229 = vmatpush1.msra.mxu0 %v9116_v9  ;;  %v11017_v45 = vadd.f32 %v8280_v16, %v10842_v11  ;;  %v9118_v10 = vld [vmem:[%s9395_s29 + $0x28] sm:$0xff] }
 0x1f9   : > { %v2773_v6 = vpop.f32.mrf.mxu1  ;;  %v8284_v17 = vpop.eup %8283  ;;  %8309 = vpow2.f32 %v3068_v27  ;;  %v3070_v35 = vmul.f32 1.442695, %v2660_v19  ;;  %5567 = vmatprep.subr.mxu1 %v9117_v46  ;;  %5454 = vmatprep.subr.mxu0 %v9118_v10  ;;  %v11022_v37 = vadd.f32 %v8282_v38, %v10818_v61 }
 0x1fa   : > { %v3074_v1 = vmul.f32 1.442695, %v2773_v6  ;;  %v8286_v42 = vpop.eup %8285  ;;  %8311 = vpow2.f32 %v3072_v30  ;;  %v2664_v5 = vpop.f32.mrf.mxu0  ;;  %7623 = vmatmul.mubr.msk.f32.gmra.mxu0 %vm247_vm0, %v10849_v15  ;;  %7631 = vmatmul.mubr.msk.f32.gmra.mxu1 %vm247_vm0, %v10849_v15  ;;  %v11029_v11 = vadd.f32 %v8284_v17, %v10837_v41 }
 0x1fb   : > { %v2777_v43 = vpop.f32.mrf.mxu1  ;;  %v8288_v16 = vpop.eup %8287  ;;  %8313 = vpow2.f32 %v3070_v35  ;;  %v3108_v27 = vmul.f32 1.442695, %v2664_v5  ;;  %4536 = vmatprep.mubr.f32.mxu0 %v13022_v29  ;;  %4649 = vmatprep.mubr.f32.mxu1 %v13022_v29  ;;  %v11034_v61 = vadd.f32 %v8286_v42, %v10723_v23 }
 0x1fc   : > { %v3112_v19 = vmul.f32 1.442695, %v2777_v43  ;;  %v8290_v30 = vpop.eup %8289  ;;  %8315 = vpow2.f32 %v3074_v1  ;;  %v2666_v38 = vpop.f32.mrf.mxu0  ;;  %v11037_v15 = vadd.f32 %v8288_v16, %v10864_v59 }
 0x1fd   : > { %v2779_v6 = vpop.f32.mrf.mxu1  ;;  %v8292_v41 = vpop.eup %8291  ;;  %8317 = vpow2.f32 %v3108_v27  ;;  %v3110_v9 = vmul.f32 1.442695, %v2666_v38  ;;  %v11040_v35 = vadd.f32 %v8290_v30, %v10844_v40 }
 0x1fe   : > { %v3114_v17 = vmul.f32 1.442695, %v2779_v6  ;;  %v8294_v46 = vpop.eup %8293  ;;  %8319 = vpow2.f32 %v3112_v19  ;;  %v2670_v10 = vpop.f32.mrf.mxu0  ;;  %7624 = vmatmul.mubr.msk.f32.gmra.mxu0 %vm247_vm0, %v10871_v26  ;;  %7632 = vmatmul.mubr.msk.f32.gmra.mxu1 %vm247_vm0, %v10871_v26  ;;  %v11047_v23 = vadd.f32 %v8292_v41, %v10861_v21 }
 0x1ff   : > { %v2783_v5 = vpop.f32.mrf.mxu1  ;;  %v8296_v59 = vpop.eup %8295  ;;  %8321 = vpow2.f32 %v3110_v9  ;;  %v3148_v1 = vmul.f32 1.442695, %v2670_v10  ;;  %4542 = vmatprep.mubr.f32.mxu0 %v13022_v29  ;;  %4655 = vmatprep.mubr.f32.mxu1 %v13022_v29  ;;  %v11052_v40 = vadd.f32 %v8294_v46, %v10737_v34 }
 0x200   : > { %v3152_v42 = vmul.f32 1.442695, %v2783_v5  ;;  %v8298_v43 = vpop.eup %8297  ;;  %8323 = vpow2.f32 %v3114_v17  ;;  %v2672_v16 = vpop.f32.mrf.mxu0  ;;  %v11055_v26 = vadd.f32 %v8296_v59, %v10886_v54 }
 0x201   : > { %v2785_v27 = vpop.f32.mrf.mxu1  ;;  %v8300_v21 = vpop.eup %8299  ;;  %8325 = vpow2.f32 %v3148_v1  ;;  %v3150_v19 = vmul.f32 1.442695, %v2672_v16  ;;  %v11058_v38 = vadd.f32 %v8298_v43, %v10866_v33 }
 0x202   : > { %v3154_v30 = vmul.f32 1.442695, %v2785_v27  ;;  %v8302_v6 = vpop.eup %8301  ;;  %8327 = vpow2.f32 %v3152_v42  ;;  %v2676_v41 = vpop.f32.mrf.mxu0  ;;  %7625 = vmatmul.mubr.msk.f32.gmra.mxu0 %vm247_vm0, %v10893_v39  ;;  %7633 = vmatmul.mubr.msk.f32.gmra.mxu1 %vm247_vm0, %v10893_v39  ;;  %v11065_v34 = vadd.f32 %v8300_v21, %v10883_v7 }
 0x203   : > { %v2789_v9 = vpop.f32.mrf.mxu1  ;;  %v8304_v54 = vpop.eup %8303  ;;  %8329 = vpow2.f32 %v3150_v19  ;;  %v3188_v17 = vmul.f32 1.442695, %v2676_v41  ;;  %4548 = vmatprep.mubr.f32.mxu0 %v13022_v29  ;;  %4661 = vmatprep.mubr.f32.mxu1 %v13022_v29  ;;  %v11070_v33 = vadd.f32 %v8302_v6, %v10751_v44 }
 0x204   : > { %v3192_v46 = vmul.f32 1.442695, %v2789_v9  ;;  %v8306_v10 = vpop.eup %8305  ;;  %8331 = vpow2.f32 %v3154_v30  ;;  %v2678_v5 = vpop.f32.mrf.mxu0  ;;  %v11073_v39 = vadd.f32 %v8304_v54, %v10908_v48 }
 0x205   : > { %v2791_v59 = vpop.f32.mrf.mxu1  ;;  %v8308_v7 = vpop.eup %8307  ;;  %8333 = vpow2.f32 %v3188_v17  ;;  %v3190_v1 = vmul.f32 1.442695, %v2678_v5  ;;  %v11076_v43 = vadd.f32 %v8306_v10, %v10888_v20 }
 0x206   : > { %v3194_v42 = vmul.f32 1.442695, %v2791_v59  ;;  %v8310_v16 = vpop.eup %8309  ;;  %8335 = vpow2.f32 %v3192_v46  ;;  %v2682_v27 = vpop.f32.mrf.mxu0  ;;  %7626 = vmatmul.mubr.msk.f32.gmra.mxu0 %vm247_vm0, %v10913_v4  ;;  %7634 = vmatmul.mubr.msk.f32.gmra.mxu1 %vm247_vm0, %v10913_v4  ;;  %v11083_v44 = vadd.f32 %v8308_v7, %v10905_v52 }
 0x207   : > { %v2795_v21 = vpop.f32.mrf.mxu1  ;;  %v8312_v48 = vpop.eup %8311  ;;  %8337 = vpow2.f32 %v3190_v1  ;;  %v3228_v19 = vmul.f32 1.442695, %v2682_v27  ;;  %4554 = vmatprep.mubr.f32.mxu0 %v13022_v29  ;;  %4667 = vmatprep.mubr.f32.mxu1 %v13022_v29  ;;  %v11088_v20 = vadd.f32 %v8310_v16, %v10774_v3 }
 0x208   : > { %v3232_v30 = vmul.f32 1.442695, %v2795_v21  ;;  %v8314_v6 = vpop.eup %8313  ;;  %8339 = vpow2.f32 %v3194_v42  ;;  %v2684_v41 = vpop.f32.mrf.mxu0  ;;  %v11091_v4 = vadd.f32 %v8312_v48, %v10931_v47 }
 0x209   : > { %v2797_v9 = vpop.f32.mrf.mxu1  ;;  %v8316_v52 = vpop.eup %8315  ;;  %8341 = vpow2.f32 %v3228_v19  ;;  %v3230_v54 = vmul.f32 1.442695, %v2684_v41  ;;  %v11094_v46 = vadd.f32 %v8314_v6, %v10925_v0 }
 0x20a   : > { %v3234_v17 = vmul.f32 1.442695, %v2797_v9  ;;  %v8318_v10 = vpop.eup %8317  ;;  %8343 = vpow2.f32 %v3232_v30  ;;  %v2688_v5 = vpop.f32.mrf.mxu0  ;;  %7627 = vmatmul.mubr.msk.f32.gmra.mxu0 %vm247_vm0, %v10936_v13  ;;  %7635 = vmatmul.mubr.msk.f32.gmra.mxu1 %vm247_vm0, %v10936_v13  ;;  %v3444_v3 = vadd.f32 %v8316_v52, %v10928_v50 }
 0x20b   : > { %v2801_v59 = vpop.f32.mrf.mxu1  ;;  %v8320_v47 = vpop.eup %8319  ;;  %8345 = vpow2.f32 %v3230_v54  ;;  %v3268_v7 = vmul.f32 1.442695, %v2688_v5  ;;  %4560 = vmatprep.mubr.f32.mxu0 %v13022_v29  ;;  %4673 = vmatprep.mubr.f32.mxu1 %v13022_v29  ;;  %v11104_v0 = vadd.f32 %v8318_v10, %v10791_v60 }
 0x20c   : > { %v3272_v1 = vmul.f32 1.442695, %v2801_v59  ;;  %v8322_v42 = vpop.eup %8321  ;;  %8347 = vpow2.f32 %v3234_v17  ;;  %v2690_v16 = vpop.f32.mrf.mxu0  ;;  %v11107_v21 = vadd.f32 %v3444_v3, %v10319_v49  ;;  %v11110_v50 = vadd.f32 %v8320_v47, %v10954_v28 }
 0x20d   : > { %v2803_v27 = vpop.f32.mrf.mxu1  ;;  %v8324_v13 = vpop.eup %8323  ;;  %8349 = vpow2.f32 %v3268_v7  ;;  %v3270_v48 = vmul.f32 1.442695, %v2690_v16  ;;  %v11113_v30 = vadd.f32 %v8322_v42, %v10948_v57 }
 0x20e   : > { %v3274_v19 = vmul.f32 1.442695, %v2803_v27  ;;  %v8326_v6 = vpop.eup %8325  ;;  %8351 = vpow2.f32 %v3272_v1  ;;  %v2694_v60 = vpop.f32.mrf.mxu0  ;;  %7628 = vmatmul.mubr.msk.f32.gmra.mxu0 %vm247_vm0, %v10959_v18  ;;  %7636 = vmatmul.mubr.msk.f32.gmra.mxu1 %vm247_vm0, %v10959_v18  ;;  %v3449_v49 = vadd.f32 %v8324_v13, %v10951_v55 }
 0x20f   : > { %v2807_v41 = vpop.f32.mrf.mxu1  ;;  %v8328_v28 = vpop.eup %8327  ;;  %8353 = vpow2.f32 %v3270_v48  ;;  %v3308_v9 = vmul.f32 1.442695, %v2694_v60  ;;  %4566 = vmatprep.mubr.f32.mxu0 %v13022_v29  ;;  %4679 = vmatprep.mubr.f32.mxu1 %v13022_v29  ;;  %v11123_v57 = vadd.f32 %v8326_v6, %v10808_v62 }
 0x210   : > { %v3312_v52 = vmul.f32 1.442695, %v2807_v41  ;;  %v8330_v54 = vpop.eup %8329  ;;  %8355 = vpow2.f32 %v3274_v19  ;;  %v2696_v17 = vpop.f32.mrf.mxu0  ;;  %v11126_v5 = vadd.f32 %v3449_v49, %v10338_v24  ;;  %v11129_v55 = vadd.f32 %v8328_v28, %v10977_v22 }
 0x211   : > { %v2809_v10 = vpop.f32.mrf.mxu1  ;;  %v8332_v18 = vpop.eup %8331  ;;  %8357 = vpow2.f32 %v3308_v9  ;;  %v3310_v59 = vmul.f32 1.442695, %v2696_v17  ;;  %v11132_v47 = vadd.f32 %v8330_v54, %v10971_v2  ;;  %v11144_v2 = vld [vmem:[%s12999_s1 + $0xc0] sm:$0xff]  ;;  %v9119_v17 = vld [vmem:[%s9395_s29 + $0x30] sm:$0xff] }
 0x212   : > { %v3314_v3 = vmul.f32 1.442695, %v2809_v10  ;;  %v8334_v7 = vpop.eup %8333  ;;  %8359 = vpow2.f32 %v3312_v52  ;;  %v2700_v62 = vpop.f32.mrf.mxu0  ;;  %7629 = vmatmul.mubr.msk.f32.gmra.mxu0 %vm247_vm0, %v10982_v8  ;;  %7637 = vmatmul.mubr.msk.f32.gmra.mxu1 %vm247_vm0, %v10982_v8  ;;  %v3454_v24 = vadd.f32 %v8332_v18, %v10974_v12 }
 0x213   : > { %v2813_v1 = vpop.f32.mrf.mxu1  ;;  %v8336_v22 = vpop.eup %8335  ;;  %8361 = vpow2.f32 %v3310_v59  ;;  %v3348_v42 = vmul.f32 1.442695, %v2700_v62  ;;  %5262 = vmatprep.mubr.f32.mxu0 %v13022_v29  ;;  %5375 = vmatprep.mubr.f32.mxu1 %v13022_v29  ;;  %v11147_v27 = vadd.f32 %v8334_v7, %v10830_v31 }
 0x214   : > { %v3352_v16 = vmul.f32 1.442695, %v2813_v1  ;;  %v8338_v13 = vpop.eup %8337  ;;  %8363 = vpow2.f32 %v3314_v3  ;;  %v2702_v8 = vpop.f32.mrf.mxu0  ;;  %v11150_v48 = vadd.f32 %v3454_v24, %v10357_v32  ;;  %v11153_v19 = vadd.f32 %v8336_v22, %v11000_v56  ;;  %v9120_v3 = vld [vmem:[%s9395_s29 + $0x20] sm:$0xff]  ;;  %v9121_v22 = vld [vmem:[%s9395_s29 + $0x58] sm:$0xff] }
 0x215   : > { %v2815_v12 = vpop.f32.mrf.mxu1  ;;  %v8340_v6 = vpop.eup %8339  ;;  %8365 = vpow2.f32 %v3348_v42  ;;  %v3350_v60 = vmul.f32 1.442695, %v2702_v8  ;;  %v11156_v49 = vadd.f32 %v8338_v13, %v10994_v53  ;;  %v11168_v53 = vld [vmem:[%s12999_s1 + $0xc8] sm:$0xff] }
 0x216   : > { %v3354_v41 = vmul.f32 1.442695, %v2815_v12  ;;  %v8342_v31 = vpop.eup %8341  ;;  %8367 = vpow2.f32 %v3352_v16  ;;  %v2884_v28 = vpop.f32.mrf.mxu0  ;;  %7638 = vmatmul.mubr.msk.f32.vlgmr.msra.gmra.mxu0 %vm247_vm0, %v11144_v2  ;;  %7646 = vmatmul.mubr.msk.f32.vlgmr.msra.gmra.mxu1 %vm247_vm0, %v11144_v2  ;;  %v3459_v32 = vadd.f32 %v8340_v6, %v10997_v58  ;;  %v9122_v42 = vld [vmem:[%s9395_s29 + $0x48] sm:$0xff] }
 0x217   : > { %v2997_v9 = vpop.f32.mrf.mxu1  ;;  %v8344_v56 = vpop.eup %8343  ;;  %8369 = vpow2.f32 %v3350_v60  ;;  %v3076_v52 = vmul.f32 1.442695, %v2884_v28  ;;  %5568 = vmatpush1.msra.mxu1 %v9119_v17  ;;  %5268 = vmatprep.mubr.f32.mxu0 %v13022_v29  ;;  %v11171_v10 = vadd.f32 %v8342_v31, %v10856_v36 }
 0x218   : > { %v3080_v54 = vmul.f32 1.442695, %v2997_v9  ;;  %v8346_v18 = vpop.eup %8345  ;;  %8371 = vpow2.f32 %v3354_v41  ;;  %v2886_v58 = vpop.f32.mrf.mxu0  ;;  %5381 = vmatprep.mubr.f32.mxu1 %v13022_v29  ;;  %5455 = vmatpush1.msra.mxu0 %v9120_v3  ;;  %v11176_v7 = vadd.f32 %v3459_v32, %v10380_v51  ;;  %v11179_v62 = vadd.f32 %v8344_v56, %v11022_v37  ;;  %v13052_v41 = vld [vmem:[#allocation47_spill] sm:$0xff] }
 0x219   : > { %v2999_v59 = vpop.f32.mrf.mxu1  ;;  %v8348_v1 = vpop.eup %8347  ;;  %8373 = vpow2.f32 %v3076_v52  ;;  %v3078_v24 = vmul.f32 1.442695, %v2886_v58  ;;  %5793 = vmatprep.subr.mxu1 %v9121_v22  ;;  %5680 = vmatprep.subr.mxu0 %v9122_v42  ;;  %v11184_v16 = vadd.f32 %v8346_v18, %v11012_v25  ;;  %v11196_v25 = vld [vmem:[%s12999_s1 + $0xd0] sm:$0xff]  ;;  %v13053_v32 = vld [vmem:[#allocation11_spill] sm:$0xff] }
 0x21a   : > { %v3082_v36 = vmul.f32 1.442695, %v2999_v59  ;;  %v8350_v13 = vpop.eup %8349  ;;  %8375 = vpow2.f32 %v3080_v54  ;;  %v2890_v8 = vpop.f32.mrf.mxu0  ;;  %7639 = vmatmul.mubr.msk.f32.gmra.mxu0 %vm247_vm0, %v11168_v53  ;;  %7647 = vmatmul.mubr.msk.f32.gmra.mxu1 %vm247_vm0, %v11168_v53  ;;  %v3464_v51 = vadd.f32 %v8348_v1, %v11017_v45  ;;  %v13055_v42 = vld [vmem:[#allocation48_spill] sm:$0xff] }
 0x21b   : > { %v3003_v12 = vpop.f32.mrf.mxu1  ;;  %v8352_v37 = vpop.eup %8351  ;;  %8377 = vpow2.f32 %v3078_v24  ;;  %v3116_v6 = vmul.f32 1.442695, %v2890_v8  ;;  %5274 = vmatprep.mubr.f32.mxu0 %v13022_v29  ;;  %5387 = vmatprep.mubr.f32.mxu1 %v13022_v29  ;;  %v11199_v31 = vadd.f32 %v8350_v13, %v13052_v41 }
 0x21c   : > { %v3120_v60 = vmul.f32 1.442695, %v3003_v12  ;;  %v8354_v28 = vpop.eup %8353  ;;  %8379 = vpow2.f32 %v3082_v36  ;;  %v2892_v9 = vpop.f32.mrf.mxu0  ;;  %v11202_v56 = vadd.f32 %v3464_v51, %v13053_v32  ;;  %v11205_v52 = vadd.f32 %v8352_v37, %v11040_v35  ;;  %v13056_v51 = vld [vmem:[#allocation12_spill] sm:$0xff] }
 0x21d   : > { %v3005_v45 = vpop.f32.mrf.mxu1  ;;  %v8356_v54 = vpop.eup %8355  ;;  %8381 = vpow2.f32 %v3116_v6  ;;  %v3118_v17 = vmul.f32 1.442695, %v2892_v9  ;;  %v11208_v58 = vadd.f32 %v8354_v28, %v11034_v61  ;;  %v11220_v61 = vld [vmem:[%s12999_s1 + $0xd8] sm:$0xff] }
 0x21e   : > { %13054 = vst [vmem:[#allocation47_spill] sm:$0xff] %v11202_v56  ;;  %v3122_v18 = vmul.f32 1.442695, %v3005_v45  ;;  %v8358_v59 = vpop.eup %8357  ;;  %8383 = vpow2.f32 %v3120_v60  ;;  %v2896_v3 = vpop.f32.mrf.mxu0  ;;  %7640 = vmatmul.mubr.msk.f32.gmra.mxu0 %vm247_vm0, %v11196_v25  ;;  %7648 = vmatmul.mubr.msk.f32.gmra.mxu1 %vm247_vm0, %v11196_v25  ;;  %v3469_v35 = vadd.f32 %v8356_v54, %v11037_v15 }
 0x21f   : > { %v3009_v1 = vpop.f32.mrf.mxu1  ;;  %v8360_v24 = vpop.eup %8359  ;;  %8385 = vpow2.f32 %v3118_v17  ;;  %v3156_v36 = vmul.f32 1.442695, %v2896_v3  ;;  %5280 = vmatprep.mubr.f32.mxu0 %v13022_v29  ;;  %5393 = vmatprep.mubr.f32.mxu1 %v13022_v29  ;;  %v11223_v13 = vadd.f32 %v8358_v59, %v13055_v42  ;;  %v13058_v3 = vld [vmem:[#allocation49_spill] sm:$0xff] }
 0x220   : > { %v3160_v22 = vmul.f32 1.442695, %v3009_v1  ;;  %v8362_v8 = vpop.eup %8361  ;;  %8387 = vpow2.f32 %v3122_v18  ;;  %v2898_v12 = vpop.f32.mrf.mxu0  ;;  %v11226_v37 = vadd.f32 %v3469_v35, %v13056_v51  ;;  %v11229_v6 = vadd.f32 %v8360_v24, %v11058_v38 }
 0x221   : > { %v3011_v15 = vpop.f32.mrf.mxu1  ;;  %v8364_v60 = vpop.eup %8363  ;;  %8389 = vpow2.f32 %v3156_v36  ;;  %v3158_v41 = vmul.f32 1.442695, %v2898_v12  ;;  %v11232_v9 = vadd.f32 %v8362_v8, %v11052_v40  ;;  %v11244_v40 = vld [vmem:[%s12999_s1 + $0xe0] sm:$0xff]  ;;  %v13059_v36 = vld [vmem:[#allocation13_spill] sm:$0xff] }
 0x222   : > { %13057 = vst [vmem:[#allocation11_spill] sm:$0xff] %v11226_v37  ;;  %v3162_v28 = vmul.f32 1.442695, %v3011_v15  ;;  %v8366_v45 = vpop.eup %8365  ;;  %8391 = vpow2.f32 %v3160_v22  ;;  %v2902_v32 = vpop.f32.mrf.mxu0  ;;  %7641 = vmatmul.mubr.msk.f32.gmra.mxu0 %vm247_vm0, %v11220_v61  ;;  %7649 = vmatmul.mubr.msk.f32.gmra.mxu1 %vm247_vm0, %v11220_v61  ;;  %v3474_v38 = vadd.f32 %v8364_v60, %v11055_v26 }
 0x223   : > { %v3015_v54 = vpop.f32.mrf.mxu1  ;;  %v8368_v17 = vpop.eup %8367  ;;  %8393 = vpow2.f32 %v3158_v41  ;;  %v3196_v18 = vmul.f32 1.442695, %v2902_v32  ;;  %5286 = vmatprep.mubr.f32.mxu0 %v13022_v29  ;;  %5399 = vmatprep.mubr.f32.mxu1 %v13022_v29  ;;  %v11247_v1 = vadd.f32 %v8366_v45, %v13058_v3 }
 0x224   : > { %v3200_v59 = vmul.f32 1.442695, %v3015_v54  ;;  %v8370_v35 = vpop.eup %8369  ;;  %8395 = vpow2.f32 %v3162_v28  ;;  %v2904_v24 = vpop.f32.mrf.mxu0  ;;  %v11250_v22 = vadd.f32 %v3474_v38, %v13059_v36  ;;  %v11253_v42 = vadd.f32 %v8368_v17, %v11076_v43  ;;  %v13061_v38 = vld [vmem:[#allocation50_spill] sm:$0xff] }
 0x225   : > { %v3017_v26 = vpop.f32.mrf.mxu1  ;;  %v8372_v8 = vpop.eup %8371  ;;  %8397 = vpow2.f32 %v3196_v18  ;;  %v3198_v12 = vmul.f32 1.442695, %v2904_v24  ;;  %v11256_v51 = vadd.f32 %v8370_v35, %v11070_v33  ;;  %v11268_v33 = vld [vmem:[%s12999_s1 + $0xe8] sm:$0xff] }
 0x226   : > { %13060 = vst [vmem:[#allocation48_spill] sm:$0xff] %v11250_v22  ;;  %v3202_v15 = vmul.f32 1.442695, %v3017_v26  ;;  %v8374_v60 = vpop.eup %8373  ;;  %8399 = vpow2.f32 %v3200_v59  ;;  %v2908_v41 = vpop.f32.mrf.mxu0  ;;  %7642 = vmatmul.mubr.msk.f32.gmra.mxu0 %vm247_vm0, %v11244_v40  ;;  %7650 = vmatmul.mubr.msk.f32.gmra.mxu1 %vm247_vm0, %v11244_v40  ;;  %v3479_v43 = vadd.f32 %v8372_v8, %v11073_v39  ;;  %v13062_v39 = vld [vmem:[#allocation14_spill] sm:$0xff] }
 0x227   : > { %v3021_v45 = vpop.f32.mrf.mxu1  ;;  %v8376_v28 = vpop.eup %8375  ;;  %8401 = vpow2.f32 %v3198_v12  ;;  %v3236_v32 = vmul.f32 1.442695, %v2908_v41  ;;  %5292 = vmatprep.mubr.f32.mxu0 %v13022_v29  ;;  %5405 = vmatprep.mubr.f32.mxu1 %v13022_v29  ;;  %v3445_v17 = vadd.f32 %v8374_v60, %v13061_v38  ;;  %v13064_v12 = vld [vmem:[#allocation15_spill] sm:$0xff] }
 0x228   : > { %v3240_v54 = vmul.f32 1.442695, %v3021_v45  ;;  %v8378_v18 = vpop.eup %8377  ;;  %8403 = vpow2.f32 %v3202_v15  ;;  %v2910_v59 = vpop.f32.mrf.mxu0  ;;  %v11272_v35 = vadd.f32 %v3479_v43, %v13062_v39  ;;  %v3447_v24 = vadd.f32 %v8376_v28, %v11094_v46  ;;  %v13066_v46 = vld [vmem:[#allocation16_spill] sm:$0xff] }
 0x229   : > { %v3023_v3 = vpop.f32.mrf.mxu1  ;;  %v8380_v26 = vpop.eup %8379  ;;  %8405 = vpow2.f32 %v3236_v32  ;;  %v3238_v36 = vmul.f32 1.442695, %v2910_v59  ;;  %v11276_v41 = vadd.f32 %v3445_v17, %v13064_v12  ;;  %v3446_v15 = vadd.f32 %v8378_v18, %v11088_v20  ;;  %v13068_v59 = vld [vmem:[#allocation51_spill] sm:$0xff] }
 0x22a   : > { %13063 = vst [vmem:[#allocation12_spill] sm:$0xff] %v11272_v35  ;;  %v3242_v8 = vmul.f32 1.442695, %v3023_v3  ;;  %v8382_v45 = vpop.eup %8381  ;;  %8407 = vpow2.f32 %v3240_v54  ;;  %v2914_v22 = vpop.f32.mrf.mxu0  ;;  %7643 = vmatmul.mubr.msk.f32.gmra.mxu0 %vm247_vm0, %v11268_v33  ;;  %7651 = vmatmul.mubr.msk.f32.gmra.mxu1 %vm247_vm0, %v11268_v33  ;;  %v11284_v43 = vadd.f32 %v3447_v24, %v13066_v46  ;;  %v3448_v28 = vadd.f32 %v8380_v26, %v11091_v4  ;;  %v11292_v54 = vld [vmem:[%s12999_s1 + $0xf0] sm:$0xff]  ;;  %v13071_v26 = vld [vmem:[#allocation18_spill] sm:$0xff] }
 0x22b   : > { %13065 = vst [vmem:[#allocation49_spill] sm:$0xff] %v11276_v41  ;;  %v3027_v60 = vpop.f32.mrf.mxu1  ;;  %v8384_v32 = vpop.eup %8383  ;;  %8409 = vpow2.f32 %v3238_v36  ;;  %v3276_v38 = vmul.f32 1.442695, %v2914_v22  ;;  %5298 = vmatprep.mubr.f32.mxu0 %v13022_v29  ;;  %5411 = vmatprep.mubr.f32.mxu1 %v13022_v29  ;;  %v3450_v20 = vadd.f32 %v8382_v45, %v13068_v59  ;;  %v13069_v4 = vld [vmem:[#allocation17_spill] sm:$0xff] }
 0x22c   : > { %13067 = vst [vmem:[#allocation13_spill] sm:$0xff] %v11284_v43  ;;  %v3280_v17 = vmul.f32 1.442695, %v3027_v60  ;;  %v8386_v18 = vpop.eup %8385  ;;  %8411 = vpow2.f32 %v3242_v8  ;;  %v2916_v3 = vpop.f32.mrf.mxu0  ;;  %v11296_v24 = vadd.f32 %v3446_v15, %v13069_v4  ;;  %v3452_v22 = vadd.f32 %v8384_v32, %v11113_v30  ;;  %v13073_v43 = vld [vmem:[#allocation19_spill] sm:$0xff]  ;;  %v13075_v15 = vld [vmem:[#allocation20_spill] sm:$0xff] }
 0x22d   : > { %v3029_v39 = vpop.f32.mrf.mxu1  ;;  %v11300_v36 = vadd.f32 %v3448_v28, %v13071_v26  ;;  %v8388_v12 = vpop.eup %8387  ;;  %8413 = vpow2.f32 %v3276_v38  ;;  %v3278_v60 = vmul.f32 1.442695, %v2916_v3  ;;  %v11303_v41 = vadd.f32 %v3450_v20, %v13073_v43  ;;  %v13079_v26 = vld [vmem:[#allocation22_spill] sm:$0xff] }
 0x22e   : > { %13070 = vst [vmem:[#allocation50_spill] sm:$0xff] %v11296_v24  ;;  %v3282_v46 = vmul.f32 1.442695, %v3029_v39  ;;  %v8390_v45 = vpop.eup %8389  ;;  %8415 = vpow2.f32 %v3280_v17  ;;  %v2920_v8 = vpop.f32.mrf.mxu0  ;;  %7644 = vmatmul.mubr.msk.f32.gmra.mxu0 %vm247_vm0, %v11292_v54  ;;  %7652 = vmatmul.mubr.msk.f32.gmra.mxu1 %vm247_vm0, %v11292_v54  ;;  %v3451_v30 = vadd.f32 %v8386_v18, %v11104_v0  ;;  %v11311_v28 = vadd.f32 %v3452_v22, %v13075_v15  ;;  %v11319_v17 = vld [vmem:[%s12999_s1 + $0xf8] sm:$0xff]  ;;  %v13081_v15 = vld [vmem:[#allocation23_spill] sm:$0xff] }
 0x22f   : > { %13072 = vst [vmem:[#allocation14_spill] sm:$0xff] %v11300_v36  ;;  %13074 = vst [vmem:[#allocation15_spill] sm:$0xff] %v11303_v41  ;;  %v3033_v59 = vpop.f32.mrf.mxu1  ;;  %v3453_v32 = vadd.f32 %v8388_v12, %v11110_v50  ;;  %v8392_v38 = vpop.eup %8391  ;;  %8417 = vpow2.f32 %v3278_v60  ;;  %v3316_v43 = vmul.f32 1.442695, %v2920_v8  ;;  %5304 = vmatprep.mubr.f32.mxu0 %v13022_v29  ;;  %5417 = vmatprep.mubr.f32.mxu1 %v13022_v29  ;;  %v13077_v50 = vld [vmem:[#allocation21_spill] sm:$0xff] }
 0x230   : > { %13076 = vst [vmem:[#allocation16_spill] sm:$0xff] %v11311_v28  ;;  %v3320_v20 = vmul.f32 1.442695, %v3033_v59  ;;  %v3455_v0 = vadd.f32 %v8390_v45, %v10989_v63  ;;  %v8394_v18 = vpop.eup %8393  ;;  %8419 = vpow2.f32 %v3282_v46  ;;  %v2922_v3 = vpop.f32.mrf.mxu0  ;;  %v11323_v4 = vadd.f32 %v3451_v30, %v13077_v50  ;;  %v13083_v30 = vld [vmem:[#allocation24_spill] sm:$0xff] }
 0x231   : > { %v3035_v39 = vpop.f32.mrf.mxu1  ;;  %v3457_v22 = vadd.f32 %v8392_v38, %v11132_v47  ;;  %v11327_v12 = vadd.f32 %v3453_v32, %v13079_v26  ;;  %v8396_v60 = vpop.eup %8395  ;;  %8421 = vpow2.f32 %v3316_v43  ;;  %v3318_v8 = vmul.f32 1.442695, %v2922_v3 }
 0x232   : > { %13078 = vst [vmem:[#allocation51_spill] sm:$0xff] %v11323_v4  ;;  %v3322_v59 = vmul.f32 1.442695, %v3035_v39  ;;  %v11330_v28 = vadd.f32 %v3455_v0, %v13081_v15  ;;  %v8398_v63 = vpop.eup %8397  ;;  %8423 = vpow2.f32 %v3320_v20  ;;  %v2926_v46 = vpop.f32.mrf.mxu0  ;;  %7645 = vmatmul.mubr.msk.f32.gmra.mxu0 %vm247_vm0, %v11319_v17  ;;  %7653 = vmatmul.mubr.msk.f32.gmra.mxu1 %vm247_vm0, %v11319_v17  ;;  %v3456_v47 = vadd.f32 %v8394_v18, %v11123_v57  ;;  %v13085_v57 = vld [vmem:[#allocation25_spill] sm:$0xff] }
 0x233   : > { %13080 = vst [vmem:[#allocation17_spill] sm:$0xff] %v11327_v12  ;;  %v3039_v45 = vpop.f32.mrf.mxu1  ;;  %v11338_v32 = vadd.f32 %v3457_v22, %v13083_v30  ;;  %v3458_v38 = vadd.f32 %v8396_v60, %v11129_v55  ;;  %v8400_v43 = vpop.eup %8399  ;;  %8425 = vpow2.f32 %v3318_v8  ;;  %v3356_v0 = vmul.f32 1.442695, %v2926_v46  ;;  %5488 = vmatprep.mubr.f32.mxu0 %v13022_v29  ;;  %5601 = vmatprep.mubr.f32.mxu1 %v13022_v29  ;;  %v13087_v55 = vld [vmem:[#allocation26_spill] sm:$0xff]  ;;  %v9133_v12 = vld [vmem:[%s9395_s29 + $0x90] sm:$0xff] }
 0x234   : > { %13082 = vst [vmem:[#allocation18_spill] sm:$0xff] %v11330_v28  ;;  %v3360_v3 = vmul.f32 1.442695, %v3039_v45  ;;  %v3460_v20 = vadd.f32 %v8398_v63, %v11007_v14  ;;  %v8402_v39 = vpop.eup %8401  ;;  %8427 = vpow2.f32 %v3322_v59  ;;  %v2928_v50 = vpop.f32.mrf.mxu0  ;;  %v11345_v18 = vadd.f32 %v3456_v47, %v13085_v57  ;;  %v13089_v45 = vld [vmem:[#allocation27_spill] sm:$0xff]  ;;  %v13091_v47 = vld [vmem:[#allocation28_spill] sm:$0xff] }
 0x235   : > { %13084 = vst [vmem:[#allocation19_spill] sm:$0xff] %v11338_v32  ;;  %v3041_v26 = vpop.f32.mrf.mxu1  ;;  %v3462_v22 = vadd.f32 %v8400_v43, %v11156_v49  ;;  %v11349_v60 = vadd.f32 %v3458_v38, %v13087_v55  ;;  %v8404_v8 = vpop.eup %8403  ;;  %8429 = vpow2.f32 %v3356_v0  ;;  %v3358_v15 = vmul.f32 1.442695, %v2928_v50  ;;  %v9123_v50 = vld [vmem:[%s9395_s29 + $0x50] sm:$0xff] }
 0x236   : > { %13086 = vst [vmem:[#allocation20_spill] sm:$0xff] %v11345_v18  ;;  %v3362_v46 = vmul.f32 1.442695, %v3041_v26  ;;  %v11352_v30 = vadd.f32 %v3460_v20, %v13089_v45  ;;  %v8406_v14 = vpop.eup %8405  ;;  %8431 = vpow2.f32 %v3360_v3  ;;  %v3622_v59 = vpop.f32.mrf.mxu0  ;;  %7654 = vmatmul.mubr.msk.f32.vlgmr.msra.gmra.mxu0 %vm247_vm0, %v11144_v2  ;;  %7662 = vmatmul.mubr.msk.f32.vlgmr.msra.gmra.mxu1 %vm247_vm0, %v11144_v2  ;;  %v3461_v49 = vadd.f32 %v8402_v39, %v11147_v27 }
 0x237   : > { %13088 = vst [vmem:[#allocation21_spill] sm:$0xff] %v11349_v60  ;;  %v3735_v63 = vpop.f32.mrf.mxu1  ;;  %v11360_v38 = vadd.f32 %v3462_v22, %v13091_v47  ;;  %v3463_v43 = vadd.f32 %v8404_v8, %v11153_v19  ;;  %v8408_v0 = vpop.eup %8407  ;;  %8433 = vpow2.f32 %v3358_v15  ;;  %v4686_v20 = vmul.f32 1.442695, %v3622_v59  ;;  %5794 = vmatpush1.msra.mxu1 %v9123_v50  ;;  %5494 = vmatprep.mubr.f32.mxu0 %v13022_v29  ;;  %v9124_v22 = vld [vmem:[%s9395_s29 + $0x40] sm:$0xff]  ;;  %v13093_v19 = vld [vmem:[#allocation29_spill] sm:$0xff] }
 0x238   : > { %13090 = vst [vmem:[#allocation22_spill] sm:$0xff] %v11352_v30  ;;  %v4690_v3 = vmul.f32 1.442695, %v3735_v63  ;;  %v3465_v26 = vadd.f32 %v8406_v14, %v11029_v11  ;;  %v8410_v57 = vpop.eup %8409  ;;  %8435 = vpow2.f32 %v3362_v46  ;;  %v3624_v27 = vpop.f32.mrf.mxu0  ;;  %5607 = vmatprep.mubr.f32.mxu1 %v13022_v29  ;;  %5681 = vmatpush1.msra.mxu0 %v9124_v22  ;;  %v11369_v55 = vadd.f32 %v3461_v49, %v13093_v19  ;;  %v13095_v15 = vld [vmem:[#allocation30_spill] sm:$0xff]  ;;  %v9126_v46 = vld [vmem:[%s9395_s29 + $0x68] sm:$0xff] }
 0x239   : > { %13092 = vst [vmem:[#allocation23_spill] sm:$0xff] %v11360_v38  ;;  %v3737_v39 = vpop.f32.mrf.mxu1  ;;  %v3467_v8 = vadd.f32 %v8408_v0, %v11184_v16  ;;  %v11373_v45 = vadd.f32 %v3463_v43, %v13095_v15  ;;  %v8412_v59 = vpop.eup %8411  ;;  %8437 = vpow2.f32 %v4686_v20  ;;  %v4688_v11 = vmul.f32 1.442695, %v3624_v27  ;;  %v9125_v63 = vld [vmem:[%s9395_s29 + $0x78] sm:$0xff]  ;;  %5906 = vmatprep.subr.mxu0 %v9126_v46  ;;  %v13097_v47 = vld [vmem:[#allocation31_spill] sm:$0xff]  ;;  %v13099_v43 = vld [vmem:[#allocation32_spill] sm:$0xff] }
 0x23a   : > { %13094 = vst [vmem:[#allocation24_spill] sm:$0xff] %v11369_v55  ;;  %v4692_v14 = vmul.f32 1.442695, %v3737_v39  ;;  %6019 = vmatprep.subr.mxu1 %v9125_v63  ;;  %v11378_v50 = vadd.f32 %v3465_v26, %v13097_v47  ;;  %v8414_v22 = vpop.eup %8413  ;;  %8439 = vpow2.f32 %v4690_v3  ;;  %v3628_v49 = vpop.f32.mrf.mxu0  ;;  %7655 = vmatmul.mubr.msk.f32.gmra.mxu0 %vm247_vm0, %v11168_v53  ;;  %v3466_v16 = vadd.f32 %v8410_v57, %v11171_v10  ;;  %v13101_v10 = vld [vmem:[#allocation33_spill] sm:$0xff] }
 0x23b   : > { %13096 = vst [vmem:[#allocation25_spill] sm:$0xff] %v11373_v45  ;;  %v3741_v19 = vpop.f32.mrf.mxu1  ;;  %7663 = vmatmul.mubr.msk.f32.gmra.mxu1 %vm247_vm0, %v11168_v53  ;;  %v11386_v0 = vadd.f32 %v3467_v8, %v13099_v43  ;;  %v3468_v20 = vadd.f32 %v8412_v59, %v11179_v62  ;;  %v8416_v27 = vpop.eup %8415  ;;  %8441 = vpow2.f32 %v4688_v11  ;;  %v4726_v26 = vmul.f32 1.442695, %v3628_v49  ;;  %5500 = vmatprep.mubr.f32.mxu0 %v13022_v29  ;;  %v13103_v62 = vld [vmem:[#allocation34_spill] sm:$0xff] }
 0x23c   : > { %13098 = vst [vmem:[#allocation26_spill] sm:$0xff] %v11378_v50  ;;  %v4730_v39 = vmul.f32 1.442695, %v3741_v19  ;;  %5613 = vmatprep.mubr.f32.mxu1 %v13022_v29  ;;  %v3470_v3 = vadd.f32 %v8414_v22, %v11047_v23  ;;  %v8418_v15 = vpop.eup %8417  ;;  %8443 = vpow2.f32 %v4692_v14  ;;  %v3630_v63 = vpop.f32.mrf.mxu0  ;;  %v11393_v57 = vadd.f32 %v3466_v16, %v13101_v10  ;;  %v13105_v19 = vld [vmem:[#allocation35_spill] sm:$0xff]  ;;  %v13107_v16 = vld [vmem:[#allocation36_spill] sm:$0xff] }
 0x23d   : > { %13100 = vst [vmem:[#allocation27_spill] sm:$0xff] %v11386_v0  ;;  %v3743_v46 = vpop.f32.mrf.mxu1  ;;  %v3472_v8 = vadd.f32 %v8416_v27, %v11208_v58  ;;  %v11397_v59 = vadd.f32 %v3468_v20, %v13103_v62  ;;  %v8420_v11 = vpop.eup %8419  ;;  %8445 = vpow2.f32 %v4726_v26  ;;  %v4728_v47 = vmul.f32 1.442695, %v3630_v63 }
 0x23e   : > { %13102 = vst [vmem:[#allocation28_spill] sm:$0xff] %v11393_v57  ;;  %v4732_v49 = vmul.f32 1.442695, %v3743_v46  ;;  %v11400_v43 = vadd.f32 %v3470_v3, %v13105_v19  ;;  %v8422_v23 = vpop.eup %8421  ;;  %8447 = vpow2.f32 %v4730_v39  ;;  %v3634_v14 = vpop.f32.mrf.mxu0  ;;  %7656 = vmatmul.mubr.msk.f32.gmra.mxu0 %vm247_vm0, %v11196_v25  ;;  %v3471_v58 = vadd.f32 %v8418_v15, %v11199_v31  ;;  %v13109_v31 = vld [vmem:[#allocation37_spill] sm:$0xff] }
 0x23f   : > { %13104 = vst [vmem:[#allocation29_spill] sm:$0xff] %v11397_v59  ;;  %v3747_v22 = vpop.f32.mrf.mxu1  ;;  %7664 = vmatmul.mubr.msk.f32.gmra.mxu1 %vm247_vm0, %v11196_v25  ;;  %v11408_v20 = vadd.f32 %v3472_v8, %v13107_v16  ;;  %v3473_v27 = vadd.f32 %v8420_v11, %v11205_v52  ;;  %v8424_v26 = vpop.eup %8423  ;;  %8449 = vpow2.f32 %v4728_v47  ;;  %v4766_v3 = vmul.f32 1.442695, %v3634_v14  ;;  %5506 = vmatprep.mubr.f32.mxu0 %v13022_v29  ;;  %v13111_v52 = vld [vmem:[#allocation38_spill] sm:$0xff] }
 0x240   : > { %13106 = vst [vmem:[#allocation30_spill] sm:$0xff] %v11400_v43  ;;  %v4770_v63 = vmul.f32 1.442695, %v3747_v22  ;;  %5619 = vmatprep.mubr.f32.mxu1 %v13022_v29  ;;  %v3475_v39 = vadd.f32 %v8422_v23, %v11065_v34  ;;  %v8426_v46 = vpop.eup %8425  ;;  %8451 = vpow2.f32 %v4732_v49  ;;  %v3636_v10 = vpop.f32.mrf.mxu0  ;;  %v11415_v15 = vadd.f32 %v3471_v58, %v13109_v31  ;;  %v13113_v22 = vld [vmem:[#allocation39_spill] sm:$0xff]  ;;  %v13115_v58 = vld [vmem:[#allocation40_spill] sm:$0xff] }
 0x241   : > { %13108 = vst [vmem:[#allocation31_spill] sm:$0xff] %v11408_v20  ;;  %v3749_v62 = vpop.f32.mrf.mxu1  ;;  %v3477_v8 = vadd.f32 %v8424_v26, %v11232_v9  ;;  %v11419_v11 = vadd.f32 %v3473_v27, %v13111_v52  ;;  %v8428_v47 = vpop.eup %8427  ;;  %8453 = vpow2.f32 %v4766_v3  ;;  %v4768_v19 = vmul.f32 1.442695, %v3636_v10  ;;  %v9130_v20 = vld [vmem:[%s9395_s29 + $0x98] sm:$0xff] }
 0x242   : > { %13110 = vst [vmem:[#allocation32_spill] sm:$0xff] %v11415_v15  ;;  %v4772_v14 = vmul.f32 1.442695, %v3749_v62  ;;  %v11422_v16 = vadd.f32 %v3475_v39, %v13113_v22  ;;  %v8430_v34 = vpop.eup %8429  ;;  %8455 = vpow2.f32 %v4770_v63  ;;  %v3640_v49 = vpop.f32.mrf.mxu0  ;;  %7657 = vmatmul.mubr.msk.f32.gmra.mxu0 %vm247_vm0, %v11220_v61  ;;  %v3476_v9 = vadd.f32 %v8426_v46, %v11223_v13  ;;  %v13117_v13 = vld [vmem:[#allocation41_spill] sm:$0xff]  ;;  %v9128_v15 = vld [vmem:[%s9395_s29 + $0x60] sm:$0xff] }
 0x243   : > { %13112 = vst [vmem:[#allocation33_spill] sm:$0xff] %v11419_v11  ;;  %v3753_v23 = vpop.f32.mrf.mxu1  ;;  %7665 = vmatmul.mubr.msk.f32.gmra.mxu1 %vm247_vm0, %v11220_v61  ;;  %v11430_v27 = vadd.f32 %v3477_v8, %v13115_v58  ;;  %v3478_v26 = vadd.f32 %v8428_v47, %v11229_v6  ;;  %v8432_v3 = vpop.eup %8431  ;;  %8457 = vpow2.f32 %v4768_v19  ;;  %v4806_v39 = vmul.f32 1.442695, %v3640_v49  ;;  %5512 = vmatprep.mubr.f32.mxu0 %v13022_v29  ;;  %v13119_v6 = vld [vmem:[#allocation42_spill] sm:$0xff] }
 0x244   : > { %13114 = vst [vmem:[#allocation34_spill] sm:$0xff] %v11422_v16  ;;  %v4810_v10 = vmul.f32 1.442695, %v3753_v23  ;;  %5625 = vmatprep.mubr.f32.mxu1 %v13022_v29  ;;  %v3480_v63 = vadd.f32 %v8430_v34, %v11083_v44  ;;  %v8434_v62 = vpop.eup %8433  ;;  %8459 = vpow2.f32 %v4772_v14  ;;  %v3642_v31 = vpop.f32.mrf.mxu0  ;;  %v11437_v46 = vadd.f32 %v3476_v9, %v13117_v13  ;;  %v13121_v23 = vld [vmem:[#allocation43_spill] sm:$0xff]  ;;  %v13123_v9 = vld [vmem:[#allocation44_spill] sm:$0xff] }
 0x245   : > { %13116 = vst [vmem:[#allocation35_spill] sm:$0xff] %v11430_v27  ;;  %v3755_v52 = vpop.f32.mrf.mxu1  ;;  %v3482_v8 = vadd.f32 %v8432_v3, %v11256_v51  ;;  %v11441_v47 = vadd.f32 %v3478_v26, %v13119_v6  ;;  %v8436_v19 = vpop.eup %8435  ;;  %8461 = vpow2.f32 %v4806_v39  ;;  %v4808_v22 = vmul.f32 1.442695, %v3642_v31 }
 0x246   : > { %13118 = vst [vmem:[#allocation36_spill] sm:$0xff] %v11437_v46  ;;  %v4812_v49 = vmul.f32 1.442695, %v3755_v52  ;;  %v11444_v58 = vadd.f32 %v3480_v63, %v13121_v23  ;;  %v11446_v44 = vpop.eup %8437  ;;  %8463 = vpow2.f32 %v4810_v10  ;;  %v3646_v14 = vpop.f32.mrf.mxu0  ;;  %7658 = vmatmul.mubr.msk.f32.gmra.mxu0 %vm247_vm0, %v11244_v40  ;;  %v3481_v51 = vadd.f32 %v8434_v62, %v11247_v1  ;;  %v13125_v1 = vld [vmem:[#allocation45_spill] sm:$0xff] }
 0x247   : > { %13120 = vst [vmem:[#allocation37_spill] sm:$0xff] %v11441_v47  ;;  %v3759_v34 = vpop.f32.mrf.mxu1  ;;  %7666 = vmatmul.mubr.msk.f32.gmra.mxu1 %vm247_vm0, %v11244_v40  ;;  %v11454_v26 = vadd.f32 %v3482_v8, %v13123_v9  ;;  %v3483_v3 = vadd.f32 %v8436_v19, %v11253_v42  ;;  %v11457_v39 = vpop.eup %8439  ;;  %8465 = vpow2.f32 %v4808_v22  ;;  %v4846_v63 = vmul.f32 1.442695, %v3646_v14  ;;  %5518 = vmatprep.mubr.f32.mxu0 %v13022_v29  ;;  %v13127_v8 = vld [vmem:[#allocation46_spill] sm:$0xff] }
 0x248   : > { %13122 = vst [vmem:[#allocation38_spill] sm:$0xff] %v11444_v58  ;;  %v4850_v10 = vmul.f32 1.442695, %v3759_v34  ;;  %5631 = vmatprep.mubr.f32.mxu1 %v13022_v29  ;;  %v11461_v31 = vpop.eup %8441  ;;  %8467 = vpow2.f32 %v4812_v49  ;;  %v3648_v52 = vpop.f32.mrf.mxu0  ;;  %v11464_v62 = vadd.f32 %v3481_v51, %v13125_v1 }
 0x249   : > { %13124 = vst [vmem:[#allocation39_spill] sm:$0xff] %v11454_v26  ;;  %v3761_v13 = vpop.f32.mrf.mxu1  ;;  %v11467_v6 = vadd.f32 %v3483_v3, %v13127_v8  ;;  %v11469_v42 = vpop.eup %8443  ;;  %8469 = vpow2.f32 %v4846_v63  ;;  %v4848_v19 = vmul.f32 1.442695, %v3648_v52 }
 0x24a   : > { %13126 = vst [vmem:[#allocation40_spill] sm:$0xff] %v11464_v62  ;;  %v4852_v22 = vmul.f32 1.442695, %v3761_v13  ;;  %v11471_v23 = vpop.eup %8445  ;;  %8471 = vpow2.f32 %v4850_v10  ;;  %v3652_v14 = vpop.f32.mrf.mxu0  ;;  %7659 = vmatmul.mubr.msk.f32.gmra.mxu0 %vm247_vm0, %v11268_v33 }
 0x24b   : > { %13128 = vst [vmem:[#allocation41_spill] sm:$0xff] %v11467_v6  ;;  %v3765_v34 = vpop.f32.mrf.mxu1  ;;  %7667 = vmatmul.mubr.msk.f32.gmra.mxu1 %vm247_vm0, %v11268_v33  ;;  %v11477_v49 = vpop.eup %8447  ;;  %8473 = vpow2.f32 %v4848_v19  ;;  %v4886_v51 = vmul.f32 1.442695, %v3652_v14  ;;  %5524 = vmatprep.mubr.f32.mxu0 %v13022_v29 }
 0x24c   : > { %v4890_v9 = vmul.f32 1.442695, %v3765_v34  ;;  %5637 = vmatprep.mubr.f32.mxu1 %v13022_v29  ;;  %v11481_v3 = vpop.eup %8449  ;;  %8475 = vpow2.f32 %v4852_v22  ;;  %v3654_v63 = vpop.f32.mrf.mxu0 }
 0x24d   : > { %v3767_v10 = vpop.f32.mrf.mxu1  ;;  %v11483_v52 = vpop.eup %8451  ;;  %8477 = vpow2.f32 %v4886_v51  ;;  %v4888_v13 = vmul.f32 1.442695, %v3654_v63 }
 0x24e   : > { %v4892_v1 = vmul.f32 1.442695, %v3767_v10  ;;  %v11485_v8 = vpop.eup %8453  ;;  %8479 = vpow2.f32 %v4890_v9  ;;  %v3658_v19 = vpop.f32.mrf.mxu0  ;;  %7660 = vmatmul.mubr.msk.f32.gmra.mxu0 %vm247_vm0, %v11292_v54 }
 0x24f   : > { %v3771_v14 = vpop.f32.mrf.mxu1  ;;  %7668 = vmatmul.mubr.msk.f32.gmra.mxu1 %vm247_vm0, %v11292_v54  ;;  %v11491_v34 = vpop.eup %8455  ;;  %8481 = vpow2.f32 %v4888_v13  ;;  %v4926_v22 = vmul.f32 1.442695, %v3658_v19  ;;  %5530 = vmatprep.mubr.f32.mxu0 %v13022_v29 }
 0x250   : > { %v4930_v6 = vmul.f32 1.442695, %v3771_v14  ;;  %5643 = vmatprep.mubr.f32.mxu1 %v13022_v29  ;;  %v11495_v51 = vpop.eup %8457  ;;  %8483 = vpow2.f32 %v4892_v1  ;;  %v3660_v9 = vpop.f32.mrf.mxu0 }
 0x251   : > { %v3773_v63 = vpop.f32.mrf.mxu1  ;;  %v11497_v10 = vpop.eup %8459  ;;  %8485 = vpow2.f32 %v4926_v22  ;;  %v4928_v62 = vmul.f32 1.442695, %v3660_v9 }
 0x252   : > { %v4932_v26 = vmul.f32 1.442695, %v3773_v63  ;;  %v11499_v58 = vpop.eup %8461  ;;  %8487 = vpow2.f32 %v4930_v6  ;;  %v3664_v13 = vpop.f32.mrf.mxu0  ;;  %7661 = vmatmul.mubr.msk.f32.gmra.mxu0 %vm247_vm0, %v11319_v17 }
 0x253   : > { %v3777_v19 = vpop.f32.mrf.mxu1  ;;  %7669 = vmatmul.mubr.msk.f32.gmra.mxu1 %vm247_vm0, %v11319_v17  ;;  %v11505_v14 = vpop.eup %8463  ;;  %8489 = vpow2.f32 %v4928_v62  ;;  %v4966_v1 = vmul.f32 1.442695, %v3664_v13  ;;  %5714 = vmatprep.mubr.f32.mxu0 %v13022_v29 }
 0x254   : > { %v4970_v47 = vmul.f32 1.442695, %v3777_v19  ;;  %5827 = vmatprep.mubr.f32.mxu1 %v13022_v29  ;;  %v11509_v22 = vpop.eup %8465  ;;  %8491 = vpow2.f32 %v4932_v26  ;;  %v3666_v6 = vpop.f32.mrf.mxu0 }
 0x255   : > { %v3779_v9 = vpop.f32.mrf.mxu1  ;;  %v11511_v63 = vpop.eup %8467  ;;  %8493 = vpow2.f32 %v4966_v1  ;;  %v4968_v46 = vmul.f32 1.442695, %v3666_v6  ;;  %v9127_v6 = vld [vmem:[%s9395_s29 + $0x70] sm:$0xff] }
 0x256   : > { %v4972_v27 = vmul.f32 1.442695, %v3779_v9  ;;  %v11513_v16 = vpop.eup %8469  ;;  %8495 = vpow2.f32 %v4970_v47  ;;  %v3848_v62 = vpop.f32.mrf.mxu0  ;;  %7670 = vmatmul.mubr.msk.f32.vlgmr.msra.gmra.mxu0 %vm247_vm0, %v11144_v2 }
 0x257   : > { %v3961_v13 = vpop.f32.mrf.mxu1  ;;  %7678 = vmatmul.mubr.msk.f32.vlgmr.msra.gmra.mxu1 %vm247_vm0, %v11144_v2  ;;  %v11519_v26 = vpop.eup %8471  ;;  %8497 = vpow2.f32 %v4968_v46  ;;  %v4694_v19 = vmul.f32 1.442695, %v3848_v62  ;;  %5720 = vmatprep.mubr.f32.mxu0 %v13022_v29 }
 0x258   : > { %v4698_v1 = vmul.f32 1.442695, %v3961_v13  ;;  %6020 = vmatpush1.msra.mxu1 %v9127_v6  ;;  %v11523_v47 = vpop.eup %8473  ;;  %8499 = vpow2.f32 %v4972_v27  ;;  %v3850_v9 = vpop.f32.mrf.mxu0  ;;  %5833 = vmatprep.mubr.f32.mxu1 %v13022_v29  ;;  %v9129_v13 = vld [vmem:[%s9395_s29 + $0x88] sm:$0xff] }
 0x259   : > { %v3963_v11 = vpop.f32.mrf.mxu1  ;;  %5907 = vmatpush1.msra.mxu0 %v9128_v15  ;;  %v11527_v2 = vpop.eup %8475  ;;  %8501 = vpow2.f32 %v4694_v19  ;;  %v4696_v46 = vmul.f32 1.442695, %v3850_v9  ;;  %6245 = vmatprep.subr.mxu1 %v9130_v20 }
 0x25a   : > { %v4700_v62 = vmul.f32 1.442695, %v3963_v11  ;;  %6132 = vmatprep.subr.mxu0 %v9129_v13  ;;  %v11531_v6 = vpop.eup %8477  ;;  %8503 = vpow2.f32 %v4698_v1  ;;  %v3854_v43 = vpop.f32.mrf.mxu0  ;;  %7671 = vmatmul.mubr.msk.f32.gmra.mxu0 %vm247_vm0, %v11168_v53 }
 0x25b   : > { %v3967_v27 = vpop.f32.mrf.mxu1  ;;  %7679 = vmatmul.mubr.msk.f32.gmra.mxu1 %vm247_vm0, %v11168_v53  ;;  %v11537_v15 = vpop.eup %8479  ;;  %8505 = vpow2.f32 %v4696_v46  ;;  %v4734_v19 = vmul.f32 1.442695, %v3854_v43  ;;  %5726 = vmatprep.mubr.f32.mxu0 %v13022_v29 }
 0x25c   : > { %v4738_v11 = vmul.f32 1.442695, %v3967_v27  ;;  %5839 = vmatprep.mubr.f32.mxu1 %v13022_v29  ;;  %v11541_v20 = vpop.eup %8481  ;;  %8507 = vpow2.f32 %v4700_v62  ;;  %v3856_v1 = vpop.f32.mrf.mxu0 }
 0x25d   : > { %v3969_v9 = vpop.f32.mrf.mxu1  ;;  %v11543_v13 = vpop.eup %8483  ;;  %8509 = vpow2.f32 %v4734_v19  ;;  %v4736_v59 = vmul.f32 1.442695, %v3856_v1 }
 0x25e   : > { %v4740_v57 = vmul.f32 1.442695, %v3969_v9  ;;  %v11545_v53 = vpop.eup %8485  ;;  %8511 = vpow2.f32 %v4738_v11  ;;  %v3860_v46 = vpop.f32.mrf.mxu0  ;;  %7672 = vmatmul.mubr.msk.f32.gmra.mxu0 %vm247_vm0, %v11196_v25 }
 0x25f   : > { %v3973_v43 = vpop.f32.mrf.mxu1  ;;  %7680 = vmatmul.mubr.msk.f32.gmra.mxu1 %vm247_vm0, %v11196_v25  ;;  %v11551_v27 = vpop.eup %8487  ;;  %8513 = vpow2.f32 %v4736_v59  ;;  %v4774_v62 = vmul.f32 1.442695, %v3860_v46  ;;  %5732 = vmatprep.mubr.f32.mxu0 %v13022_v29 }
 0x260   : > { %v4778_v0 = vmul.f32 1.442695, %v3973_v43  ;;  %5845 = vmatprep.mubr.f32.mxu1 %v13022_v29  ;;  %v11555_v19 = vpop.eup %8489  ;;  %8515 = vpow2.f32 %v4740_v57  ;;  %v3862_v11 = vpop.f32.mrf.mxu0 }
 0x261   : > { %v3975_v1 = vpop.f32.mrf.mxu1  ;;  %v11557_v9 = vpop.eup %8491  ;;  %8517 = vpow2.f32 %v4774_v62  ;;  %v4776_v50 = vmul.f32 1.442695, %v3862_v11 }
 0x262   : > { %v4780_v45 = vmul.f32 1.442695, %v3975_v1  ;;  %v11559_v25 = vpop.eup %8493  ;;  %8519 = vpow2.f32 %v4778_v0  ;;  %v3866_v59 = vpop.f32.mrf.mxu0  ;;  %7673 = vmatmul.mubr.msk.f32.gmra.mxu0 %vm247_vm0, %v11220_v61 }
 0x263   : > { %v3979_v46 = vpop.f32.mrf.mxu1  ;;  %7681 = vmatmul.mubr.msk.f32.gmra.mxu1 %vm247_vm0, %v11220_v61  ;;  %v11565_v43 = vpop.eup %8495  ;;  %8521 = vpow2.f32 %v4776_v50  ;;  %v4814_v57 = vmul.f32 1.442695, %v3866_v59  ;;  %5738 = vmatprep.mubr.f32.mxu0 %v13022_v29 }
 0x264   : > { %v4818_v55 = vmul.f32 1.442695, %v3979_v46  ;;  %5851 = vmatprep.mubr.f32.mxu1 %v13022_v29  ;;  %v11569_v62 = vpop.eup %8497  ;;  %8523 = vpow2.f32 %v4780_v45  ;;  %v3868_v0 = vpop.f32.mrf.mxu0 }
 0x265   : > { %v3981_v11 = vpop.f32.mrf.mxu1  ;;  %v11571_v1 = vpop.eup %8499  ;;  %8525 = vpow2.f32 %v4814_v57  ;;  %v4816_v38 = vmul.f32 1.442695, %v3868_v0 }
 0x266   : > { %v4820_v30 = vmul.f32 1.442695, %v3981_v11  ;;  %v11573_v61 = vpop.eup %8501  ;;  %8527 = vpow2.f32 %v4818_v55  ;;  %v3872_v50 = vpop.f32.mrf.mxu0  ;;  %7674 = vmatmul.mubr.msk.f32.gmra.mxu0 %vm247_vm0, %v11244_v40 }
 0x267   : > { %v3985_v59 = vpop.f32.mrf.mxu1  ;;  %7682 = vmatmul.mubr.msk.f32.gmra.mxu1 %vm247_vm0, %v11244_v40  ;;  %v8504_v46 = vpop.eup %8503  ;;  %8529 = vpow2.f32 %v4816_v38  ;;  %v4854_v45 = vmul.f32 1.442695, %v3872_v50  ;;  %5744 = vmatprep.mubr.f32.mxu0 %v13022_v29 }
 0x268   : > { %v4858_v60 = vmul.f32 1.442695, %v3985_v59  ;;  %5857 = vmatprep.mubr.f32.mxu1 %v13022_v29  ;;  %v8506_v57 = vpop.eup %8505  ;;  %8531 = vpow2.f32 %v4820_v30  ;;  %v3874_v0 = vpop.f32.mrf.mxu0  ;;  %v11582_v11 = vadd.f32 %v8504_v46, %v11461_v31 }
 0x269   : > { %v3987_v55 = vpop.f32.mrf.mxu1  ;;  %v8508_v18 = vpop.eup %8507  ;;  %8533 = vpow2.f32 %v4854_v45  ;;  %v4856_v32 = vmul.f32 1.442695, %v3874_v0  ;;  %v11585_v40 = vadd.f32 %v8506_v57, %v11446_v44 }
 0x26a   : > { %v4860_v28 = vmul.f32 1.442695, %v3987_v55  ;;  %v11587_v38 = vpop.eup %8509  ;;  %8535 = vpow2.f32 %v4858_v60  ;;  %v3878_v50 = vpop.f32.mrf.mxu0  ;;  %7675 = vmatmul.mubr.msk.f32.gmra.mxu0 %vm247_vm0, %v11268_v33  ;;  %v11594_v30 = vadd.f32 %v8508_v18, %v11457_v39 }
 0x26b   : > { %v3991_v59 = vpop.f32.mrf.mxu1  ;;  %7683 = vmatmul.mubr.msk.f32.gmra.mxu1 %vm247_vm0, %v11268_v33  ;;  %v8512_v31 = vpop.eup %8511  ;;  %8537 = vpow2.f32 %v4856_v32  ;;  %v4894_v46 = vmul.f32 1.442695, %v3878_v50  ;;  %5750 = vmatprep.mubr.f32.mxu0 %v13022_v29 }
 0x26c   : > { %v4898_v45 = vmul.f32 1.442695, %v3991_v59  ;;  %5863 = vmatprep.mubr.f32.mxu1 %v13022_v29  ;;  %v8514_v60 = vpop.eup %8513  ;;  %8539 = vpow2.f32 %v4860_v28  ;;  %v3880_v44 = vpop.f32.mrf.mxu0  ;;  %v11599_v0 = vadd.f32 %v8512_v31, %v11481_v3 }
 0x26d   : > { %v3993_v57 = vpop.f32.mrf.mxu1  ;;  %v8516_v55 = vpop.eup %8515  ;;  %8541 = vpow2.f32 %v4894_v46  ;;  %v4896_v33 = vmul.f32 1.442695, %v3880_v44  ;;  %v11602_v39 = vadd.f32 %v8514_v60, %v11471_v23 }
 0x26e   : > { %v4900_v18 = vmul.f32 1.442695, %v3993_v57  ;;  %v11604_v32 = vpop.eup %8517  ;;  %8543 = vpow2.f32 %v4898_v45  ;;  %v3884_v50 = vpop.f32.mrf.mxu0  ;;  %7676 = vmatmul.mubr.msk.f32.gmra.mxu0 %vm247_vm0, %v11292_v54  ;;  %v11611_v28 = vadd.f32 %v8516_v55, %v11477_v49 }
 0x26f   : > { %v3997_v59 = vpop.f32.mrf.mxu1  ;;  %7684 = vmatmul.mubr.msk.f32.gmra.mxu1 %vm247_vm0, %v11292_v54  ;;  %v8520_v3 = vpop.eup %8519  ;;  %8545 = vpow2.f32 %v4896_v33  ;;  %v4934_v31 = vmul.f32 1.442695, %v3884_v50  ;;  %5756 = vmatprep.mubr.f32.mxu0 %v13022_v29 }
 0x270   : > { %v4938_v46 = vmul.f32 1.442695, %v3997_v59  ;;  %5869 = vmatprep.mubr.f32.mxu1 %v13022_v29  ;;  %v8522_v23 = vpop.eup %8521  ;;  %8547 = vpow2.f32 %v4900_v18  ;;  %v3886_v45 = vpop.f32.mrf.mxu0  ;;  %v11616_v44 = vadd.f32 %v8520_v3, %v11495_v51 }
 0x271   : > { %v3999_v60 = vpop.f32.mrf.mxu1  ;;  %v8524_v57 = vpop.eup %8523  ;;  %8549 = vpow2.f32 %v4934_v31  ;;  %v4936_v54 = vmul.f32 1.442695, %v3886_v45  ;;  %v11619_v55 = vadd.f32 %v8522_v23, %v11485_v8 }
 0x272   : > { %v4940_v49 = vmul.f32 1.442695, %v3999_v60  ;;  %v11621_v33 = vpop.eup %8525  ;;  %8551 = vpow2.f32 %v4938_v46  ;;  %v3890_v50 = vpop.f32.mrf.mxu0  ;;  %7677 = vmatmul.mubr.msk.f32.gmra.mxu0 %vm247_vm0, %v11319_v17  ;;  %v11628_v51 = vadd.f32 %v8524_v57, %v11491_v34 }
 0x273   : > { %v4003_v59 = vpop.f32.mrf.mxu1  ;;  %7685 = vmatmul.mubr.msk.f32.gmra.mxu1 %vm247_vm0, %v11319_v17  ;;  %v8528_v18 = vpop.eup %8527  ;;  %8553 = vpow2.f32 %v4936_v54  ;;  %v4974_v3 = vmul.f32 1.442695, %v3890_v50  ;;  %5940 = vmatprep.mubr.f32.mxu0 %v13022_v29 }
 0x274   : > { %v4978_v31 = vmul.f32 1.442695, %v4003_v59  ;;  %6053 = vmatprep.mubr.f32.mxu1 %v13022_v29  ;;  %v8530_v8 = vpop.eup %8529  ;;  %8555 = vpow2.f32 %v4940_v49  ;;  %v3892_v46 = vpop.f32.mrf.mxu0  ;;  %v11633_v45 = vadd.f32 %v8528_v18, %v11509_v22  ;;  %v11643_v49 = vld [vmem:[%s12999_s1 + $0xc0] sm:$0xff] }
 0x275   : > { %v4005_v23 = vpop.f32.mrf.mxu1  ;;  %v8532_v60 = vpop.eup %8531  ;;  %8557 = vpow2.f32 %v4974_v3  ;;  %v4976_v17 = vmul.f32 1.442695, %v3892_v46  ;;  %v11636_v57 = vadd.f32 %v8530_v8, %v11499_v58 }
 0x276   : > { %v4980_v34 = vmul.f32 1.442695, %v4005_v23  ;;  %v11638_v54 = vpop.eup %8533  ;;  %8559 = vpow2.f32 %v4978_v31  ;;  %v4074_v50 = vpop.f32.mrf.mxu0  ;;  %7686 = vmatmul.mubr.msk.f32.vlgmr.msra.gmra.mxu0 %vm247_vm0, %v11643_v49  ;;  %v11650_v58 = vadd.f32 %v8532_v60, %v11505_v14  ;;  %v9132_v23 = vld [vmem:[%s9395_s29 + $0x80] sm:$0xff] }
 0x277   : > { %v4187_v59 = vpop.f32.mrf.mxu1  ;;  %7694 = vmatmul.mubr.msk.f32.vlgmr.msra.gmra.mxu1 %vm247_vm0, %v11643_v49  ;;  %v8536_v22 = vpop.eup %8535  ;;  %8561 = vpow2.f32 %v4976_v17  ;;  %v4702_v18 = vmul.f32 1.442695, %v4074_v50  ;;  %5946 = vmatprep.mubr.f32.mxu0 %v13022_v29 }
 0x278   : > { %v4706_v3 = vmul.f32 1.442695, %v4187_v59  ;;  %6059 = vmatprep.mubr.f32.mxu1 %v13022_v29  ;;  %v8538_v31 = vpop.eup %8537  ;;  %8563 = vpow2.f32 %v4980_v34  ;;  %v4076_v8 = vpop.f32.mrf.mxu0  ;;  %6133 = vmatpush1.msra.mxu0 %v9132_v23  ;;  %v11657_v4 = vadd.f32 %v8536_v22, %v11523_v47  ;;  %v11667_v23 = vld [vmem:[%s12999_s1 + $0xc8] sm:$0xff] }
 0x279   : > { %v4189_v46 = vpop.f32.mrf.mxu1  ;;  %6246 = vmatpush1.msra.mxu1 %v9133_v12  ;;  %v8540_v14 = vpop.eup %8539  ;;  %8565 = vpow2.f32 %v4702_v18  ;;  %v4704_v60 = vmul.f32 1.442695, %v4076_v8  ;;  %v11660_v50 = vadd.f32 %v8538_v31, %v11513_v16 }
 0x27a   : > { %v4708_v17 = vmul.f32 1.442695, %v4189_v46  ;;  %v11662_v59 = vpop.eup %8541  ;;  %8567 = vpow2.f32 %v4706_v3  ;;  %v4080_v34 = vpop.f32.mrf.mxu0  ;;  %7687 = vmatmul.mubr.msk.f32.gmra.mxu0 %vm247_vm0, %v11667_v23  ;;  %v11674_v12 = vadd.f32 %v8540_v14, %v11519_v26 }
 0x27b   : > { %v4193_v41 = vpop.f32.mrf.mxu1  ;;  %7695 = vmatmul.mubr.msk.f32.gmra.mxu1 %vm247_vm0, %v11667_v23  ;;  %v8544_v16 = vpop.eup %8543  ;;  %8569 = vpow2.f32 %v4704_v60  ;;  %v4742_v47 = vmul.f32 1.442695, %v4080_v34  ;;  %5952 = vmatprep.mubr.f32.mxu0 %v13022_v29 }
 0x27c   : > { %v4746_v22 = vmul.f32 1.442695, %v4193_v41  ;;  %6065 = vmatprep.mubr.f32.mxu1 %v13022_v29  ;;  %v8546_v18 = vpop.eup %8545  ;;  %8571 = vpow2.f32 %v4708_v17  ;;  %v4082_v3 = vpop.f32.mrf.mxu0  ;;  %v11679_v8 = vadd.f32 %v8544_v16, %v11541_v20  ;;  %v11689_v17 = vld [vmem:[%s12999_s1 + $0xd0] sm:$0xff] }
 0x27d   : > { %v4195_v31 = vpop.f32.mrf.mxu1  ;;  %v8548_v46 = vpop.eup %8547  ;;  %8573 = vpow2.f32 %v4742_v47  ;;  %v4744_v36 = vmul.f32 1.442695, %v4082_v3  ;;  %v11682_v14 = vadd.f32 %v8546_v18, %v11531_v6 }
 0x27e   : > { %v4748_v26 = vmul.f32 1.442695, %v4195_v31  ;;  %v11684_v60 = vpop.eup %8549  ;;  %8575 = vpow2.f32 %v4746_v22  ;;  %v4086_v41 = vpop.f32.mrf.mxu0  ;;  %7688 = vmatmul.mubr.msk.f32.gmra.mxu0 %vm247_vm0, %v11689_v17  ;;  %v11696_v20 = vadd.f32 %v8548_v46, %v11537_v15 }
 0x27f   : > { %v4199_v34 = vpop.f32.mrf.mxu1  ;;  %7696 = vmatmul.mubr.msk.f32.gmra.mxu1 %vm247_vm0, %v11689_v17  ;;  %v8552_v6 = vpop.eup %8551  ;;  %8577 = vpow2.f32 %v4744_v36  ;;  %v4782_v16 = vmul.f32 1.442695, %v4086_v41  ;;  %5958 = vmatprep.mubr.f32.mxu0 %v13022_v29 }
 0x280   : > { %13129 = vst [vmem:[#allocation42_spill] sm:$0xff] %v11696_v20  ;;  %v4786_v47 = vmul.f32 1.442695, %v4199_v34  ;;  %6071 = vmatprep.mubr.f32.mxu1 %v13022_v29  ;;  %v8554_v22 = vpop.eup %8553  ;;  %8579 = vpow2.f32 %v4748_v26  ;;  %v4088_v18 = vpop.f32.mrf.mxu0  ;;  %v11701_v31 = vadd.f32 %v8552_v6, %v11555_v19  ;;  %v11711_v26 = vld [vmem:[%s12999_s1 + $0xd8] sm:$0xff] }
 0x281   : > { %v4201_v3 = vpop.f32.mrf.mxu1  ;;  %v8556_v24 = vpop.eup %8555  ;;  %8581 = vpow2.f32 %v4782_v16  ;;  %v4784_v35 = vmul.f32 1.442695, %v4088_v18  ;;  %v11704_v46 = vadd.f32 %v8554_v22, %v11545_v53 }
 0x282   : > { %v4788_v15 = vmul.f32 1.442695, %v4201_v3  ;;  %v11706_v36 = vpop.eup %8557  ;;  %8583 = vpow2.f32 %v4786_v47  ;;  %v4092_v41 = vpop.f32.mrf.mxu0  ;;  %7689 = vmatmul.mubr.msk.f32.gmra.mxu0 %vm247_vm0, %v11711_v26  ;;  %v11718_v19 = vadd.f32 %v8556_v24, %v11551_v27 }
 0x283   : > { %v4205_v34 = vpop.f32.mrf.mxu1  ;;  %7697 = vmatmul.mubr.msk.f32.gmra.mxu1 %vm247_vm0, %v11711_v26  ;;  %v8560_v53 = vpop.eup %8559  ;;  %8585 = vpow2.f32 %v4784_v35  ;;  %v4822_v6 = vmul.f32 1.442695, %v4092_v41  ;;  %5964 = vmatprep.mubr.f32.mxu0 %v13022_v29 }
 0x284   : > { %13130 = vst [vmem:[#allocation43_spill] sm:$0xff] %v11718_v19  ;;  %v4826_v16 = vmul.f32 1.442695, %v4205_v34  ;;  %6077 = vmatprep.mubr.f32.mxu1 %v13022_v29  ;;  %v8562_v47 = vpop.eup %8561  ;;  %8587 = vpow2.f32 %v4788_v15  ;;  %v4094_v22 = vpop.f32.mrf.mxu0  ;;  %v11723_v3 = vadd.f32 %v8560_v53, %v11569_v62  ;;  %v11731_v15 = vld [vmem:[%s12999_s1 + $0xe0] sm:$0xff] }
 0x285   : > { %v4207_v18 = vpop.f32.mrf.mxu1  ;;  %v8564_v37 = vpop.eup %8563  ;;  %8589 = vpow2.f32 %v4822_v6  ;;  %v4824_v56 = vmul.f32 1.442695, %v4094_v22  ;;  %v11726_v27 = vadd.f32 %v8562_v47, %v11559_v25 }
 0x286   : > { %v4828_v24 = vmul.f32 1.442695, %v4207_v18  ;;  %v8566_v35 = vpop.eup %8565  ;;  %8591 = vpow2.f32 %v4826_v16  ;;  %v4098_v41 = vpop.f32.mrf.mxu0  ;;  %7690 = vmatmul.mubr.msk.f32.gmra.mxu0 %vm247_vm0, %v11731_v15  ;;  %v11738_v62 = vadd.f32 %v8564_v37, %v11565_v43 }
 0x287   : > { %v4211_v34 = vpop.f32.mrf.mxu1  ;;  %7698 = vmatmul.mubr.msk.f32.gmra.mxu1 %vm247_vm0, %v11731_v15  ;;  %v8568_v25 = vpop.eup %8567  ;;  %8593 = vpow2.f32 %v4824_v56  ;;  %v4862_v53 = vmul.f32 1.442695, %v4098_v41  ;;  %5970 = vmatprep.mubr.f32.mxu0 %v13022_v29  ;;  %v11743_v16 = vadd.f32 %v8566_v35, %v11469_v42  ;;  %v11754_v42 = vld [vmem:[%s12999_s1 + $0xe8] sm:$0xff] }
 0x288   : > { %13131 = vst [vmem:[#allocation44_spill] sm:$0xff] %v11738_v62  ;;  %v4866_v6 = vmul.f32 1.442695, %v4211_v34  ;;  %6083 = vmatprep.mubr.f32.mxu1 %v13022_v29  ;;  %v8570_v47 = vpop.eup %8569  ;;  %8595 = vpow2.f32 %v4828_v24  ;;  %v4100_v22 = vpop.f32.mrf.mxu0  ;;  %v11746_v19 = vadd.f32 %v8568_v25, %v11585_v40 }
 0x289   : > { %v4213_v18 = vpop.f32.mrf.mxu1  ;;  %v8572_v37 = vpop.eup %8571  ;;  %8597 = vpow2.f32 %v4862_v53  ;;  %v4864_v43 = vmul.f32 1.442695, %v4100_v22  ;;  %v11749_v41 = vadd.f32 %v8570_v47, %v11573_v61 }
 0x28a   : > { %v4868_v56 = vmul.f32 1.442695, %v4213_v18  ;;  %v8574_v34 = vpop.eup %8573  ;;  %8599 = vpow2.f32 %v4866_v6  ;;  %v4104_v62 = vpop.f32.mrf.mxu0  ;;  %7691 = vmatmul.mubr.msk.f32.gmra.mxu0 %vm247_vm0, %v11754_v42  ;;  %v11761_v40 = vadd.f32 %v8572_v37, %v11582_v11 }
 0x28b   : > { %v4217_v20 = vpop.f32.mrf.mxu1  ;;  %7699 = vmatmul.mubr.msk.f32.gmra.mxu1 %vm247_vm0, %v11754_v42  ;;  %v8576_v61 = vpop.eup %8575  ;;  %8601 = vpow2.f32 %v4864_v43  ;;  %v4902_v24 = vmul.f32 1.442695, %v4104_v62  ;;  %5976 = vmatprep.mubr.f32.mxu0 %v13022_v29  ;;  %v11766_v25 = vadd.f32 %v8574_v34, %v11483_v52  ;;  %v11777_v52 = vld [vmem:[%s12999_s1 + $0xf0] sm:$0xff] }
 0x28c   : > { %13132 = vst [vmem:[#allocation45_spill] sm:$0xff] %v11761_v40  ;;  %v4906_v35 = vmul.f32 1.442695, %v4217_v20  ;;  %6089 = vmatprep.mubr.f32.mxu1 %v13022_v29  ;;  %v8578_v53 = vpop.eup %8577  ;;  %8603 = vpow2.f32 %v4868_v56  ;;  %v4106_v6 = vpop.f32.mrf.mxu0  ;;  %v11769_v22 = vadd.f32 %v8576_v61, %v11602_v39 }
 0x28d   : > { %v4219_v47 = vpop.f32.mrf.mxu1  ;;  %v8580_v11 = vpop.eup %8579  ;;  %8605 = vpow2.f32 %v4902_v24  ;;  %v4904_v18 = vmul.f32 1.442695, %v4106_v6  ;;  %v11772_v20 = vadd.f32 %v8578_v53, %v11587_v38 }
 0x28e   : > { %v4908_v37 = vmul.f32 1.442695, %v4219_v47  ;;  %v8582_v62 = vpop.eup %8581  ;;  %8607 = vpow2.f32 %v4906_v35  ;;  %v4110_v43 = vpop.f32.mrf.mxu0  ;;  %7692 = vmatmul.mubr.msk.f32.gmra.mxu0 %vm247_vm0, %v11777_v52  ;;  %v11784_v39 = vadd.f32 %v8580_v11, %v11599_v0 }
 0x28f   : > { %v4223_v40 = vpop.f32.mrf.mxu1  ;;  %7700 = vmatmul.mubr.msk.f32.gmra.mxu1 %vm247_vm0, %v11777_v52  ;;  %v8584_v38 = vpop.eup %8583  ;;  %8609 = vpow2.f32 %v4904_v18  ;;  %v4942_v56 = vmul.f32 1.442695, %v4110_v43  ;;  %5982 = vmatprep.mubr.f32.mxu0 %v13022_v29  ;;  %v11789_v61 = vadd.f32 %v8582_v62, %v11497_v10  ;;  %v11800_v10 = vld [vmem:[%s12999_s1 + $0xf8] sm:$0xff] }
 0x290   : > { %13133 = vst [vmem:[#allocation46_spill] sm:$0xff] %v11784_v39  ;;  %v4946_v34 = vmul.f32 1.442695, %v4223_v40  ;;  %6095 = vmatprep.mubr.f32.mxu1 %v13022_v29  ;;  %v8586_v24 = vpop.eup %8585  ;;  %8611 = vpow2.f32 %v4908_v37  ;;  %v4112_v35 = vpop.f32.mrf.mxu0  ;;  %v11792_v6 = vadd.f32 %v8584_v38, %v11619_v55 }
 0x291   : > { %v4225_v53 = vpop.f32.mrf.mxu1  ;;  %v8588_v0 = vpop.eup %8587  ;;  %8613 = vpow2.f32 %v4942_v56  ;;  %v4944_v47 = vmul.f32 1.442695, %v4112_v35  ;;  %v11795_v40 = vadd.f32 %v8586_v24, %v11604_v32 }
 0x292   : > { %v4948_v11 = vmul.f32 1.442695, %v4225_v53  ;;  %v8590_v18 = vpop.eup %8589  ;;  %8615 = vpow2.f32 %v4946_v34  ;;  %v4116_v43 = vpop.f32.mrf.mxu0  ;;  %7693 = vmatmul.mubr.msk.f32.gmra.mxu0 %vm247_vm0, %v11800_v10  ;;  %v11807_v55 = vadd.f32 %v8588_v0, %v11616_v44 }
 0x293   : > { %v4229_v39 = vpop.f32.mrf.mxu1  ;;  %7701 = vmatmul.mubr.msk.f32.gmra.mxu1 %vm247_vm0, %v11800_v10  ;;  %v8592_v32 = vpop.eup %8591  ;;  %8617 = vpow2.f32 %v4944_v47  ;;  %v4982_v37 = vmul.f32 1.442695, %v4116_v43  ;;  %6166 = vmatprep.mubr.f32.mxu0 %v13022_v29  ;;  %v11812_v38 = vadd.f32 %v8590_v18, %v11511_v63 }
 0x294   : > { %13134 = vst [vmem:[#allocation52_spill] sm:$0xff] %v11807_v55  ;;  %v4986_v62 = vmul.f32 1.442695, %v4229_v39  ;;  %6279 = vmatprep.mubr.f32.mxu1 %v13022_v29  ;;  %v8594_v56 = vpop.eup %8593  ;;  %8619 = vpow2.f32 %v4948_v11  ;;  %v4118_v34 = vpop.f32.mrf.mxu0  ;;  %v11815_v35 = vadd.f32 %v8592_v32, %v11636_v57 }
 0x295   : > { %v4231_v24 = vpop.f32.mrf.mxu1  ;;  %v8596_v44 = vpop.eup %8595  ;;  %8621 = vpow2.f32 %v4982_v37  ;;  %v4984_v53 = vmul.f32 1.442695, %v4118_v34  ;;  %v11818_v39 = vadd.f32 %v8594_v56, %v11621_v33 }
 0x296   : > { %v4988_v0 = vmul.f32 1.442695, %v4231_v24  ;;  %v8598_v47 = vpop.eup %8597  ;;  %8623 = vpow2.f32 %v4986_v62  ;;  %v4300_v43 = vpop.f32.mrf.mxu0  ;;  %7702 = vmatmul.mubr.msk.f32.vlgmr.msra.gmra.mxu0 %vm247_vm0, %v11643_v49  ;;  %v11825_v63 = vadd.f32 %v8596_v44, %v11633_v45 }
 0x297   : > { %v4413_v55 = vpop.f32.mrf.mxu1  ;;  %7710 = vmatmul.mubr.msk.f32.vlgmr.msra.gmra.mxu1 %vm247_vm0, %v11643_v49  ;;  %v8600_v57 = vpop.eup %8599  ;;  %8625 = vpow2.f32 %v4984_v53  ;;  %v4710_v11 = vmul.f32 1.442695, %v4300_v43  ;;  %6172 = vmatprep.mubr.f32.mxu0 %v13022_v29  ;;  %v11830_v33 = vadd.f32 %v8598_v47, %v11527_v2 }
 0x298   : > { %v4714_v18 = vmul.f32 1.442695, %v4413_v55  ;;  %6285 = vmatprep.mubr.f32.mxu1 %v13022_v29  ;;  %v8602_v32 = vpop.eup %8601  ;;  %8627 = vpow2.f32 %v4988_v0  ;;  %v4302_v37 = vpop.f32.mrf.mxu0  ;;  %v11833_v49 = vadd.f32 %v8600_v57, %v11660_v50 }
 0x299   : > { %v4415_v62 = vpop.f32.mrf.mxu1  ;;  %v8604_v45 = vpop.eup %8603  ;;  %8629 = vpow2.f32 %v4710_v11  ;;  %v4712_v56 = vmul.f32 1.442695, %v4302_v37  ;;  %v11836_v55 = vadd.f32 %v8602_v32, %v11638_v54 }
 0x29a   : > { %v4716_v34 = vmul.f32 1.442695, %v4415_v62  ;;  %v8606_v24 = vpop.eup %8605  ;;  %8631 = vpow2.f32 %v4714_v18  ;;  %v4306_v44 = vpop.f32.mrf.mxu0  ;;  %7703 = vmatmul.mubr.msk.f32.gmra.mxu0 %vm247_vm0, %v11667_v23  ;;  %v11843_v2 = vadd.f32 %v8604_v45, %v11657_v4 }
 0x29b   : > { %v4419_v53 = vpop.f32.mrf.mxu1  ;;  %7711 = vmatmul.mubr.msk.f32.gmra.mxu1 %vm247_vm0, %v11667_v23  ;;  %v8608_v50 = vpop.eup %8607  ;;  %8633 = vpow2.f32 %v4712_v56  ;;  %v4750_v0 = vmul.f32 1.442695, %v4306_v44  ;;  %6178 = vmatprep.mubr.f32.mxu0 %v13022_v29  ;;  %v11848_v54 = vadd.f32 %v8606_v24, %v11543_v13 }
 0x29c   : > { %v4754_v47 = vmul.f32 1.442695, %v4419_v53  ;;  %6291 = vmatprep.mubr.f32.mxu1 %v13022_v29  ;;  %v8610_v43 = vpop.eup %8609  ;;  %8635 = vpow2.f32 %v4716_v34  ;;  %v4308_v57 = vpop.f32.mrf.mxu0  ;;  %v11851_v23 = vadd.f32 %v8608_v50, %v11682_v14 }
 0x29d   : > { %v4421_v11 = vpop.f32.mrf.mxu1  ;;  %v8612_v4 = vpop.eup %8611  ;;  %8637 = vpow2.f32 %v4750_v0  ;;  %v4752_v18 = vmul.f32 1.442695, %v4308_v57  ;;  %v11854_v37 = vadd.f32 %v8610_v43, %v11662_v59 }
 0x29e   : > { %v4756_v32 = vmul.f32 1.442695, %v4421_v11  ;;  %v8614_v62 = vpop.eup %8613  ;;  %8639 = vpow2.f32 %v4754_v47  ;;  %v4312_v45 = vpop.f32.mrf.mxu0  ;;  %7704 = vmatmul.mubr.msk.f32.gmra.mxu0 %vm247_vm0, %v11689_v17  ;;  %v11861_v13 = vadd.f32 %v8612_v4, %v11679_v8 }
 0x29f   : > { %v4425_v56 = vpop.f32.mrf.mxu1  ;;  %7712 = vmatmul.mubr.msk.f32.gmra.mxu1 %vm247_vm0, %v11689_v17  ;;  %v8616_v14 = vpop.eup %8615  ;;  %8641 = vpow2.f32 %v4752_v18  ;;  %v4790_v34 = vmul.f32 1.442695, %v4312_v45  ;;  %6184 = vmatprep.mubr.f32.mxu0 %v13022_v29  ;;  %v11866_v59 = vadd.f32 %v8614_v62, %v11557_v9 }
 0x2a0   : > { %v4794_v24 = vmul.f32 1.442695, %v4425_v56  ;;  %6297 = vmatprep.mubr.f32.mxu1 %v13022_v29  ;;  %v8618_v44 = vpop.eup %8617  ;;  %8643 = vpow2.f32 %v4756_v32  ;;  %v4314_v53 = vpop.f32.mrf.mxu0  ;;  %v11869_v17 = vadd.f32 %v8616_v14, %v11704_v46 }
 0x2a1   : > { %v4427_v50 = vpop.f32.mrf.mxu1  ;;  %v8620_v8 = vpop.eup %8619  ;;  %8645 = vpow2.f32 %v4790_v34  ;;  %v4792_v0 = vmul.f32 1.442695, %v4314_v53  ;;  %v11872_v43 = vadd.f32 %v8618_v44, %v11684_v60 }
 0x2a2   : > { %v4796_v47 = vmul.f32 1.442695, %v4427_v50  ;;  %v8622_v57 = vpop.eup %8621  ;;  %8647 = vpow2.f32 %v4794_v24  ;;  %v4318_v11 = vpop.f32.mrf.mxu0  ;;  %7705 = vmatmul.mubr.msk.f32.gmra.mxu0 %vm247_vm0, %v11711_v26  ;;  %v11879_v9 = vadd.f32 %v8620_v8, %v11701_v31 }
 0x2a3   : > { %v4431_v4 = vpop.f32.mrf.mxu1  ;;  %7713 = vmatmul.mubr.msk.f32.gmra.mxu1 %vm247_vm0, %v11711_v26  ;;  %v8624_v46 = vpop.eup %8623  ;;  %8649 = vpow2.f32 %v4792_v0  ;;  %v4830_v18 = vmul.f32 1.442695, %v4318_v11  ;;  %6190 = vmatprep.mubr.f32.mxu0 %v13022_v29  ;;  %v11884_v60 = vadd.f32 %v8622_v57, %v11571_v1 }
 0x2a4   : > { %v4834_v32 = vmul.f32 1.442695, %v4431_v4  ;;  %6303 = vmatprep.mubr.f32.mxu1 %v13022_v29  ;;  %v8626_v62 = vpop.eup %8625  ;;  %8651 = vpow2.f32 %v4796_v47  ;;  %v4320_v45 = vpop.f32.mrf.mxu0  ;;  %v11887_v26 = vadd.f32 %v8624_v46, %v11726_v27 }
 0x2a5   : > { %v4433_v56 = vpop.f32.mrf.mxu1  ;;  %v8628_v31 = vpop.eup %8627  ;;  %8653 = vpow2.f32 %v4830_v18  ;;  %v4832_v14 = vmul.f32 1.442695, %v4320_v45  ;;  %v11890_v24 = vadd.f32 %v8626_v62, %v11706_v36 }
 0x2a6   : > { %v4836_v34 = vmul.f32 1.442695, %v4433_v56  ;;  %v8630_v44 = vpop.eup %8629  ;;  %8655 = vpow2.f32 %v4834_v32  ;;  %v4324_v53 = vpop.f32.mrf.mxu0  ;;  %7706 = vmatmul.mubr.msk.f32.gmra.mxu0 %vm247_vm0, %v11731_v15  ;;  %v11897_v1 = vadd.f32 %v8628_v31, %v11723_v3 }
 0x2a7   : > { %v4437_v50 = vpop.f32.mrf.mxu1  ;;  %7714 = vmatmul.mubr.msk.f32.gmra.mxu1 %vm247_vm0, %v11731_v15  ;;  %v8632_v27 = vpop.eup %8631  ;;  %8657 = vpow2.f32 %v4832_v14  ;;  %v4870_v8 = vmul.f32 1.442695, %v4324_v53  ;;  %6196 = vmatprep.mubr.f32.mxu0 %v13022_v29  ;;  %v11902_v36 = vadd.f32 %v8630_v44, %v11594_v30 }
 0x2a8   : > { %v4874_v0 = vmul.f32 1.442695, %v4437_v50  ;;  %6309 = vmatprep.mubr.f32.mxu1 %v13022_v29  ;;  %v8634_v47 = vpop.eup %8633  ;;  %8659 = vpow2.f32 %v4836_v34  ;;  %v4326_v57 = vpop.f32.mrf.mxu0  ;;  %v11905_v15 = vadd.f32 %v8632_v27, %v11749_v41 }
 0x2a9   : > { %v4439_v11 = vpop.f32.mrf.mxu1  ;;  %v8636_v3 = vpop.eup %8635  ;;  %8661 = vpow2.f32 %v4870_v8  ;;  %v4872_v4 = vmul.f32 1.442695, %v4326_v57  ;;  %v11908_v18 = vadd.f32 %v8634_v47, %v11743_v16 }
 0x2aa   : > { %v4876_v46 = vmul.f32 1.442695, %v4439_v11  ;;  %v8638_v32 = vpop.eup %8637  ;;  %8663 = vpow2.f32 %v4874_v0  ;;  %v4330_v62 = vpop.f32.mrf.mxu0  ;;  %7707 = vmatmul.mubr.msk.f32.gmra.mxu0 %vm247_vm0, %v11754_v42  ;;  %v5086_v30 = vadd.f32 %v8636_v3, %v11746_v19 }
 0x2ab   : > { %v4443_v45 = vpop.f32.mrf.mxu1  ;;  %7715 = vmatmul.mubr.msk.f32.gmra.mxu1 %vm247_vm0, %v11754_v42  ;;  %v8640_v41 = vpop.eup %8639  ;;  %8665 = vpow2.f32 %v4872_v4  ;;  %v4910_v56 = vmul.f32 1.442695, %v4330_v62  ;;  %6202 = vmatprep.mubr.f32.mxu0 %v13022_v29  ;;  %v11918_v16 = vadd.f32 %v8638_v32, %v11611_v28 }
 0x2ac   : > { %v4914_v31 = vmul.f32 1.442695, %v4443_v45  ;;  %6315 = vmatprep.mubr.f32.mxu1 %v13022_v29  ;;  %v8642_v14 = vpop.eup %8641  ;;  %8667 = vpow2.f32 %v4876_v46  ;;  %v4332_v34 = vpop.f32.mrf.mxu0  ;;  %v11921_v53 = vadd.f32 %v5086_v30, %v11107_v21  ;;  %v11924_v19 = vadd.f32 %v8640_v41, %v11772_v20 }
 0x2ad   : > { %v4445_v44 = vpop.f32.mrf.mxu1  ;;  %v8644_v42 = vpop.eup %8643  ;;  %8669 = vpow2.f32 %v4910_v56  ;;  %v4912_v50 = vmul.f32 1.442695, %v4332_v34  ;;  %v11927_v8 = vadd.f32 %v8642_v14, %v11766_v25 }
 0x2ae   : > { %v4916_v27 = vmul.f32 1.442695, %v4445_v44  ;;  %v8646_v0 = vpop.eup %8645  ;;  %8671 = vpow2.f32 %v4914_v31  ;;  %v4336_v28 = vpop.f32.mrf.mxu0  ;;  %7708 = vmatmul.mubr.msk.f32.gmra.mxu0 %vm247_vm0, %v11777_v52  ;;  %v5091_v21 = vadd.f32 %v8644_v42, %v11769_v22 }
 0x2af   : > { %v4449_v47 = vpop.f32.mrf.mxu1  ;;  %7716 = vmatmul.mubr.msk.f32.gmra.mxu1 %vm247_vm0, %v11777_v52  ;;  %v8648_v20 = vpop.eup %8647  ;;  %8673 = vpow2.f32 %v4912_v50  ;;  %v4950_v57 = vmul.f32 1.442695, %v4336_v28  ;;  %6208 = vmatprep.mubr.f32.mxu0 %v13022_v29  ;;  %v11937_v25 = vadd.f32 %v8646_v0, %v11628_v51 }
 0x2b0   : > { %v4954_v11 = vmul.f32 1.442695, %v4449_v47  ;;  %6321 = vmatprep.mubr.f32.mxu1 %v13022_v29  ;;  %v8650_v3 = vpop.eup %8649  ;;  %8675 = vpow2.f32 %v4916_v27  ;;  %v4338_v4 = vpop.f32.mrf.mxu0  ;;  %v11940_v32 = vadd.f32 %v5091_v21, %v11126_v5  ;;  %v11943_v22 = vadd.f32 %v8648_v20, %v11795_v40 }
 0x2b1   : > { %v4451_v46 = vpop.f32.mrf.mxu1  ;;  %v8652_v52 = vpop.eup %8651  ;;  %8677 = vpow2.f32 %v4950_v57  ;;  %v4952_v62 = vmul.f32 1.442695, %v4338_v4  ;;  %v11946_v30 = vadd.f32 %v8650_v3, %v11789_v61 }
 0x2b2   : > { %v4956_v45 = vmul.f32 1.442695, %v4451_v46  ;;  %v8654_v29 = vpop.eup %8653  ;;  %8679 = vpow2.f32 %v4954_v11  ;;  %v4342_v51 = vpop.f32.mrf.mxu0  ;;  %7709 = vmatmul.mubr.msk.f32.gmra.mxu0 %vm247_vm0, %v11800_v10  ;;  %v5096_v5 = vadd.f32 %v8652_v52, %v11792_v6 }
 0x2b3   : > { %v4455_v41 = vpop.f32.mrf.mxu1  ;;  %7717 = vmatmul.mubr.msk.f32.gmra.mxu1 %vm247_vm0, %v11800_v10  ;;  %v8656_v40 = vpop.eup %8655  ;;  %8681 = vpow2.f32 %v4952_v62  ;;  %v4990_v56 = vmul.f32 1.442695, %v4342_v51  ;;  %v11954_v14 = vadd.f32 %v8654_v29, %v11650_v58 }
 0x2b4   : > { %v4994_v31 = vmul.f32 1.442695, %v4455_v41  ;;  %v8658_v61 = vpop.eup %8657  ;;  %8683 = vpow2.f32 %v4956_v45  ;;  %v4344_v34 = vpop.f32.mrf.mxu0  ;;  %v11957_v42 = vadd.f32 %v5096_v5, %v11150_v48  ;;  %v11960_v50 = vadd.f32 %v8656_v40, %v11818_v39 }
 0x2b5   : > { %v4457_v44 = vpop.f32.mrf.mxu1  ;;  %v8660_v10 = vpop.eup %8659  ;;  %8685 = vpow2.f32 %v4990_v56  ;;  %v4992_v6 = vmul.f32 1.442695, %v4344_v34  ;;  %v11963_v0 = vadd.f32 %v8658_v61, %v11812_v38  ;;  %v13135_v56 = vld [vmem:[#allocation42_spill] sm:$0xff] }
 0x2b6   : > { %v4996_v27 = vmul.f32 1.442695, %v4457_v44  ;;  %v8662_v28 = vpop.eup %8661  ;;  %8687 = vpow2.f32 %v4994_v31  ;;  %v4526_v58 = vpop.f32.mrf.mxu0  ;;  %v5101_v21 = vadd.f32 %v8660_v10, %v11815_v35  ;;  %v13136_v44 = vld [vmem:[#allocation47_spill] sm:$0xff] }
 0x2b7   : > { %v4639_v47 = vpop.f32.mrf.mxu1  ;;  %v8664_v20 = vpop.eup %8663  ;;  %8689 = vpow2.f32 %v4992_v6  ;;  %v4718_v48 = vmul.f32 1.442695, %v4526_v58  ;;  %v11967_v39 = vadd.f32 %v8662_v28, %v11674_v12 }
 0x2b8   : > { %v4722_v57 = vmul.f32 1.442695, %v4639_v47  ;;  %v8666_v11 = vpop.eup %8665  ;;  %8691 = vpow2.f32 %v4996_v27  ;;  %v4528_v3 = vpop.f32.mrf.mxu0  ;;  %v11970_v38 = vadd.f32 %v5101_v21, %v11176_v7  ;;  %v11973_v46 = vadd.f32 %v8664_v20, %v11836_v55 }
 0x2b9   : > { %v4641_v4 = vpop.f32.mrf.mxu1  ;;  %v8668_v52 = vpop.eup %8667  ;;  %8693 = vpow2.f32 %v4718_v48  ;;  %v4720_v35 = vmul.f32 1.442695, %v4528_v3  ;;  %v11976_v45 = vadd.f32 %v8666_v11, %v11830_v33  ;;  %v13137_v3 = vld [vmem:[#allocation43_spill] sm:$0xff] }
 0x2ba   : > { %v4724_v62 = vmul.f32 1.442695, %v4641_v4  ;;  %v8670_v29 = vpop.eup %8669  ;;  %8695 = vpow2.f32 %v4722_v57  ;;  %v4532_v12 = vpop.f32.mrf.mxu0  ;;  %v5106_v41 = vadd.f32 %v8668_v52, %v11833_v49 }
 0x2bb   : > { %v4645_v51 = vpop.f32.mrf.mxu1  ;;  %v8672_v5 = vpop.eup %8671  ;;  %8697 = vpow2.f32 %v4720_v35  ;;  %v4758_v7 = vmul.f32 1.442695, %v4532_v12  ;;  %v11980_v55 = vadd.f32 %v8670_v29, %v13135_v56 }
 0x2bc   : > { %v4762_v40 = vmul.f32 1.442695, %v4645_v51  ;;  %v8674_v31 = vpop.eup %8673  ;;  %8699 = vpow2.f32 %v4724_v62  ;;  %v4534_v61 = vpop.f32.mrf.mxu0  ;;  %v11983_v33 = vadd.f32 %v5106_v41, %v13136_v44  ;;  %v11986_v10 = vadd.f32 %v8672_v5, %v11854_v37  ;;  %v13138_v62 = vld [vmem:[#allocation11_spill] sm:$0xff]  ;;  %v13140_v44 = vld [vmem:[#allocation44_spill] sm:$0xff] }
 0x2bd   : > { %v4647_v34 = vpop.f32.mrf.mxu1  ;;  %v8676_v6 = vpop.eup %8675  ;;  %8701 = vpow2.f32 %v4758_v7  ;;  %v4760_v49 = vmul.f32 1.442695, %v4534_v61  ;;  %v11989_v28 = vadd.f32 %v8674_v31, %v11848_v54 }
 0x2be   : > { %v4764_v27 = vmul.f32 1.442695, %v4647_v34  ;;  %v8678_v58 = vpop.eup %8677  ;;  %8703 = vpow2.f32 %v4762_v40  ;;  %v4538_v47 = vpop.f32.mrf.mxu0  ;;  %v5111_v20 = vadd.f32 %v8676_v6, %v11851_v23 }
 0x2bf   : > { %v4651_v21 = vpop.f32.mrf.mxu1  ;;  %v8680_v48 = vpop.eup %8679  ;;  %8705 = vpow2.f32 %v4760_v49  ;;  %v4798_v57 = vmul.f32 1.442695, %v4538_v47  ;;  %v11993_v37 = vadd.f32 %v8678_v58, %v13137_v3  ;;  %v13141_v58 = vld [vmem:[#allocation48_spill] sm:$0xff] }
 0x2c0   : > { %v4802_v11 = vmul.f32 1.442695, %v4651_v21  ;;  %v8682_v4 = vpop.eup %8681  ;;  %8707 = vpow2.f32 %v4764_v27  ;;  %v4540_v52 = vpop.f32.mrf.mxu0  ;;  %v11996_v54 = vadd.f32 %v5111_v20, %v13138_v62  ;;  %v11999_v29 = vadd.f32 %v8680_v48, %v11872_v43 }
 0x2c1   : > { %v4653_v35 = vpop.f32.mrf.mxu1  ;;  %v8684_v12 = vpop.eup %8683  ;;  %8709 = vpow2.f32 %v4798_v57  ;;  %v4800_v23 = vmul.f32 1.442695, %v4540_v52  ;;  %v12002_v41 = vadd.f32 %v8682_v4, %v11866_v59 }
 0x2c2   : > { %13139 = vst [vmem:[#allocation42_spill] sm:$0xff] %v11996_v54  ;;  %v4804_v51 = vmul.f32 1.442695, %v4653_v35  ;;  %v8686_v5 = vpop.eup %8685  ;;  %8711 = vpow2.f32 %v4802_v11  ;;  %v4544_v7 = vpop.f32.mrf.mxu0  ;;  %v5116_v56 = vadd.f32 %v8684_v12, %v11869_v17  ;;  %v13143_v12 = vld [vmem:[#allocation45_spill] sm:$0xff] }
 0x2c3   : > { %v4657_v40 = vpop.f32.mrf.mxu1  ;;  %v8688_v31 = vpop.eup %8687  ;;  %8713 = vpow2.f32 %v4800_v23  ;;  %v4838_v61 = vmul.f32 1.442695, %v4544_v7  ;;  %v12006_v43 = vadd.f32 %v8686_v5, %v13140_v44  ;;  %v13144_v7 = vld [vmem:[#allocation12_spill] sm:$0xff] }
 0x2c4   : > { %v4842_v34 = vmul.f32 1.442695, %v4657_v40  ;;  %v8690_v6 = vpop.eup %8689  ;;  %8715 = vpow2.f32 %v4804_v51  ;;  %v4546_v49 = vpop.f32.mrf.mxu0  ;;  %v12009_v59 = vadd.f32 %v5116_v56, %v13141_v58  ;;  %v12012_v47 = vadd.f32 %v8688_v31, %v11890_v24  ;;  %v13148_v58 = vld [vmem:[#allocation13_spill] sm:$0xff] }
 0x2c5   : > { %v4659_v27 = vpop.f32.mrf.mxu1  ;;  %v8692_v21 = vpop.eup %8691  ;;  %8717 = vpow2.f32 %v4838_v61  ;;  %v4840_v17 = vmul.f32 1.442695, %v4546_v49  ;;  %v12015_v48 = vadd.f32 %v8690_v6, %v11884_v60 }
 0x2c6   : > { %13142 = vst [vmem:[#allocation47_spill] sm:$0xff] %v12009_v59  ;;  %v4844_v20 = vmul.f32 1.442695, %v4659_v27  ;;  %v8694_v57 = vpop.eup %8693  ;;  %8719 = vpow2.f32 %v4842_v34  ;;  %v4550_v11 = vpop.f32.mrf.mxu0  ;;  %v5121_v4 = vadd.f32 %v8692_v21, %v11887_v26  ;;  %v13146_v26 = vld [vmem:[#allocation49_spill] sm:$0xff] }
 0x2c7   : > { %v4663_v3 = vpop.f32.mrf.mxu1  ;;  %v8696_v52 = vpop.eup %8695  ;;  %8721 = vpow2.f32 %v4840_v17  ;;  %v4878_v35 = vmul.f32 1.442695, %v4550_v11  ;;  %v5087_v24 = vadd.f32 %v8694_v57, %v13143_v12  ;;  %v13150_v11 = vld [vmem:[#allocation46_spill] sm:$0xff] }
 0x2c8   : > { %v4882_v62 = vmul.f32 1.442695, %v4663_v3  ;;  %v8698_v23 = vpop.eup %8697  ;;  %8723 = vpow2.f32 %v4844_v20  ;;  %v4552_v51 = vpop.f32.mrf.mxu0  ;;  %v12020_v40 = vadd.f32 %v5121_v4, %v13144_v7  ;;  %v5089_v60 = vadd.f32 %v8696_v52, %v11908_v18  ;;  %v13155_v7 = vld [vmem:[#allocation15_spill] sm:$0xff] }
 0x2c9   : > { %v4665_v5 = vpop.f32.mrf.mxu1  ;;  %v8700_v56 = vpop.eup %8699  ;;  %8725 = vpow2.f32 %v4878_v35  ;;  %v4880_v31 = vmul.f32 1.442695, %v4552_v51  ;;  %v12024_v34 = vadd.f32 %v5087_v24, %v13146_v26  ;;  %v5088_v27 = vadd.f32 %v8698_v23, %v11902_v36  ;;  %v13153_v24 = vld [vmem:[#allocation14_spill] sm:$0xff] }
 0x2ca   : > { %13145 = vst [vmem:[#allocation43_spill] sm:$0xff] %v12020_v40  ;;  %v4884_v61 = vmul.f32 1.442695, %v4665_v5  ;;  %v8702_v44 = vpop.eup %8701  ;;  %8727 = vpow2.f32 %v4882_v62  ;;  %v4556_v6 = vpop.f32.mrf.mxu0  ;;  %v12028_v21 = vadd.f32 %v5089_v60, %v13148_v58  ;;  %v5090_v17 = vadd.f32 %v8700_v56, %v11905_v15  ;;  %v13151_v62 = vld [vmem:[#allocation50_spill] sm:$0xff] }
 0x2cb   : > { %13147 = vst [vmem:[#allocation11_spill] sm:$0xff] %v12024_v34  ;;  %v4669_v49 = vpop.f32.mrf.mxu1  ;;  %v8704_v20 = vpop.eup %8703  ;;  %8729 = vpow2.f32 %v4880_v31  ;;  %v4918_v18 = vmul.f32 1.442695, %v4556_v6  ;;  %v5092_v3 = vadd.f32 %v8702_v44, %v13150_v11  ;;  %v12033_v12 = vadd.f32 %v5088_v27, %v13151_v62  ;;  %v13157_v44 = vld [vmem:[#allocation16_spill] sm:$0xff] }
 0x2cc   : > { %13149 = vst [vmem:[#allocation44_spill] sm:$0xff] %v12028_v21  ;;  %v4922_v57 = vmul.f32 1.442695, %v4669_v49  ;;  %v8706_v4 = vpop.eup %8705  ;;  %8731 = vpow2.f32 %v4884_v61  ;;  %v4558_v52 = vpop.f32.mrf.mxu0  ;;  %v5094_v36 = vadd.f32 %v8704_v20, %v11927_v8  ;;  %v12037_v23 = vadd.f32 %v5090_v17, %v13153_v24  ;;  %v13159_v17 = vld [vmem:[#allocation52_spill] sm:$0xff]  ;;  %v13164_v24 = vld [vmem:[#allocation18_spill] sm:$0xff] }
 0x2cd   : > { %v4671_v35 = vpop.f32.mrf.mxu1  ;;  %13152 = vst [vmem:[#allocation48_spill] sm:$0xff] %v12033_v12  ;;  %v8708_v51 = vpop.eup %8707  ;;  %8733 = vpow2.f32 %v4918_v18  ;;  %v4920_v15 = vmul.f32 1.442695, %v4558_v52  ;;  %v12040_v60 = vadd.f32 %v5092_v3, %v13155_v7  ;;  %v5093_v26 = vadd.f32 %v8706_v4, %v11918_v16  ;;  %v13162_v4 = vld [vmem:[#allocation17_spill] sm:$0xff] }
 0x2ce   : > { %13154 = vst [vmem:[#allocation45_spill] sm:$0xff] %v12037_v23  ;;  %v4924_v5 = vmul.f32 1.442695, %v4671_v35  ;;  %v8710_v56 = vpop.eup %8709  ;;  %8735 = vpow2.f32 %v4922_v57  ;;  %v4562_v31 = vpop.f32.mrf.mxu0  ;;  %v12044_v6 = vadd.f32 %v5094_v36, %v13157_v44  ;;  %v5095_v8 = vadd.f32 %v8708_v51, %v11924_v19  ;;  %v13160_v57 = vld [vmem:[#allocation51_spill] sm:$0xff] }
 0x2cf   : > { %13156 = vst [vmem:[#allocation12_spill] sm:$0xff] %v12040_v60  ;;  %v4675_v61 = vpop.f32.mrf.mxu1  ;;  %v8712_v49 = vpop.eup %8711  ;;  %8737 = vpow2.f32 %v4920_v15  ;;  %v4958_v27 = vmul.f32 1.442695, %v4562_v31  ;;  %v5097_v20 = vadd.f32 %v8710_v56, %v13159_v17  ;;  %v12049_v52 = vadd.f32 %v5093_v26, %v13160_v57  ;;  %v13166_v31 = vld [vmem:[#allocation19_spill] sm:$0xff] }
 0x2d0   : > { %13158 = vst [vmem:[#allocation49_spill] sm:$0xff] %v12044_v6  ;;  %v4962_v58 = vmul.f32 1.442695, %v4675_v61  ;;  %v8714_v18 = vpop.eup %8713  ;;  %8739 = vpow2.f32 %v4924_v5  ;;  %v4564_v11 = vpop.f32.mrf.mxu0  ;;  %v5099_v16 = vadd.f32 %v8712_v49, %v11946_v30  ;;  %v12053_v35 = vadd.f32 %v5095_v8, %v13162_v4  ;;  %v13172_v4 = vld [vmem:[#allocation22_spill] sm:$0xff] }
 0x2d1   : > { %v4677_v3 = vpop.f32.mrf.mxu1  ;;  %13161 = vst [vmem:[#allocation13_spill] sm:$0xff] %v12049_v52  ;;  %v8716_v62 = vpop.eup %8715  ;;  %8741 = vpow2.f32 %v4958_v27  ;;  %v4960_v19 = vmul.f32 1.442695, %v4564_v11  ;;  %v12056_v51 = vadd.f32 %v5097_v20, %v13164_v24  ;;  %v5098_v56 = vadd.f32 %v8714_v18, %v11937_v25  ;;  %v13170_v18 = vld [vmem:[#allocation21_spill] sm:$0xff] }
 0x2d2   : > { %13163 = vst [vmem:[#allocation46_spill] sm:$0xff] %v12053_v35  ;;  %v4964_v36 = vmul.f32 1.442695, %v4677_v3  ;;  %v8718_v15 = vpop.eup %8717  ;;  %8743 = vpow2.f32 %v4962_v58  ;;  %v4568_v5 = vpop.f32.mrf.mxu0  ;;  %v12060_v61 = vadd.f32 %v5099_v16, %v13166_v31  ;;  %v5100_v30 = vadd.f32 %v8716_v62, %v11943_v22  ;;  %v13168_v58 = vld [vmem:[#allocation20_spill] sm:$0xff] }
 0x2d3   : > { %13165 = vst [vmem:[#allocation50_spill] sm:$0xff] %v12056_v51  ;;  %v4681_v7 = vpop.f32.mrf.mxu1  ;;  %v8720_v26 = vpop.eup %8719  ;;  %8745 = vpow2.f32 %v4960_v19  ;;  %v4998_v44 = vmul.f32 1.442695, %v4568_v5  ;;  %v5102_v49 = vadd.f32 %v8718_v15, %v11825_v63  ;;  %v12065_v11 = vadd.f32 %v5098_v56, %v13168_v58  ;;  %v13174_v15 = vld [vmem:[#allocation23_spill] sm:$0xff] }
 0x2d4   : > { %13167 = vst [vmem:[#allocation14_spill] sm:$0xff] %v12060_v61  ;;  %v5002_v8 = vmul.f32 1.442695, %v4681_v7  ;;  %v8722_v27 = vpop.eup %8721  ;;  %8747 = vpow2.f32 %v4964_v36  ;;  %v4570_v17 = vpop.f32.mrf.mxu0  ;;  %v5104_v25 = vadd.f32 %v8720_v26, %v11963_v0  ;;  %v12069_v3 = vadd.f32 %v5100_v30, %v13170_v18  ;;  %v13180_v18 = vld [vmem:[#allocation26_spill] sm:$0xff] }
 0x2d5   : > { %v4683_v20 = vpop.f32.mrf.mxu1  ;;  %13169 = vst [vmem:[#allocation15_spill] sm:$0xff] %v12065_v11  ;;  %v8724_v57 = vpop.eup %8723  ;;  %8749 = vpow2.f32 %v4998_v44  ;;  %v5000_v22 = vmul.f32 1.442695, %v4570_v17  ;;  %v12072_v62 = vadd.f32 %v5102_v49, %v13172_v4  ;;  %v5103_v24 = vadd.f32 %v8722_v27, %v11954_v14  ;;  %v13178_v27 = vld [vmem:[#allocation25_spill] sm:$0xff] }
 0x2d6   : > { %13171 = vst [vmem:[#allocation16_spill] sm:$0xff] %v12069_v3  ;;  %v5004_v16 = vmul.f32 1.442695, %v4683_v20  ;;  %v8726_v63 = vpop.eup %8725  ;;  %8751 = vpow2.f32 %v5002_v8  ;;  %v5264_v19 = vpop.f32.mrf.mxu0  ;;  %v12076_v5 = vadd.f32 %v5104_v25, %v13174_v15  ;;  %v5105_v0 = vadd.f32 %v8724_v57, %v11960_v50  ;;  %v13176_v8 = vld [vmem:[#allocation24_spill] sm:$0xff] }
 0x2d7   : > { %13173 = vst [vmem:[#allocation52_spill] sm:$0xff] %v12072_v62  ;;  %v5377_v36 = vpop.f32.mrf.mxu1  ;;  %v8728_v7 = vpop.eup %8727  ;;  %8753 = vpow2.f32 %v5000_v22  ;;  %v6328_v56 = vmul.f32 1.442695, %v5264_v19  ;;  %v5107_v30 = vadd.f32 %v8726_v63, %v11843_v2  ;;  %v12081_v17 = vadd.f32 %v5103_v24, %v13176_v8  ;;  %v13182_v63 = vld [vmem:[#allocation27_spill] sm:$0xff] }
 0x2d8   : > { %13175 = vst [vmem:[#allocation51_spill] sm:$0xff] %v12076_v5  ;;  %v6332_v31 = vmul.f32 1.442695, %v5377_v36  ;;  %v8730_v26 = vpop.eup %8729  ;;  %8755 = vpow2.f32 %v5004_v16  ;;  %v5266_v44 = vpop.f32.mrf.mxu0  ;;  %v5109_v14 = vadd.f32 %v8728_v7, %v11976_v45  ;;  %v12085_v20 = vadd.f32 %v5105_v0, %v13178_v27  ;;  %v13188_v27 = vld [vmem:[#allocation30_spill] sm:$0xff] }
 0x2d9   : > { %v5379_v49 = vpop.f32.mrf.mxu1  ;;  %13177 = vst [vmem:[#allocation17_spill] sm:$0xff] %v12081_v17  ;;  %v8732_v58 = vpop.eup %8731  ;;  %v6330_v50 = vmul.f32 1.442695, %v5266_v44  ;;  %v12088_v57 = vadd.f32 %v5107_v30, %v13180_v18  ;;  %8757 = vpow2.f32 %v6328_v56  ;;  %v5108_v4 = vadd.f32 %v8730_v26, %v11967_v39  ;;  %v13184_v56 = vld [vmem:[#allocation28_spill] sm:$0xff]  ;;  %v13186_v26 = vld [vmem:[#allocation29_spill] sm:$0xff] }
 0x2da   : > { %13179 = vst [vmem:[#allocation18_spill] sm:$0xff] %v12085_v20  ;;  %v6334_v25 = vmul.f32 1.442695, %v5379_v49  ;;  %v8734_v22 = vpop.eup %8733  ;;  %v5270_v2 = vpop.f32.mrf.mxu0  ;;  %v12092_v19 = vadd.f32 %v5109_v14, %v13182_v63  ;;  %v5110_v45 = vadd.f32 %v8732_v58, %v11973_v46  ;;  %8759 = vpow2.f32 %v6332_v31 }
 0x2db   : > { %13181 = vst [vmem:[#allocation19_spill] sm:$0xff] %v12088_v57  ;;  %v5383_v16 = vpop.f32.mrf.mxu1  ;;  %v8736_v36 = vpop.eup %8735  ;;  %v6368_v24 = vmul.f32 1.442695, %v5270_v2  ;;  %v5112_v0 = vadd.f32 %v8734_v22, %v11861_v13  ;;  %8761 = vpow2.f32 %v6330_v50  ;;  %v12097_v49 = vadd.f32 %v5108_v4, %v13184_v56  ;;  %v13190_v2 = vld [vmem:[#allocation31_spill] sm:$0xff] }
 0x2dc   : > { %13183 = vst [vmem:[#allocation20_spill] sm:$0xff] %v12092_v19  ;;  %v6372_v15 = vmul.f32 1.442695, %v5383_v16  ;;  %v8738_v7 = vpop.eup %8737  ;;  %v5272_v30 = vpop.f32.mrf.mxu0  ;;  %v5114_v39 = vadd.f32 %v8736_v36, %v11989_v28  ;;  %v12101_v8 = vadd.f32 %v5110_v45, %v13186_v26  ;;  %8763 = vpow2.f32 %v6334_v25  ;;  %v13196_v26 = vld [vmem:[#allocation34_spill] sm:$0xff] }
 0x2dd   : > { %v5385_v44 = vpop.f32.mrf.mxu1  ;;  %13185 = vst [vmem:[#allocation21_spill] sm:$0xff] %v12097_v49  ;;  %v8740_v14 = vpop.eup %8739  ;;  %v6370_v46 = vmul.f32 1.442695, %v5272_v30  ;;  %v12104_v58 = vadd.f32 %v5112_v0, %v13188_v27  ;;  %8765 = vpow2.f32 %v6368_v24  ;;  %v5113_v22 = vadd.f32 %v8738_v7, %v11980_v55  ;;  %v13192_v24 = vld [vmem:[#allocation32_spill] sm:$0xff]  ;;  %v13194_v7 = vld [vmem:[#allocation33_spill] sm:$0xff] }
 0x2de   : > { %13187 = vst [vmem:[#allocation22_spill] sm:$0xff] %v12101_v8  ;;  %v6374_v31 = vmul.f32 1.442695, %v5385_v44  ;;  %v8742_v13 = vpop.eup %8741  ;;  %v5276_v50 = vpop.f32.mrf.mxu0  ;;  %v12108_v16 = vadd.f32 %v5114_v39, %v13190_v2  ;;  %v5115_v28 = vadd.f32 %v8740_v14, %v11986_v10  ;;  %8767 = vpow2.f32 %v6372_v15 }
 0x2df   : > { %13189 = vst [vmem:[#allocation23_spill] sm:$0xff] %v12104_v58  ;;  %v5389_v18 = vpop.f32.mrf.mxu1  ;;  %v8744_v4 = vpop.eup %8743  ;;  %v6408_v63 = vmul.f32 1.442695, %v5276_v50  ;;  %v5117_v45 = vadd.f32 %v8742_v13, %v11879_v9  ;;  %8769 = vpow2.f32 %v6370_v46  ;;  %v12113_v44 = vadd.f32 %v5113_v22, %v13192_v24  ;;  %v13198_v50 = vld [vmem:[#allocation35_spill] sm:$0xff] }
 0x2e0   : > { %13191 = vst [vmem:[#allocation24_spill] sm:$0xff] %v12108_v16  ;;  %v6412_v25 = vmul.f32 1.442695, %v5389_v18  ;;  %v8746_v36 = vpop.eup %8745  ;;  %v5278_v0 = vpop.f32.mrf.mxu0  ;;  %v5119_v55 = vadd.f32 %v8744_v4, %v12002_v41  ;;  %v12117_v56 = vadd.f32 %v5115_v28, %v13194_v7  ;;  %8771 = vpow2.f32 %v6374_v31  ;;  %v13204_v7 = vld [vmem:[#allocation38_spill] sm:$0xff] }
 0x2e1   : > { %v5391_v30 = vpop.f32.mrf.mxu1  ;;  %13193 = vst [vmem:[#allocation25_spill] sm:$0xff] %v12113_v44  ;;  %v8748_v39 = vpop.eup %8747  ;;  %v6410_v10 = vmul.f32 1.442695, %v5278_v0  ;;  %v12120_v14 = vadd.f32 %v5117_v45, %v13196_v26  ;;  %8773 = vpow2.f32 %v6408_v63  ;;  %v5118_v13 = vadd.f32 %v8746_v36, %v11993_v37  ;;  %v13200_v63 = vld [vmem:[#allocation36_spill] sm:$0xff]  ;;  %v13202_v36 = vld [vmem:[#allocation37_spill] sm:$0xff] }
 0x2e2   : > { %13195 = vst [vmem:[#allocation26_spill] sm:$0xff] %v12117_v56  ;;  %v6414_v15 = vmul.f32 1.442695, %v5391_v30  ;;  %v8750_v9 = vpop.eup %8749  ;;  %v5282_v46 = vpop.f32.mrf.mxu0  ;;  %v12124_v18 = vadd.f32 %v5119_v55, %v13198_v50  ;;  %v5120_v41 = vadd.f32 %v8748_v39, %v11999_v29  ;;  %8775 = vpow2.f32 %v6412_v25 }
 0x2e3   : > { %13197 = vst [vmem:[#allocation27_spill] sm:$0xff] %v12120_v14  ;;  %v5395_v27 = vpop.f32.mrf.mxu1  ;;  %v8752_v22 = vpop.eup %8751  ;;  %v6448_v2 = vmul.f32 1.442695, %v5282_v46  ;;  %v5122_v28 = vadd.f32 %v8750_v9, %v11897_v1  ;;  %8777 = vpow2.f32 %v6410_v10  ;;  %v12129_v30 = vadd.f32 %v5118_v13, %v13200_v63  ;;  %v13206_v9 = vld [vmem:[#allocation39_spill] sm:$0xff] }
 0x2e4   : > { %13199 = vst [vmem:[#allocation28_spill] sm:$0xff] %v12124_v18  ;;  %v6452_v31 = vmul.f32 1.442695, %v5395_v27  ;;  %v8754_v4 = vpop.eup %8753  ;;  %v5284_v45 = vpop.f32.mrf.mxu0  ;;  %v5124_v37 = vadd.f32 %v8752_v22, %v12015_v48  ;;  %v12133_v24 = vadd.f32 %v5120_v41, %v13202_v36  ;;  %8779 = vpow2.f32 %v6414_v15 }
 0x2e5   : > { %v5397_v0 = vpop.f32.mrf.mxu1  ;;  %13201 = vst [vmem:[#allocation29_spill] sm:$0xff] %v12129_v30  ;;  %v8756_v55 = vpop.eup %8755  ;;  %v6450_v29 = vmul.f32 1.442695, %v5284_v45  ;;  %v12136_v39 = vadd.f32 %v5122_v28, %v13204_v7  ;;  %8781 = vpow2.f32 %v6448_v2  ;;  %v5123_v26 = vadd.f32 %v8754_v4, %v12006_v43  ;;  %v13208_v2 = vld [vmem:[#allocation40_spill] sm:$0xff]  ;;  %v13210_v45 = vld [vmem:[#allocation41_spill] sm:$0xff] }
 0x2e6   : > { %13203 = vst [vmem:[#allocation30_spill] sm:$0xff] %v12133_v24  ;;  %v6454_v25 = vmul.f32 1.442695, %v5397_v0  ;;  %v5288_v1 = vpop.f32.mrf.mxu0  ;;  %v12140_v46 = vadd.f32 %v5124_v37, %v13206_v9  ;;  %v5125_v48 = vadd.f32 %v8756_v55, %v12012_v47  ;;  %v12143_v27 = vpop.eup %8757  ;;  %8783 = vpow2.f32 %v6452_v31 }
 0x2e7   : > { %13205 = vst [vmem:[#allocation31_spill] sm:$0xff] %v12136_v39  ;;  %v5401_v10 = vpop.f32.mrf.mxu1  ;;  %v6488_v13 = vmul.f32 1.442695, %v5288_v1  ;;  %v12145_v50 = vpop.eup %8759  ;;  %8785 = vpow2.f32 %v6450_v29  ;;  %v12148_v28 = vadd.f32 %v5123_v26, %v13208_v2 }
 0x2e8   : > { %13207 = vst [vmem:[#allocation32_spill] sm:$0xff] %v12140_v46  ;;  %v6492_v15 = vmul.f32 1.442695, %v5401_v10  ;;  %v5290_v41 = vpop.f32.mrf.mxu0  ;;  %v12151_v43 = vadd.f32 %v5125_v48, %v13210_v45  ;;  %v12153_v4 = vpop.eup %8761  ;;  %8787 = vpow2.f32 %v6454_v25 }
 0x2e9   : > { %v5403_v22 = vpop.f32.mrf.mxu1  ;;  %13209 = vst [vmem:[#allocation33_spill] sm:$0xff] %v12148_v28  ;;  %v6490_v47 = vmul.f32 1.442695, %v5290_v41  ;;  %v12155_v63 = vpop.eup %8763  ;;  %8789 = vpow2.f32 %v6488_v13 }
 0x2ea   : > { %13211 = vst [vmem:[#allocation34_spill] sm:$0xff] %v12151_v43  ;;  %v6494_v0 = vmul.f32 1.442695, %v5403_v22  ;;  %v5294_v31 = vpop.f32.mrf.mxu0  ;;  %v12157_v36 = vpop.eup %8765  ;;  %8791 = vpow2.f32 %v6492_v15 }
 0x2eb   : > { %v5407_v37 = vpop.f32.mrf.mxu1  ;;  %v6528_v55 = vmul.f32 1.442695, %v5294_v31  ;;  %v12159_v7 = vpop.eup %8767  ;;  %8793 = vpow2.f32 %v6490_v47 }
 0x2ec   : > { %v6532_v29 = vmul.f32 1.442695, %v5407_v37  ;;  %v5296_v1 = vpop.f32.mrf.mxu0  ;;  %v12161_v26 = vpop.eup %8769  ;;  %8795 = vpow2.f32 %v6494_v0 }
 0x2ed   : > { %v5409_v10 = vpop.f32.mrf.mxu1  ;;  %v6530_v25 = vmul.f32 1.442695, %v5296_v1  ;;  %v12163_v48 = vpop.eup %8771  ;;  %8797 = vpow2.f32 %v6528_v55 }
 0x2ee   : > { %v6534_v9 = vmul.f32 1.442695, %v5409_v10  ;;  %v5300_v13 = vpop.f32.mrf.mxu0  ;;  %v12165_v22 = vpop.eup %8773  ;;  %8799 = vpow2.f32 %v6532_v29 }
 0x2ef   : > { %v5413_v41 = vpop.f32.mrf.mxu1  ;;  %v6568_v15 = vmul.f32 1.442695, %v5300_v13  ;;  %v12167_v45 = vpop.eup %8775  ;;  %8801 = vpow2.f32 %v6530_v25 }
 0x2f0   : > { %v6572_v2 = vmul.f32 1.442695, %v5413_v41  ;;  %v5302_v47 = vpop.f32.mrf.mxu0  ;;  %v12169_v37 = vpop.eup %8777  ;;  %8803 = vpow2.f32 %v6534_v9 }
 0x2f1   : > { %v5415_v31 = vpop.f32.mrf.mxu1  ;;  %v6570_v0 = vmul.f32 1.442695, %v5302_v47  ;;  %v12171_v10 = vpop.eup %8779  ;;  %8805 = vpow2.f32 %v6568_v15 }
 0x2f2   : > { %v6574_v1 = vmul.f32 1.442695, %v5415_v31  ;;  %v5306_v55 = vpop.f32.mrf.mxu0  ;;  %v12173_v24 = vpop.eup %8781  ;;  %8807 = vpow2.f32 %v6572_v2 }
 0x2f3   : > { %v5419_v43 = vpop.f32.mrf.mxu1  ;;  %v6608_v29 = vmul.f32 1.442695, %v5306_v55  ;;  %v12175_v41 = vpop.eup %8783  ;;  %8809 = vpow2.f32 %v6570_v0 }
 0x2f4   : > { %v6612_v13 = vmul.f32 1.442695, %v5419_v43  ;;  %v5308_v25 = vpop.f32.mrf.mxu0  ;;  %v12177_v8 = vpop.eup %8785  ;;  %8811 = vpow2.f32 %v6574_v1 }
 0x2f5   : > { %v5421_v56 = vpop.f32.mrf.mxu1  ;;  %v6610_v9 = vmul.f32 1.442695, %v5308_v25  ;;  %v12179_v31 = vpop.eup %8787  ;;  %8813 = vpow2.f32 %v6608_v29 }
 0x2f6   : > { %v6614_v47 = vmul.f32 1.442695, %v5421_v56  ;;  %v5490_v15 = vpop.f32.mrf.mxu0  ;;  %v12181_v3 = vpop.eup %8789  ;;  %8815 = vpow2.f32 %v6612_v13 }
 0x2f7   : > { %v5603_v20 = vpop.f32.mrf.mxu1  ;;  %v6336_v2 = vmul.f32 1.442695, %v5490_v15  ;;  %v12183_v55 = vpop.eup %8791  ;;  %8817 = vpow2.f32 %v6610_v9 }
 0x2f8   : > { %v6340_v43 = vmul.f32 1.442695, %v5603_v20  ;;  %v5492_v0 = vpop.f32.mrf.mxu0  ;;  %v12185_v35 = vpop.eup %8793  ;;  %8819 = vpow2.f32 %v6614_v47 }
 0x2f9   : > { %v5605_v28 = vpop.f32.mrf.mxu1  ;;  %v6338_v1 = vmul.f32 1.442695, %v5492_v0  ;;  %v12187_v25 = vpop.eup %8795 }
 0x2fa   : > { %v6342_v56 = vmul.f32 1.442695, %v5605_v28  ;;  %8821 = vpow2.f32 %v6340_v43  ;;  %v5496_v29 = vpop.f32.mrf.mxu0  ;;  %v12189_v39 = vpop.eup %8797 }
 0x2fb   : > { %v5609_v46 = vpop.f32.mrf.mxu1  ;;  %8823 = vpow2.f32 %v6336_v2  ;;  %v6376_v13 = vmul.f32 1.442695, %v5496_v29  ;;  %v12191_v15 = vpop.eup %8799 }
 0x2fc   : > { %v6380_v20 = vmul.f32 1.442695, %v5609_v46  ;;  %8825 = vpow2.f32 %v6342_v56  ;;  %v5498_v9 = vpop.f32.mrf.mxu0  ;;  %v12193_v23 = vpop.eup %8801 }
 0x2fd   : > { %v5611_v30 = vpop.f32.mrf.mxu1  ;;  %8827 = vpow2.f32 %v6338_v1  ;;  %v6378_v47 = vmul.f32 1.442695, %v5498_v9  ;;  %v12195_v0 = vpop.eup %8803 }
 0x2fe   : > { %v6382_v28 = vmul.f32 1.442695, %v5611_v30  ;;  %8829 = vpow2.f32 %v6380_v20  ;;  %v5502_v43 = vpop.f32.mrf.mxu0  ;;  %v12197_v14 = vpop.eup %8805 }
 0x2ff   : > { %v5615_v18 = vpop.f32.mrf.mxu1  ;;  %8831 = vpow2.f32 %v6376_v13  ;;  %v6416_v2 = vmul.f32 1.442695, %v5502_v43  ;;  %v12199_v29 = vpop.eup %8807 }
 0x300   : > { %v6420_v46 = vmul.f32 1.442695, %v5615_v18  ;;  %8833 = vpow2.f32 %v6382_v28  ;;  %v5504_v56 = vpop.f32.mrf.mxu0  ;;  %v12201_v44 = vpop.eup %8809 }
 0x301   : > { %v5617_v16 = vpop.f32.mrf.mxu1  ;;  %8835 = vpow2.f32 %v6378_v47  ;;  %v6418_v1 = vmul.f32 1.442695, %v5504_v56  ;;  %v12203_v9 = vpop.eup %8811 }
 0x302   : > { %v6422_v30 = vmul.f32 1.442695, %v5617_v16  ;;  %8837 = vpow2.f32 %v6420_v46  ;;  %v5508_v20 = vpop.f32.mrf.mxu0  ;;  %v12205_v58 = vpop.eup %8813 }
 0x303   : > { %v5621_v19 = vpop.f32.mrf.mxu1  ;;  %8839 = vpow2.f32 %v6416_v2  ;;  %v6456_v13 = vmul.f32 1.442695, %v5508_v20  ;;  %v12207_v43 = vpop.eup %8815 }
 0x304   : > { %v6460_v18 = vmul.f32 1.442695, %v5621_v19  ;;  %8841 = vpow2.f32 %v6422_v30  ;;  %v5510_v28 = vpop.f32.mrf.mxu0  ;;  %v12209_v49 = vpop.eup %8817 }
 0x305   : > { %v5623_v5 = vpop.f32.mrf.mxu1  ;;  %8843 = vpow2.f32 %v6418_v1  ;;  %v6458_v47 = vmul.f32 1.442695, %v5510_v28  ;;  %v12211_v56 = vpop.eup %8819 }
 0x306   : > { %v6462_v16 = vmul.f32 1.442695, %v5623_v5  ;;  %13212 = vst [vmem:[#allocation35_spill] sm:$0xff] %v12211_v56  ;;  %8845 = vpow2.f32 %v6460_v18  ;;  %v5514_v46 = vpop.f32.mrf.mxu0 }
 0x307   : > { %v5627_v61 = vpop.f32.mrf.mxu1  ;;  %v8822_v6 = vpop.eup %8821  ;;  %8847 = vpow2.f32 %v6456_v13  ;;  %v6496_v2 = vmul.f32 1.442695, %v5514_v46 }
 0x308   : > { %v6500_v20 = vmul.f32 1.442695, %v5627_v61  ;;  %v12213_v19 = vpop.eup %8823  ;;  %8849 = vpow2.f32 %v6462_v16  ;;  %v5516_v30 = vpop.f32.mrf.mxu0  ;;  %v12216_v17 = vadd.f32 %v8822_v6, %v12153_v4 }
 0x309   : > { %v5629_v57 = vpop.f32.mrf.mxu1  ;;  %v8826_v1 = vpop.eup %8825  ;;  %8851 = vpow2.f32 %v6458_v47  ;;  %v6498_v5 = vmul.f32 1.442695, %v5516_v30 }
 0x30a   : > { %v6502_v28 = vmul.f32 1.442695, %v5629_v57  ;;  %v12218_v62 = vpop.eup %8827  ;;  %8853 = vpow2.f32 %v6500_v20  ;;  %v5520_v18 = vpop.f32.mrf.mxu0  ;;  %v12221_v13 = vadd.f32 %v8826_v1, %v12145_v50 }
 0x30b   : > { %v5633_v11 = vpop.f32.mrf.mxu1  ;;  %v8830_v61 = vpop.eup %8829  ;;  %8855 = vpow2.f32 %v6496_v2  ;;  %v6536_v16 = vmul.f32 1.442695, %v5520_v18 }
 0x30c   : > { %13213 = vst [vmem:[#allocation36_spill] sm:$0xff] %v12221_v13  ;;  %v6540_v46 = vmul.f32 1.442695, %v5633_v11  ;;  %v12223_v51 = vpop.eup %8831  ;;  %8857 = vpow2.f32 %v6502_v28  ;;  %v5522_v6 = vpop.f32.mrf.mxu0  ;;  %v12226_v47 = vadd.f32 %v8830_v61, %v12161_v26 }
 0x30d   : > { %v5635_v4 = vpop.f32.mrf.mxu1  ;;  %v8834_v57 = vpop.eup %8833  ;;  %8859 = vpow2.f32 %v6498_v5  ;;  %v6538_v20 = vmul.f32 1.442695, %v5522_v6 }
 0x30e   : > { %v6542_v30 = vmul.f32 1.442695, %v5635_v4  ;;  %v12228_v52 = vpop.eup %8835  ;;  %8861 = vpow2.f32 %v6540_v46  ;;  %v5526_v50 = vpop.f32.mrf.mxu0  ;;  %v12231_v2 = vadd.f32 %v8834_v57, %v12159_v7 }
 0x30f   : > { %v5639_v1 = vpop.f32.mrf.mxu1  ;;  %v8838_v11 = vpop.eup %8837  ;;  %8863 = vpow2.f32 %v6536_v16  ;;  %v6576_v28 = vmul.f32 1.442695, %v5526_v50 }
 0x310   : > { %13214 = vst [vmem:[#allocation37_spill] sm:$0xff] %v12231_v2  ;;  %v6580_v18 = vmul.f32 1.442695, %v5639_v1  ;;  %v12233_v60 = vpop.eup %8839  ;;  %8865 = vpow2.f32 %v6542_v30  ;;  %v5528_v26 = vpop.f32.mrf.mxu0  ;;  %v12236_v5 = vadd.f32 %v8838_v11, %v12169_v37 }
 0x311   : > { %v5641_v61 = vpop.f32.mrf.mxu1  ;;  %v8842_v6 = vpop.eup %8841  ;;  %8867 = vpow2.f32 %v6538_v20  ;;  %v6578_v46 = vmul.f32 1.442695, %v5528_v26 }
 0x312   : > { %v6582_v4 = vmul.f32 1.442695, %v5641_v61  ;;  %v12238_v12 = vpop.eup %8843  ;;  %8869 = vpow2.f32 %v6580_v18  ;;  %v5532_v7 = vpop.f32.mrf.mxu0  ;;  %v12241_v16 = vadd.f32 %v8842_v6, %v12167_v45 }
 0x313   : > { %v5645_v57 = vpop.f32.mrf.mxu1  ;;  %v8846_v50 = vpop.eup %8845  ;;  %8871 = vpow2.f32 %v6576_v28  ;;  %v6616_v30 = vmul.f32 1.442695, %v5532_v7 }
 0x314   : > { %13215 = vst [vmem:[#allocation38_spill] sm:$0xff] %v12241_v16  ;;  %v6620_v1 = vmul.f32 1.442695, %v5645_v57  ;;  %v12243_v21 = vpop.eup %8847  ;;  %8873 = vpow2.f32 %v6582_v4  ;;  %v5534_v37 = vpop.f32.mrf.mxu0  ;;  %v12246_v20 = vadd.f32 %v8846_v50, %v12177_v8 }
 0x315   : > { %v5647_v11 = vpop.f32.mrf.mxu1  ;;  %v8850_v26 = vpop.eup %8849  ;;  %8875 = vpow2.f32 %v6578_v46  ;;  %v6618_v45 = vmul.f32 1.442695, %v5534_v37 }
 0x316   : > { %v6622_v18 = vmul.f32 1.442695, %v5647_v11  ;;  %v12248_v61 = vpop.eup %8851  ;;  %8877 = vpow2.f32 %v6620_v1  ;;  %v5716_v6 = vpop.f32.mrf.mxu0  ;;  %v12251_v28 = vadd.f32 %v8850_v26, %v12175_v41 }
 0x317   : > { %v5829_v34 = vpop.f32.mrf.mxu1  ;;  %v8854_v7 = vpop.eup %8853  ;;  %8879 = vpow2.f32 %v6616_v30  ;;  %v6344_v4 = vmul.f32 1.442695, %v5716_v6 }
 0x318   : > { %13216 = vst [vmem:[#allocation39_spill] sm:$0xff] %v12251_v28  ;;  %v12253_v57 = vpop.eup %8855  ;;  %8881 = vpow2.f32 %v6622_v18  ;;  %v6348_v8 = vmul.f32 1.442695, %v5829_v34  ;;  %v5718_v50 = vpop.f32.mrf.mxu0  ;;  %v12256_v46 = vadd.f32 %v8854_v7, %v12185_v35 }
 0x319   : > { %v5831_v40 = vpop.f32.mrf.mxu1  ;;  %v8858_v11 = vpop.eup %8857  ;;  %8883 = vpow2.f32 %v6344_v4  ;;  %v6346_v1 = vmul.f32 1.442695, %v5718_v50 }
 0x31a   : > { %v12258_v37 = vpop.eup %8859  ;;  %8885 = vpow2.f32 %v6618_v45  ;;  %v6350_v41 = vmul.f32 1.442695, %v5831_v40  ;;  %v5722_v26 = vpop.f32.mrf.mxu0  ;;  %v12261_v30 = vadd.f32 %v8858_v11, %v12183_v55 }
 0x31b   : > { %v5835_v28 = vpop.f32.mrf.mxu1  ;;  %v8862_v6 = vpop.eup %8861  ;;  %8887 = vpow2.f32 %v6346_v1  ;;  %v6384_v34 = vmul.f32 1.442695, %v5722_v26 }
 0x31c   : > { %13217 = vst [vmem:[#allocation40_spill] sm:$0xff] %v12261_v30  ;;  %v12263_v18 = vpop.eup %8863  ;;  %8889 = vpow2.f32 %v6348_v8  ;;  %v6388_v35 = vmul.f32 1.442695, %v5835_v28  ;;  %v5724_v7 = vpop.f32.mrf.mxu0  ;;  %v12266_v4 = vadd.f32 %v8862_v6, %v12193_v23 }
 0x31d   : > { %v5837_v16 = vpop.f32.mrf.mxu1  ;;  %v8866_v50 = vpop.eup %8865  ;;  %8891 = vpow2.f32 %v6384_v34  ;;  %v6386_v40 = vmul.f32 1.442695, %v5724_v7 }
 0x31e   : > { %v12268_v45 = vpop.eup %8867  ;;  %8893 = vpow2.f32 %v6350_v41  ;;  %v6390_v55 = vmul.f32 1.442695, %v5837_v16  ;;  %v5728_v11 = vpop.f32.mrf.mxu0  ;;  %v12271_v1 = vadd.f32 %v8866_v50, %v12191_v15 }
 0x31f   : > { %v5841_v30 = vpop.f32.mrf.mxu1  ;;  %v8870_v26 = vpop.eup %8869  ;;  %8895 = vpow2.f32 %v6386_v40  ;;  %v6424_v28 = vmul.f32 1.442695, %v5728_v11 }
 0x320   : > { %13218 = vst [vmem:[#allocation41_spill] sm:$0xff] %v12271_v1  ;;  %v12273_v8 = vpop.eup %8871  ;;  %8897 = vpow2.f32 %v6388_v35  ;;  %v6428_v23 = vmul.f32 1.442695, %v5841_v30  ;;  %v5730_v6 = vpop.f32.mrf.mxu0  ;;  %v12276_v34 = vadd.f32 %v8870_v26, %v12201_v44 }
 0x321   : > { %v5843_v59 = vpop.f32.mrf.mxu1  ;;  %v8874_v7 = vpop.eup %8873  ;;  %8899 = vpow2.f32 %v6424_v28  ;;  %v6426_v16 = vmul.f32 1.442695, %v5730_v6 }
 0x322   : > { %13219 = vst [vmem:[#allocation53_spill] sm:$0xff] %v12276_v34  ;;  %v12278_v41 = vpop.eup %8875  ;;  %8901 = vpow2.f32 %v6390_v55  ;;  %v6430_v15 = vmul.f32 1.442695, %v5843_v59  ;;  %v5734_v50 = vpop.f32.mrf.mxu0  ;;  %v12281_v40 = vadd.f32 %v8874_v7, %v12199_v29 }
 0x323   : > { %v5847_v1 = vpop.f32.mrf.mxu1  ;;  %v8878_v11 = vpop.eup %8877  ;;  %8903 = vpow2.f32 %v6426_v16  ;;  %v6464_v30 = vmul.f32 1.442695, %v5734_v50 }
 0x324   : > { %13220 = vst [vmem:[#allocation54_spill] sm:$0xff] %v12281_v40  ;;  %v12283_v35 = vpop.eup %8879  ;;  %8905 = vpow2.f32 %v6428_v23  ;;  %v6468_v44 = vmul.f32 1.442695, %v5847_v1  ;;  %v5736_v26 = vpop.f32.mrf.mxu0  ;;  %v12286_v28 = vadd.f32 %v8878_v11, %v12209_v49 }
 0x325   : > { %v5849_v2 = vpop.f32.mrf.mxu1  ;;  %v8882_v6 = vpop.eup %8881  ;;  %8907 = vpow2.f32 %v6464_v30  ;;  %v6466_v59 = vmul.f32 1.442695, %v5736_v26 }
 0x326   : > { %13221 = vst [vmem:[#allocation55_spill] sm:$0xff] %v12286_v28  ;;  %v8884_v55 = vpop.eup %8883  ;;  %8909 = vpow2.f32 %v6430_v15  ;;  %v6470_v54 = vmul.f32 1.442695, %v5849_v2  ;;  %v5740_v29 = vpop.f32.mrf.mxu0  ;;  %v12289_v16 = vadd.f32 %v8882_v6, %v12207_v43 }
 0x327   : > { %v5853_v7 = vpop.f32.mrf.mxu1  ;;  %v12291_v50 = vpop.eup %8885  ;;  %8911 = vpow2.f32 %v6466_v59  ;;  %v6504_v1 = vmul.f32 1.442695, %v5740_v29  ;;  %v12294_v23 = vadd.f32 %v8884_v55, %v12155_v63 }
 0x328   : > { %13222 = vst [vmem:[#allocation56_spill] sm:$0xff] %v12289_v16  ;;  %v8888_v49 = vpop.eup %8887  ;;  %8913 = vpow2.f32 %v6468_v44  ;;  %v6508_v11 = vmul.f32 1.442695, %v5853_v7  ;;  %v5742_v30 = vpop.f32.mrf.mxu0 }
 0x329   : > { %13223 = vst [vmem:[#allocation57_spill] sm:$0xff] %v12294_v23  ;;  %v5855_v26 = vpop.f32.mrf.mxu1  ;;  %v12296_v40 = vpop.eup %8889  ;;  %8915 = vpow2.f32 %v6504_v1  ;;  %v6506_v2 = vmul.f32 1.442695, %v5742_v30  ;;  %v12299_v43 = vadd.f32 %v8888_v49, %v12213_v19 }
 0x32a   : > { %v6510_v15 = vmul.f32 1.442695, %v5855_v26  ;;  %v8892_v6 = vpop.eup %8891  ;;  %8917 = vpow2.f32 %v6470_v54  ;;  %v5746_v59 = vpop.f32.mrf.mxu0 }
 0x32b   : > { %13224 = vst [vmem:[#allocation58_spill] sm:$0xff] %v12299_v43  ;;  %v5859_v29 = vpop.f32.mrf.mxu1  ;;  %v12301_v16 = vpop.eup %8893  ;;  %8919 = vpow2.f32 %v6506_v2  ;;  %v6544_v63 = vmul.f32 1.442695, %v5746_v59  ;;  %v12304_v44 = vadd.f32 %v8892_v6, %v12163_v48 }
 0x32c   : > { %v8896_v55 = vpop.eup %8895  ;;  %8921 = vpow2.f32 %v6508_v11  ;;  %v6548_v7 = vmul.f32 1.442695, %v5859_v29  ;;  %v5748_v1 = vpop.f32.mrf.mxu0 }
 0x32d   : > { %13225 = vst [vmem:[#allocation59_spill] sm:$0xff] %v12304_v44  ;;  %v5861_v30 = vpop.f32.mrf.mxu1  ;;  %v12306_v26 = vpop.eup %8897  ;;  %8923 = vpow2.f32 %v6510_v15  ;;  %v6546_v19 = vmul.f32 1.442695, %v5748_v1  ;;  %v12309_v54 = vadd.f32 %v8896_v55, %v12223_v51 }
 0x32e   : > { %v6550_v49 = vmul.f32 1.442695, %v5861_v30  ;;  %v8900_v23 = vpop.eup %8899  ;;  %8925 = vpow2.f32 %v6544_v63  ;;  %v5752_v2 = vpop.f32.mrf.mxu0 }
 0x32f   : > { %13226 = vst [vmem:[#allocation60_spill] sm:$0xff] %v12309_v54  ;;  %v5865_v59 = vpop.f32.mrf.mxu1  ;;  %v12311_v43 = vpop.eup %8901  ;;  %8927 = vpow2.f32 %v6546_v19  ;;  %v6584_v48 = vmul.f32 1.442695, %v5752_v2  ;;  %v12314_v11 = vadd.f32 %v8900_v23, %v12171_v10 }
 0x330   : > { %v8904_v6 = vpop.eup %8903  ;;  %8929 = vpow2.f32 %v6548_v7  ;;  %v6588_v29 = vmul.f32 1.442695, %v5865_v59  ;;  %v5754_v15 = vpop.f32.mrf.mxu0 }
 0x331   : > { %13227 = vst [vmem:[#allocation61_spill] sm:$0xff] %v12314_v11  ;;  %v5867_v1 = vpop.f32.mrf.mxu1  ;;  %v12316_v30 = vpop.eup %8905  ;;  %8931 = vpow2.f32 %v6550_v49  ;;  %v6586_v51 = vmul.f32 1.442695, %v5754_v15  ;;  %v12319_v63 = vadd.f32 %v8904_v6, %v12233_v60 }
 0x332   : > { %v6590_v55 = vmul.f32 1.442695, %v5867_v1  ;;  %v8908_v54 = vpop.eup %8907  ;;  %8933 = vpow2.f32 %v6584_v48  ;;  %v5758_v19 = vpop.f32.mrf.mxu0 }
 0x333   : > { %13228 = vst [vmem:[#allocation62_spill] sm:$0xff] %v12319_v63  ;;  %v5871_v2 = vpop.f32.mrf.mxu1  ;;  %v12321_v44 = vpop.eup %8909  ;;  %8935 = vpow2.f32 %v6586_v51  ;;  %v6624_v10 = vmul.f32 1.442695, %v5758_v19  ;;  %v12324_v23 = vadd.f32 %v8908_v54, %v12179_v31 }
 0x334   : > { %v8912_v7 = vpop.eup %8911  ;;  %8937 = vpow2.f32 %v6588_v29  ;;  %v6628_v59 = vmul.f32 1.442695, %v5871_v2  ;;  %v5760_v49 = vpop.f32.mrf.mxu0 }
 0x335   : > { %13229 = vst [vmem:[#allocation63_spill] sm:$0xff] %v12324_v23  ;;  %v5873_v15 = vpop.f32.mrf.mxu1  ;;  %v12326_v1 = vpop.eup %8913  ;;  %8939 = vpow2.f32 %v6590_v55  ;;  %v6626_v60 = vmul.f32 1.442695, %v5760_v49  ;;  %v12329_v48 = vadd.f32 %v8912_v7, %v12243_v21 }
 0x336   : > { %v6630_v6 = vmul.f32 1.442695, %v5873_v15  ;;  %v8916_v63 = vpop.eup %8915  ;;  %8941 = vpow2.f32 %v6624_v10  ;;  %v5942_v51 = vpop.f32.mrf.mxu0 }
 0x337   : > { %13230 = vst [vmem:[#allocation64_spill] sm:$0xff] %v12329_v48  ;;  %v6055_v19 = vpop.f32.mrf.mxu1  ;;  %v12331_v11 = vpop.eup %8917  ;;  %8943 = vpow2.f32 %v6626_v60  ;;  %v6352_v31 = vmul.f32 1.442695, %v5942_v51  ;;  %v12334_v29 = vadd.f32 %v8916_v63, %v12187_v25 }
 0x338   : > { %v6356_v54 = vmul.f32 1.442695, %v6055_v19  ;;  %v8920_v2 = vpop.eup %8919  ;;  %8945 = vpow2.f32 %v6628_v59  ;;  %v5944_v55 = vpop.f32.mrf.mxu0 }
 0x339   : > { %13231 = vst [vmem:[#allocation65_spill] sm:$0xff] %v12334_v29  ;;  %v6057_v49 = vpop.f32.mrf.mxu1  ;;  %v12336_v15 = vpop.eup %8921  ;;  %8947 = vpow2.f32 %v6630_v6  ;;  %v6354_v21 = vmul.f32 1.442695, %v5944_v55  ;;  %v12339_v10 = vadd.f32 %v8920_v2, %v12253_v57 }
 0x33a   : > { %v6358_v7 = vmul.f32 1.442695, %v6057_v49  ;;  %v12341_v48 = vpop.eup %8923  ;;  %8949 = vpow2.f32 %v6352_v31  ;;  %v5948_v60 = vpop.f32.mrf.mxu0 }
 0x33b   : > { %13232 = vst [vmem:[#allocation66_spill] sm:$0xff] %v12339_v10  ;;  %v6061_v51 = vpop.f32.mrf.mxu1  ;;  %v12343_v19 = vpop.eup %8925  ;;  %8951 = vpow2.f32 %v6356_v54  ;;  %v6392_v25 = vmul.f32 1.442695, %v5948_v60 }
 0x33c   : > { %v6396_v63 = vmul.f32 1.442695, %v6061_v51  ;;  %v8928_v59 = vpop.eup %8927  ;;  %8953 = vpow2.f32 %v6358_v7  ;;  %v5950_v29 = vpop.f32.mrf.mxu0 }
 0x33d   : > { %v6063_v23 = vpop.f32.mrf.mxu1  ;;  %v12345_v6 = vpop.eup %8929  ;;  %8955 = vpow2.f32 %v6354_v21  ;;  %v6394_v55 = vmul.f32 1.442695, %v5950_v29  ;;  %v12348_v2 = vadd.f32 %v8928_v59, %v12263_v18 }
 0x33e   : > { %v6398_v57 = vmul.f32 1.442695, %v6063_v23  ;;  %v12350_v31 = vpop.eup %8931  ;;  %8957 = vpow2.f32 %v6392_v25  ;;  %v5954_v49 = vpop.f32.mrf.mxu0 }
 0x33f   : > { %13233 = vst [vmem:[#allocation67_spill] sm:$0xff] %v12348_v2  ;;  %v6067_v10 = vpop.f32.mrf.mxu1  ;;  %v12352_v54 = vpop.eup %8933  ;;  %8959 = vpow2.f32 %v6396_v63  ;;  %v6432_v60 = vmul.f32 1.442695, %v5954_v49 }
 0x340   : > { %v6436_v7 = vmul.f32 1.442695, %v6067_v10  ;;  %v8936_v51 = vpop.eup %8935  ;;  %8961 = vpow2.f32 %v6398_v57  ;;  %v5956_v13 = vpop.f32.mrf.mxu0 }
 0x341   : > { %v6069_v28 = vpop.f32.mrf.mxu1  ;;  %v12354_v21 = vpop.eup %8937  ;;  %8963 = vpow2.f32 %v6394_v55  ;;  %v6434_v23 = vmul.f32 1.442695, %v5956_v13  ;;  %v12357_v29 = vadd.f32 %v8936_v51, %v12273_v8 }
 0x342   : > { %v6438_v18 = vmul.f32 1.442695, %v6069_v28  ;;  %v12359_v25 = vpop.eup %8939  ;;  %8965 = vpow2.f32 %v6432_v60  ;;  %v5960_v59 = vpop.f32.mrf.mxu0 }
 0x343   : > { %13234 = vst [vmem:[#allocation68_spill] sm:$0xff] %v12357_v29  ;;  %v6073_v2 = vpop.f32.mrf.mxu1  ;;  %v12361_v63 = vpop.eup %8941  ;;  %8967 = vpow2.f32 %v6436_v7  ;;  %v6472_v10 = vmul.f32 1.442695, %v5960_v59 }
 0x344   : > { %v6476_v57 = vmul.f32 1.442695, %v6073_v2  ;;  %v8944_v49 = vpop.eup %8943  ;;  %8969 = vpow2.f32 %v6438_v18  ;;  %v5962_v56 = vpop.f32.mrf.mxu0  ;;  %v6648_v2 = vadd.f32 %v12218_v62, %v12143_v27 }
 0x345   : > { %v6075_v34 = vpop.f32.mrf.mxu1  ;;  %v12363_v55 = vpop.eup %8945  ;;  %8971 = vpow2.f32 %v6434_v23  ;;  %v6474_v13 = vmul.f32 1.442695, %v5962_v56  ;;  %v12366_v28 = vadd.f32 %v8944_v49, %v12283_v35 }
 0x346   : > { %v6478_v8 = vmul.f32 1.442695, %v6075_v34  ;;  %v12368_v60 = vpop.eup %8947  ;;  %8973 = vpow2.f32 %v6472_v10  ;;  %v5966_v51 = vpop.f32.mrf.mxu0  ;;  %v6688_v35 = vadd.f32 %v12296_v40, %v6648_v2 }
 0x347   : > { %13235 = vst [vmem:[#allocation69_spill] sm:$0xff] %v12366_v28  ;;  %13236 = vst [vmem:[#allocation70_spill] sm:$0xff] %v12368_v60  ;;  %v6079_v7 = vpop.f32.mrf.mxu1  ;;  %v12372_v18 = vpop.eup %8949  ;;  %8975 = vpow2.f32 %v6476_v57  ;;  %v6512_v59 = vmul.f32 1.442695, %v5966_v51  ;;  %v6653_v51 = vadd.f32 %v12228_v52, %v12157_v36  ;;  %v6658_v52 = vadd.f32 %v12238_v12, %v12165_v22 }
 0x348   : > { %v6516_v29 = vmul.f32 1.442695, %v6079_v7  ;;  %v12374_v23 = vpop.eup %8951  ;;  %8977 = vpow2.f32 %v6478_v8  ;;  %v5968_v56 = vpop.f32.mrf.mxu0  ;;  %v6668_v12 = vadd.f32 %v12258_v37, %v12181_v3  ;;  %v6673_v3 = vadd.f32 %v12268_v45, %v12189_v39 }
 0x349   : > { %13237 = vst [vmem:[#allocation71_spill] sm:$0xff] %v12374_v23  ;;  %v6081_v34 = vpop.f32.mrf.mxu1  ;;  %v8954_v49 = vpop.eup %8953  ;;  %8979 = vpow2.f32 %v6474_v13  ;;  %v6514_v10 = vmul.f32 1.442695, %v5968_v56  ;;  %v12423_v39 = vadd.f32 %v12291_v50, %v12205_v58 }
 0x34a   : > { %v6518_v28 = vmul.f32 1.442695, %v6081_v34  ;;  %v12378_v60 = vpop.eup %8955  ;;  %8981 = vpow2.f32 %v6512_v59  ;;  %v5972_v62 = vpop.f32.mrf.mxu0  ;;  %v6728_v57 = vadd.f32 %v8954_v49, %v6688_v35  ;;  %v6693_v59 = vadd.f32 %v12306_v26, %v6653_v51 }
 0x34b   : > { %v6085_v27 = vpop.f32.mrf.mxu1  ;;  %v12382_v7 = vpop.eup %8957  ;;  %8983 = vpow2.f32 %v6516_v29  ;;  %v6552_v8 = vmul.f32 1.442695, %v5972_v62  ;;  %v6698_v51 = vadd.f32 %v12316_v30, %v6658_v52 }
 0x34c   : > { %v6556_v23 = vmul.f32 1.442695, %v6085_v27  ;;  %v12384_v40 = vpop.eup %8959  ;;  %8985 = vpow2.f32 %v6518_v28  ;;  %v5974_v13 = vpop.f32.mrf.mxu0  ;;  %v6768_v56 = vadd.f32 %v6728_v57, %v11921_v53  ;;  %v6663_v53 = vadd.f32 %v12248_v61, %v12173_v24 }
 0x34d   : > { %v6087_v2 = vpop.f32.mrf.mxu1  ;;  %v8962_v34 = vpop.eup %8961  ;;  %8987 = vpow2.f32 %v6514_v10  ;;  %v6554_v35 = vmul.f32 1.442695, %v5974_v13 }
 0x34e   : > { %v6558_v49 = vmul.f32 1.442695, %v6087_v2  ;;  %v12390_v36 = vpop.eup %8963  ;;  %8989 = vpow2.f32 %v6552_v8  ;;  %v5978_v29 = vpop.f32.mrf.mxu0  ;;  %v12392_v28 = vmul.f32 0.0625, %v6768_v56  ;;  %v6733_v27 = vadd.f32 %v8962_v34, %v6693_v59 }
 0x34f   : > { %v6091_v62 = vpop.f32.mrf.mxu1  ;;  %v12396_v26 = vpop.eup %8965  ;;  %8991 = vpow2.f32 %v6556_v23  ;;  %v6592_v10 = vmul.f32 1.442695, %v5978_v29  ;;  %v12415_v2 = vadd.f32 %v12278_v41, %v12197_v14  ;;  %v12429_v14 = vadd.f32 %v12301_v16, %v12216_v17 }
 0x350   : > { %v6596_v57 = vmul.f32 1.442695, %v6091_v62  ;;  %v12400_v22 = vpop.eup %8967  ;;  %8993 = vpow2.f32 %v6558_v49  ;;  %6996 = vxpose.xlu0.b32.start [1/16] %v12392_v28, 128  ;;  %6848 = vst [vmem:[%s12405_s9] sm:$0xff] %v12392_v28  ;;  %v5980_v24 = vpop.f32.mrf.mxu0  ;;  %v6773_v23 = vadd.f32 %v6733_v27, %v11940_v32  ;;  %v6703_v50 = vadd.f32 %v12326_v1, %v6663_v53 }
 0x351   : > { %v6093_v61 = vpop.f32.mrf.mxu1  ;;  %v8970_v37 = vpop.eup %8969  ;;  %8995 = vpow2.f32 %v6554_v35  ;;  %v6594_v8 = vmul.f32 1.442695, %v5980_v24  ;;  %v12440_v62 = vadd.f32 %v12311_v43, %v12226_v47  ;;  %v12444_v16 = vadd.f32 %v12321_v44, %v12236_v5 }
 0x352   : > { %v6598_v13 = vmul.f32 1.442695, %v6093_v61  ;;  %v12417_v56 = vpop.eup %8971  ;;  %8997 = vpow2.f32 %v6592_v10  ;;  %v5984_v59 = vpop.f32.mrf.mxu0  ;;  %v12419_v32 = vmul.f32 0.0625, %v6773_v23  ;;  %v6738_v30 = vadd.f32 %v8970_v37, %v6698_v51 }
 0x353   : > { %v6097_v34 = vpop.f32.mrf.mxu1  ;;  %v12425_v45 = vpop.eup %8973  ;;  %8999 = vpow2.f32 %v6596_v57  ;;  %v6632_v35 = vmul.f32 1.442695, %v5984_v59  ;;  %v12448_v10 = vadd.f32 %v12331_v11, %v12246_v20  ;;  %v6708_v43 = vadd.f32 %v12336_v15, %v6668_v12 }
 0x354   : > { %v6636_v49 = vmul.f32 1.442695, %v6097_v34  ;;  %v12431_v41 = vpop.eup %8975  ;;  %9001 = vpow2.f32 %v6598_v13  ;;  %6997 = vxpose.xlu0.b32.cont [2/16] %v12419_v32, 128  ;;  %6853 = vst [vmem:[%s12405_s9 + $0x28] sm:$0xff] %v12419_v32  ;;  %v5986_v52 = vpop.f32.mrf.mxu0  ;;  %v6778_v58 = vadd.f32 %v6738_v30, %v11957_v42  ;;  %v12459_v20 = vadd.f32 %v12341_v48, %v12256_v46 }
 0x355   : > { %v6099_v29 = vpop.f32.mrf.mxu1  ;;  %v8978_v27 = vpop.eup %8977  ;;  %9003 = vpow2.f32 %v6594_v8  ;;  %v6634_v61 = vmul.f32 1.442695, %v5986_v52  ;;  %v12469_v12 = vadd.f32 %v12343_v19, %v12195_v0  ;;  %v6713_v48 = vadd.f32 %v12345_v6, %v6673_v3 }
 0x356   : > { %v6638_v17 = vmul.f32 1.442695, %v6099_v29  ;;  %v12450_v57 = vpop.eup %8979  ;;  %9005 = vpow2.f32 %v6632_v35  ;;  %v6168_v42 = vpop.f32.mrf.mxu0  ;;  %v12452_v53 = vmul.f32 0.0625, %v6778_v58  ;;  %v6743_v47 = vadd.f32 %v8978_v27, %v6703_v50  ;;  %v13238_v58 = vld [vmem:[#allocation53_spill] sm:$0xff] }
 0x357   : > { %v6281_v1 = vpop.f32.mrf.mxu1  ;;  %v12455_v24 = vpop.eup %8981  ;;  %9007 = vpow2.f32 %v6636_v49  ;;  %v6360_v5 = vmul.f32 1.442695, %v6168_v42  ;;  %v12474_v8 = vadd.f32 %v12350_v31, %v12266_v4  ;;  %v6718_v6 = vadd.f32 %v12354_v21, %v12415_v2  ;;  %v13239_v2 = vld [vmem:[#allocation35_spill] sm:$0xff] }
 0x358   : > { %v6364_v44 = vmul.f32 1.442695, %v6281_v1  ;;  %v12461_v11 = vpop.eup %8983  ;;  %9009 = vpow2.f32 %v6638_v17  ;;  %6998 = vxpose.xlu0.b32.cont [3/16] %v12452_v53, 128  ;;  %6858 = vst [vmem:[%s12405_s9 + $0x50] sm:$0xff] %v12452_v53  ;;  %v6170_v23 = vpop.f32.mrf.mxu0  ;;  %v6783_v15 = vadd.f32 %v6743_v47, %v11970_v38  ;;  %v12486_v4 = vadd.f32 %v12352_v54, %v12203_v9 }
 0x359   : > { %v6283_v51 = vpop.f32.mrf.mxu1  ;;  %v8986_v37 = vpop.eup %8985  ;;  %9011 = vpow2.f32 %v6360_v5  ;;  %v6362_v46 = vmul.f32 1.442695, %v6170_v23  ;;  %v12496_v50 = vadd.f32 %v12359_v25, %v13238_v58  ;;  %v6723_v54 = vadd.f32 %v12363_v55, %v12423_v39  ;;  %v13241_v55 = vld [vmem:[#allocation70_spill] sm:$0xff] }
 0x35a   : > { %v12476_v13 = vpop.eup %8987  ;;  %9013 = vpow2.f32 %v6364_v44  ;;  %v6366_v59 = vmul.f32 1.442695, %v6283_v51  ;;  %v6174_v34 = vpop.f32.mrf.mxu0  ;;  %v12478_v30 = vmul.f32 0.0625, %v6783_v15  ;;  %v6748_v0 = vadd.f32 %v8986_v37, %v6708_v43  ;;  %v13240_v44 = vld [vmem:[#allocation55_spill] sm:$0xff] }
 0x35b   : > { %v6287_v38 = vpop.f32.mrf.mxu1  ;;  %v12480_v19 = vpop.eup %8989  ;;  %9015 = vpow2.f32 %v6362_v46  ;;  %v6400_v35 = vmul.f32 1.442695, %v6174_v34  ;;  %v12502_v27 = vadd.f32 %v12361_v63, %v13239_v2  ;;  %v12512_v39 = vadd.f32 %v13241_v55, %v13240_v44  ;;  %v13242_v63 = vld [vmem:[#allocation36_spill] sm:$0xff]  ;;  %v13243_v46 = vld [vmem:[#allocation42_spill] sm:$0xff]  ;;  %v13245_v34 = vld [vmem:[#allocation71_spill] sm:$0xff] }
 0x35c   : > { %v12488_v31 = vpop.eup %8991  ;;  %9017 = vpow2.f32 %v6634_v61  ;;  %v6404_v3 = vmul.f32 1.442695, %v6287_v38  ;;  %6999 = vxpose.xlu0.b32.cont [4/16] %v12478_v30, 128  ;;  %6863 = vst [vmem:[%s12405_s9 + $0x78] sm:$0xff] %v12478_v30  ;;  %v6176_v49 = vpop.f32.mrf.mxu0  ;;  %v6788_v29 = vadd.f32 %v6748_v0, %v11983_v33  ;;  %v12516_v61 = vadd.f32 %v12372_v18, %v13242_v63  ;;  %v13249_v44 = vld [vmem:[#allocation60_spill] sm:$0xff] }
 0x35d   : > { %v6289_v52 = vpop.f32.mrf.mxu1  ;;  %v8994_v21 = vpop.eup %8993  ;;  %9019 = vpow2.f32 %v6400_v35  ;;  %v6402_v9 = vmul.f32 1.442695, %v6176_v49  ;;  %v13246_v35 = vld [vmem:[#allocation37_spill] sm:$0xff] }
 0x35e   : > { %v12504_v17 = vpop.eup %8995  ;;  %9021 = vpow2.f32 %v6366_v59  ;;  %v6406_v42 = vmul.f32 1.442695, %v6289_v52  ;;  %v6180_v33 = vpop.f32.mrf.mxu0  ;;  %v12506_v47 = vmul.f32 0.0625, %v6788_v29  ;;  %v6753_v25 = vadd.f32 %v8994_v21, %v6713_v48  ;;  %v13244_v59 = vld [vmem:[#allocation58_spill] sm:$0xff] }
 0x35f   : > { %v6293_v1 = vpop.f32.mrf.mxu1  ;;  %v12508_v43 = vpop.eup %8997  ;;  %9023 = vpow2.f32 %v6402_v9  ;;  %v6440_v5 = vmul.f32 1.442695, %v6180_v33  ;;  %v12526_v38 = vadd.f32 %v13245_v34, %v13244_v59  ;;  %v12530_v49 = vadd.f32 %v12382_v7, %v13246_v35 }
 0x360   : > { %v12518_v23 = vpop.eup %8999  ;;  %9025 = vpow2.f32 %v6404_v3  ;;  %v6444_v51 = vmul.f32 1.442695, %v6293_v1  ;;  %7000 = vxpose.xlu0.b32.cont [5/16] %v12506_v47, 128  ;;  %6868 = vst [vmem:[%s12405_s9 + $0xa0] sm:$0xff] %v12506_v47  ;;  %v6182_v15 = vpop.f32.mrf.mxu0  ;;  %v6793_v48 = vadd.f32 %v6753_v25, %v13243_v46  ;;  %v13247_v3 = vld [vmem:[#allocation57_spill] sm:$0xff]  ;;  %v13251_v46 = vld [vmem:[#allocation38_spill] sm:$0xff]  ;;  %v12560_v59 = vmul.f32 %v12392_v28, %v12392_v28  ;;  %v13253_v28 = vld [vmem:[#allocation39_spill] sm:$0xff] }
 0x361   : > { %v6295_v37 = vpop.f32.mrf.mxu1  ;;  %v9002_v0 = vpop.eup %9001  ;;  %9027 = vpow2.f32 %v6440_v5  ;;  %v6442_v18 = vmul.f32 1.442695, %v6182_v15  ;;  %v6691_v52 = vadd.f32 %v12378_v60, %v13247_v3  ;;  %v13248_v5 = vld [vmem:[#allocation59_spill] sm:$0xff]  ;;  %v12546_v60 = vadd.f32 %v12384_v40, %v13249_v44 }
 0x362   : > { %v12534_v29 = vpop.eup %9003  ;;  %9029 = vpow2.f32 %v6406_v42  ;;  %v6446_v58 = vmul.f32 1.442695, %v6295_v37  ;;  %v6186_v21 = vpop.f32.mrf.mxu0  ;;  %v12536_v2 = vmul.f32 0.0625, %v6793_v48  ;;  %v6758_v33 = vadd.f32 %v9002_v0, %v6718_v6  ;;  %v13250_v15 = vld [vmem:[#allocation47_spill] sm:$0xff] }
 0x363   : > { %v6299_v9 = vpop.f32.mrf.mxu1  ;;  %v12538_v1 = vpop.eup %9005  ;;  %9031 = vpow2.f32 %v6442_v18  ;;  %v6480_v25 = vmul.f32 1.442695, %v6186_v21  ;;  %v12542_v7 = vadd.f32 %v12390_v36, %v13248_v5  ;;  %v12556_v36 = vadd.f32 %v12396_v26, %v13251_v46  ;;  %v13255_v46 = vld [vmem:[#allocation11_spill] sm:$0xff] }
 0x364   : > { %v12548_v55 = vpop.eup %9007  ;;  %9033 = vpow2.f32 %v6444_v51  ;;  %v6484_v42 = vmul.f32 1.442695, %v6299_v9  ;;  %7001 = vxpose.xlu0.b32.cont [6/16] %v12536_v2, 128  ;;  %6873 = vst [vmem:[%s12405_s9 + $0xc8] sm:$0xff] %v12536_v2  ;;  %v6188_v6 = vpop.f32.mrf.mxu0  ;;  %v6798_v37 = vadd.f32 %v6758_v33, %v13250_v15  ;;  %v13252_v51 = vld [vmem:[#allocation61_spill] sm:$0xff]  ;;  %v12571_v5 = vadd.f32 %v12425_v45, %v13253_v28 }
 0x365   : > { %v6301_v63 = vpop.f32.mrf.mxu1  ;;  %v9010_v48 = vpop.eup %9009  ;;  %9035 = vpow2.f32 %v6480_v25  ;;  %v6482_v40 = vmul.f32 1.442695, %v6188_v6  ;;  %v12564_v34 = vadd.f32 %v12417_v56, %v13252_v51  ;;  %v12582_v45 = vmul.f32 %v12419_v32, %v12419_v32 }
 0x366   : > { %v9012_v0 = vpop.eup %9011  ;;  %9037 = vpow2.f32 %v6446_v58  ;;  %v6486_v18 = vmul.f32 1.442695, %v6301_v63  ;;  %v6192_v35 = vpop.f32.mrf.mxu0  ;;  %v12566_v21 = vmul.f32 0.0625, %v6798_v37  ;;  %v6763_v26 = vadd.f32 %v9010_v48, %v6723_v54  ;;  %v13254_v63 = vld [vmem:[#allocation43_spill] sm:$0xff] }
 0x367   : > { %v6305_v3 = vpop.f32.mrf.mxu1  ;;  %v9014_v9 = vpop.eup %9013  ;;  %9039 = vpow2.f32 %v6482_v40  ;;  %v6520_v33 = vmul.f32 1.442695, %v6192_v35  ;;  %v6729_v25 = vadd.f32 %v9012_v0, %v12429_v14 }
 0x368   : > { %v9016_v56 = vpop.eup %9015  ;;  %9041 = vpow2.f32 %v6484_v42  ;;  %v6524_v44 = vmul.f32 1.442695, %v6305_v3  ;;  %7002 = vxpose.xlu0.b32.cont [7/16] %v12566_v21, 128  ;;  %6878 = vst [vmem:[%s12405_s9 + $0xf0] sm:$0xff] %v12566_v21  ;;  %v6194_v58 = vpop.f32.mrf.mxu0  ;;  %v6803_v54 = vadd.f32 %v6763_v26, %v13254_v63  ;;  %v6731_v15 = vadd.f32 %v9014_v9, %v6691_v52  ;;  %v13256_v52 = vld [vmem:[#allocation44_spill] sm:$0xff]  ;;  %v13259_v63 = vld [vmem:[#allocation63_spill] sm:$0xff] }
 0x369   : > { %v6307_v6 = vpop.f32.mrf.mxu1  ;;  %v12577_v37 = vpop.eup %9017  ;;  %9043 = vpow2.f32 %v6520_v33  ;;  %v6522_v14 = vmul.f32 1.442695, %v6194_v58  ;;  %v6769_v48 = vadd.f32 %v6729_v25, %v13255_v46  ;;  %v6730_v35 = vadd.f32 %v9016_v56, %v12516_v61  ;;  %v13258_v56 = vld [vmem:[#allocation48_spill] sm:$0xff] }
 0x36a   : > { %v9020_v42 = vpop.eup %9019  ;;  %9045 = vpow2.f32 %v6486_v18  ;;  %v6198_v40 = vpop.f32.mrf.mxu0  ;;  %v12584_v0 = vmul.f32 0.0625, %v6803_v54  ;;  %v6771_v3 = vadd.f32 %v6731_v15, %v13256_v52  ;;  %v12599_v54 = vadd.f32 %v12450_v57, %v13259_v63  ;;  %v13260_v46 = vld [vmem:[#allocation40_spill] sm:$0xff] }
 0x36b   : > { %v6311_v51 = vpop.f32.mrf.mxu1  ;;  %v12588_v26 = vpop.eup %9021  ;;  %9047 = vpow2.f32 %v6522_v14  ;;  %v6560_v9 = vmul.f32 1.442695, %v6198_v40  ;;  %v12590_v25 = vmul.f32 0.0625, %v6769_v48  ;;  %v6734_v61 = vadd.f32 %v9020_v42, %v12440_v62  ;;  %v13261_v40 = vld [vmem:[#allocation12_spill] sm:$0xff] }
 0x36c   : > { %v6564_v33 = vmul.f32 1.442695, %v6311_v51  ;;  %v9024_v32 = vpop.eup %9023  ;;  %9049 = vpow2.f32 %v6524_v44  ;;  %7003 = vxpose.xlu0.b32.cont [8/16] %v12584_v0, 128  ;;  %6883 = vst [vmem:[%s12405_s9 + $0x118] sm:$0xff] %v12584_v0  ;;  %v6200_v18 = vpop.f32.mrf.mxu0  ;;  %v6770_v58 = vadd.f32 %v6730_v35, %v13258_v56  ;;  %v12608_v44 = vmul.f32 %v12452_v53, %v12452_v53 }
 0x36d   : > { %13257 = vst [vmem:[#allocation53_spill] sm:$0xff] %v12590_v25  ;;  %v6313_v28 = vpop.f32.mrf.mxu1  ;;  %v12601_v15 = vpop.eup %9025  ;;  %9051 = vpow2.f32 %v6560_v9  ;;  %v6562_v14 = vmul.f32 1.442695, %v6200_v18  ;;  %7028 = vxpose.xlu1.b32.start [1/16] %v12590_v25, 128  ;;  %6849 = vst [vmem:[%s12405_s9 + $0x8] sm:$0xff] %v12590_v25  ;;  %v12612_v62 = vadd.f32 %v12455_v24, %v13260_v46  ;;  %v6774_v51 = vadd.f32 %v6734_v61, %v13261_v40  ;;  %v13262_v61 = vld [vmem:[#allocation13_spill] sm:$0xff] }
 0x36e   : > { %v9028_v48 = vpop.eup %9027  ;;  %9053 = vpow2.f32 %v6564_v33  ;;  %v6204_v57 = vpop.f32.mrf.mxu0  ;;  %v12615_v35 = vmul.f32 0.0625, %v6770_v58  ;;  %v6735_v52 = vadd.f32 %v9024_v32, %v12530_v49  ;;  %v6526_v63 = vmul.f32 1.442695, %v6307_v6  ;;  %v13264_v6 = vld [vmem:[#allocation65_spill] sm:$0xff] }
 0x36f   : > { %v6317_v42 = vpop.f32.mrf.mxu1  ;;  %v12618_v9 = vpop.eup %9029  ;;  %9055 = vpow2.f32 %v6562_v14  ;;  %v6600_v53 = vmul.f32 1.442695, %v6204_v57  ;;  %v6739_v56 = vadd.f32 %v9028_v48, %v12444_v16  ;;  %v12622_v25 = vmul.f32 0.0625, %v6774_v51  ;;  %v13263_v16 = vld [vmem:[#allocation50_spill] sm:$0xff] }
 0x370   : > { %v6604_v18 = vmul.f32 1.442695, %v6317_v42  ;;  %v9032_v24 = vpop.eup %9031  ;;  %7004 = vxpose.xlu0.b32.cont [9/16] %v12560_v59, 128  ;;  %v6206_v33 = vpop.f32.mrf.mxu0  ;;  %6850 = vst [vmem:[%s12405_s9 + $0x10] sm:$0xff] %v12615_v35  ;;  %v6775_v49 = vadd.f32 %v6735_v52, %v13262_v61  ;;  %v12627_v32 = vmul.f32 0.0625, %v6771_v3  ;;  %v12632_v57 = vadd.f32 %v12476_v13, %v13264_v6  ;;  %v13265_v52 = vld [vmem:[#allocation41_spill] sm:$0xff] }
 0x371   : > { %v6319_v46 = vpop.f32.mrf.mxu1  ;;  %v9034_v58 = vpop.eup %9033  ;;  %9057 = vpow2.f32 %v6600_v53  ;;  %v6602_v14 = vmul.f32 1.442695, %v6206_v33  ;;  %v6779_v48 = vadd.f32 %v6739_v56, %v13263_v16  ;;  %7029 = vxpose.xlu1.b32.cont [2/16] %v12622_v25, 128  ;;  %6854 = vst [vmem:[%s12405_s9 + $0x30] sm:$0xff] %v12622_v25  ;;  %v6740_v51 = vadd.f32 %v9032_v24, %v12556_v36  ;;  %v13266_v24 = vld [vmem:[#allocation15_spill] sm:$0xff] }
 0x372   : > { %v9036_v59 = vpop.eup %9035  ;;  %9059 = vpow2.f32 %v6604_v18  ;;  %v6210_v42 = vpop.f32.mrf.mxu0  ;;  %v12637_v3 = vmul.f32 0.0625, %v6775_v49  ;;  %v12642_v53 = vadd.f32 %v12480_v19, %v13265_v52  ;;  %6851 = vst [vmem:[%s12405_s9 + $0x18] sm:$0xff] %v12627_v32  ;;  %v6971_v19 = vmul.f32 %v12478_v30, %v12478_v30  ;;  %v13267_v30 = vld [vmem:[#allocation52_spill] sm:$0xff] }
 0x373   : > { %v6323_v40 = vpop.f32.mrf.mxu1  ;;  %v12646_v13 = vpop.eup %9037  ;;  %9061 = vpow2.f32 %v6602_v14  ;;  %v6640_v18 = vmul.f32 1.442695, %v6210_v42  ;;  %v12648_v33 = vmul.f32 0.0625, %v6779_v48  ;;  %v6744_v36 = vadd.f32 %v9036_v59, %v12448_v10 }
 0x374   : > { %v6644_v56 = vmul.f32 1.442695, %v6323_v40  ;;  %v9040_v61 = vpop.eup %9039  ;;  %9063 = vpow2.f32 %v6526_v63  ;;  %7005 = vxpose.xlu0.b32.cont [10/16] %v12582_v45, 128  ;;  %v6212_v49 = vpop.f32.mrf.mxu0  ;;  %6855 = vst [vmem:[%s12405_s9 + $0x38] sm:$0xff] %v12637_v3  ;;  %v6780_v16 = vadd.f32 %v6740_v51, %v13266_v24  ;;  %v6566_v6 = vmul.f32 1.442695, %v6313_v28  ;;  %v13269_v24 = vld [vmem:[#allocation19_spill] sm:$0xff] }
 0x375   : > { %v9042_v14 = vpop.eup %9041  ;;  %9065 = vpow2.f32 %v6640_v18  ;;  %v6642_v42 = vmul.f32 1.442695, %v6212_v49  ;;  %6859 = vst [vmem:[%s12405_s9 + $0x58] sm:$0xff] %v12648_v33  ;;  %v6716_v63 = vadd.f32 %v12504_v17, %v12469_v12  ;;  %v6325_v10 = vpop.f32.mrf.mxu1  ;;  %7030 = vxpose.xlu1.b32.cont [3/16] %v12648_v33, 128  ;;  %v6784_v48 = vadd.f32 %v6744_v36, %v13267_v30  ;;  %v13272_v30 = vld [vmem:[#allocation21_spill] sm:$0xff] }
 0x376   : > { %v9044_v45 = vpop.eup %9043  ;;  %9067 = vpow2.f32 %v6644_v56  ;;  %v12663_v59 = vmul.f32 0.0625, %v6780_v16  ;;  %v6745_v40 = vadd.f32 %v9040_v61, %v12571_v5  ;;  %v6976_v12 = vmul.f32 %v12506_v47, %v12506_v47  ;;  %v13268_v5 = vld [vmem:[#allocation17_spill] sm:$0xff] }
 0x377   : > { %v12666_v28 = vpop.eup %9045  ;;  %9069 = vpow2.f32 %v6642_v42  ;;  %v6749_v51 = vadd.f32 %v9044_v45, %v12459_v20  ;;  %v6736_v17 = vadd.f32 %v12601_v15, %v12542_v7  ;;  %v6606_v18 = vmul.f32 1.442695, %v6319_v46  ;;  %v13270_v7 = vld [vmem:[#allocation49_spill] sm:$0xff]  ;;  %v13271_v42 = vld [vmem:[#allocation14_spill] sm:$0xff] }
 0x378   : > { %v9048_v52 = vpop.eup %9047  ;;  %7006 = vxpose.xlu0.b32.cont [11/16] %v12608_v44, 128  ;;  %v12674_v56 = vmul.f32 0.0625, %v6784_v48  ;;  %6860 = vst [vmem:[%s12405_s9 + $0x60] sm:$0xff] %v12663_v59  ;;  %v6785_v61 = vadd.f32 %v6745_v40, %v13268_v5  ;;  %v6741_v49 = vadd.f32 %v9034_v58, %v12564_v34  ;;  %v6646_v36 = vmul.f32 1.442695, %v6325_v10 }
 0x379   : > { %v9050_v20 = vpop.eup %9049  ;;  %v6789_v47 = vadd.f32 %v6749_v51, %v13269_v24  ;;  %v6750_v16 = vadd.f32 %v9048_v52, %v12612_v62  ;;  %v6776_v15 = vadd.f32 %v6736_v17, %v13270_v7  ;;  %9071 = vpow2.f32 %v6566_v6  ;;  %v13273_v17 = vld [vmem:[#allocation51_spill] sm:$0xff] }
 0x37a   : > { %v9052_v46 = vpop.eup %9051  ;;  %7031 = vxpose.xlu1.b32.cont [4/16] %v12674_v56, 128  ;;  %6864 = vst [vmem:[%s12405_s9 + $0x80] sm:$0xff] %v12674_v56  ;;  %v12686_v44 = vmul.f32 0.0625, %v6785_v61  ;;  %v6781_v34 = vadd.f32 %v6741_v49, %v13271_v42  ;;  %v6746_v58 = vadd.f32 %v9042_v14, %v12599_v54  ;;  %9073 = vpow2.f32 %v6606_v18 }
 0x37b   : > { %v9054_v45 = vpop.eup %9053  ;;  %v12690_v10 = vmul.f32 0.0625, %v6789_v47  ;;  %v6754_v62 = vadd.f32 %v9052_v46, %v12474_v8  ;;  %v6790_v48 = vadd.f32 %v6750_v16, %v13272_v30  ;;  %v12694_v6 = vmul.f32 0.0625, %v6776_v15  ;;  %v13274_v8 = vld [vmem:[#allocation23_spill] sm:$0xff]  ;;  %v13276_v16 = vld [vmem:[#allocation25_spill] sm:$0xff]  ;;  %v13277_v15 = vld [vmem:[#allocation54_spill] sm:$0xff] }
 0x37c   : > { %v9056_v40 = vpop.eup %9055  ;;  %7007 = vxpose.xlu0.b32.cont [12/16] %v6971_v19, 128  ;;  %6865 = vst [vmem:[%s12405_s9 + $0x88] sm:$0xff] %v12686_v44  ;;  %v12698_v51 = vmul.f32 0.0625, %v6781_v34  ;;  %v6786_v54 = vadd.f32 %v6746_v58, %v13273_v17  ;;  %v6751_v14 = vadd.f32 %v9050_v20, %v12632_v57  ;;  %9075 = vpow2.f32 %v6646_v36  ;;  %v13275_v57 = vld [vmem:[#allocation20_spill] sm:$0xff] }
 0x37d   : > { %6869 = vst [vmem:[%s12405_s9 + $0xa8] sm:$0xff] %v12690_v10  ;;  %v6794_v52 = vadd.f32 %v6754_v62, %v13274_v8  ;;  %v12705_v5 = vmul.f32 0.0625, %v6790_v48  ;;  %v6755_v61 = vadd.f32 %v9056_v40, %v12642_v53  ;;  %6856 = vst [vmem:[%s12405_s9 + $0x40] sm:$0xff] %v12694_v6  ;;  %v6756_v20 = vadd.f32 %v9054_v45, %v6716_v63  ;;  %v13279_v45 = vld [vmem:[#allocation27_spill] sm:$0xff] }
 0x37e   : > { %v9058_v19 = vpop.eup %9057  ;;  %7032 = vxpose.xlu1.b32.cont [5/16] %v12690_v10, 128  ;;  %6861 = vst [vmem:[%s12405_s9 + $0x68] sm:$0xff] %v12698_v51  ;;  %v12713_v18 = vmul.f32 0.0625, %v6786_v54  ;;  %v6791_v49 = vadd.f32 %v6751_v14, %v13275_v57  ;;  %v6721_v36 = vadd.f32 %v12534_v29, %v12486_v4  ;;  %v6720_v46 = vadd.f32 %v12508_v43, %v13277_v15  ;;  %v13278_v4 = vld [vmem:[#allocation24_spill] sm:$0xff] }
 0x37f   : > { %v9060_v24 = vpop.eup %9059  ;;  %v12718_v47 = vmul.f32 0.0625, %v6794_v52  ;;  %v6759_v53 = vadd.f32 %v9058_v19, %v12496_v50  ;;  %6870 = vst [vmem:[%s12405_s9 + $0xb0] sm:$0xff] %v12705_v5  ;;  %v6795_v7 = vadd.f32 %v6755_v61, %v13276_v16  ;;  %v6796_v29 = vadd.f32 %v6756_v20, %v13278_v4  ;;  %v13282_v61 = vld [vmem:[#allocation29_spill] sm:$0xff]  ;;  %v13283_v57 = vld [vmem:[#allocation56_spill] sm:$0xff] }
 0x380   : > { %v9062_v42 = vpop.eup %9061  ;;  %7008 = vxpose.xlu0.b32.cont [13/16] %v6976_v12, 128  ;;  %6866 = vst [vmem:[%s12405_s9 + $0x90] sm:$0xff] %v12713_v18  ;;  %v12728_v63 = vmul.f32 0.0625, %v6791_v49  ;;  %v6761_v34 = vadd.f32 %v9060_v24, %v6721_v36  ;;  %v6732_v50 = vadd.f32 %v12588_v26, %v12526_v38  ;;  %v6981_v43 = vmul.f32 %v12536_v2, %v12536_v2  ;;  %v13280_v38 = vld [vmem:[#allocation28_spill] sm:$0xff]  ;;  %v13281_v2 = vld [vmem:[#allocation45_spill] sm:$0xff]  ;;  %v13284_v24 = vld [vmem:[#allocation31_spill] sm:$0xff] }
 0x381   : > { %v9064_v58 = vpop.eup %9063  ;;  %6874 = vst [vmem:[%s12405_s9 + $0xd0] sm:$0xff] %v12718_v47  ;;  %v6799_v62 = vadd.f32 %v6759_v53, %v13279_v45  ;;  %v12738_v12 = vmul.f32 0.0625, %v6795_v7  ;;  %v6760_v30 = vadd.f32 %v9062_v42, %v6720_v46  ;;  %v12743_v40 = vmul.f32 0.0625, %v6796_v29  ;;  %v13285_v15 = vld [vmem:[#allocation32_spill] sm:$0xff]  ;;  %v13287_v42 = vld [vmem:[#allocation62_spill] sm:$0xff] }
 0x382   : > { %v9066_v48 = vpop.eup %9065  ;;  %7033 = vxpose.xlu1.b32.cont [6/16] %v12718_v47, 128  ;;  %6871 = vst [vmem:[%s12405_s9 + $0xb8] sm:$0xff] %v12728_v63  ;;  %v6801_v26 = vadd.f32 %v6761_v34, %v13280_v38  ;;  %v6726_v17 = vadd.f32 %v12577_v37, %v12502_v27  ;;  %v6772_v54 = vadd.f32 %v6732_v50, %v13281_v2  ;;  %v13288_v50 = vld [vmem:[#allocation33_spill] sm:$0xff] }
 0x383   : > { %v9068_v14 = vpop.eup %9067  ;;  %v12749_v8 = vmul.f32 0.0625, %v6799_v62  ;;  %v6764_v52 = vadd.f32 %v9066_v48, %v12512_v39  ;;  %6875 = vst [vmem:[%s12405_s9 + $0xd8] sm:$0xff] %v12738_v12  ;;  %v6800_v19 = vadd.f32 %v6760_v30, %v13282_v61  ;;  %v6725_v49 = vadd.f32 %v12538_v1, %v13283_v57  ;;  %6876 = vst [vmem:[%s12405_s9 + $0xe0] sm:$0xff] %v12743_v40  ;;  %v13290_v48 = vld [vmem:[#allocation66_spill] sm:$0xff] }
 0x384   : > { %v9070_v20 = vpop.eup %9069  ;;  %7009 = vxpose.xlu0.b32.cont [14/16] %v6981_v43, 128  ;;  %v12759_v27 = vmul.f32 0.0625, %v6801_v26  ;;  %v6766_v37 = vadd.f32 %v9068_v14, %v6726_v17  ;;  %v12761_v36 = vmul.f32 0.0625, %v6772_v54  ;;  %v6737_v39 = vadd.f32 %v12618_v9, %v12546_v60  ;;  %v13286_v60 = vld [vmem:[#allocation46_spill] sm:$0xff]  ;;  %v13289_v43 = vld [vmem:[#allocation64_spill] sm:$0xff]  ;;  %v13291_v54 = vld [vmem:[#allocation67_spill] sm:$0xff] }
 0x385   : > { %6879 = vst [vmem:[%s12405_s9 + $0xf8] sm:$0xff] %v12749_v8  ;;  %v6804_v53 = vadd.f32 %v6764_v52, %v13284_v24  ;;  %v12768_v16 = vmul.f32 0.0625, %v6800_v19  ;;  %v6765_v1 = vadd.f32 %v9070_v20, %v6725_v49  ;;  %v6986_v7 = vmul.f32 %v12566_v21, %v12566_v21  ;;  %v13293_v19 = vld [vmem:[#allocation68_spill] sm:$0xff]  ;;  %v13295_v20 = vld [vmem:[#allocation69_spill] sm:$0xff] }
 0x386   : > { %7034 = vxpose.xlu1.b32.cont [7/16] %v12749_v8, 128  ;;  %6881 = vst [vmem:[%s12405_s9 + $0x108] sm:$0xff] %v12759_v27  ;;  %v6806_v46 = vadd.f32 %v6766_v37, %v13285_v15  ;;  %6852 = vst [vmem:[%s12405_s9 + $0x20] sm:$0xff] %v12761_v36  ;;  %v6777_v9 = vadd.f32 %v6737_v39, %v13286_v60  ;;  %v6702_v4 = vadd.f32 %v12400_v22, %v13287_v42  ;;  %v9072_v29 = vpop.eup %9071  ;;  %v13296_v37 = vld [vmem:[#allocation53_spill] sm:$0xff]  ;;  %v13299_v60 = vld [vmem:[#allocation30_spill] sm:$0xff] }
 0x387   : > { %v12781_v34 = vmul.f32 0.0625, %v6804_v53  ;;  %6880 = vst [vmem:[%s12405_s9 + $0x100] sm:$0xff] %v12768_v16  ;;  %v6805_v21 = vadd.f32 %v6765_v1, %v13288_v50  ;;  %v6707_v45 = vadd.f32 %v12431_v41, %v13289_v43  ;;  %v6712_v38 = vadd.f32 %v12461_v11, %v13290_v48  ;;  %v9074_v26 = vpop.eup %9073  ;;  %v13292_v11 = vld [vmem:[#allocation16_spill] sm:$0xff] }
 0x388   : > { %7010 = vxpose.xlu0.b32.cont [15/16] %v6986_v7, 128  ;;  %v12788_v62 = vmul.f32 0.0625, %v6806_v46  ;;  %v12790_v30 = vmul.f32 0.0625, %v6777_v9  ;;  %v6742_v22 = vadd.f32 %v12646_v13, %v6702_v4  ;;  %v6717_v41 = vadd.f32 %v12488_v31, %v13291_v54  ;;  %v13294_v31 = vld [vmem:[#allocation18_spill] sm:$0xff] }
 0x389   : > { %6884 = vst [vmem:[%s12405_s9 + $0x120] sm:$0xff] %v12781_v34  ;;  %v12797_v17 = vmul.f32 0.0625, %v6805_v21  ;;  %v6747_v2 = vadd.f32 %v12666_v28, %v6707_v45  ;;  %v9076_v14 = vpop.eup %9075  ;;  %v6991_v52 = vmul.f32 %v12584_v0, %v12584_v0  ;;  %v6752_v61 = vadd.f32 %v9064_v58, %v6712_v38  ;;  %v13297_v58 = vld [vmem:[#allocation22_spill] sm:$0xff] }
 0x38a   : > { %7035 = vxpose.xlu1.b32.cont [8/16] %v12781_v34, 128  ;;  %6886 = vst [vmem:[%s12405_s9 + $0x130] sm:$0xff] %v12788_v62  ;;  %6857 = vst [vmem:[%s12405_s9 + $0x48] sm:$0xff] %v12790_v30  ;;  %v6782_v13 = vadd.f32 %v6742_v22, %v13292_v11  ;;  %v6722_v28 = vadd.f32 %v12518_v23, %v13293_v19  ;;  %v6757_v49 = vadd.f32 %v9072_v29, %v6717_v41  ;;  %v13298_v7 = vld [vmem:[#allocation26_spill] sm:$0xff] }
 0x38b   : > { %6885 = vst [vmem:[%s12405_s9 + $0x128] sm:$0xff] %v12797_v17  ;;  %v6787_v57 = vadd.f32 %v6747_v2, %v13294_v31  ;;  %v6727_v0 = vadd.f32 %v12548_v55, %v13295_v20  ;;  %v6957_v39 = vmul.f32 %v13296_v37, %v13296_v37  ;;  %v6792_v53 = vadd.f32 %v6752_v61, %v13297_v58  ;;  %v13300_v4 = vld [vmem:[#allocation34_spill] sm:$0xff] }
 0x38c   : > { %7011 = vxpose.xlu0.b32.end [16/16] %v6991_v52, 128  ;;  %v12819_v24 = vmul.f32 0.0625, %v6782_v13  ;;  %v6762_v23 = vadd.f32 %v9074_v26, %v6722_v28  ;;  %v6797_v15 = vadd.f32 %v6757_v49, %v13298_v7  ;;  %v6962_v50 = vmul.f32 %v12622_v25, %v12622_v25 }
 0x38d   : > { %v12822_v1 = vmul.f32 0.0625, %v6787_v57  ;;  %v6767_v46 = vadd.f32 %v9076_v14, %v6727_v0  ;;  %v12827_v55 = vmul.f32 0.0625, %v6792_v53  ;;  %v6967_v45 = vmul.f32 %v12648_v33, %v12648_v33 }
 0x38e   : > { %7036 = vxpose.xlu1.b32.cont [9/16] %v6957_v39, 128  ;;  %6862 = vst [vmem:[%s12405_s9 + $0x70] sm:$0xff] %v12819_v24  ;;  %v6802_v9 = vadd.f32 %v6762_v23, %v13299_v60  ;;  %v12832_v42 = vmul.f32 0.0625, %v6797_v15  ;;  %v6972_v25 = vmul.f32 %v12674_v56, %v12674_v56  ;;  %v6977_v22 = vmul.f32 %v12690_v10, %v12690_v10 }
 0x38f   : > { %6867 = vst [vmem:[%s12405_s9 + $0x98] sm:$0xff] %v12822_v1  ;;  %v6807_v29 = vadd.f32 %v6767_v46, %v13300_v4  ;;  %6872 = vst [vmem:[%s12405_s9 + $0xc0] sm:$0xff] %v12827_v55  ;;  %v6982_v48 = vmul.f32 %v12718_v47, %v12718_v47  ;;  %v6987_v33 = vmul.f32 %v12749_v8, %v12749_v8 }
 0x390   : > { %7060 = vxpose.xlu0.b32.start [1/16] %v12615_v35, 128  ;;  %v12840_v21 = vmul.f32 0.0625, %v6802_v9  ;;  %6877 = vst [vmem:[%s12405_s9 + $0xe8] sm:$0xff] %v12832_v42  ;;  %v6992_v56 = vmul.f32 %v12781_v34, %v12781_v34  ;;  %v6958_v10 = vmul.f32 %v12615_v35, %v12615_v35  ;;  %v6963_v47 = vmul.f32 %v12637_v3, %v12637_v3 }
 0x391   : > { %v12844_v43 = vmul.f32 0.0625, %v6807_v29  ;;  %v6968_v8 = vmul.f32 %v12663_v59, %v12663_v59  ;;  %v6973_v34 = vmul.f32 %v12686_v44, %v12686_v44  ;;  %v6978_v35 = vmul.f32 %v12705_v5, %v12705_v5 }
 0x392   : > { %7037 = vxpose.xlu1.b32.cont [10/16] %v6962_v50, 128  ;;  %6882 = vst [vmem:[%s12405_s9 + $0x110] sm:$0xff] %v12840_v21  ;;  %v6983_v38 = vmul.f32 %v12738_v12, %v12738_v12  ;;  %v6959_v54 = vmul.f32 %v12627_v32, %v12627_v32  ;;  %v6969_v52 = vmul.f32 %v12698_v51, %v12698_v51 }
 0x393   : > { %6887 = vst [vmem:[%s12405_s9 + $0x138] sm:$0xff] %v12844_v43  ;;  %v6984_v19 = vmul.f32 %v12743_v40, %v12743_v40  ;;  %v6989_v31 = vmul.f32 %v12759_v27, %v12759_v27  ;;  %v6994_v49 = vmul.f32 %v12788_v62, %v12788_v62 }
 0x394   : > { %7061 = vxpose.xlu0.b32.cont [2/16] %v12637_v3, 128  ;;  %v6888_v3 = vlaneseq }
 0x396   : > { %7038 = vxpose.xlu1.b32.cont [11/16] %v6967_v45, 128 }
 0x398   : > { %7062 = vxpose.xlu0.b32.cont [3/16] %v12663_v59, 128  ;;  %v6889_v59 = vand.u32 127, %v6888_v3 }
 0x39a   : > { %7039 = vxpose.xlu1.b32.cont [12/16] %v6972_v25, 128  ;;  %v6893_v26 = vadd.s32 512, %v6889_v59 }
 0x39c   : > { %7063 = vxpose.xlu0.b32.cont [4/16] %v12686_v44, 128  ;;  %v6988_v44 = vmul.f32 %v12768_v16, %v12768_v16  ;;  %vm6905_vm1 = vcmp.lt.s32.totalorder %v6893_v26, 600 }
 0x39d   : > { %v6925_v14 = vsel %vm6905_vm1, %v12790_v30, 0.0  ;;  %v6979_v30 = vmul.f32 %v12728_v63, %v12728_v63  ;;  %v6955_v20 = vsel %vm6905_vm1, %v12844_v43, 0.0 }
 0x39e   : > { %7040 = vxpose.xlu1.b32.cont [13/16] %v6977_v22, 128  ;;  %v6965_v23 = vmul.f32 %v6925_v14, %v6925_v14  ;;  %v6995_v26 = vmul.f32 %v6955_v20, %v6955_v20 }
 0x3a0   : > { %7064 = vxpose.xlu0.b32.cont [5/16] %v12705_v5, 128  ;;  %v6993_v5 = vmul.f32 %v12797_v17, %v12797_v17 }
 0x3a2   : > { %7041 = vxpose.xlu1.b32.cont [14/16] %v6982_v48, 128 }
 0x3a4   : > { %7065 = vxpose.xlu0.b32.cont [6/16] %v12738_v12, 128  ;;  %v6920_v12 = vsel %vm6905_vm1, %v12761_v36, 0.0  ;;  %v6974_v36 = vmul.f32 %v12713_v18, %v12713_v18 }
 0x3a5   : > { %v6960_v39 = vmul.f32 %v6920_v12, %v6920_v12 }
 0x3a6   : > { %7042 = vxpose.xlu1.b32.cont [15/16] %v6987_v33, 128 }
 0x3a8   : > { %7066 = vxpose.xlu0.b32.cont [7/16] %v12768_v16, 128  ;;  %v6964_v16 = vmul.f32 %v12694_v6, %v12694_v6 }
 0x3aa   : > { %7043 = vxpose.xlu1.b32.end [16/16] %v6992_v56, 128 }
 0x3ac   : > { %7067 = vxpose.xlu0.b32.cont [8/16] %v12797_v17, 128 }
 0x3ae   : > { %7092 = vxpose.xlu1.b32.start [1/16] %v12627_v32, 128  ;;  %v6930_v32 = vsel %vm6905_vm1, %v12819_v24, 0.0 }
 0x3af   : > { %v6970_v46 = vmul.f32 %v6930_v32, %v6930_v32 }
 0x3b0   : > { %7068 = vxpose.xlu0.b32.cont [9/16] %v6958_v10, 128 }
 0x3b2   : > { %7093 = vxpose.xlu1.b32.cont [2/16] %v12694_v6, 128  ;;  %v6935_v6 = vsel %vm6905_vm1, %v12822_v1, 0.0 }
 0x3b3   : > { %v6975_v4 = vmul.f32 %v6935_v6, %v6935_v6 }
 0x3b4   : > { %7069 = vxpose.xlu0.b32.cont [10/16] %v6963_v47, 128 }
 0x3b6   : > { %7094 = vxpose.xlu1.b32.cont [3/16] %v12698_v51, 128  ;;  %v6940_v51 = vsel %vm6905_vm1, %v12827_v55, 0.0 }
 0x3b7   : > { %v6980_v45 = vmul.f32 %v6940_v51, %v6940_v51 }
 0x3b8   : > { %7070 = vxpose.xlu0.b32.cont [11/16] %v6968_v8, 128 }
 0x3ba   : > { %7095 = vxpose.xlu1.b32.cont [4/16] %v12713_v18, 128  ;;  %v6945_v18 = vsel %vm6905_vm1, %v12832_v42, 0.0 }
 0x3bb   : > { %v6985_v56 = vmul.f32 %v6945_v18, %v6945_v18 }
 0x3bc   : > { %7071 = vxpose.xlu0.b32.cont [12/16] %v6973_v34, 128 }
 0x3be   : > { %7096 = vxpose.xlu1.b32.cont [5/16] %v12728_v63, 128  ;;  %v6950_v63 = vsel %vm6905_vm1, %v12840_v21, 0.0 }
 0x3c0   : > { %7072 = vxpose.xlu0.b32.cont [13/16] %v6978_v35, 128  ;;  %v6990_v35 = vmul.f32 %v6950_v63, %v6950_v63 }
 0x3c2   : > { %7097 = vxpose.xlu1.b32.cont [6/16] %v12743_v40, 128 }
 0x3c4   : > { %7073 = vxpose.xlu0.b32.cont [14/16] %v6983_v38, 128 }
 0x3c6   : > { %7098 = vxpose.xlu1.b32.cont [7/16] %v12759_v27, 128 }
 0x3c8   : > { %7074 = vxpose.xlu0.b32.cont [15/16] %v6988_v44, 128 }
 0x3ca   : > { %7099 = vxpose.xlu1.b32.cont [8/16] %v12788_v62, 128 }
 0x3cc   : > { %v7012_v2 = vpop.trf.xlu0  ;;  %7075 = vxpose.xlu0.b32.end [16/16] %v6993_v5, 128 }
 0x3ce   : > { %7100 = vxpose.xlu1.b32.cont [9/16] %v6959_v54, 128 }
 0x3d0   : > { %v7013_v41 = vpop.trf.xlu0  ;;  %7124 = vxpose.xlu0.b32.start [1/16] %v6920_v12, 128 }
 0x3d1   : > { %v7156_v37 = vadd.f32 %v7013_v41, %v7012_v2 }
 0x3d2   : > { %7101 = vxpose.xlu1.b32.cont [10/16] %v6964_v16, 128 }
 0x3d4   : > { %v7014_v17 = vpop.trf.xlu0  ;;  %7125 = vxpose.xlu0.b32.cont [2/16] %v6925_v14, 128 }
 0x3d5   : > { %v7157_v27 = vadd.f32 %v7156_v37, %v7014_v17 }
 0x3d6   : > { %7102 = vxpose.xlu1.b32.cont [11/16] %v6969_v52, 128 }
 0x3d8   : > { %v7015_v11 = vpop.trf.xlu0  ;;  %7126 = vxpose.xlu0.b32.cont [3/16] %v6930_v32, 128 }
 0x3d9   : > { %v7158_v53 = vadd.f32 %v7157_v27, %v7015_v11 }
 0x3da   : > { %7103 = vxpose.xlu1.b32.cont [12/16] %v6974_v36, 128 }
 0x3dc   : > { %v7016_v13 = vpop.trf.xlu0  ;;  %7127 = vxpose.xlu0.b32.cont [4/16] %v6935_v6, 128 }
 0x3dd   : > { %v7159_v7 = vadd.f32 %v7158_v53, %v7016_v13 }
 0x3de   : > { %7104 = vxpose.xlu1.b32.cont [13/16] %v6979_v30, 128 }
 0x3e0   : > { %v7017_v61 = vpop.trf.xlu0  ;;  %7128 = vxpose.xlu0.b32.cont [5/16] %v6940_v51, 128 }
 0x3e1   : > { %v7160_v62 = vadd.f32 %v7159_v7, %v7017_v61 }
 0x3e2   : > { %7105 = vxpose.xlu1.b32.cont [14/16] %v6984_v19, 128 }
 0x3e4   : > { %v7018_v28 = vpop.trf.xlu0  ;;  %7129 = vxpose.xlu0.b32.cont [6/16] %v6945_v18, 128 }
 0x3e5   : > { %v7161_v60 = vadd.f32 %v7160_v62, %v7018_v28 }
 0x3e6   : > { %7106 = vxpose.xlu1.b32.cont [15/16] %v6989_v31, 128 }
 0x3e8   : > { %v7019_v57 = vpop.trf.xlu0  ;;  %7130 = vxpose.xlu0.b32.cont [7/16] %v6950_v63, 128 }
 0x3e9   : > { %v7162_v42 = vadd.f32 %v7161_v60, %v7019_v57 }
 0x3ea   : > { %7107 = vxpose.xlu1.b32.end [16/16] %v6994_v49, 128  ;;  %v7044_v40 = vpop.trf.xlu1 }
 0x3ec   : > { %v7020_v0 = vpop.trf.xlu0  ;;  %7131 = vxpose.xlu0.b32.cont [8/16] %v6955_v20, 128 }
 0x3ed   : > { %v7163_v50 = vadd.f32 %v7162_v42, %v7020_v0 }
 0x3ee   : > { %v7045_v24 = vpop.trf.xlu1 }
 0x3f0   : > { %v7021_v58 = vpop.trf.xlu0  ;;  %7132 = vxpose.xlu0.b32.cont [9/16] %v6960_v39, 128 }
 0x3f1   : > { %v7164_v43 = vadd.f32 %v7163_v50, %v7021_v58 }
 0x3f2   : > { %v7046_v1 = vpop.trf.xlu1 }
 0x3f4   : > { %v7022_v15 = vpop.trf.xlu0  ;;  %7133 = vxpose.xlu0.b32.cont [10/16] %v6965_v23, 128 }
 0x3f5   : > { %v7165_v22 = vadd.f32 %v7164_v43, %v7022_v15 }
 0x3f6   : > { %v7047_v55 = vpop.trf.xlu1 }
 0x3f8   : > { %v7023_v9 = vpop.trf.xlu0  ;;  %7134 = vxpose.xlu0.b32.cont [11/16] %v6970_v46, 128 }
 0x3f9   : > { %v7166_v33 = vadd.f32 %v7165_v22, %v7023_v9 }
 0x3fa   : > { %v7048_v29 = vpop.trf.xlu1 }
 0x3fc   : > { %v7024_v21 = vpop.trf.xlu0  ;;  %7135 = vxpose.xlu0.b32.cont [12/16] %v6975_v4, 128 }
 0x3fd   : > { %v7167_v47 = vadd.f32 %v7166_v33, %v7024_v21 }
 0x3fe   : > { %v7049_v25 = vpop.trf.xlu1 }
 0x400   : > { %v7025_v48 = vpop.trf.xlu0  ;;  %7136 = vxpose.xlu0.b32.cont [13/16] %v6980_v45, 128 }
 0x401   : > { %v7168_v34 = vadd.f32 %v7167_v47, %v7025_v48 }
 0x402   : > { %v7050_v10 = vpop.trf.xlu1 }
 0x404   : > { %v7026_v8 = vpop.trf.xlu0  ;;  %7137 = vxpose.xlu0.b32.cont [14/16] %v6985_v56, 128 }
 0x405   : > { %v7169_v38 = vadd.f32 %v7168_v34, %v7026_v8 }
 0x406   : > { %v7051_v3 = vpop.trf.xlu1 }
 0x408   : > { %v7027_v59 = vpop.trf.xlu0  ;;  %7138 = vxpose.xlu0.b32.cont [15/16] %v6990_v35, 128 }
 0x409   : > { %v7170_v44 = vadd.f32 %v7169_v38, %v7027_v59 }
 0x40a   : > { %v7052_v5 = vpop.trf.xlu1 }
 0x40b   : > { %v7171_v2 = vadd.f32 %v7170_v44, %v7044_v40 }
 0x40c   : > { %7139 = vxpose.xlu0.b32.end [16/16] %v6995_v26, 128  ;;  %v7076_v54 = vpop.trf.xlu0 }
 0x40d   : > { %v7172_v12 = vadd.f32 %v7171_v2, %v7045_v24 }
 0x40e   : > { %v7053_v41 = vpop.trf.xlu1 }
 0x40f   : > { %v7173_v16 = vadd.f32 %v7172_v12, %v7046_v1 }
 0x410   : > { %v7077_v14 = vpop.trf.xlu0 }
 0x411   : > { %v7174_v17 = vadd.f32 %v7173_v16, %v7047_v55 }
 0x412   : > { %v7054_v52 = vpop.trf.xlu1 }
 0x413   : > { %v7175_v32 = vadd.f32 %v7174_v17, %v7048_v29 }
 0x414   : > { %v7078_v11 = vpop.trf.xlu0 }
 0x415   : > { %v7176_v36 = vadd.f32 %v7175_v32, %v7049_v25 }
 0x416   : > { %v7055_v6 = vpop.trf.xlu1 }
 0x417   : > { %v7177_v13 = vadd.f32 %v7176_v36, %v7050_v10 }
 0x418   : > { %v7079_v30 = vpop.trf.xlu0 }
 0x419   : > { %v7178_v51 = vadd.f32 %v7177_v13, %v7051_v3 }
 0x41a   : > { %9182 = shalt.err (!%p9179_p3)
}
 0x41b   : > { %s9183_s4 = scalar_lea.hbm %s12930_s19, 5120  ;;  %s9187_s7 = scalar_lea.hbm %s13000_s2, 10240 }
 0x41c   : > { %p9184_p5 = scmp.ne.s32.totalorder %s12930_s19, %s9183_s4  ;;  %p9188_p7 = scmp.lt.s32.totalorder %s12930_s19, %s13000_s2 }
 0x41d   : > { %p9189_p10 = scmp.lt.s32.totalorder %s9187_s7, %s9183_s4 }
 0x41e   : > { %p9185_p6 = pnand %p9184_p5, %p9358_p9 }
 0x41f   : > { %p9190_p13 = por %p9189_p10, %p9188_p7 }
 0x420   : > { %p9186_p4 = pneg %p9185_p6 }
 0x422   : > { %p9191_p8 = pnand %p9190_p13, %p9186_p4 }
 0x424   : > { %9194 = shalt.err (!%p9191_p8)
}
 0x425   : > { %s9284_s10 = smov 640   ;;  %s9285_s29 = smov 40   ;;  %v7056_v61 = vpop.trf.xlu1  ;;  %v7179_v19 = vadd.f32 %v7178_v51, %v7052_v5  ;;  %v7080_v18 = vpop.trf.xlu0 }
 0x426   : > { %7729 = dma.vmem_to_hbm [thread:$0]  (%p9358_p9), %s12932_s11, 5120, %s12930_s19, %s7243_s21, %s9284_s10, %s9284_s10, %s9285_s29  }
 0x427   : > { %v7180_v28 = vadd.f32 %v7179_v19, %v7053_v41  ;;  %s7719_s11 = sshll.u32 %s9271_s15, 4  ;;  %s216_s18 = scalar_lea.vmem [#allocation6], %s9391_s22 }
 0x428   : > { %s7279_s19 = sshll.u32 %s216_s18, 4  ;;  %s7277_s28 = scalar_lea.hbm %s13001_s3, %s7719_s11  ;;  %s7280_s19 = int_to_ptr.vmem [resolvable:$true] %s7279_s19 }
 0x429   : > { %v7057_v31 = vpop.trf.xlu1  ;;  %v7181_v63 = vadd.f32 %v7180_v28, %v7054_v52  ;;  %v7081_v57 = vpop.trf.xlu0  ;;  %s7248_s24 = scalar_lea.sflag [#allocation7], %s9391_s22  ;;  %s9195_s30 = scalar_lea.vmem %s7280_s19, 16 }
 0x42a   : > { %p9196_p11 = scmp.ne.s32.totalorder %s7280_s19, %s9195_s30  ;;  %s9286_s4 = smov [#allocation6]  }
 0x42b   : > { %v7182_v49 = vadd.f32 %v7181_v63, %v7055_v6  ;;  %s9199_s5 = sshll.u32 %s9286_s4, 4  ;;  %s9200_s5 = int_to_ptr.vmem [resolvable:$false] %s9199_s5 }
 0x42c   : > { %p9197_p12 = pnand %p9196_p11, %p9358_p9  ;;  %s9201_s15 = scalar_lea.vmem %s9200_s5, 32 }
 0x42d   : > { %v7058_v40 = vpop.trf.xlu1  ;;  %v7183_v20 = vadd.f32 %v7182_v49, %v7056_v61  ;;  %v7082_v0 = vpop.trf.xlu0  ;;  %p9202_p1 = scmp.lt.s32.totalorder %s7280_s19, %s9200_s5  ;;  %p9203_p2 = scmp.lt.s32.totalorder %s9201_s15, %s9195_s30 }
 0x42e   : > { %p9198_p0 = pneg %p9197_p12 }
 0x42f   : > { %v7184_v37 = vadd.f32 %v7183_v20, %v7057_v31  ;;  %p9204_p3 = por %p9203_p2, %p9202_p1 }
 0x431   : > { %v7059_v39 = vpop.trf.xlu1  ;;  %v7185_v24 = vadd.f32 %v7184_v37, %v7058_v40  ;;  %v7083_v27 = vpop.trf.xlu0  ;;  %p9205_p5 = pnand %p9204_p3, %p9198_p0 }
 0x433   : > { %v7186_v58 = vadd.f32 %v7185_v24, %v7059_v39 }
 0x435   : > { %v7108_v53 = vpop.trf.xlu1  ;;  %v7187_v23 = vadd.f32 %v7186_v58, %v7076_v54  ;;  %v7084_v1 = vpop.trf.xlu0 }
 0x437   : > { %v7188_v7 = vadd.f32 %v7187_v23, %v7077_v14 }
 0x439   : > { %v7109_v15 = vpop.trf.xlu1  ;;  %v7189_v62 = vadd.f32 %v7188_v7, %v7078_v11  ;;  %v7085_v46 = vpop.trf.xlu0 }
 0x43b   : > { %v7190_v55 = vadd.f32 %v7189_v62, %v7079_v30 }
 0x43d   : > { %v7110_v60 = vpop.trf.xlu1  ;;  %v7191_v9 = vadd.f32 %v7190_v55, %v7080_v18  ;;  %v7086_v42 = vpop.trf.xlu0 }
 0x43f   : > { %v7192_v4 = vadd.f32 %v7191_v9, %v7081_v57 }
 0x441   : > { %v7111_v29 = vpop.trf.xlu1  ;;  %v7193_v50 = vadd.f32 %v7192_v4, %v7082_v0  ;;  %v7087_v21 = vpop.trf.xlu0 }
 0x443   : > { %v7194_v43 = vadd.f32 %v7193_v50, %v7083_v27 }
 0x445   : > { %v7112_v45 = vpop.trf.xlu1  ;;  %v7195_v25 = vadd.f32 %v7194_v43, %v7084_v1  ;;  %v7088_v22 = vpop.trf.xlu0 }
 0x447   : > { %v7196_v48 = vadd.f32 %v7195_v25, %v7085_v46 }
 0x449   : > { %v7113_v33 = vpop.trf.xlu1  ;;  %v7197_v56 = vadd.f32 %v7196_v48, %v7086_v42  ;;  %v7089_v10 = vpop.trf.xlu0 }
 0x44b   : > { %v7198_v47 = vadd.f32 %v7197_v56, %v7087_v21 }
 0x44d   : > { %v7114_v8 = vpop.trf.xlu1  ;;  %v7199_v34 = vadd.f32 %v7198_v47, %v7088_v22  ;;  %v7090_v35 = vpop.trf.xlu0 }
 0x44f   : > { %v7200_v3 = vadd.f32 %v7199_v34, %v7089_v10 }
 0x451   : > { %v7115_v38 = vpop.trf.xlu1  ;;  %v7201_v59 = vadd.f32 %v7200_v3, %v7090_v35  ;;  %v7091_v44 = vpop.trf.xlu0 }
 0x453   : > { %v7202_v26 = vadd.f32 %v7201_v59, %v7091_v44 }
 0x455   : > { %v7116_v5 = vpop.trf.xlu1  ;;  %v7203_v2 = vadd.f32 %v7202_v26, %v7108_v53  ;;  %v7140_v54 = vpop.trf.xlu0 }
 0x457   : > { %v7204_v12 = vadd.f32 %v7203_v2, %v7109_v15 }
 0x459   : > { %v7117_v41 = vpop.trf.xlu1  ;;  %v7205_v16 = vadd.f32 %v7204_v12, %v7110_v60  ;;  %v7141_v14 = vpop.trf.xlu0 }
 0x45b   : > { %v7206_v17 = vadd.f32 %v7205_v16, %v7111_v29 }
 0x45d   : > { %v7118_v52 = vpop.trf.xlu1  ;;  %v7207_v32 = vadd.f32 %v7206_v17, %v7112_v45  ;;  %v7142_v11 = vpop.trf.xlu0 }
 0x45f   : > { %v7208_v36 = vadd.f32 %v7207_v32, %v7113_v33 }
 0x461   : > { %v7119_v6 = vpop.trf.xlu1  ;;  %v7209_v13 = vadd.f32 %v7208_v36, %v7114_v8  ;;  %v7143_v30 = vpop.trf.xlu0 }
 0x463   : > { %v7210_v51 = vadd.f32 %v7209_v13, %v7115_v38 }
 0x465   : > { %v7120_v61 = vpop.trf.xlu1  ;;  %v7211_v19 = vadd.f32 %v7210_v51, %v7116_v5  ;;  %v7144_v18 = vpop.trf.xlu0 }
 0x467   : > { %v7212_v28 = vadd.f32 %v7211_v19, %v7117_v41 }
 0x469   : > { %v7121_v31 = vpop.trf.xlu1  ;;  %v7213_v63 = vadd.f32 %v7212_v28, %v7118_v52  ;;  %v7145_v57 = vpop.trf.xlu0 }
 0x46b   : > { %v7214_v49 = vadd.f32 %v7213_v63, %v7119_v6 }
 0x46d   : > { %v7122_v40 = vpop.trf.xlu1  ;;  %v7215_v20 = vadd.f32 %v7214_v49, %v7120_v61  ;;  %v7146_v0 = vpop.trf.xlu0 }
 0x46f   : > { %v7216_v37 = vadd.f32 %v7215_v20, %v7121_v31 }
 0x471   : > { %v7123_v39 = vpop.trf.xlu1  ;;  %v7217_v24 = vadd.f32 %v7216_v37, %v7122_v40  ;;  %v7147_v27 = vpop.trf.xlu0 }
 0x473   : > { %v7218_v58 = vadd.f32 %v7217_v24, %v7123_v39 }
 0x475   : > { %v7219_v53 = vadd.f32 %v7218_v58, %v7140_v54  ;;  %v7148_v23 = vpop.trf.xlu0 }
 0x477   : > { %v7220_v1 = vadd.f32 %v7219_v53, %v7141_v14 }
 0x479   : > { %v7221_v7 = vadd.f32 %v7220_v1, %v7142_v11  ;;  %v7149_v15 = vpop.trf.xlu0 }
 0x47b   : > { %v7222_v62 = vadd.f32 %v7221_v7, %v7143_v30 }
 0x47d   : > { %v7223_v46 = vadd.f32 %v7222_v62, %v7144_v18  ;;  %v7150_v55 = vpop.trf.xlu0 }
 0x47f   : > { %v7224_v60 = vadd.f32 %v7223_v46, %v7145_v57 }
 0x481   : > { %v7225_v9 = vadd.f32 %v7224_v60, %v7146_v0  ;;  %v7151_v42 = vpop.trf.xlu0 }
 0x483   : > { %v7226_v4 = vadd.f32 %v7225_v9, %v7147_v27 }
 0x485   : > { %v7227_v29 = vadd.f32 %v7226_v4, %v7148_v23  ;;  %v7152_v50 = vpop.trf.xlu0 }
 0x487   : > { %v7228_v21 = vadd.f32 %v7227_v29, %v7149_v15 }
 0x489   : > { %v7229_v43 = vadd.f32 %v7228_v21, %v7150_v55  ;;  %v7153_v45 = vpop.trf.xlu0 }
 0x48b   : > { %v7230_v25 = vadd.f32 %v7229_v43, %v7151_v42 }
 0x48d   : > { %v7231_v22 = vadd.f32 %v7230_v25, %v7152_v50  ;;  %v7154_v48 = vpop.trf.xlu0 }
 0x48f   : > { %v7232_v33 = vadd.f32 %v7231_v22, %v7153_v45 }
 0x491   : > { %v7233_v56 = vadd.f32 %v7232_v33, %v7154_v48  ;;  %v7155_v10 = vpop.trf.xlu0 }
 0x493   : > { %v7234_v47 = vadd.f32 %v7233_v56, %v7155_v10 }
 0x495   : > { %v7235_v8 = vrot.slane %v7234_v47, 4 }
 0x497   : > { %v7236_v34 = vadd.f32 %v7235_v8, %v7234_v47 }
 0x499   : > { %v7237_v35 = vrot.slane %v7236_v34, 2 }
 0x49b   : > { %v7238_v3 = vadd.f32 %v7237_v35, %v7236_v34 }
 0x49d   : > { %v7239_v38 = vrot.slane %v7238_v3, 1 }
 0x49f   : > { %v7240_v59 = vadd.f32 %v7239_v38, %v7238_v3 }
 0x4a1   : > { %7241 = vst [vmem:[%s216_s18] sm:$0x1] %v7240_v59 }
 0x4a2   : > { %9208 = shalt.err (!%p9205_p5)
}
 0x4a3   : > { %s9209_s6 = scalar_lea.hbm %s7277_s28, 16  ;;  %s9213_s8 = scalar_lea.hbm %s13001_s3, 32 }
 0x4a4   : > { %p9210_p6 = scmp.ne.s32.totalorder %s7277_s28, %s9209_s6  ;;  %p9214_p10 = scmp.lt.s32.totalorder %s7277_s28, %s13001_s3 }
 0x4a5   : > { %p9215_p13 = scmp.lt.s32.totalorder %s9213_s8, %s9209_s6 }
 0x4a6   : > { %p9211_p4 = pnand %p9210_p6, %p9358_p9 }
 0x4a7   : > { %p9216_p8 = por %p9215_p13, %p9214_p10 }
 0x4a8   : > { %p9212_p7 = pneg %p9211_p4 }
 0x4aa   : > { %p9217_p11 = pnand %p9216_p8, %p9212_p7 }
 0x4ac   : > { %9220 = shalt.err (!%p9217_p11)
}
 0x4ad   : > { %7730 = dma.vmem_to_hbm [thread:$0]  (%p9358_p9), %s7280_s19, 16, %s7277_s28, %s7248_s24  }
 0x4ae PF: > { %s7291_s29 = sand.u32 1, %s9259_s12   ;;  %p13301_p12 = scmp.ne.s32.totalorder %s13008_s27, 0 }
 0x4af   : > { %p13302_p0 = scmp.ge.s32.totalorder %s9279_s17, 2  ;;  %s7292_s11 = scalar_lea.sflag [#allocation4], %s7291_s29 }
 0x4b1   : > { %p7738_p1 = pnand %p13302_p0, %p13301_p12 }
 0x4b3   : > { %p7739_p2 = pneg %p7738_p1 }
 0x4b5   : > { %9250 = dma.done.wait (%p7739_p2), %s7292_s11, 5120  }
 0x4b6   : > { %9252 = vsyncadd (%p7739_p2), %s7292_s11, 4294962176  ;;  %s7301_s18 = scalar_lea.sflag [#allocation7], %s7291_s29 }
 0x4b7   : > { %9254 = dma.done.wait (%p7739_p2), %s7301_s18, 16  }
 0x4b8   : > { %9256 = vsyncadd (%p7739_p2), %s7301_s18, 4294967280  ;;  %s23_s17 = sadd.s32 1, %s9279_s17   ;;  %s13303_s12 = smov %s9263_s13 }
 0x4b9   : > { %p20_p3 = scmp.ge.s32.totalorder %s23_s17, 4   ;;  %s13304_s13 = smov %s9267_s14 }
 0x4ba   : > { %s13305_s14 = smov %s9363_s26  ;;  %s13306_s15 = smov %s9275_s16 }
 0x4bb   : > { %s13307_s16 = smov %s13309_s20  ;;  %22 = sbr.rel (!%p20_p3) target bundleno = 8 (0x8), region = 90 }
 0x4c0   :  { %7305 = vsyncpa [#allocation3], 1 }
 0x4c1   :  { %7307 = vsyncpa [#allocation3 + $0x1], 1 }
 0x4c2   :  { %7308 = vsyncpa [#allocation4], 1 }
 0x4c3   :  { %7310 = vsyncpa [#allocation4 + $0x1], 1 }
 0x4c4   :  { %7311 = vsyncpa [#allocation7], 1 }
 0x4c5   :  { %7313 = vsyncpa [#allocation7 + $0x1], 1 }

</bundles_post_ra>
